<compile_context>
chip_gen: v7x
topology: tpu7x:2x2x1
jax: 0.10.0
libtpu: 0.0.40
codegen_flags: <defaults>
</compile_context>

<pallas_src>
import functools

import jax
import jax.numpy as jnp
from jax.experimental import pallas as pl
from jax.experimental.pallas import tpu as pltpu


def _round_up(v, m):
    return -(-v // m) * m


def _vmem_limit_bytes():
    cap = 64 * 1024 * 1024  # conservative fallback (v7x per-TC VMEM)
    try:
        info = pltpu.get_tpu_info()
        cap = int(getattr(info, "vmem_capacity_bytes", cap))
    except Exception:
        pass
    return min(cap * 3 // 4, 96 * 1024 * 1024)


def _pick_block_rows(n_src_pad, out_pad, heads, f, vmem_budget, requested=128):
    """Largest destination-row tile whose working set stays well under the VMEM budget."""
    def est(tm):
        adj = 2 * tm * n_src_pad                              # int8 adj tile, double-buffered
        outb = 2 * tm * out_pad * 4                           # f32 out tile, double-buffered
        dstb = 2 * tm * 2 * heads * 4                         # [alpha_dst | m] tile
        resident = n_src_pad * heads * (f + 1) * 2 + heads * n_src_pad * 4
        temps = 4 * tm * n_src_pad * 4                        # e / p / adjf f32 working set
        return adj + outb + dstb + resident + temps
    tm = requested
    while tm > 8 and est(tm) > vmem_budget // 2:
        tm //= 2
    return max(tm, 8)


def _gat_layer_kernel(src_ref, dst_ref, haug_ref, bias_ref, adj_ref, out_ref, *,
                      heads, out_per_head, out_dim, concat,
                      apply_elu, apply_log_softmax):
    """One GATConv layer over a tile of destination rows.

    src_ref : [H, Ns]        f32  alpha_src for all source nodes (transposed, VMEM-resident)
    dst_ref : [TM, 2*H]      f32  [alpha_dst | m] for this tile's destination rows, where
                                  m[i,h] = leaky_relu(alpha_dst[i,h] + max_j alpha_src[j,h])
    haug_ref: [Ns, H*(F+1)]  bf16 per head: F projected-feature columns + one ones column
    bias_ref: [1, out_dim]   f32
    adj_ref : [TM, Ns]       int8 adj[i, j] = 1 iff edge j -> i (self-loops included)
    out_ref : [TM, out_pad]  f32  lane-dense (>=128-lane) padded output slab
    """
    F = out_per_head
    Fa = F + 1

    src_t = src_ref[...]                            # [H, Ns]
    dst = dst_ref[...]                              # [TM, 2H]
    haug = haug_ref[...]                            # [Ns, H*(F+1)] bf16

    # Hoisted adjacency weights (exact-zero mask), reused by every head.
    adjf = adj_ref[...].astype(jnp.float32)         # [TM, Ns]

    outs = []
    acc_mean = None
    for hd in range(heads):
        a_d = dst[:, hd:hd + 1]                     # [TM, 1]
        m = dst[:, heads + hd:heads + hd + 1]       # [TM, 1]  stability shift (>= row max)
        e = a_d + src_t[hd:hd + 1, :]               # [TM, Ns]
        e = jnp.maximum(e, 0.2 * e)                 # leaky_relu(negative_slope=0.2)
        p = jnp.exp(e - m) * adjf                   # [TM, Ns] unnormalized softmax weights
        # One bf16 MXU matmul yields both the aggregate and the softmax denominator
        # (ones column folded into haug) -> no cross-lane reductions in the kernel.
        agg_s = jnp.dot(p.astype(jnp.bfloat16), haug[:, hd * Fa:(hd + 1) * Fa],
                        preferred_element_type=jnp.float32)      # [TM, F+1]
        out_h = agg_s[:, :F] * pl.reciprocal(agg_s[:, F:Fa], approx=True)
        if concat:
            outs.append(out_h)
        else:
            acc_mean = out_h if acc_mean is None else acc_mean + out_h

    if concat:
        res = outs[0] if heads == 1 else jnp.concatenate(outs, axis=1)   # [TM, H*F]
    else:
        res = acc_mean * jnp.float32(1.0 / heads)

    res = res + bias_ref[...]

    if apply_elu:
        # Clamp exp argument so the unselected branch never overflows.
        res = jnp.where(res > 0, res, jnp.exp(jnp.minimum(res, 0.0)) - 1.0)

    if apply_log_softmax:
        mm = jnp.max(res, axis=1, keepdims=True)
        sh = res - mm
        res = sh - jnp.log(jnp.sum(jnp.exp(sh), axis=1, keepdims=True))

    out_pad = out_ref.shape[1]
    if out_pad > out_dim:   # lane-dense store: pad the class/feature dim with zeros
        res = jnp.concatenate(
            [res, jnp.zeros((res.shape[0], out_pad - out_dim), res.dtype)], axis=1)
    out_ref[...] = res.astype(out_ref.dtype)


def gat_layer(x, w, att_src, att_dst, bias, adj, *, heads, out_per_head, concat,
              apply_elu=False, apply_log_softmax=False, block_rows=128):
    N = x.shape[0]
    F = out_per_head
    out_dim = heads * F if concat else F
    out_pad = max(_round_up(out_dim, 128), 128)

    # ---- Grid-invariant precompute, hoisted out of the kernel (plain XLA) ----
    xf = x.astype(jnp.float32)
    wf = w.astype(jnp.float32)
    h_full = jnp.dot(xf, wf)                                    # [N, H*F]
    h3 = h_full.reshape(N, heads, F)
    alpha_src = jnp.sum(h3 * att_src[None, :, :], axis=-1)      # [N, H]
    alpha_dst = jnp.sum(h3 * att_dst[None, :, :], axis=-1)      # [N, H]
    # Monotone bound replaces the per-row XLU max: m >= masked row max, and softmax is
    # shift-invariant, so the result is exact while exp(e - m) stays <= ~1.
    src_max = jnp.max(alpha_src, axis=0)                        # [H]
    m_full = jax.nn.leaky_relu(alpha_dst + src_max[None, :], negative_slope=0.2)

    vmem_budget = _vmem_limit_bytes()
    n_src_pad = _round_up(N, 128)
    tm = _pick_block_rows(n_src_pad, out_pad, heads, F, vmem_budget, requested=block_rows)
    n_dst_pad = _round_up(N, tm)
    grid = (n_dst_pad // tm,)

    # Source-axis padding (lanes): padded columns contribute nothing (adj column is 0).
    alpha_src_t = jnp.pad(alpha_src.T, ((0, 0), (0, n_src_pad - N)))          # [H, Ns]
    ones = jnp.ones((N, heads, 1), jnp.float32)
    h_aug = jnp.concatenate([h3, ones], axis=-1).reshape(N, heads * (F + 1))
    h_aug = jnp.pad(h_aug, ((0, n_src_pad - N), (0, 0))).astype(jnp.bfloat16)  # [Ns, H*(F+1)]

    # Destination-axis padding (rows): padded rows attend to node 0 so they stay finite.
    dst_terms = jnp.pad(jnp.concatenate([alpha_dst, m_full], axis=1),
                        ((0, n_dst_pad - N), (0, 0)))                          # [Nd, 2H]
    adj_p = jnp.pad(adj.astype(jnp.int8), ((0, n_dst_pad - N), (0, n_src_pad - N)))
    if n_dst_pad > N:
        adj_p = adj_p.at[N:, 0].set(1)

    bias_f = bias.astype(jnp.float32).reshape(1, out_dim)

    kernel = functools.partial(
        _gat_layer_kernel, heads=heads, out_per_head=F, out_dim=out_dim, concat=concat,
        apply_elu=apply_elu, apply_log_softmax=apply_log_softmax)

    flops = int(2 * heads * n_dst_pad * n_src_pad * (F + 1)       # aggregation matmuls
                + 5 * heads * n_dst_pad * n_src_pad)              # [TM, Ns] elementwise
    transcendentals = int(heads * n_dst_pad * n_src_pad + 2 * n_dst_pad * out_dim)
    bytes_accessed = int(adj_p.size                                # int8
                         + alpha_src_t.size * 4 + dst_terms.size * 4
                         + h_aug.size * 2 + bias_f.size * 4
                         + n_dst_pad * out_pad * 4)

    out = pl.pallas_call(
        kernel,
        out_shape=jax.ShapeDtypeStruct((n_dst_pad, out_pad), jnp.float32),
        grid_spec=pltpu.PrefetchScalarGridSpec(
            num_scalar_prefetch=0,
            grid=grid,
            in_specs=[
                pl.BlockSpec((heads, n_src_pad), lambda i: (0, 0)),            # alpha_src_t
                pl.BlockSpec((tm, 2 * heads), lambda i: (i, 0)),               # [a_dst | m]
                pl.BlockSpec((n_src_pad, heads * (F + 1)), lambda i: (0, 0)),  # h_aug (bf16)
                pl.BlockSpec((1, out_dim), lambda i: (0, 0)),                  # bias
                pl.BlockSpec((tm, n_src_pad), lambda i: (i, 0)),               # adj tile (int8)
            ],
            out_specs=pl.BlockSpec((tm, out_pad), lambda i: (i, 0)),
        ),
        compiler_params=pltpu.CompilerParams(
            dimension_semantics=("parallel",),
            vmem_limit_bytes=vmem_budget),
        cost_estimate=pl.CostEstimate(
            flops=flops, transcendentals=transcendentals, bytes_accessed=bytes_accessed),
    )(alpha_src_t, dst_terms, h_aug, bias_f, adj_p)

    return out[:N, :out_dim]


def gat_forward(x, adj, params, *, heads):
    # F.dropout(p=0.6, training=False) is the identity at inference.
    h1 = gat_layer(x, params["w1"], params["as1"], params["ad1"], params["b1"], adj,
                   heads=heads, out_per_head=params["hidden"], concat=True,
                   apply_elu=True)
    out = gat_layer(h1, params["w2"], params["as2"], params["ad2"], params["b2"], adj,
                    heads=1, out_per_head=params["out"], concat=False,
                    apply_log_softmax=True)
    return out


def gat_reference(x, adj, params, *, heads):
    """Pure-JAX (f32, exact softmax) reference of the same forward pass."""
    def layer(x, w, a_s, a_d, b, heads, F, concat):
        N = x.shape[0]
        h3 = (x @ w).reshape(N, heads, F)
        asrc = jnp.sum(h3 * a_s[None], -1)                  # [N, H]
        adst = jnp.sum(h3 * a_d[None], -1)                  # [N, H]
        e = adst[:, None, :] + asrc[None, :, :]             # [Ndst, Nsrc, H]
        e = jax.nn.leaky_relu(e, negative_slope=0.2)
        e = jnp.where((adj > 0)[:, :, None], e, -jnp.inf)
        alpha = jax.nn.softmax(e, axis=1)
        out = jnp.einsum('ijh,jhf->ihf', alpha, h3)
        out = out.reshape(N, heads * F) if concat else out.mean(axis=1)
        return out + b
    h1 = jax.nn.elu(layer(x, params["w1"], params["as1"], params["ad1"],
                          params["b1"], heads, params["hidden"], True))
    o = layer(h1, params["w2"], params["as2"], params["ad2"],
              params["b2"], 1, params["out"], False)
    return jax.nn.log_softmax(o, axis=1)


if __name__ == "__main__":
    key = jax.random.PRNGKey(0)
    N, C_in, hidden, C_out, heads = 256, 16, 8, 4, 8
    ks = jax.random.split(key, 10)

    x = jax.random.normal(ks[0], (N, C_in), jnp.float32)

    # Small deterministic directed graph: a ring plus random extra edges.
    E_extra = 1024
    src = jnp.concatenate([jnp.arange(N), jax.random.randint(ks[1], (E_extra,), 0, N)])
    dst = jnp.concatenate([(jnp.arange(N) + 1) % N, jax.random.randint(ks[2], (E_extra,), 0, N)])

    # Dense int8 adjacency mask with self-loops: adj[i, j] = 1 iff edge j -> i.
    adj = jnp.zeros((N, N), jnp.int8).at[dst, src].set(1)
    adj = adj.at[jnp.arange(N), jnp.arange(N)].set(1)

    def glorot(k, shape):
        lim = (6.0 / (shape[0] + shape[-1])) ** 0.5
        return jax.random.uniform(k, shape, jnp.float32, -lim, lim)

    params = {
        # GATConv(in_channels=C_in, hidden, heads=8, concat=True)
        "w1":  glorot(ks[3], (C_in, heads * hidden)),
        "as1": glorot(ks[4], (heads, hidden)),
        "ad1": glorot(ks[5], (heads, hidden)),
        "b1":  jnp.zeros((1, heads * hidden), jnp.float32),
        # GATConv(hidden*heads, out_channels, heads=1, concat=False)
        "w2":  glorot(ks[6], (heads * hidden, C_out)),
        "as2": glorot(ks[7], (1, C_out)),
        "ad2": glorot(ks[8], (1, C_out)),
        "b2":  jnp.zeros((1, C_out), jnp.float32),
        "hidden": hidden,
        "out": C_out,
    }

    out = gat_forward(x, adj, params, heads=heads)
    jax.block_until_ready(out)

    assert out.shape == (N, C_out)
    assert bool(jnp.all(jnp.isfinite(out)))
    # log_softmax rows must exponentiate to a probability distribution.
    row_sums = jnp.sum(jnp.exp(out), axis=1)
    assert bool(jnp.allclose(row_sums, 1.0, atol=1e-3))
    # Structural correctness against an exact f32 reference (tolerance covers bf16 MXU
    # inputs + approximate softmax reciprocal).
    ref = gat_reference(x, adj, params, heads=heads)
    assert bool(jnp.max(jnp.abs(out - ref)) < 0.25)
    print("KERNEL_OK")
</pallas_src>

<mosaic_0001>
module attributes {stable_mosaic.version = 11 : i64} {
  func.func @_gat_layer_kernel(%arg0: i32, %arg1: memref<8x256xf32, #tpu.memory_space<vmem>>, %arg2: memref<128x16xf32, #tpu.memory_space<vmem>>, %arg3: memref<256x72xbf16, #tpu.memory_space<vmem>>, %arg4: memref<1x64xf32, #tpu.memory_space<vmem>>, %arg5: memref<128x256xi8, #tpu.memory_space<vmem>>, %arg6: memref<128x128xf32, #tpu.memory_space<vmem>>) attributes {dimension_semantics = [#tpu.dimension_semantics<parallel>], iteration_bounds = array<i64: 2>, scalar_prefetch = 0 : i64, scratch_operands = 0 : i64, tpu.core_type = #tpu.core_type<tc>, window_params = [{pipeline_mode = #tpu.pipeline_mode<synchronous>, transform_indices = @transform_0, window_bounds = array<i64: 8, 256>}, {transform_indices = @transform_1, window_bounds = array<i64: 128, 16>}, {pipeline_mode = #tpu.pipeline_mode<synchronous>, transform_indices = @transform_2, window_bounds = array<i64: 256, 72>}, {pipeline_mode = #tpu.pipeline_mode<synchronous>, transform_indices = @transform_3, window_bounds = array<i64: 1, 64>}, {transform_indices = @transform_4, window_bounds = array<i64: 128, 256>}, {transform_indices = @transform_5, window_bounds = array<i64: 128, 128>}]} {
    %c0 = arith.constant 0 : index
    %c0_0 = arith.constant 0 : index
    %0 = vector.load %arg1[%c0, %c0_0] : memref<8x256xf32, #tpu.memory_space<vmem>>, vector<8x256xf32>
    %c0_1 = arith.constant 0 : index
    %c0_2 = arith.constant 0 : index
    %1 = vector.load %arg2[%c0_1, %c0_2] : memref<128x16xf32, #tpu.memory_space<vmem>>, vector<128x16xf32>
    %c0_3 = arith.constant 0 : index
    %c0_4 = arith.constant 0 : index
    %2 = vector.load %arg3[%c0_3, %c0_4] : memref<256x72xbf16, #tpu.memory_space<vmem>>, vector<256x72xbf16>
    %c0_5 = arith.constant 0 : index
    %c0_6 = arith.constant 0 : index
    %3 = vector.load %arg5[%c0_5, %c0_6] : memref<128x256xi8, #tpu.memory_space<vmem>>, vector<128x256xi8>
    %4 = arith.sitofp %3 : vector<128x256xi8> to vector<128x256xf32>
    %5 = vector.extract_strided_slice %1 {offsets = [0, 0], sizes = [128, 1], strides = [1, 1]} : vector<128x16xf32> to vector<128x1xf32>
    %6 = vector.extract_strided_slice %1 {offsets = [0, 8], sizes = [128, 1], strides = [1, 1]} : vector<128x16xf32> to vector<128x1xf32>
    %7 = vector.extract_strided_slice %0 {offsets = [0, 0], sizes = [1, 256], strides = [1, 1]} : vector<8x256xf32> to vector<1x256xf32>
    %8 = vector.broadcast %5 : vector<128x1xf32> to vector<128x256xf32>
    %9 = vector.broadcast %7 : vector<1x256xf32> to vector<128x256xf32>
    %10 = arith.addf %8, %9 : vector<128x256xf32>
    %cst = arith.constant 2.000000e-01 : f32
    %11 = vector.broadcast %cst : f32 to vector<128x256xf32>
    %12 = arith.mulf %11, %10 : vector<128x256xf32>
    %13 = arith.maximumf %10, %12 : vector<128x256xf32>
    %14 = vector.broadcast %6 : vector<128x1xf32> to vector<128x256xf32>
    %15 = arith.subf %13, %14 : vector<128x256xf32>
    %16 = math.exp %15 : vector<128x256xf32>
    %17 = arith.mulf %16, %4 : vector<128x256xf32>
    %18 = arith.truncf %17 : vector<128x256xf32> to vector<128x256xbf16>
    %19 = vector.extract_strided_slice %2 {offsets = [0, 0], sizes = [256, 9], strides = [1, 1]} : vector<256x72xbf16> to vector<256x9xbf16>
    %cst_7 = arith.constant dense<0.000000e+00> : vector<128x9xf32>
    %20 = tpu.matmul %18, %19, %cst_7 {dimension_numbers = #tpu.dot_dimension_numbers<[1], [0], [0], [1], [0, 0, 1, 1], [], []>} : vector<128x256xbf16>, vector<256x9xbf16>, vector<128x9xf32> -> vector<128x9xf32>
    %21 = vector.extract_strided_slice %20 {offsets = [0, 0], sizes = [128, 8], strides = [1, 1]} : vector<128x9xf32> to vector<128x8xf32>
    %22 = vector.extract_strided_slice %20 {offsets = [0, 8], sizes = [128, 1], strides = [1, 1]} : vector<128x9xf32> to vector<128x1xf32>
    %23 = tpu.reciprocal %22 {approx = true} : vector<128x1xf32> -> vector<128x1xf32>
    %24 = vector.broadcast %23 : vector<128x1xf32> to vector<128x8xf32>
    %25 = arith.mulf %21, %24 : vector<128x8xf32>
    %26 = vector.extract_strided_slice %1 {offsets = [0, 1], sizes = [128, 1], strides = [1, 1]} : vector<128x16xf32> to vector<128x1xf32>
    %27 = vector.extract_strided_slice %1 {offsets = [0, 9], sizes = [128, 1], strides = [1, 1]} : vector<128x16xf32> to vector<128x1xf32>
    %28 = vector.extract_strided_slice %0 {offsets = [1, 0], sizes = [1, 256], strides = [1, 1]} : vector<8x256xf32> to vector<1x256xf32>
    %29 = vector.broadcast %26 : vector<128x1xf32> to vector<128x256xf32>
    %30 = vector.broadcast %28 : vector<1x256xf32> to vector<128x256xf32>
    %31 = arith.addf %29, %30 : vector<128x256xf32>
    %cst_8 = arith.constant 2.000000e-01 : f32
    %32 = vector.broadcast %cst_8 : f32 to vector<128x256xf32>
    %33 = arith.mulf %32, %31 : vector<128x256xf32>
    %34 = arith.maximumf %31, %33 : vector<128x256xf32>
    %35 = vector.broadcast %27 : vector<128x1xf32> to vector<128x256xf32>
    %36 = arith.subf %34, %35 : vector<128x256xf32>
    %37 = math.exp %36 : vector<128x256xf32>
    %38 = arith.mulf %37, %4 : vector<128x256xf32>
    %39 = arith.truncf %38 : vector<128x256xf32> to vector<128x256xbf16>
    %40 = vector.extract_strided_slice %2 {offsets = [0, 9], sizes = [256, 9], strides = [1, 1]} : vector<256x72xbf16> to vector<256x9xbf16>
    %cst_9 = arith.constant dense<0.000000e+00> : vector<128x9xf32>
    %41 = tpu.matmul %39, %40, %cst_9 {dimension_numbers = #tpu.dot_dimension_numbers<[1], [0], [0], [1], [0, 0, 1, 1], [], []>} : vector<128x256xbf16>, vector<256x9xbf16>, vector<128x9xf32> -> vector<128x9xf32>
    %42 = vector.extract_strided_slice %41 {offsets = [0, 0], sizes = [128, 8], strides = [1, 1]} : vector<128x9xf32> to vector<128x8xf32>
    %43 = vector.extract_strided_slice %41 {offsets = [0, 8], sizes = [128, 1], strides = [1, 1]} : vector<128x9xf32> to vector<128x1xf32>
    %44 = tpu.reciprocal %43 {approx = true} : vector<128x1xf32> -> vector<128x1xf32>
    %45 = vector.broadcast %44 : vector<128x1xf32> to vector<128x8xf32>
    %46 = arith.mulf %42, %45 : vector<128x8xf32>
    %47 = vector.extract_strided_slice %1 {offsets = [0, 2], sizes = [128, 1], strides = [1, 1]} : vector<128x16xf32> to vector<128x1xf32>
    %48 = vector.extract_strided_slice %1 {offsets = [0, 10], sizes = [128, 1], strides = [1, 1]} : vector<128x16xf32> to vector<128x1xf32>
    %49 = vector.extract_strided_slice %0 {offsets = [2, 0], sizes = [1, 256], strides = [1, 1]} : vector<8x256xf32> to vector<1x256xf32>
    %50 = vector.broadcast %47 : vector<128x1xf32> to vector<128x256xf32>
    %51 = vector.broadcast %49 : vector<1x256xf32> to vector<128x256xf32>
    %52 = arith.addf %50, %51 : vector<128x256xf32>
    %cst_10 = arith.constant 2.000000e-01 : f32
    %53 = vector.broadcast %cst_10 : f32 to vector<128x256xf32>
    %54 = arith.mulf %53, %52 : vector<128x256xf32>
    %55 = arith.maximumf %52, %54 : vector<128x256xf32>
    %56 = vector.broadcast %48 : vector<128x1xf32> to vector<128x256xf32>
    %57 = arith.subf %55, %56 : vector<128x256xf32>
    %58 = math.exp %57 : vector<128x256xf32>
    %59 = arith.mulf %58, %4 : vector<128x256xf32>
    %60 = arith.truncf %59 : vector<128x256xf32> to vector<128x256xbf16>
    %61 = vector.extract_strided_slice %2 {offsets = [0, 18], sizes = [256, 9], strides = [1, 1]} : vector<256x72xbf16> to vector<256x9xbf16>
    %cst_11 = arith.constant dense<0.000000e+00> : vector<128x9xf32>
    %62 = tpu.matmul %60, %61, %cst_11 {dimension_numbers = #tpu.dot_dimension_numbers<[1], [0], [0], [1], [0, 0, 1, 1], [], []>} : vector<128x256xbf16>, vector<256x9xbf16>, vector<128x9xf32> -> vector<128x9xf32>
    %63 = vector.extract_strided_slice %62 {offsets = [0, 0], sizes = [128, 8], strides = [1, 1]} : vector<128x9xf32> to vector<128x8xf32>
    %64 = vector.extract_strided_slice %62 {offsets = [0, 8], sizes = [128, 1], strides = [1, 1]} : vector<128x9xf32> to vector<128x1xf32>
    %65 = tpu.reciprocal %64 {approx = true} : vector<128x1xf32> -> vector<128x1xf32>
    %66 = vector.broadcast %65 : vector<128x1xf32> to vector<128x8xf32>
    %67 = arith.mulf %63, %66 : vector<128x8xf32>
    %68 = vector.extract_strided_slice %1 {offsets = [0, 3], sizes = [128, 1], strides = [1, 1]} : vector<128x16xf32> to vector<128x1xf32>
    %69 = vector.extract_strided_slice %1 {offsets = [0, 11], sizes = [128, 1], strides = [1, 1]} : vector<128x16xf32> to vector<128x1xf32>
    %70 = vector.extract_strided_slice %0 {offsets = [3, 0], sizes = [1, 256], strides = [1, 1]} : vector<8x256xf32> to vector<1x256xf32>
    %71 = vector.broadcast %68 : vector<128x1xf32> to vector<128x256xf32>
    %72 = vector.broadcast %70 : vector<1x256xf32> to vector<128x256xf32>
    %73 = arith.addf %71, %72 : vector<128x256xf32>
    %cst_12 = arith.constant 2.000000e-01 : f32
    %74 = vector.broadcast %cst_12 : f32 to vector<128x256xf32>
    %75 = arith.mulf %74, %73 : vector<128x256xf32>
    %76 = arith.maximumf %73, %75 : vector<128x256xf32>
    %77 = vector.broadcast %69 : vector<128x1xf32> to vector<128x256xf32>
    %78 = arith.subf %76, %77 : vector<128x256xf32>
    %79 = math.exp %78 : vector<128x256xf32>
    %80 = arith.mulf %79, %4 : vector<128x256xf32>
    %81 = arith.truncf %80 : vector<128x256xf32> to vector<128x256xbf16>
    %82 = vector.extract_strided_slice %2 {offsets = [0, 27], sizes = [256, 9], strides = [1, 1]} : vector<256x72xbf16> to vector<256x9xbf16>
    %cst_13 = arith.constant dense<0.000000e+00> : vector<128x9xf32>
    %83 = tpu.matmul %81, %82, %cst_13 {dimension_numbers = #tpu.dot_dimension_numbers<[1], [0], [0], [1], [0, 0, 1, 1], [], []>} : vector<128x256xbf16>, vector<256x9xbf16>, vector<128x9xf32> -> vector<128x9xf32>
    %84 = vector.extract_strided_slice %83 {offsets = [0, 0], sizes = [128, 8], strides = [1, 1]} : vector<128x9xf32> to vector<128x8xf32>
    %85 = vector.extract_strided_slice %83 {offsets = [0, 8], sizes = [128, 1], strides = [1, 1]} : vector<128x9xf32> to vector<128x1xf32>
    %86 = tpu.reciprocal %85 {approx = true} : vector<128x1xf32> -> vector<128x1xf32>
    %87 = vector.broadcast %86 : vector<128x1xf32> to vector<128x8xf32>
    %88 = arith.mulf %84, %87 : vector<128x8xf32>
    %89 = vector.extract_strided_slice %1 {offsets = [0, 4], sizes = [128, 1], strides = [1, 1]} : vector<128x16xf32> to vector<128x1xf32>
    %90 = vector.extract_strided_slice %1 {offsets = [0, 12], sizes = [128, 1], strides = [1, 1]} : vector<128x16xf32> to vector<128x1xf32>
    %91 = vector.extract_strided_slice %0 {offsets = [4, 0], sizes = [1, 256], strides = [1, 1]} : vector<8x256xf32> to vector<1x256xf32>
    %92 = vector.broadcast %89 : vector<128x1xf32> to vector<128x256xf32>
    %93 = vector.broadcast %91 : vector<1x256xf32> to vector<128x256xf32>
    %94 = arith.addf %92, %93 : vector<128x256xf32>
    %cst_14 = arith.constant 2.000000e-01 : f32
    %95 = vector.broadcast %cst_14 : f32 to vector<128x256xf32>
    %96 = arith.mulf %95, %94 : vector<128x256xf32>
    %97 = arith.maximumf %94, %96 : vector<128x256xf32>
    %98 = vector.broadcast %90 : vector<128x1xf32> to vector<128x256xf32>
    %99 = arith.subf %97, %98 : vector<128x256xf32>
    %100 = math.exp %99 : vector<128x256xf32>
    %101 = arith.mulf %100, %4 : vector<128x256xf32>
    %102 = arith.truncf %101 : vector<128x256xf32> to vector<128x256xbf16>
    %103 = vector.extract_strided_slice %2 {offsets = [0, 36], sizes = [256, 9], strides = [1, 1]} : vector<256x72xbf16> to vector<256x9xbf16>
    %cst_15 = arith.constant dense<0.000000e+00> : vector<128x9xf32>
    %104 = tpu.matmul %102, %103, %cst_15 {dimension_numbers = #tpu.dot_dimension_numbers<[1], [0], [0], [1], [0, 0, 1, 1], [], []>} : vector<128x256xbf16>, vector<256x9xbf16>, vector<128x9xf32> -> vector<128x9xf32>
    %105 = vector.extract_strided_slice %104 {offsets = [0, 0], sizes = [128, 8], strides = [1, 1]} : vector<128x9xf32> to vector<128x8xf32>
    %106 = vector.extract_strided_slice %104 {offsets = [0, 8], sizes = [128, 1], strides = [1, 1]} : vector<128x9xf32> to vector<128x1xf32>
    %107 = tpu.reciprocal %106 {approx = true} : vector<128x1xf32> -> vector<128x1xf32>
    %108 = vector.broadcast %107 : vector<128x1xf32> to vector<128x8xf32>
    %109 = arith.mulf %105, %108 : vector<128x8xf32>
    %110 = vector.extract_strided_slice %1 {offsets = [0, 5], sizes = [128, 1], strides = [1, 1]} : vector<128x16xf32> to vector<128x1xf32>
    %111 = vector.extract_strided_slice %1 {offsets = [0, 13], sizes = [128, 1], strides = [1, 1]} : vector<128x16xf32> to vector<128x1xf32>
    %112 = vector.extract_strided_slice %0 {offsets = [5, 0], sizes = [1, 256], strides = [1, 1]} : vector<8x256xf32> to vector<1x256xf32>
    %113 = vector.broadcast %110 : vector<128x1xf32> to vector<128x256xf32>
    %114 = vector.broadcast %112 : vector<1x256xf32> to vector<128x256xf32>
    %115 = arith.addf %113, %114 : vector<128x256xf32>
    %cst_16 = arith.constant 2.000000e-01 : f32
    %116 = vector.broadcast %cst_16 : f32 to vector<128x256xf32>
    %117 = arith.mulf %116, %115 : vector<128x256xf32>
    %118 = arith.maximumf %115, %117 : vector<128x256xf32>
    %119 = vector.broadcast %111 : vector<128x1xf32> to vector<128x256xf32>
    %120 = arith.subf %118, %119 : vector<128x256xf32>
    %121 = math.exp %120 : vector<128x256xf32>
    %122 = arith.mulf %121, %4 : vector<128x256xf32>
    %123 = arith.truncf %122 : vector<128x256xf32> to vector<128x256xbf16>
    %124 = vector.extract_strided_slice %2 {offsets = [0, 45], sizes = [256, 9], strides = [1, 1]} : vector<256x72xbf16> to vector<256x9xbf16>
    %cst_17 = arith.constant dense<0.000000e+00> : vector<128x9xf32>
    %125 = tpu.matmul %123, %124, %cst_17 {dimension_numbers = #tpu.dot_dimension_numbers<[1], [0], [0], [1], [0, 0, 1, 1], [], []>} : vector<128x256xbf16>, vector<256x9xbf16>, vector<128x9xf32> -> vector<128x9xf32>
    %126 = vector.extract_strided_slice %125 {offsets = [0, 0], sizes = [128, 8], strides = [1, 1]} : vector<128x9xf32> to vector<128x8xf32>
    %127 = vector.extract_strided_slice %125 {offsets = [0, 8], sizes = [128, 1], strides = [1, 1]} : vector<128x9xf32> to vector<128x1xf32>
    %128 = tpu.reciprocal %127 {approx = true} : vector<128x1xf32> -> vector<128x1xf32>
    %129 = vector.broadcast %128 : vector<128x1xf32> to vector<128x8xf32>
    %130 = arith.mulf %126, %129 : vector<128x8xf32>
    %131 = vector.extract_strided_slice %1 {offsets = [0, 6], sizes = [128, 1], strides = [1, 1]} : vector<128x16xf32> to vector<128x1xf32>
    %132 = vector.extract_strided_slice %1 {offsets = [0, 14], sizes = [128, 1], strides = [1, 1]} : vector<128x16xf32> to vector<128x1xf32>
    %133 = vector.extract_strided_slice %0 {offsets = [6, 0], sizes = [1, 256], strides = [1, 1]} : vector<8x256xf32> to vector<1x256xf32>
    %134 = vector.broadcast %131 : vector<128x1xf32> to vector<128x256xf32>
    %135 = vector.broadcast %133 : vector<1x256xf32> to vector<128x256xf32>
    %136 = arith.addf %134, %135 : vector<128x256xf32>
    %cst_18 = arith.constant 2.000000e-01 : f32
    %137 = vector.broadcast %cst_18 : f32 to vector<128x256xf32>
    %138 = arith.mulf %137, %136 : vector<128x256xf32>
    %139 = arith.maximumf %136, %138 : vector<128x256xf32>
    %140 = vector.broadcast %132 : vector<128x1xf32> to vector<128x256xf32>
    %141 = arith.subf %139, %140 : vector<128x256xf32>
    %142 = math.exp %141 : vector<128x256xf32>
    %143 = arith.mulf %142, %4 : vector<128x256xf32>
    %144 = arith.truncf %143 : vector<128x256xf32> to vector<128x256xbf16>
    %145 = vector.extract_strided_slice %2 {offsets = [0, 54], sizes = [256, 9], strides = [1, 1]} : vector<256x72xbf16> to vector<256x9xbf16>
    %cst_19 = arith.constant dense<0.000000e+00> : vector<128x9xf32>
    %146 = tpu.matmul %144, %145, %cst_19 {dimension_numbers = #tpu.dot_dimension_numbers<[1], [0], [0], [1], [0, 0, 1, 1], [], []>} : vector<128x256xbf16>, vector<256x9xbf16>, vector<128x9xf32> -> vector<128x9xf32>
    %147 = vector.extract_strided_slice %146 {offsets = [0, 0], sizes = [128, 8], strides = [1, 1]} : vector<128x9xf32> to vector<128x8xf32>
    %148 = vector.extract_strided_slice %146 {offsets = [0, 8], sizes = [128, 1], strides = [1, 1]} : vector<128x9xf32> to vector<128x1xf32>
    %149 = tpu.reciprocal %148 {approx = true} : vector<128x1xf32> -> vector<128x1xf32>
    %150 = vector.broadcast %149 : vector<128x1xf32> to vector<128x8xf32>
    %151 = arith.mulf %147, %150 : vector<128x8xf32>
    %152 = vector.extract_strided_slice %1 {offsets = [0, 7], sizes = [128, 1], strides = [1, 1]} : vector<128x16xf32> to vector<128x1xf32>
    %153 = vector.extract_strided_slice %1 {offsets = [0, 15], sizes = [128, 1], strides = [1, 1]} : vector<128x16xf32> to vector<128x1xf32>
    %154 = vector.extract_strided_slice %0 {offsets = [7, 0], sizes = [1, 256], strides = [1, 1]} : vector<8x256xf32> to vector<1x256xf32>
    %155 = vector.broadcast %152 : vector<128x1xf32> to vector<128x256xf32>
    %156 = vector.broadcast %154 : vector<1x256xf32> to vector<128x256xf32>
    %157 = arith.addf %155, %156 : vector<128x256xf32>
    %cst_20 = arith.constant 2.000000e-01 : f32
    %158 = vector.broadcast %cst_20 : f32 to vector<128x256xf32>
    %159 = arith.mulf %158, %157 : vector<128x256xf32>
    %160 = arith.maximumf %157, %159 : vector<128x256xf32>
    %161 = vector.broadcast %153 : vector<128x1xf32> to vector<128x256xf32>
    %162 = arith.subf %160, %161 : vector<128x256xf32>
    %163 = math.exp %162 : vector<128x256xf32>
    %164 = arith.mulf %163, %4 : vector<128x256xf32>
    %165 = arith.truncf %164 : vector<128x256xf32> to vector<128x256xbf16>
    %166 = vector.extract_strided_slice %2 {offsets = [0, 63], sizes = [256, 9], strides = [1, 1]} : vector<256x72xbf16> to vector<256x9xbf16>
    %cst_21 = arith.constant dense<0.000000e+00> : vector<128x9xf32>
    %167 = tpu.matmul %165, %166, %cst_21 {dimension_numbers = #tpu.dot_dimension_numbers<[1], [0], [0], [1], [0, 0, 1, 1], [], []>} : vector<128x256xbf16>, vector<256x9xbf16>, vector<128x9xf32> -> vector<128x9xf32>
    %168 = vector.extract_strided_slice %167 {offsets = [0, 0], sizes = [128, 8], strides = [1, 1]} : vector<128x9xf32> to vector<128x8xf32>
    %169 = vector.extract_strided_slice %167 {offsets = [0, 8], sizes = [128, 1], strides = [1, 1]} : vector<128x9xf32> to vector<128x1xf32>
    %170 = tpu.reciprocal %169 {approx = true} : vector<128x1xf32> -> vector<128x1xf32>
    %171 = vector.broadcast %170 : vector<128x1xf32> to vector<128x8xf32>
    %172 = arith.mulf %168, %171 : vector<128x8xf32>
    %173 = tpu.concatenate %25, %46, %67, %88, %109, %130, %151, %172 in 1 : vector<128x8xf32>, vector<128x8xf32>, vector<128x8xf32>, vector<128x8xf32>, vector<128x8xf32>, vector<128x8xf32>, vector<128x8xf32>, vector<128x8xf32> -> vector<128x64xf32>
    %c0_22 = arith.constant 0 : index
    %c0_23 = arith.constant 0 : index
    %174 = vector.load %arg4[%c0_22, %c0_23] : memref<1x64xf32, #tpu.memory_space<vmem>>, vector<1x64xf32>
    %175 = vector.broadcast %174 : vector<1x64xf32> to vector<128x64xf32>
    %176 = arith.addf %173, %175 : vector<128x64xf32>
    %cst_24 = arith.constant 0.000000e+00 : f32
    %177 = vector.broadcast %cst_24 : f32 to vector<128x64xf32>
    %178 = arith.cmpf ogt, %176, %177 : vector<128x64xf32>
    %cst_25 = arith.constant 0.000000e+00 : f32
    %179 = vector.broadcast %cst_25 : f32 to vector<128x64xf32>
    %180 = arith.minimumf %176, %179 : vector<128x64xf32>
    %181 = math.exp %180 : vector<128x64xf32>
    %cst_26 = arith.constant 1.000000e+00 : f32
    %182 = vector.broadcast %cst_26 : f32 to vector<128x64xf32>
    %183 = arith.subf %181, %182 : vector<128x64xf32>
    %184 = arith.select %178, %176, %183 : vector<128x64xi1>, vector<128x64xf32>
    %cst_27 = arith.constant 0.000000e+00 : f32
    %185 = vector.broadcast %cst_27 : f32 to vector<128x64xf32>
    %186 = tpu.concatenate %184, %185 in 1 : vector<128x64xf32>, vector<128x64xf32> -> vector<128x128xf32>
    %c0_28 = arith.constant 0 : index
    %c0_29 = arith.constant 0 : index
    %187 = vector.load %arg6[%c0_28, %c0_29] : memref<128x128xf32, #tpu.memory_space<vmem>>, vector<128x128xf32>
    tpu.vector_store %arg6[%c0_28, %c0_29], %186 {strides = array<i32>} : memref<128x128xf32, #tpu.memory_space<vmem>>, vector<128x128xf32>,
    return
  }
  func.func @transform_0(%arg0: i32) -> (i32, i32) {
    %c0_i32 = arith.constant 0 : i32
    %c0_i32_0 = arith.constant 0 : i32
    %c0_i32_1 = arith.constant 0 : i32
    return %c0_i32, %c0_i32_0 : i32, i32
  }
  func.func @transform_1(%arg0: i32) -> (i32, i32) {
    %c0_i32 = arith.constant 0 : i32
    %c0_i32_0 = arith.constant 0 : i32
    return %arg0, %c0_i32 : i32, i32
  }
  func.func @transform_2(%arg0: i32) -> (i32, i32) {
    %c0_i32 = arith.constant 0 : i32
    %c0_i32_0 = arith.constant 0 : i32
    %c0_i32_1 = arith.constant 0 : i32
    return %c0_i32, %c0_i32_0 : i32, i32
  }
  func.func @transform_3(%arg0: i32) -> (i32, i32) {
    %c0_i32 = arith.constant 0 : i32
    %c0_i32_0 = arith.constant 0 : i32
    %c0_i32_1 = arith.constant 0 : i32
    return %c0_i32, %c0_i32_0 : i32, i32
  }
  func.func @transform_4(%arg0: i32) -> (i32, i32) {
    %c0_i32 = arith.constant 0 : i32
    %c0_i32_0 = arith.constant 0 : i32
    return %arg0, %c0_i32 : i32, i32
  }
  func.func @transform_5(%arg0: i32) -> (i32, i32) {
    %c0_i32 = arith.constant 0 : i32
    %c0_i32_0 = arith.constant 0 : i32
    return %arg0, %c0_i32 : i32, i32
  }
}

</mosaic_0001>

<bundles_post_ra>
// kernel: tpu_custom_call.1
= control target key start
LH: loop header
LB: loop body
LE: loop exit
PB: predicated region body
PF: predicated region fallthrough
CT: control target
= control target key end

     0   :  { %10 = vsyncpa [#allocation3], 0  ;;  %s12932_s0 = inlined_call_operand.vmem [shape: f32[8,256], index: 0, kind: input, shape index: {}]   ;;  %s12933_s1 = inlined_call_operand.vmem [shape: f32[256,16], index: 1, kind: input, shape index: {}]   ;;  %s12934_s2 = inlined_call_operand.vmem [shape: bf16[256,72], index: 2, kind: input, shape index: {}]   ;;  %s12935_s3 = inlined_call_operand.vmem [shape: f32[1,64], index: 3, kind: input, shape index: {}]   ;;  %s12936_s4 = inlined_call_operand.vmem [shape: s8[256,256], index: 4, kind: input, shape index: {}]   ;;  %s12937_s5 = inlined_call_operand.hbm [shape: f32[256,128], index: 5, kind: output, shape index: {}]  }
   0x1   :  { %12 = vsyncpa [#allocation3 + $0x1], 0  ;;  %s8080_s18 = smov 0   ;;  %s8082_s19 = smov 0  }
   0x2   :  { %s8084_s20 = smov 0   ;;  %s8086_s21 = smov 0  }
   0x3 LB: > { %s8101_s22 = sadd.s32 4294967295, %s8016_s21   ;;  %s6309_s23 = sadd.s32 4294967294, %s8016_s21   ;;  %s8016_s21 = sphi %s8086_s21, %s14204_s21   ;;  %s8012_s20 = sphi %s8084_s20, %s14203_s20   ;;  %s8008_s19 = sphi %s8082_s19, %s14202_s19   ;;  %s8004_s18 = sphi %s8080_s18, %s14201_s18  }
   0x4   : > { %s8105_s24 = sadd.s32 1, %s8016_s21   ;;  %s140_s25 = sadd.s32 1, %s8012_s20 }
   0x5   : > { %s137_s26 = ssub.s32 %s8016_s21, %s8105_s24  ;;  %p150_p0 = scmp.ne.s32.totalorder %s8012_s20, %s8008_s19 }
   0x6   : > { %p138_p1 = scmp.eq.s32.totalorder %s137_s26, 0  ;;  %p151_p2 = scmp.eq.s32.totalorder %s8101_s22, 1 }
   0x7   : > { %p156_p3 = scmp.ne.s32.totalorder %s8008_s19, %s8004_s18  ;;  %p157_p4 = scmp.eq.s32.totalorder %s6309_s23, 1 }
   0x8   : > { %s8116_s27 = scalar_select %p138_p1, %s8012_s20, %s140_s25  }
   0x9   : > { %p8118_p5 = por %p151_p2, %p150_p0  ;;  %p8122_p6 = por %p157_p4, %p156_p3 }
   0xa   : > { %p6312_p7 = scmp.ge.s32.totalorder %s8016_s21, 1  ;;  %p203_p8 = scmp.lt.s32.totalorder %s8016_s21, 3 }
   0xc   : > { %p204_p9 = pnand %p6312_p7, %p203_p8 }
   0xe   : > { %207 = sbr.rel (%p204_p9) target bundleno = 2879 (0xb3f), region = 40 }
  0x15   : > { %s6314_s30 = sshll.u32 %s8101_s22, 4  ;;  %v8018_v0 = vmov 0   ;;  %v8183_v13 = vld [vmem:[%s12934_s2 + $0x40] sm:$0xff]   ;;  %v8201_v17 = vld [vmem:[%s12934_s2 + $0x48] sm:$0xff]   ;;  %v8222_v21 = vld [vmem:[%s12934_s2 + $0x50] sm:$0xff]   ;;  %v12938_v24 = vmov 8   ;;  %v454_v41 = vlaneseq }
  0x16   : > { %6942 = vset.pattern.permute.xlu1 %v8018_v0  ;;  %6941 = vset.pattern.permute.xlu0 %v8018_v0  ;;  %p238_p10 = scmp.lt.s32.totalorder %s6314_s30, 31  ;;  %v8190_v14 = vld [vmem:[%s12934_s2] sm:$0xff]   ;;  %v8211_v18 = vld [vmem:[%s12934_s2 + $0x8] sm:$0xff]   ;;  %v8231_v22 = vld [vmem:[%s12934_s2 + $0x10] sm:$0xff]   ;;  %v8020_v34 = vmov 1   ;;  %v8021_v35 = vmov 9  }
  0x17   : > { %6359 = vmatprep.subr.bf16.mxu0 %v8183_v13  ;;  %v8236_v23 = vld [vmem:[%s12934_s2 + $0x58] sm:$0xff]   ;;  %v8252_v26 = vld [vmem:[%s12934_s2 + $0x60] sm:$0xff]   ;;  %v8266_v28 = vld [vmem:[%s12934_s2 + $0x68] sm:$0xff]   ;;  %s6316_s12 = sshll.u32 %s8101_s22, 2  ;;  %s8022_s13 = smov 119   ;;  %v8023_v38 = vmov 2  }
  0x18   : > { %s14206_s30 = smov (!%p238_p10, %s6314_s30), 31  ;;  %6360 = vmatpush3.bf16.msra.mxu0 %v8190_v14  ;;  %v8245_v25 = vld [vmem:[%s12934_s2 + $0x18] sm:$0xff]   ;;  %v8259_v27 = vld [vmem:[%s12934_s2 + $0x20] sm:$0xff]   ;;  %v8273_v29 = vld [vmem:[%s12934_s2 + $0x28] sm:$0xff]   ;;  %p244_p11 = scmp.lt.s32.totalorder %s6316_s12, 7  ;;  %v8361_v44 = vshrl.u32 %v454_v41, 7 }
  0x19   : > { %s6315_s6 = sshll.u32 %s14206_s30, 3  ;;  %6361 = vmatprep.subr.bf16.mxu0 %v8201_v17  ;;  %v8280_v30 = vld [vmem:[%s12934_s2 + $0x70] sm:$0xff]   ;;  %v8294_v32 = vld [vmem:[%s12934_s2 + $0x78] sm:$0xff]   ;;  %v252_v49 = vld [vmem:[%s12932_s0] sm:$0xff]  ;;  %s8025_s8 = smov 110   ;;  %vm5950_vm0 = vcmask 64512  }
  0x1a   : > { %s8132_s9 = scalar_lea.vmem %s12933_s1, %s6315_s6  ;;  %v8287_v31 = vld [vmem:[%s12934_s2 + $0x30] sm:$0xff]   ;;  %v8301_v33 = vld [vmem:[%s12934_s2 + $0x38] sm:$0xff]   ;;  %s14208_s12 = smov (!%p244_p11, %s6316_s12), 7  ;;  %13298 = vst [vmem:[#allocation8_spill] sm:$0xff] %v8361_v44  ;;  %v456_v48 = vsub.s32 0, %v8361_v44  ;;  %v8393_v53 = vld [vmem:[%s12932_s0 + $0x8] sm:$0xff] }
  0x1b   : > { %v8135_v1 = vld [vmem:[%s8132_s9 + $0x10] sm:$0xff]  ;;  %v8138_v2 = vld [vmem:[%s8132_s9] sm:$0xff]  ;;  %v8143_v3 = vld [vmem:[%s8132_s9 + $0x18] sm:$0xff]  ;;  %s6357_s14 = sshll.u32 %s14208_s12, 4  ;;  %13299 = vst [vmem:[#allocation9_spill] sm:$0xff] %v8393_v53  ;;  %s8028_s15 = smov 101  }
  0x1c   : > { %13295 = vst [vmem:[#allocation5_spill] sm:$0xff] %v8138_v2  ;;  %386 = vperm.xlu1 %6942, %v8135_v1   ;;  %376 = vperm.xlu0 %6941, %v8138_v2   ;;  %v8146_v4 = vld [vmem:[%s8132_s9 + $0x8] sm:$0xff]  ;;  %v8154_v6 = vld [vmem:[%s8132_s9 + $0x20] sm:$0xff]  ;;  %v8159_v7 = vld [vmem:[%s8132_s9 + $0x38] sm:$0xff]  ;;  %s8366_s17 = scalar_lea.vmem %s12936_s4, %s6357_s14  ;;  %v8395_v56 = vrot.slane %v252_v49, %v456_v48  ;;  %v8398_v58 = vrot.slane %v8393_v53, %v456_v48  ;;  %s8031_s23 = smov 92   ;;  %vm5967_vm1 = vcmask 130048  }
  0x1d   : > { %v8151_v5 = vld [vmem:[%s8132_s9 + $0x28] sm:$0xff]  ;;  %v8162_v8 = vld [vmem:[%s8132_s9 + $0x30] sm:$0xff]  ;;  %v8170_v10 = vld [vmem:[%s8132_s9 + $0x40] sm:$0xff]  ;;  %6362 = vmatpush3.bf16.msra.mxu0 %v8211_v18  ;;  %s8034_s7 = smov 83   ;;  %s8037_s12 = smov 74   ;;  %vm5984_vm2 = vcmask 195584  }
  0x1e   : > { %v8167_v9 = vld [vmem:[%s8132_s9 + $0x48] sm:$0xff]  ;;  %v8175_v11 = vld [vmem:[%s8132_s9 + $0x58] sm:$0xff]  ;;  %v8178_v12 = vld [vmem:[%s8132_s9 + $0x50] sm:$0xff]  ;;  %6363 = vmatprep.subr.bf16.mxu0 %v8222_v21  ;;  %s8039_s11 = smov 65   ;;  %s8044_s14 = smov 32   ;;  %vm6001_vm3 = vcmask 261120  }
  0x1f   : > { %v8193_v15 = vld [vmem:[%s8132_s9 + $0x68] sm:$0xff]  ;;  %v8196_v16 = vld [vmem:[%s8132_s9 + $0x60] sm:$0xff]  ;;  %v8214_v19 = vld [vmem:[%s8132_s9 + $0x78] sm:$0xff]  ;;  %s8046_s16 = smov 48   ;;  %vm6018_vm4 = vcmask 326656   ;;  %vm6035_vm5 = vcmask 392192  }
  0x20   : > { %391 = vperm.xlu1 %6942, %v8143_v3   ;;  %381 = vperm.xlu0 %6941, %v8146_v4   ;;  %13296 = vst [vmem:[#allocation6_spill] sm:$0xff] %v8196_v16  ;;  %v8217_v20 = vld [vmem:[%s8132_s9 + $0x70] sm:$0xff]  ;;  %v303_v47 = vld [vmem:[%s8366_s17 + $0x8] sm:$0xff]  ;;  %v302_v52 = vld [vmem:[%s8366_s17] sm:$0xff]  ;;  %vm6052_vm6 = vcmask 457728   ;;  %vm6188_vm7 = vcmask 523264  }
  0x21   : > { %13297 = vst [vmem:[#allocation7_spill] sm:$0xff] %v8217_v20  ;;  %6364 = vmatpush3.bf16.msra.mxu0 %v8231_v22  ;;  %v311_v54 = vunpack.c.0.s8 %v303_v47  ;;  %v313_v55 = vunpack.c.1.s8 %v303_v47  ;;  %v310_v57 = vunpack.c.0.s8 %v302_v52  ;;  %v312_v61 = vunpack.c.1.s8 %v302_v52  ;;  %v305_v0 = vld [vmem:[%s8366_s17 + $0x18] sm:$0xff]  ;;  %s234_s26 = sand.u32 1, %s8008_s19   ;;  %s6358_s6 = sshll.u32 %s8101_s22, 11 }
  0x22   : > { %6365 = vmatprep.subr.bf16.mxu0 %v8236_v23  ;;  %v315_v62 = vunpack.c.2.s8 %v303_v47  ;;  %v317_v63 = vunpack.c.3.s8 %v303_v47  ;;  %s6313_s30 = sshll.u32 %s234_s26, 7  ;;  %s12890_s22 = scalar_lea.sflag [#allocation3], %s234_s26 }
  0x23   : > { %v8434_v41 = vcvt.s32.f32 %v312_v61 }
  0x24   : > { %401 = vperm.xlu1 %6942, %v8151_v5   ;;  %396 = vperm.xlu0 %6941, %v8154_v6   ;;  %v8436_v47 = vcvt.s32.f32 %v315_v62 }
  0x25   : > { %6366 = vmatpush3.bf16.msra.mxu0 %v8245_v25  ;;  %13304 = vst [vmem:[#allocation14_spill] sm:$0xff] %v8434_v41 }
  0x26   : > { %6367 = vmatprep.subr.bf16.mxu0 %v8252_v26  ;;  %13305 = vst [vmem:[#allocation15_spill] sm:$0xff] %v8436_v47 }
  0x28   : > { %411 = vperm.xlu1 %6942, %v8159_v7   ;;  %406 = vperm.xlu0 %6941, %v8162_v8  }
  0x29   : > { %6368 = vmatpush3.bf16.msra.mxu0 %v8259_v27 }
  0x2a   : > { %6369 = vmatprep.subr.bf16.mxu0 %v8266_v28 }
  0x2c   : > { %421 = vperm.xlu1 %6942, %v8167_v9   ;;  %416 = vperm.xlu0 %6941, %v8170_v10  }
  0x2d   : > { %6370 = vmatpush3.bf16.msra.mxu0 %v8273_v29 }
  0x2e   : > { %6371 = vmatprep.subr.bf16.mxu0 %v8280_v30 }
  0x30   : > { %431 = vperm.xlu1 %6942, %v8175_v11   ;;  %426 = vperm.xlu0 %6941, %v8178_v12  }
  0x31   : > { %6372 = vmatpush3.bf16.msra.mxu0 %v8287_v31 }
  0x32   : > { %6373 = vmatprep.subr.bf16.mxu0 %v8294_v32 }
  0x34   : > { %441 = vperm.xlu1 %6942, %v8193_v15   ;;  %436 = vperm.xlu0 %6941, %v8196_v16  }
  0x35   : > { %6374 = vmatpush3.bf16.msra.mxu0 %v8301_v33 }
  0x38   : > { %451 = vperm.xlu1 %6942, %v8214_v19   ;;  %446 = vperm.xlu0 %6941, %v8217_v20  }
  0x3c   : > { %6944 = vset.pattern.permute.xlu1 %v12938_v24  ;;  %6943 = vset.pattern.permute.xlu0 %v12938_v24 }
  0x3d   : > { %563 = vperm.xlu1 %6944, %v8146_v4   ;;  %559 = vperm.xlu0 %6943, %v8138_v2  }
  0x41   : > { %567 = vperm.xlu1 %6944, %v8135_v1   ;;  %571 = vperm.xlu0 %6943, %v8143_v3  }
  0x45   : > { %575 = vperm.xlu1 %6944, %v8154_v6   ;;  %579 = vperm.xlu0 %6943, %v8151_v5  }
  0x49   : > { %583 = vperm.xlu1 %6944, %v8162_v8   ;;  %587 = vperm.xlu0 %6943, %v8159_v7  }
  0x4d   : > { %591 = vperm.xlu1 %6944, %v8170_v10   ;;  %595 = vperm.xlu0 %6943, %v8167_v9  }
  0x51   : > { %599 = vperm.xlu1 %6944, %v8178_v12   ;;  %603 = vperm.xlu0 %6943, %v8175_v11  }
  0x55   : > { %607 = vperm.xlu1 %6944, %v8196_v16   ;;  %611 = vperm.xlu0 %6943, %v8193_v15  }
  0x59   : > { %615 = vperm.xlu1 %6944, %v8217_v20   ;;  %619 = vperm.xlu0 %6943, %v8214_v19  }
  0x5d   : > { %6945 = vset.pattern.permute.xlu1 %v8020_v34  ;;  %6946 = vset.pattern.permute.xlu0 %v8020_v34  ;;  %v319_v34 = vunpack.c.0.s8 %v305_v0 }
  0x5e   : > { %1072 = vperm.xlu1 %6945, %v8138_v2   ;;  %1076 = vperm.xlu0 %6946, %v8146_v4  }
  0x5f   : > { %v8460_v24 = vcvt.s32.f32 %v319_v34  ;;  %v325_v34 = vunpack.c.3.s8 %v305_v0 }
  0x61   : > { %13309 = vst [vmem:[#allocation19_spill] sm:$0xff] %v8460_v24 }
  0x62   : > { %1080 = vperm.xlu1 %6945, %v8135_v1   ;;  %1088 = vperm.xlu0 %6946, %v8154_v6  }
  0x66   : > { %1084 = vperm.xlu1 %6945, %v8143_v3   ;;  %1096 = vperm.xlu0 %6946, %v8162_v8  }
  0x6a   : > { %1092 = vperm.xlu1 %6945, %v8151_v5   ;;  %1104 = vperm.xlu0 %6946, %v8170_v10  }
  0x6e   : > { %1100 = vperm.xlu1 %6945, %v8159_v7   ;;  %1112 = vperm.xlu0 %6946, %v8178_v12  }
  0x72   : > { %1108 = vperm.xlu1 %6945, %v8167_v9   ;;  %1120 = vperm.xlu0 %6946, %v8196_v16  }
  0x76   : > { %1116 = vperm.xlu1 %6945, %v8175_v11   ;;  %1128 = vperm.xlu0 %6946, %v8217_v20  }
  0x7a   : > { %1124 = vperm.xlu1 %6945, %v8193_v15   ;;  %6947 = vset.pattern.permute.xlu0 %v8021_v35 }
  0x7b   : > { %1240 = vperm.xlu0 %6947, %v8138_v2  }
  0x7e   : > { %1132 = vperm.xlu1 %6945, %v8214_v19  }
  0x7f   : > { %1252 = vperm.xlu0 %6947, %v8143_v3  }
  0x82   : > { %6948 = vset.pattern.permute.xlu1 %v8021_v35  ;;  %v321_v35 = vunpack.c.1.s8 %v305_v0 }
  0x83   : > { %1244 = vperm.xlu1 %6948, %v8146_v4   ;;  %1260 = vperm.xlu0 %6947, %v8151_v5  }
  0x87   : > { %1248 = vperm.xlu1 %6948, %v8135_v1   ;;  %1268 = vperm.xlu0 %6947, %v8159_v7  }
  0x8b   : > { %1256 = vperm.xlu1 %6948, %v8154_v6   ;;  %1276 = vperm.xlu0 %6947, %v8167_v9  }
  0x8f   : > { %1264 = vperm.xlu1 %6948, %v8162_v8   ;;  %1284 = vperm.xlu0 %6947, %v8175_v11  }
  0x93   : > { %1272 = vperm.xlu1 %6948, %v8170_v10   ;;  %1292 = vperm.xlu0 %6947, %v8193_v15  }
  0x97   : > { %1280 = vperm.xlu1 %6948, %v8178_v12   ;;  %1300 = vperm.xlu0 %6947, %v8214_v19  }
  0x9b   : > { %v8343_v36 = vpop.permute.xlu1 %386  ;;  %1288 = vperm.xlu1 %6948, %v8196_v16   ;;  %1449 = vrot.lane.b32.xlu0 %v8211_v18, %s8022_s13  ;;  %v377_v37 = vpop.permute.xlu0 %376  ;;  %v8414_v18 = vcvt.s32.f32 %v313_v55 }
  0x9c   : > { %6949 = vset.pattern.permute.xlu0 %v8023_v38  ;;  %v8443_v49 = vadd.f32 %v8395_v56, %v8343_v36 }
  0x9d   : > { %13301 = vst [vmem:[#allocation11_spill] sm:$0xff] %v8414_v18 }
  0x9f   : > { %v8348_v39 = vpop.permute.xlu1 %391  ;;  %1296 = vperm.xlu1 %6948, %v8217_v20   ;;  %1453 = vrot.lane.b32.xlu0 %v8245_v25, %s8022_s13  ;;  %v382_v40 = vpop.permute.xlu0 %381  ;;  %v8420_v25 = vadd.f32 %v8398_v58, %v377_v37 }
  0xa0   : > { %v8456_v62 = vadd.f32 %v8395_v56, %v8348_v39  ;;  %v469_v53 = vadd.f32 %v8398_v58, %v8348_v39 }
  0xa3   : > { %v8353_v42 = vpop.permute.xlu1 %401  ;;  %1447 = vrot.lane.b32.xlu1 %v8190_v14, %s8022_s13  ;;  %1457 = vrot.lane.b32.xlu0 %v8273_v29, %s8022_s13  ;;  %v8359_v43 = vpop.permute.xlu0 %396  ;;  %v8410_v14 = vadd.f32 %v8395_v56, %v377_v37  ;;  %v314_v29 = vunpack.c.2.s8 %v302_v52 }
  0xa4   : > { %6950 = vset.pattern.permute.xlu1 %v8023_v38 }
  0xa5   : > { %v8452_v61 = vcvt.s32.f32 %v314_v29 }
  0xa7   : > { %v8368_v45 = vpop.permute.xlu1 %411  ;;  %1451 = vrot.lane.b32.xlu1 %v8231_v22, %s8022_s13  ;;  %1461 = vrot.lane.b32.xlu0 %v8301_v33, %s8022_s13  ;;  %v8374_v46 = vpop.permute.xlu0 %406  ;;  %v8417_v22 = vld [vmem:[%s8366_s17 + $0x10] sm:$0xff]  ;;  %v316_v33 = vunpack.c.3.s8 %v302_v52  ;;  %13307 = vst [vmem:[#allocation17_spill] sm:$0xff] %v8452_v61 }
  0xa8   : > { %v318_v48 = vunpack.c.0.s8 %v8417_v22  ;;  %v320_v52 = vunpack.c.1.s8 %v8417_v22  ;;  %v322_v39 = vunpack.c.2.s8 %v8417_v22 }
  0xaa   : > { %v8474_v20 = vcvt.s32.f32 %v318_v48  ;;  %v8486_v48 = vadd.f32 %v8395_v56, %v8353_v42 }
  0xab   : > { %v8381_v50 = vpop.permute.xlu1 %421  ;;  %1455 = vrot.lane.b32.xlu1 %v8259_v27, %s8022_s13  ;;  %1465 = vrot.lane.b32.xlu0 %v8201_v17, %s8022_s13  ;;  %v8387_v51 = vpop.permute.xlu0 %416  ;;  %v8412_v17 = vcvt.s32.f32 %v311_v54  ;;  %v465_v27 = vadd.f32 %v8398_v58, %v382_v40  ;;  %v495_v54 = vmul.f32 0.2, %v8420_v25 }
  0xac   : > { %13313 = vst [vmem:[#allocation23_spill] sm:$0xff] %v8474_v20 }
  0xad   : > { %13300 = vst [vmem:[#allocation10_spill] sm:$0xff] %v8412_v17 }
  0xaf   : > { %v8400_v59 = vpop.permute.xlu1 %431  ;;  %1459 = vrot.lane.b32.xlu1 %v8287_v31, %s8022_s13  ;;  %1469 = vrot.lane.b32.xlu0 %v8236_v23, %s8022_s13  ;;  %v8406_v60 = vpop.permute.xlu0 %426  ;;  %v464_v23 = vadd.f32 %v8395_v56, %v382_v40  ;;  %v8424_v31 = vcvt.s32.f32 %v310_v57  ;;  %v8438_v40 = vcvt.s32.f32 %v317_v63  ;;  %v497_v57 = vmul.f32 0.2, %v465_v27 }
  0xb0   : > { %v8458_v63 = vcvt.s32.f32 %v316_v33  ;;  %v323_v33 = vunpack.c.2.s8 %v305_v0  ;;  %v8490_v0 = vadd.f32 %v8395_v56, %v8359_v43 }
  0xb1   : > { %13302 = vst [vmem:[#allocation12_spill] sm:$0xff] %v8424_v31  ;;  %13306 = vst [vmem:[#allocation16_spill] sm:$0xff] %v8438_v40  ;;  %v496_v55 = vmul.f32 0.2, %v464_v23 }
  0xb2   : > { %13308 = vst [vmem:[#allocation18_spill] sm:$0xff] %v8458_v63 }
  0xb3   : > { %v8426_v38 = vpop.permute.xlu1 %441  ;;  %1463 = vrot.lane.b32.xlu1 %v8183_v13, %s8022_s13  ;;  %1473 = vrot.lane.b32.xlu0 %v8266_v28, %s8022_s13  ;;  %v8432_v37 = vpop.permute.xlu0 %436  ;;  %v8447_v13 = vadd.f32 %v8398_v58, %v8343_v36  ;;  %v494_v28 = vmul.f32 0.2, %v8410_v14  ;;  %v8462_v36 = vcvt.s32.f32 %v321_v35  ;;  %v498_v35 = vmul.f32 0.2, %v8443_v49 }
  0xb4   : > { %13303 = vst [vmem:[#allocation13_spill] sm:$0xff] %v8426_v38  ;;  %v529_v38 = vmax.f32 %v465_v27, %v497_v57  ;;  %v473_v27 = vadd.f32 %v8398_v58, %v8353_v42  ;;  %v8506_v57 = vcvt.s32.f32 %v322_v39 }
  0xb5   : > { %13310 = vst [vmem:[#allocation20_spill] sm:$0xff] %v8462_v36  ;;  %v499_v16 = vmul.f32 0.2, %v8447_v13  ;;  %v8478_v36 = vcvt.s32.f32 %v320_v52  ;;  %v471_v52 = vadd.f32 %v8398_v58, %v8359_v43 }
  0xb6   : > { %13317 = vst [vmem:[#allocation27_spill] sm:$0xff] %v8506_v57 }
  0xb7   : > { %v8466_v44 = vpop.permute.xlu1 %451  ;;  %1467 = vrot.lane.b32.xlu1 %v8222_v21, %s8022_s13  ;;  %1477 = vrot.lane.b32.xlu0 %v8294_v32, %s8022_s13  ;;  %v8472_v29 = vpop.permute.xlu0 %446  ;;  %13314 = vst [vmem:[#allocation24_spill] sm:$0xff] %v8478_v36  ;;  %v526_v21 = vmax.f32 %v8410_v14, %v494_v28  ;;  %v527_v32 = vmax.f32 %v8420_v25, %v495_v54  ;;  %v501_v36 = vmul.f32 0.2, %v469_v53  ;;  %v8497_v14 = vcvt.s32.f32 %v323_v33 }
  0xb8   : > { %13311 = vst [vmem:[#allocation21_spill] sm:$0xff] %v8466_v44  ;;  %13312 = vst [vmem:[#allocation22_spill] sm:$0xff] %v8472_v29  ;;  %v528_v44 = vmax.f32 %v464_v23, %v496_v55  ;;  %v500_v29 = vmul.f32 0.2, %v8456_v62  ;;  %v8499_v25 = vcvt.s32.f32 %v325_v34  ;;  %v530_v55 = vmax.f32 %v8443_v49, %v498_v35 }
  0xb9   : > { %13315 = vst [vmem:[#allocation25_spill] sm:$0xff] %v8497_v14  ;;  %v531_v43 = vmax.f32 %v8447_v13, %v499_v16  ;;  %v504_v34 = vmul.f32 0.2, %v8486_v48  ;;  %v503_v23 = vmul.f32 0.2, %v471_v52  ;;  %v533_v16 = vmax.f32 %v469_v53, %v501_v36 }
  0xba   : > { %13316 = vst [vmem:[#allocation26_spill] sm:$0xff] %v8499_v25  ;;  %v502_v25 = vmul.f32 0.2, %v8490_v0  ;;  %v532_v14 = vmax.f32 %v8456_v62, %v500_v29  ;;  %v475_v49 = vadd.f32 %v8398_v58, %v8374_v46 }
  0xbb   : > { %1471 = vrot.lane.b32.xlu1 %v8252_v26, %s8022_s13  ;;  %1705 = vperm.xlu0 %6949, %v8138_v2  }
  0xbc   : > { %v564_v28 = vpop.permute.xlu1 %563  ;;  %v560_v54 = vpop.permute.xlu0 %559  ;;  %v534_v39 = vmax.f32 %v8490_v0, %v502_v25  ;;  %v8540_v25 = vadd.f32 %v8398_v58, %v8381_v50 }
  0xbd   : > { %v624_v26 = vsub.f32 %v528_v44, %v564_v28  ;;  %v625_v20 = vsub.f32 %v529_v38, %v564_v28  ;;  %v622_v2 = vsub.f32 %v526_v21, %v560_v54  ;;  %v623_v33 = vsub.f32 %v527_v32, %v560_v54 }
  0xbe   : > { %v505_v44 = vmul.f32 0.2, %v473_v27  ;;  %v8516_v38 = vadd.f32 %v8395_v56, %v8368_v45  ;;  %v535_v21 = vmax.f32 %v471_v52, %v503_v23  ;;  %v8536_v52 = vadd.f32 %v8395_v56, %v8381_v50 }
  0xbf   : > { %v658_v42 = vmul.f32 1.442695, %v624_v26  ;;  %v660_v24 = vmul.f32 1.442695, %v625_v20  ;;  %v654_v63 = vmul.f32 1.442695, %v622_v2  ;;  %1475 = vrot.lane.b32.xlu1 %v8280_v30, %s8022_s13  ;;  %1717 = vperm.xlu0 %6949, %v8143_v3   ;;  %v477_v2 = vadd.f32 %v8398_v58, %v8368_v45 }
  0xc0   : > { %v656_v13 = vmul.f32 1.442695, %v623_v33  ;;  %v568_v35 = vpop.permute.xlu1 %567  ;;  %v572_v62 = vpop.permute.xlu0 %571  ;;  %v8524_v3 = vadd.f32 %v8395_v56, %v8374_v46  ;;  %v507_v45 = vmul.f32 0.2, %v475_v49  ;;  %v537_v54 = vmax.f32 %v473_v27, %v505_v44  ;;  %s8042_s13 = smov 16  }
  0xc1   : > { %7009 = vpow2.f32 %v658_v42  ;;  %v626_v20 = vsub.f32 %v530_v55, %v568_v35  ;;  %v627_v30 = vsub.f32 %v531_v43, %v568_v35  ;;  %v628_v53 = vsub.f32 %v532_v14, %v572_v62 }
  0xc2   : > { %7011 = vpow2.f32 %v660_v24  ;;  %v629_v36 = vsub.f32 %v533_v16, %v572_v62  ;;  %v509_v46 = vmul.f32 0.2, %v477_v2  ;;  %v536_v14 = vmax.f32 %v8486_v48, %v504_v34 }
  0xc3   : > { %7013 = vpow2.f32 %v654_v63  ;;  %v664_v29 = vmul.f32 1.442695, %v627_v30  ;;  %1709 = vperm.xlu1 %6950, %v8146_v4   ;;  %1725 = vperm.xlu0 %6949, %v8151_v5   ;;  %v662_v43 = vmul.f32 1.442695, %v626_v20  ;;  %v8531_v63 = vmul.f32 0.2, %v8516_v38 }
  0xc4   : > { %7015 = vpow2.f32 %v656_v13  ;;  %v668_v32 = vmul.f32 1.442695, %v629_v36  ;;  %v576_v28 = vpop.permute.xlu1 %575  ;;  %v580_v55 = vpop.permute.xlu0 %579  ;;  %v666_v26 = vmul.f32 1.442695, %v628_v53  ;;  %v506_v0 = vmul.f32 0.2, %v8524_v3 }
  0xc5   : > { %v631_v24 = vsub.f32 %v535_v21, %v576_v28  ;;  %7017 = vpow2.f32 %v664_v29  ;;  %v633_v5 = vsub.f32 %v537_v54, %v580_v55  ;;  %v479_v48 = vadd.f32 %v8398_v58, %v8387_v51 }
  0xc6   : > { %7019 = vpow2.f32 %v668_v32  ;;  %v630_v27 = vsub.f32 %v534_v39, %v576_v28  ;;  %v539_v34 = vmax.f32 %v475_v49, %v507_v45  ;;  %v632_v16 = vsub.f32 %v536_v14, %v580_v55 }
  0xc7   : > { %v672_v23 = vmul.f32 1.442695, %v631_v24  ;;  %1713 = vperm.xlu1 %6950, %v8135_v1   ;;  %1733 = vperm.xlu0 %6949, %v8159_v7   ;;  %7021 = vpow2.f32 %v662_v43  ;;  %v676_v44 = vmul.f32 1.442695, %v633_v5  ;;  %v541_v13 = vmax.f32 %v477_v2, %v509_v46 }
  0xc8   : > { %v584_v33 = vpop.permute.xlu1 %583  ;;  %v588_v42 = vpop.permute.xlu0 %587  ;;  %v8548_v50 = vadd.f32 %v8395_v56, %v8387_v51  ;;  %7023 = vpow2.f32 %v666_v26  ;;  %v13318_v7 = vunpack.c.3.s8 %v8417_v22  ;;  %v538_v30 = vmax.f32 %v8524_v3, %v506_v0 }
  0xc9   : > { %v635_v35 = vsub.f32 %v539_v34, %v584_v33  ;;  %7025 = vpow2.f32 %v672_v23  ;;  %v637_v49 = vsub.f32 %v541_v13, %v588_v42  ;;  %v8558_v53 = vmul.f32 0.2, %v8536_v52  ;;  %v8595_v13 = vld [vmem:[%s8366_s17 + $0x20] sm:$0xff] }
  0xca   : > { %v8552_v62 = vcvt.s32.f32 %v13318_v7  ;;  %v511_v51 = vmul.f32 0.2, %v479_v48  ;;  %v670_v36 = vmul.f32 1.442695, %v630_v27  ;;  %v540_v22 = vmax.f32 %v8516_v38, %v8531_v63  ;;  %v8591_v27 = vld [vmem:[%s8366_s17 + $0x28] sm:$0xff] }
  0xcb   : > { %v7010_v20 = vpop.eup %7009  ;;  %1721 = vperm.xlu1 %6950, %v8154_v6   ;;  %1741 = vperm.xlu0 %6949, %v8167_v9   ;;  %v513_v3 = vmul.f32 0.2, %v8540_v25  ;;  %v674_v45 = vmul.f32 1.442695, %v632_v16  ;;  %7027 = vpow2.f32 %v676_v44  ;;  %v510_v28 = vmul.f32 0.2, %v8548_v50 }
  0xcc   : > { %13319 = vst [vmem:[#allocation28_spill] sm:$0xff] %v8552_v62  ;;  %v7012_v2 = vpop.eup %7011  ;;  %v8562_v29 = vpop.permute.xlu1 %591  ;;  %v720_v9 = vmul.f32 %v7010_v20, %v8434_v41  ;;  %v680_v54 = vmul.f32 1.442695, %v635_v35  ;;  %v8573_v46 = vadd.f32 %v8395_v56, %v8400_v59  ;;  %v8577_v43 = vadd.f32 %v8398_v58, %v8400_v59 }
  0xcd   : > { %v8564_v39 = vpop.permute.xlu0 %595  ;;  %v7014_v21 = vpop.eup %7013  ;;  %v721_v55 = vmul.f32 %v7012_v2, %v8414_v18  ;;  %v8581_v24 = vadd.f32 %v8398_v58, %v8406_v60  ;;  %v684_v14 = vmul.f32 1.442695, %v637_v49  ;;  %7029 = vpow2.f32 %v670_v36 }
  0xce   : > { %v7016_v32 = vpop.eup %7015  ;;  %v718_v38 = vmul.f32 %v7014_v21, %v8424_v31  ;;  %v634_v26 = vsub.f32 %v538_v30, %v584_v33  ;;  %v543_v5 = vmax.f32 %v479_v48, %v511_v51  ;;  %7031 = vpow2.f32 %v674_v45 }
  0xcf   : > { %1729 = vperm.xlu1 %6950, %v8162_v8   ;;  %1749 = vperm.xlu0 %6949, %v8175_v11   ;;  %v7018_v63 = vpop.eup %7017  ;;  %v719_v23 = vmul.f32 %v7016_v32, %v8412_v17  ;;  %v636_v34 = vsub.f32 %v540_v22, %v588_v42  ;;  %v545_v16 = vmax.f32 %v8540_v25, %v513_v3  ;;  %7033 = vpow2.f32 %v680_v54 }
  0xd0   : > { %v8585_v0 = vpop.permute.xlu1 %599  ;;  %v750_v44 = vpack.c.bf16 %v720_v9, %v718_v38  ;;  %v7020_v11 = vpop.eup %7019  ;;  %v639_v33 = vsub.f32 %v543_v5, %v8562_v29  ;;  %v723_v35 = vmul.f32 %v7018_v63, %v8436_v47  ;;  %7035 = vpow2.f32 %v684_v14 }
  0xd1   : > { %v8588_v59 = vpop.permute.xlu0 %603  ;;  %v751_v48 = vpack.c.bf16 %v721_v55, %v719_v23  ;;  %v7022_v7 = vpop.eup %7021  ;;  %v641_v20 = vsub.f32 %v545_v16, %v8564_v39  ;;  %v327_v25 = vunpack.c.0.s8 %v8591_v27  ;;  %v515_v49 = vmul.f32 0.2, %v8581_v24 }
  0xd2   : > { %v7024_v30 = vpop.eup %7023  ;;  %v678_v2 = vmul.f32 1.442695, %v634_v26  ;;  %v725_v36 = vmul.f32 %v7020_v11, %v8438_v40  ;;  %v8614_v45 = vadd.f32 %v8395_v56, %v8406_v60  ;;  %v682_v9 = vmul.f32 1.442695, %v636_v34  ;;  %v13321_v34 = vld [vmem:[#allocation19_spill] sm:$0xff] }
  0xd3   : > { %1737 = vperm.xlu1 %6950, %v8170_v10   ;;  %1757 = vperm.xlu0 %6949, %v8193_v15   ;;  %v7026_v3 = vpop.eup %7025  ;;  %v517_v15 = vmul.f32 0.2, %v8577_v43  ;;  %v542_v32 = vmax.f32 %v8548_v50, %v510_v28  ;;  %v8618_v54 = vmul.f32 0.2, %v8573_v46  ;;  %v688_v55 = vmul.f32 1.442695, %v639_v33 }
  0xd4   : > { %894 = vmatprep.mubr.bf16.mxu0 %v751_v48  ;;  %v8605_v51 = vpop.permute.xlu1 %607  ;;  %v544_v38 = vmax.f32 %v8536_v52, %v8558_v53  ;;  %v753_v14 = vpack.c.bf16 %v725_v36, %v723_v35  ;;  %v8624_v26 = vadd.f32 %v8398_v58, %v8432_v37  ;;  %v692_v5 = vmul.f32 1.442695, %v641_v20  ;;  %v13320_v50 = vld [vmem:[#allocation18_spill] sm:$0xff] }
  0xd5   : > { %v8608_v22 = vpop.permute.xlu0 %611  ;;  %895 = vmatmul.mubr.bf16.vlgmr.msra.gmra.mrb[0].mxu0 %v750_v44  ;;  %v7028_v63 = vpop.eup %7027  ;;  %v722_v60 = vmul.f32 %v7022_v7, %v8452_v61  ;;  %v724_v28 = vmul.f32 %v7024_v30, %v13320_v50  ;;  %7037 = vpow2.f32 %v678_v2  ;;  %v638_v23 = vsub.f32 %v542_v32, %v8562_v29  ;;  %v13322_v44 = vld [vmem:[#allocation13_spill] sm:$0xff]  ;;  %v13323_v7 = vld [vmem:[#allocation20_spill] sm:$0xff] }
  0xd6   : > { %v547_v52 = vmax.f32 %v8581_v24, %v515_v49  ;;  %902 = vmatprep.mubr.bf16.mxu0 %v753_v14  ;;  %v727_v16 = vmul.f32 %v7026_v3, %v13321_v34  ;;  %v489_v11 = vadd.f32 %v8398_v58, %v13322_v44  ;;  %7039 = vpow2.f32 %v682_v9 }
  0xd7   : > { %1745 = vperm.xlu1 %6950, %v8178_v12   ;;  %1765 = vperm.xlu0 %6949, %v8214_v19   ;;  %v640_v19 = vsub.f32 %v544_v38, %v8564_v39  ;;  %v549_v33 = vmax.f32 %v8577_v43, %v517_v15  ;;  %v7030_v35 = vpop.eup %7029  ;;  %v514_v29 = vmul.f32 0.2, %v8614_v45  ;;  %7041 = vpow2.f32 %v688_v55  ;;  %v13324_v39 = vld [vmem:[#allocation6_spill] sm:$0xff]  ;;  %v13329_v55 = vld [vmem:[#allocation24_spill] sm:$0xff] }
  0xd8   : > { %v8632_v53 = vpop.permute.xlu1 %615  ;;  %v643_v24 = vsub.f32 %v547_v52, %v8585_v0  ;;  %v729_v20 = vmul.f32 %v7028_v63, %v13323_v7  ;;  %v7032_v30 = vpop.eup %7031  ;;  %v519_v49 = vmul.f32 0.2, %v8624_v26  ;;  %7043 = vpow2.f32 %v692_v5 }
  0xd9   : > { %v8639_v48 = vpop.permute.xlu0 %619  ;;  %v645_v2 = vsub.f32 %v549_v33, %v8588_v59  ;;  %v752_v36 = vpack.c.bf16 %v724_v28, %v722_v60  ;;  %v8024_v43 = vmov 10   ;;  %v7034_v3 = vpop.eup %7033  ;;  %v686_v15 = vmul.f32 1.442695, %v638_v23 }
  0xda   : > { %v755_v9 = vpack.c.bf16 %v729_v20, %v727_v16  ;;  %v8648_v32 = vcvt.s32.f32 %v327_v25  ;;  %v7036_v38 = vpop.eup %7035  ;;  %v8653_v14 = vadd.f32 %v8395_v56, %v13322_v44  ;;  %v521_v63 = vmul.f32 0.2, %v489_v11  ;;  %v13328_v20 = vld [vmem:[#allocation23_spill] sm:$0xff] }
  0xdb   : > { %1753 = vperm.xlu1 %6950, %v13324_v39   ;;  %6952 = vset.pattern.permute.xlu0 %v8024_v43  ;;  %v8657_v5 = vadd.f32 %v8395_v56, %v8432_v37  ;;  %v690_v60 = vmul.f32 1.442695, %v640_v19  ;;  %v546_v52 = vmax.f32 %v8614_v45, %v514_v29  ;;  %v696_v16 = vmul.f32 1.442695, %v643_v24  ;;  %v13327_v19 = vld [vmem:[#allocation7_spill] sm:$0xff]  ;;  %v13330_v45 = vld [vmem:[#allocation25_spill] sm:$0xff] }
  0xdc   : > { %1877 = vperm.xlu0 %6952, %v8146_v4   ;;  %13325 = vst [vmem:[#allocation13_spill] sm:$0xff] %v8648_v32  ;;  %v13326_v4 = vld [vmem:[#allocation22_spill] sm:$0xff]  ;;  %v548_v44 = vmax.f32 %v8573_v46, %v8618_v54  ;;  %v700_v33 = vmul.f32 1.442695, %v645_v2  ;;  %v551_v37 = vmax.f32 %v8624_v26, %v519_v49  ;;  %v728_v21 = vmul.f32 %v7032_v30, %v13329_v55  ;;  %v13332_v46 = vld [vmem:[#allocation21_spill] sm:$0xff] }
  0xdd   : > { %903 = vmatmul.mubr.bf16.gmra.mrb[4].mxu0 %v752_v36  ;;  %v8659_v28 = vpop.permute.xlu1 %1072  ;;  %v8661_v23 = vpop.permute.xlu0 %1076  ;;  %v8665_v25 = vadd.f32 %v8398_v58, %v13326_v4  ;;  %v726_v36 = vmul.f32 %v7030_v35, %v13328_v20  ;;  %7045 = vpow2.f32 %v686_v15  ;;  %v642_v42 = vsub.f32 %v546_v52, %v8585_v0  ;;  %v13331_v24 = vld [vmem:[#allocation26_spill] sm:$0xff]  ;;  %v9047_v20 = vld [vmem:[%s8132_s9 + $0x60] sm:$0xff] }
  0xde   : > { %910 = vmatprep.mubr.bf16.mxu0 %v755_v9  ;;  %v731_v29 = vmul.f32 %v7034_v3, %v13330_v45  ;;  %v733_v7 = vmul.f32 %v7036_v38, %v13331_v24  ;;  %v493_v54 = vadd.f32 %v8398_v58, %v13332_v46  ;;  %7047 = vpow2.f32 %v690_v60  ;;  %v13333_v60 = vld [vmem:[#allocation5_spill] sm:$0xff]  ;;  %v8878_v24 = vld [vmem:[%s8132_s9 + $0x78] sm:$0xff]  ;;  %13387 = vst [vmem:[#allocation70_spill] sm:$0xff] %v9047_v20 }
  0xdf   : > { %1761 = vperm.xlu1 %6950, %v13327_v19   ;;  %v644_v26 = vsub.f32 %v548_v44, %v8588_v59  ;;  %v553_v49 = vmax.f32 %v489_v11, %v521_v63  ;;  %v7038_v30 = vpop.eup %7037  ;;  %v520_v0 = vmul.f32 0.2, %v8653_v14  ;;  %7049 = vpow2.f32 %v696_v16 }
  0xe0   : > { %1889 = vperm.xlu0 %6952, %v8154_v6   ;;  %v518_v6 = vmul.f32 0.2, %v8657_v5  ;;  %v647_v3 = vsub.f32 %v551_v37, %v8605_v51  ;;  %v7040_v15 = vpop.eup %7039  ;;  %v523_v9 = vmul.f32 0.2, %v8665_v25  ;;  %7051 = vpow2.f32 %v700_v33 }
  0xe1   : > { %v8681_v2 = vpop.permute.xlu1 %1080  ;;  %v8683_v35 = vpop.permute.xlu0 %1088  ;;  %v649_v58 = vsub.f32 %v553_v49, %v8608_v22  ;;  %v754_v59 = vpack.c.bf16 %v728_v21, %v726_v36  ;;  %v694_v38 = vmul.f32 1.442695, %v642_v42  ;;  %v757_v63 = vpack.c.bf16 %v733_v7, %v731_v29 }
  0xe2   : > { %v7042_v11 = vpop.eup %7041  ;;  %v13334_v52 = vunpack.c.1.s8 %v8591_v27  ;;  %v331_v44 = vunpack.c.2.s8 %v8591_v27  ;;  %v8699_v33 = vadd.f32 %v8395_v56, %v13332_v46  ;;  %v525_v21 = vmul.f32 0.2, %v493_v54 }
  0xe3   : > { %6951 = vset.pattern.permute.xlu1 %v8024_v43  ;;  %v7044_v37 = vpop.eup %7043  ;;  %v698_v43 = vmul.f32 1.442695, %v644_v26  ;;  %v8708_v36 = vadd.f32 %v8395_v56, %v13326_v4  ;;  %v550_v29 = vmax.f32 %v8657_v5, %v518_v6  ;;  %v704_v49 = vmul.f32 1.442695, %v647_v3 }
  0xe4   : > { %1873 = vperm.xlu1 %6951, %v13333_v60   ;;  %1897 = vperm.xlu0 %6952, %v8162_v8   ;;  %v8694_v16 = vcvt.s32.f32 %v13334_v52  ;;  %v333_v8 = vunpack.c.3.s8 %v8591_v27  ;;  %v552_v60 = vmax.f32 %v8653_v14, %v520_v0  ;;  %v708_v46 = vmul.f32 1.442695, %v649_v58 }
  0xe5   : > { %911 = vmatmul.mubr.bf16.gmra.mrb[8].mxu0 %v754_v59  ;;  %v8701_v42 = vpop.permute.xlu1 %1084  ;;  %v8703_v7 = vpop.permute.xlu0 %1096  ;;  %v555_v26 = vmax.f32 %v8665_v25, %v523_v9  ;;  %v730_v59 = vmul.f32 %v7038_v30, %v8506_v57  ;;  %v732_v52 = vmul.f32 %v7040_v15, %v8552_v62  ;;  %7053 = vpow2.f32 %v694_v38 }
  0xe6   : > { %13335 = vst [vmem:[#allocation6_spill] sm:$0xff] %v8694_v16  ;;  %918 = vmatprep.mubr.bf16.mxu0 %v757_v63  ;;  %v646_v27 = vsub.f32 %v550_v29, %v8605_v51  ;;  %v735_v56 = vmul.f32 %v7042_v11, %v8648_v32  ;;  %v737_v5 = vmul.f32 %v7044_v37, %v8694_v16  ;;  %7055 = vpow2.f32 %v698_v43  ;;  %v8739_v11 = vld [vmem:[%s8366_s17 + $0x38] sm:$0xff] }
  0xe7   : > { %v648_v14 = vsub.f32 %v552_v60, %v8608_v22  ;;  %v557_v4 = vmax.f32 %v493_v54, %v525_v21  ;;  %v13336_v0 = vunpack.c.0.s8 %v8595_v13  ;;  %7057 = vpow2.f32 %v704_v49  ;;  %v8743_v43 = vld [vmem:[%s8132_s9 + $0x18] sm:$0xff] }
  0xe8   : > { %1881 = vperm.xlu1 %6951, %v8135_v1   ;;  %1905 = vperm.xlu0 %6952, %v8170_v10   ;;  %v7046_v1 = vpop.eup %7045  ;;  %v651_v10 = vsub.f32 %v555_v26, %v8632_v53  ;;  %v13338_v6 = vunpack.c.1.s8 %v8595_v13  ;;  %v8734_v15 = vcvt.s32.f32 %v331_v44  ;;  %v522_v54 = vmul.f32 0.2, %v8708_v36  ;;  %v13342_v60 = vld [vmem:[#allocation8_spill] sm:$0xff] }
  0xe9   : > { %v8721_v25 = vpop.permute.xlu1 %1092  ;;  %v8723_v30 = vpop.permute.xlu0 %1104  ;;  %v8727_v51 = vcvt.s32.f32 %v13336_v0  ;;  %7059 = vpow2.f32 %v708_v46  ;;  %v653_v9 = vsub.f32 %v557_v4, %v8639_v48  ;;  %v756_v58 = vpack.c.bf16 %v732_v52, %v730_v59 }
  0xea   : > { %v8732_v3 = vcvt.s32.f32 %v13338_v6  ;;  %13340 = vst [vmem:[#allocation21_spill] sm:$0xff] %v8734_v15  ;;  %v7048_v22 = vpop.eup %7047  ;;  %v524_v63 = vmul.f32 0.2, %v8699_v33  ;;  %v702_v37 = vmul.f32 1.442695, %v646_v27  ;;  %v759_v21 = vpack.c.bf16 %v737_v5, %v735_v56 }
  0xeb   : > { %13337 = vst [vmem:[#allocation22_spill] sm:$0xff] %v8727_v51  ;;  %v7050_v38 = vpop.eup %7049  ;;  %v8747_v44 = vcvt.s32.f32 %v333_v8  ;;  %v706_v49 = vmul.f32 1.442695, %v648_v14  ;;  %v12958_v46 = vsub.s32 1, %v13342_v60  ;;  %v330_v52 = vunpack.c.2.s8 %v8595_v13 }
  0xec   : > { %13339 = vst [vmem:[#allocation7_spill] sm:$0xff] %v8732_v3  ;;  %1885 = vperm.xlu1 %6951, %v8743_v43   ;;  %1913 = vperm.xlu0 %6952, %v8178_v12   ;;  %v7052_v29 = vpop.eup %7051  ;;  %v712_v27 = vmul.f32 1.442695, %v651_v10  ;;  %v332_v56 = vunpack.c.3.s8 %v8595_v13  ;;  %v335_v12 = vunpack.c.0.s8 %v8739_v11  ;;  %v337_v8 = vunpack.c.1.s8 %v8739_v11 }
  0xed   : > { %13341 = vst [vmem:[#allocation5_spill] sm:$0xff] %v8747_v44  ;;  %919 = vmatmul.mubr.bf16.gmra.mrb[12].mxu0 %v756_v58  ;;  %v8750_v26 = vpop.permute.xlu1 %1100  ;;  %v8752_v59 = vpop.permute.xlu0 %1112  ;;  %v554_v5 = vmax.f32 %v8708_v36, %v522_v54  ;;  %v716_v14 = vmul.f32 1.442695, %v653_v9  ;;  %v734_v4 = vmul.f32 %v7046_v1, %v8727_v51  ;;  %v736_v0 = vmul.f32 %v7048_v22, %v8732_v3  ;;  %v8763_v58 = vld [vmem:[%s8132_s9 + $0x28] sm:$0xff]  ;;  %v13343_v1 = vld [vmem:[#allocation9_spill] sm:$0xff]  ;;  %v8832_v3 = vld [vmem:[%s8132_s9 + $0x58] sm:$0xff] }
  0xee   : > { %926 = vmatprep.mubr.bf16.mxu0 %v759_v21  ;;  %7061 = vpow2.f32 %v702_v37  ;;  %v556_v6 = vmax.f32 %v8699_v33, %v524_v63  ;;  %v739_v13 = vmul.f32 %v7050_v38, %v8734_v15  ;;  %v741_v10 = vmul.f32 %v7052_v29, %v8747_v44  ;;  %v8838_v15 = vld [vmem:[%s12934_s2 + $0x10] sm:$0xff]  }
  0xef   : > { %7063 = vpow2.f32 %v706_v49  ;;  %v650_v36 = vsub.f32 %v554_v5, %v8632_v53  ;;  %v8773_v22 = vrot.slane %v13343_v1, %v12958_v46  ;;  %v7054_v9 = vpop.eup %7053  ;;  %v758_v63 = vpack.c.bf16 %v736_v0, %v734_v4  ;;  %v8785_v49 = vld [vmem:[%s8132_s9 + $0x38] sm:$0xff]  ;;  %13353 = vst [vmem:[#allocation37_spill] sm:$0xff] %v8838_v15 }
  0xf0   : > { %1893 = vperm.xlu1 %6951, %v8763_v58   ;;  %1921 = vperm.xlu0 %6952, %v13324_v39   ;;  %7065 = vpow2.f32 %v712_v27  ;;  %v652_v39 = vsub.f32 %v556_v6, %v8639_v48  ;;  %v7056_v38 = vpop.eup %7055  ;;  %v8780_v37 = vcvt.s32.f32 %v330_v52  ;;  %v8782_v53 = vcvt.s32.f32 %v332_v56  ;;  %v8794_v48 = vld [vmem:[%s8366_s17 + $0x30] sm:$0xff] }
  0xf1   : > { %v8775_v33 = vpop.permute.xlu1 %1108  ;;  %v8777_v54 = vpop.permute.xlu0 %1120  ;;  %7067 = vpow2.f32 %v716_v14  ;;  %v761_v29 = vpack.c.bf16 %v741_v10, %v739_v13  ;;  %v8789_v5 = vcvt.s32.f32 %v335_v12  ;;  %v8791_v27 = vcvt.s32.f32 %v337_v8  ;;  %v8807_v10 = vld [vmem:[%s8132_s9 + $0x48] sm:$0xff] }
  0xf2   : > { %13344 = vst [vmem:[#allocation9_spill] sm:$0xff] %v8780_v37  ;;  %13345 = vst [vmem:[#allocation29_spill] sm:$0xff] %v8782_v53  ;;  %v7058_v21 = vpop.eup %7057  ;;  %v710_v52 = vmul.f32 1.442695, %v650_v36  ;;  %v1144_v56 = vadd.f32 %v8773_v22, %v8659_v28  ;;  %v714_v6 = vmul.f32 1.442695, %v652_v39  ;;  %v740_v12 = vmul.f32 %v7056_v38, %v8782_v53 }
  0xf3   : > { %13346 = vst [vmem:[#allocation30_spill] sm:$0xff] %v8789_v5  ;;  %13347 = vst [vmem:[#allocation31_spill] sm:$0xff] %v8791_v27  ;;  %v7060_v14 = vpop.eup %7059  ;;  %v334_v8 = vunpack.c.0.s8 %v8794_v48  ;;  %v336_v13 = vunpack.c.1.s8 %v8794_v48  ;;  %v8813_v36 = vld [vmem:[%s12934_s2] sm:$0xff]   ;;  %v743_v1 = vmul.f32 %v7058_v21, %v8789_v5  ;;  %v339_v39 = vunpack.c.2.s8 %v8739_v11 }
  0xf4   : > { %1901 = vperm.xlu1 %6951, %v8785_v49   ;;  %1929 = vperm.xlu0 %6952, %v13327_v19   ;;  %v738_v19 = vmul.f32 %v7054_v9, %v8780_v37  ;;  %13349 = vst [vmem:[#allocation33_spill] sm:$0xff] %v8813_v36  ;;  %v745_v9 = vmul.f32 %v7060_v14, %v8791_v27  ;;  %v341_v38 = vunpack.c.3.s8 %v8739_v11  ;;  %7069 = vpow2.f32 %v710_v52 }
  0xf5   : > { %927 = vmatmul.mubr.bf16.gmra.mrb[16].mxu0 %v758_v63  ;;  %v8798_v4 = vpop.permute.xlu1 %1116  ;;  %v8800_v0 = vpop.permute.xlu0 %1128  ;;  %v1176_v63 = vmul.f32 0.2, %v1144_v56  ;;  %v8026_v53 = vmov 3   ;;  %7071 = vpow2.f32 %v714_v6  ;;  %v8827_v27 = vcvt.s32.f32 %v334_v8 }
  0xf6   : > { %13348 = vst [vmem:[#allocation32_spill] sm:$0xff] %v8800_v0  ;;  %934 = vmatprep.mubr.bf16.mxu0 %v761_v29  ;;  %v1146_v29 = vadd.f32 %v8773_v22, %v8661_v23  ;;  %v760_v14 = vpack.c.bf16 %v740_v12, %v738_v19  ;;  %v8829_v5 = vcvt.s32.f32 %v336_v13  ;;  %v763_v52 = vpack.c.bf16 %v745_v9, %v743_v1 }
  0xf7   : > { %13351 = vst [vmem:[#allocation35_spill] sm:$0xff] %v8827_v27  ;;  %v8842_v6 = vcvt.s32.f32 %v339_v39  ;;  %v8844_v19 = vcvt.s32.f32 %v341_v38  ;;  %v1208_v13 = vmax.f32 %v1144_v56, %v1176_v63  ;;  %v340_v38 = vunpack.c.3.s8 %v8794_v48  ;;  %v8862_v56 = vld [vmem:[%s12934_s2 + $0x20] sm:$0xff]  }
  0xf8   : > { %1909 = vperm.xlu1 %6951, %v8807_v10   ;;  %2080 = vrot.lane.b32.xlu0 %v8813_v36, %s8025_s8  ;;  %v7062_v37 = vpop.eup %7061  ;;  %13352 = vst [vmem:[#allocation36_spill] sm:$0xff] %v8829_v5  ;;  %v1178_v8 = vmul.f32 0.2, %v1146_v29  ;;  %v338_v36 = vunpack.c.2.s8 %v8794_v48  ;;  %13357 = vst [vmem:[#allocation41_spill] sm:$0xff] %v8862_v56  ;;  %v13038_v34 = vmov 11  }
  0xf9   : > { %v8823_v46 = vpop.permute.xlu1 %1124  ;;  %6954 = vset.pattern.permute.xlu0 %v8026_v53  ;;  %v7064_v21 = vpop.eup %7063  ;;  %13354 = vst [vmem:[#allocation38_spill] sm:$0xff] %v8842_v6  ;;  %13355 = vst [vmem:[#allocation39_spill] sm:$0xff] %v8844_v19  ;;  %v742_v16 = vmul.f32 %v7062_v37, %v8827_v27  ;;  %v8875_v32 = vcvt.s32.f32 %v340_v38  ;;  %v8922_v38 = vld [vmem:[%s12934_s2 + $0x50] sm:$0xff]  }
  0xfa   : > { %13350 = vst [vmem:[#allocation34_spill] sm:$0xff] %v8823_v46  ;;  %v8825_v44 = vpop.permute.xlu0 %1240  ;;  %v7066_v11 = vpop.eup %7065  ;;  %v744_v39 = vmul.f32 %v7064_v21, %v8829_v5  ;;  %v1210_v21 = vmax.f32 %v1146_v29, %v1178_v8  ;;  %v8884_v29 = vld [vmem:[%s12934_s2 + $0x30] sm:$0xff]   ;;  %v8897_v8 = vld [vmem:[%s12934_s2 + $0x8] sm:$0xff]   ;;  %13365 = vst [vmem:[#allocation49_spill] sm:$0xff] %v8922_v38 }
  0xfb   : > { %v7068_v12 = vpop.eup %7067  ;;  %v1304_v51 = vsub.f32 %v1208_v13, %v8825_v44  ;;  %v747_v63 = vmul.f32 %v7066_v11, %v8842_v6  ;;  %13359 = vst [vmem:[#allocation43_spill] sm:$0xff] %v8875_v32  ;;  %13360 = vst [vmem:[#allocation44_spill] sm:$0xff] %v8884_v29  ;;  %v8971_v6 = vld [vmem:[%s12934_s2 + $0x48] sm:$0xff]  }
  0xfc   : > { %1917 = vperm.xlu1 %6951, %v8832_v3   ;;  %2084 = vrot.lane.b32.xlu0 %v8838_v15, %s8025_s8  ;;  %v8856_v15 = vld [vmem:[%s8132_s9 + $0x68] sm:$0xff]  ;;  %v749_v37 = vmul.f32 %v7068_v12, %v8844_v19  ;;  %v762_v27 = vpack.c.bf16 %v744_v39, %v742_v16  ;;  %13361 = vst [vmem:[#allocation45_spill] sm:$0xff] %v8897_v8  ;;  %v8915_v39 = vld [vmem:[%s12934_s2 + $0x18] sm:$0xff]   ;;  %13374 = vst [vmem:[#allocation58_spill] sm:$0xff] %v8971_v6 }
  0xfd   : > { %935 = vmatmul.mubr.bf16.gmra.mrb[20].mxu0 %v760_v14  ;;  %v8846_v1 = vpop.permute.xlu1 %1132  ;;  %v1337_v5 = vmul.f32 1.442695, %v1304_v51  ;;  %13364 = vst [vmem:[#allocation48_spill] sm:$0xff] %v8915_v39 }
  0xfe   : > { %13356 = vst [vmem:[#allocation40_spill] sm:$0xff] %v8846_v1  ;;  %942 = vmatprep.mubr.bf16.mxu0 %v763_v52  ;;  %v8848_v9 = vpop.permute.xlu0 %1252  ;;  %v8872_v52 = vcvt.s32.f32 %v338_v36  ;;  %v7070_v13 = vpop.eup %7069 }
  0xff   : > { %v7072_v57 = vpop.eup %7071  ;;  %7073 = vpow2.f32 %v1337_v5 }
 0x100   : > { %1925 = vperm.xlu1 %6951, %v8856_v15   ;;  %2088 = vrot.lane.b32.xlu0 %v8862_v56, %s8025_s8  ;;  %13358 = vst [vmem:[#allocation42_spill] sm:$0xff] %v8872_v52  ;;  %v765_v56 = vpack.c.bf16 %v749_v37, %v747_v63  ;;  %v746_v11 = vmul.f32 %v7070_v13, %v8872_v52  ;;  %v8933_v63 = vld [vmem:[%s12934_s2 + $0x28] sm:$0xff]   ;;  %v8940_v37 = vld [vmem:[%s12934_s2 + $0x60] sm:$0xff]  }
 0x101   : > { %v748_v12 = vmul.f32 %v7072_v57, %v8875_v32  ;;  %13367 = vst [vmem:[#allocation51_spill] sm:$0xff] %v8933_v63  ;;  %13368 = vst [vmem:[#allocation52_spill] sm:$0xff] %v8940_v37 }
 0x102   : > { %v8868_v14 = vpop.permute.xlu1 %1244  ;;  %v8870_v48 = vpop.permute.xlu0 %1260 }
 0x103   : > { %v1306_v62 = vsub.f32 %v1210_v21, %v8868_v14 }
 0x104   : > { %1933 = vperm.xlu1 %6951, %v8878_v24   ;;  %2092 = vrot.lane.b32.xlu0 %v8884_v29, %s8025_s8  ;;  %v8999_v29 = vld [vmem:[%s12934_s2 + $0x68] sm:$0xff]  }
 0x105   : > { %943 = vmatmul.mubr.bf16.gmra.mrb[24].mxu0 %v762_v27  ;;  %v1341_v16 = vmul.f32 1.442695, %v1306_v62  ;;  %v8904_v62 = vld [vmem:[%s12934_s2 + $0x40] sm:$0xff]   ;;  %v764_v27 = vpack.c.bf16 %v748_v12, %v746_v11  ;;  %v8951_v12 = vld [vmem:[%s12934_s2 + $0x38] sm:$0xff]   ;;  %13379 = vst [vmem:[#allocation63_spill] sm:$0xff] %v8999_v29 }
 0x106   : > { %950 = vmatprep.mubr.bf16.mxu0 %v765_v56  ;;  %v8888_v51 = vpop.permute.xlu1 %1248  ;;  %v8890_v36 = vpop.permute.xlu0 %1268  ;;  %13362 = vst [vmem:[#allocation46_spill] sm:$0xff] %v8904_v62  ;;  %13370 = vst [vmem:[#allocation54_spill] sm:$0xff] %v8951_v12 }
 0x107   : > { %7075 = vpow2.f32 %v1341_v16 }
 0x108   : > { %2082 = vrot.lane.b32.xlu1 %v8897_v8, %s8025_s8  ;;  %2096 = vrot.lane.b32.xlu0 %v8904_v62, %s8025_s8 }
 0x109   : > { %6953 = vset.pattern.permute.xlu1 %v8026_v53  ;;  %v7074_v21 = vpop.eup %7073 }
 0x10a   : > { %v8908_v5 = vpop.permute.xlu1 %1256  ;;  %v8910_v57 = vpop.permute.xlu0 %1276  ;;  %v1400_v32 = vmul.f32 %v7074_v21, %v8412_v17 }
 0x10b   : > { %13363 = vst [vmem:[#allocation47_spill] sm:$0xff] %v8910_v57 }
 0x10c   : > { %2086 = vrot.lane.b32.xlu1 %v8915_v39, %s8025_s8  ;;  %2100 = vrot.lane.b32.xlu0 %v8922_v38, %s8025_s8  ;;  %v1148_v39 = vadd.f32 %v8773_v22, %v8681_v2 }
 0x10d   : > { %951 = vmatmul.mubr.bf16.gmra.mrb[28].mxu0 %v764_v27  ;;  %v8958_v27 = vld [vmem:[%s12934_s2 + $0x70] sm:$0xff]  }
 0x10e   : > { %v8926_v53 = vpop.permute.xlu1 %1264  ;;  %v8928_v56 = vpop.permute.xlu0 %1284  ;;  %13371 = vst [vmem:[#allocation55_spill] sm:$0xff] %v8958_v27  ;;  %v1180_v50 = vmul.f32 0.2, %v1148_v39 }
 0x10f   : > { %13366 = vst [vmem:[#allocation50_spill] sm:$0xff] %v8928_v56 }
 0x110   : > { %2090 = vrot.lane.b32.xlu1 %v8933_v63, %s8025_s8  ;;  %2104 = vrot.lane.b32.xlu0 %v8940_v37, %s8025_s8  ;;  %v9043_v63 = vld [vmem:[%s8132_s9 + $0x10] sm:$0xff]  ;;  %v1212_v0 = vmax.f32 %v1148_v39, %v1180_v50 }
 0x111   : > { %v7076_v13 = vpop.eup %7075 }
 0x112   : > { %v8944_v16 = vpop.permute.xlu1 %1272  ;;  %v8946_v11 = vpop.permute.xlu0 %1292  ;;  %v1402_v37 = vmul.f32 %v7076_v13, %v8414_v18  ;;  %v9004_v18 = vld [vmem:[%s8132_s9 + $0x30] sm:$0xff] }
 0x113   : > { %13369 = vst [vmem:[#allocation53_spill] sm:$0xff] %v8946_v11  ;;  %13380 = vst [vmem:[#allocation64_spill] sm:$0xff] %v9004_v18  ;;  %v9023_v11 = vld [vmem:[%s8132_s9] sm:$0xff] }
 0x114   : > { %2094 = vrot.lane.b32.xlu1 %v8951_v12, %s8025_s8  ;;  %2108 = vrot.lane.b32.xlu0 %v8958_v27, %s8025_s8  ;;  %v1432_v38 = vpack.c.bf16 %v1402_v37, %v1400_v32  ;;  %v8976_v27 = vld [vmem:[%s8132_s9 + $0x8] sm:$0xff]  ;;  %v8989_v37 = vld [vmem:[%s8132_s9 + $0x20] sm:$0xff]  ;;  %13383 = vst [vmem:[#allocation67_spill] sm:$0xff] %v9023_v11 }
 0x115   : > { %13377 = vst [vmem:[#allocation61_spill] sm:$0xff] %v8989_v37  ;;  %v9027_v12 = vld [vmem:[%s8132_s9 + $0x50] sm:$0xff] }
 0x116   : > { %v8964_v52 = vpop.permute.xlu1 %1280  ;;  %v8966_v19 = vpop.permute.xlu0 %1300  ;;  %1527 = vmatprep.mubr.bf16.mxu1 %v1432_v38  ;;  %v8984_v38 = vld [vmem:[%s12934_s2 + $0x58] sm:$0xff]   ;;  %13384 = vst [vmem:[#allocation68_spill] sm:$0xff] %v9027_v12 }
 0x117   : > { %13372 = vst [vmem:[#allocation56_spill] sm:$0xff] %v8964_v52  ;;  %13373 = vst [vmem:[#allocation57_spill] sm:$0xff] %v8966_v19 }
 0x118   : > { %2098 = vrot.lane.b32.xlu1 %v8971_v6, %s8025_s8  ;;  %2342 = vperm.xlu0 %6954, %v8976_v27   ;;  %13376 = vst [vmem:[#allocation60_spill] sm:$0xff] %v8984_v38 }
 0x11a   : > { %v8979_v21 = vpop.permute.xlu1 %1288  ;;  %v1450_v32 = vpop.permute.xlu0 %1449 }
 0x11b   : > { %13375 = vst [vmem:[#allocation59_spill] sm:$0xff] %v8979_v21  ;;  %v13386_v21 = vsub.s32 1, %v13342_v60 }
 0x11c   : > { %2102 = vrot.lane.b32.xlu1 %v8984_v38, %s8025_s8  ;;  %2354 = vperm.xlu0 %6954, %v8989_v37   ;;  %v9012_v38 = vld [vmem:[%s12934_s2 + $0x78] sm:$0xff]  }
 0x11d   : > { %13381 = vst [vmem:[#allocation65_spill] sm:$0xff] %v9012_v38 }
 0x11e   : > { %v8992_v13 = vpop.permute.xlu1 %1296  ;;  %v8994_v62 = vpop.permute.xlu0 %1453 }
 0x11f   : > { %13378 = vst [vmem:[#allocation62_spill] sm:$0xff] %v8992_v13  ;;  %v9017_v13 = vld [vmem:[%s8132_s9 + $0x40] sm:$0xff] }
 0x120   : > { %2106 = vrot.lane.b32.xlu1 %v8999_v29, %s8025_s8  ;;  %2362 = vperm.xlu0 %6954, %v9004_v18   ;;  %13382 = vst [vmem:[#allocation66_spill] sm:$0xff] %v9017_v13  ;;  %v9062_v18 = vld [vmem:[%s8132_s9 + $0x70] sm:$0xff] }
 0x121   : > { %13388 = vst [vmem:[#allocation71_spill] sm:$0xff] %v9062_v18 }
 0x122   : > { %v1448_v17 = vpop.permute.xlu1 %1447  ;;  %v9007_v19 = vpop.permute.xlu0 %1457 }
 0x124   : > { %2110 = vrot.lane.b32.xlu1 %v9012_v38, %s8025_s8  ;;  %2370 = vperm.xlu0 %6954, %v9017_v13   ;;  %v9035_v38 = vld [vmem:[%s12932_s0] sm:$0xff] }
 0x125   : > { %13385 = vst [vmem:[#allocation69_spill] sm:$0xff] %v9035_v38  ;;  %v9040_v45 = vrot.slane %v9035_v38, %v13386_v21  ;;  %v1150_v38 = vadd.f32 %v8773_v22, %v8701_v42 }
 0x126   : > { %v1452_v29 = vpop.permute.xlu1 %1451  ;;  %v9020_v6 = vpop.permute.xlu0 %1461 }
 0x127   : > { %v1143_v21 = vadd.f32 %v9040_v45, %v8659_v28  ;;  %v1182_v28 = vmul.f32 0.2, %v1150_v38  ;;  %v1147_v8 = vadd.f32 %v9040_v45, %v8681_v2  ;;  %v1308_v2 = vsub.f32 %v1212_v0, %v8888_v51 }
 0x128   : > { %2338 = vperm.xlu1 %6953, %v9023_v11   ;;  %2378 = vperm.xlu0 %6954, %v9027_v12   ;;  %v1145_v12 = vadd.f32 %v9040_v45, %v8661_v23 }
 0x129   : > { %v1175_v46 = vmul.f32 0.2, %v1143_v21 }
 0x12a   : > { %v9030_v1 = vpop.permute.xlu1 %1455  ;;  %v1466_v55 = vpop.permute.xlu0 %1465 }
 0x12b   : > { %v1207_v57 = vmax.f32 %v1143_v21, %v1175_v46  ;;  %v1156_v21 = vadd.f32 %v8773_v22, %v8703_v7 }
 0x12c   : > { %2346 = vperm.xlu1 %6953, %v9043_v63   ;;  %2386 = vperm.xlu0 %6954, %v9047_v20   ;;  %v1177_v20 = vmul.f32 0.2, %v1145_v12 }
 0x12e   : > { %v9052_v13 = vpop.permute.xlu1 %1459  ;;  %v1470_v56 = vpop.permute.xlu0 %1469  ;;  %v1209_v61 = vmax.f32 %v1145_v12, %v1177_v20  ;;  %v1214_v20 = vmax.f32 %v1150_v38, %v1182_v28  ;;  %v1179_v12 = vmul.f32 0.2, %v1147_v8  ;;  %v1345_v38 = vmul.f32 1.442695, %v1308_v2 }
 0x12f   : > { %v1188_v2 = vmul.f32 0.2, %v1156_v21 }
 0x130   : > { %2350 = vperm.xlu1 %6953, %v8743_v43   ;;  %2394 = vperm.xlu0 %6954, %v9062_v18   ;;  %v1211_v0 = vmax.f32 %v1147_v8, %v1179_v12 }
 0x132   : > { %v1464_v23 = vpop.permute.xlu1 %1463  ;;  %v9065_v52 = vpop.permute.xlu0 %1473 }
 0x133   : > { %6423 = vmatprep.subr.bf16.mxu1 %v1464_v23  ;;  %v1152_v23 = vadd.f32 %v8773_v22, %v8683_v35 }
 0x134   : > { %2358 = vperm.xlu1 %6953, %v8763_v58   ;;  %6424 = vmatpush3.bf16.msra.mxu1 %v1448_v17  ;;  %v1149_v17 = vadd.f32 %v9040_v45, %v8701_v42 }
 0x135   : > { %6955 = vset.pattern.permute.xlu0 %v13038_v34  ;;  %6425 = vmatprep.subr.bf16.mxu1 %v1466_v55  ;;  %v1305_v34 = vsub.f32 %v1209_v61, %v8868_v14  ;;  %v1154_v55 = vadd.f32 %v8773_v22, %v8721_v25  ;;  %v1184_v46 = vmul.f32 0.2, %v1152_v23  ;;  %v1310_v61 = vsub.f32 %v1214_v20, %v8848_v9 }
 0x136   : > { %2506 = vperm.xlu0 %6955, %v9023_v11   ;;  %v1468_v18 = vpop.permute.xlu1 %1467  ;;  %v9072_v37 = vpop.permute.xlu0 %1477  ;;  %v1303_v11 = vsub.f32 %v1207_v57, %v8825_v44  ;;  %v1181_v14 = vmul.f32 0.2, %v1149_v17 }
 0x137   : > { %v1339_v39 = vmul.f32 1.442695, %v1305_v34  ;;  %v1349_v34 = vmul.f32 1.442695, %v1310_v61  ;;  %v1216_v28 = vmax.f32 %v1152_v23, %v1184_v46  ;;  %v9121_v46 = vld [vmem:[%s12932_s0 + $0x8] sm:$0xff] }
 0x138   : > { %2366 = vperm.xlu1 %6953, %v8785_v49   ;;  %6426 = vmatpush3.bf16.msra.mxu1 %v1450_v32  ;;  %v1186_v32 = vmul.f32 0.2, %v1154_v55  ;;  %v1335_v44 = vmul.f32 1.442695, %v1303_v11  ;;  %v1213_v20 = vmax.f32 %v1149_v17, %v1181_v14 }
 0x139   : > { %6427 = vmatprep.subr.bf16.mxu1 %v1468_v18  ;;  %v1151_v18 = vadd.f32 %v9040_v45, %v8683_v35  ;;  %7077 = vpow2.f32 %v1339_v39  ;;  %v1307_v35 = vsub.f32 %v1211_v0, %v8888_v51  ;;  %v1312_v11 = vsub.f32 %v1216_v28, %v8908_v5 }
 0x13a   : > { %2518 = vperm.xlu0 %6955, %v8743_v43   ;;  %v1472_v50 = vpop.permute.xlu1 %1471  ;;  %v9085_v42 = vpop.permute.xlu0 %1705  ;;  %v1218_v8 = vmax.f32 %v1154_v55, %v1186_v32  ;;  %7079 = vpow2.f32 %v1345_v38 }
 0x13b   : > { %v1183_v23 = vmul.f32 0.2, %v1151_v18  ;;  %7081 = vpow2.f32 %v1335_v44  ;;  %v1343_v55 = vmul.f32 1.442695, %v1307_v35  ;;  %v9144_v44 = vadd.f32 %v9040_v45, %v8750_v26 }
 0x13c   : > { %2374 = vperm.xlu1 %6953, %v8807_v10   ;;  %6428 = vmatpush3.bf16.msra.mxu1 %v1452_v29  ;;  %v13040_v29 = vsub.s32 2, %v13342_v60  ;;  %7083 = vpow2.f32 %v1349_v34  ;;  %v1220_v34 = vmax.f32 %v1156_v21, %v1188_v2 }
 0x13d   : > { %6429 = vmatprep.subr.bf16.mxu1 %v1470_v56  ;;  %v1153_v56 = vadd.f32 %v9040_v45, %v8721_v25  ;;  %v1309_v25 = vsub.f32 %v1213_v20, %v8848_v9  ;;  %v1215_v39 = vmax.f32 %v1151_v18, %v1183_v23  ;;  %7085 = vpow2.f32 %v1343_v55 }
 0x13e   : > { %2526 = vperm.xlu0 %6955, %v8763_v58   ;;  %v1476_v43 = vpop.permute.xlu1 %1475  ;;  %v9092_v57 = vpop.permute.xlu0 %1717  ;;  %v1158_v58 = vadd.f32 %v8773_v22, %v8750_v26  ;;  %v9126_v61 = vrot.slane %v9121_v46, %v13040_v29  ;;  %v9159_v26 = vadd.f32 %v8773_v22, %v8775_v33  ;;  %v1316_v21 = vsub.f32 %v1220_v34, %v8926_v53  ;;  %v13400_v29 = vld [vmem:[#allocation19_spill] sm:$0xff] }
 0x13f   : > { %v1185_v12 = vmul.f32 0.2, %v1153_v56  ;;  %v1347_v14 = vmul.f32 1.442695, %v1309_v25  ;;  %v1311_v28 = vsub.f32 %v1215_v39, %v8908_v5  ;;  %v13389_v55 = vmov 11  }
 0x140   : > { %2382 = vperm.xlu1 %6953, %v8832_v3   ;;  %6430 = vmatpush3.bf16.msra.mxu1 %v8994_v62  ;;  %v1314_v62 = vsub.f32 %v1218_v8, %v8870_v48  ;;  %v1190_v9 = vmul.f32 0.2, %v1158_v58  ;;  %v1361_v39 = vmul.f32 1.442695, %v1316_v21 }
 0x141   : > { %6431 = vmatprep.subr.bf16.mxu1 %v1472_v50  ;;  %v9116_v50 = vadd.f32 %v9040_v45, %v8703_v7  ;;  %v9135_v7 = vadd.f32 %v8773_v22, %v8723_v30  ;;  %v1217_v18 = vmax.f32 %v1153_v56, %v1185_v12  ;;  %v1351_v12 = vmul.f32 1.442695, %v1311_v28 }
 0x142   : > { %2534 = vperm.xlu0 %6955, %v8785_v49   ;;  %v9107_v17 = vpop.permute.xlu1 %1709  ;;  %v9109_v51 = vpop.permute.xlu0 %1725  ;;  %v1353_v49 = vmul.f32 1.442695, %v1312_v11  ;;  %v1357_v0 = vmul.f32 1.442695, %v1314_v62  ;;  %v1222_v20 = vmax.f32 %v1158_v58, %v1190_v9  ;;  %v9183_v62 = vadd.f32 %v9040_v45, %v8775_v33 }
 0x143   : > { %v7078_v35 = vpop.eup %7077  ;;  %v1313_v5 = vsub.f32 %v1217_v18, %v8870_v48  ;;  %v1192_v11 = vmul.f32 0.2, %v9135_v7 }
 0x144   : > { %2390 = vperm.xlu1 %6953, %v8856_v15   ;;  %6432 = vmatpush3.bf16.msra.mxu1 %v9030_v1  ;;  %v9131_v1 = vadd.f32 %v9040_v45, %v8723_v30  ;;  %v9152_v30 = vadd.f32 %v8773_v22, %v8752_v59  ;;  %7087 = vpow2.f32 %v1353_v49  ;;  %v7080_v58 = vpop.eup %7079  ;;  %v1318_v23 = vsub.f32 %v1222_v20, %v8890_v36 }
 0x145   : > { %6433 = vmatprep.subr.bf16.mxu1 %v9065_v52  ;;  %v9148_v52 = vadd.f32 %v9040_v45, %v8752_v59  ;;  %v1187_v59 = vmul.f32 0.2, %v9116_v50  ;;  %7089 = vpow2.f32 %v1347_v14  ;;  %v7082_v25 = vpop.eup %7081  ;;  %v1194_v49 = vmul.f32 0.2, %v9159_v26 }
 0x146   : > { %2542 = vperm.xlu0 %6955, %v8807_v10   ;;  %v9138_v32 = vpop.permute.xlu1 %1713  ;;  %v9140_v38 = vpop.permute.xlu0 %1733  ;;  %v9164_v56 = vmul.f32 0.2, %v9131_v1  ;;  %7091 = vpow2.f32 %v1357_v0  ;;  %v9179_v48 = vmul.f32 0.2, %v9152_v30  ;;  %v9190_v14 = vadd.f32 %v9040_v45, %v8777_v54 }
 0x147   : > { %v9176_v2 = vmul.f32 0.2, %v9148_v52  ;;  %v7084_v9 = vpop.eup %7083  ;;  %v1401_v33 = vmul.f32 %v7078_v35, %v8434_v41  ;;  %v9197_v0 = vadd.f32 %v8773_v22, %v8777_v54  ;;  %v1355_v34 = vmul.f32 1.442695, %v1313_v5 }
 0x148   : > { %2398 = vperm.xlu1 %6953, %v8878_v24   ;;  %6434 = vmatpush3.bf16.msra.mxu1 %v9007_v19  ;;  %v1404_v20 = vmul.f32 %v7080_v58, %v8436_v47  ;;  %v1224_v35 = vmax.f32 %v9135_v7, %v1192_v11  ;;  %v9211_v54 = vadd.f32 %v8773_v22, %v8798_v4  ;;  %7093 = vpow2.f32 %v1351_v12  ;;  %v7086_v58 = vpop.eup %7085  ;;  %v13401_v47 = vld [vmem:[#allocation34_spill] sm:$0xff] }
 0x149   : > { %6435 = vmatprep.subr.bf16.mxu1 %v1476_v43  ;;  %v1189_v43 = vmul.f32 0.2, %v9144_v44  ;;  %v1226_v5 = vmax.f32 %v9159_v26, %v1194_v49  ;;  %7095 = vpow2.f32 %v1361_v39  ;;  %v1193_v11 = vmul.f32 0.2, %v9183_v62 }
 0x14a   : > { %2550 = vperm.xlu0 %6955, %v8832_v3   ;;  %v9168_v19 = vpop.permute.xlu1 %1721  ;;  %v9170_v8 = vpop.permute.xlu0 %1741  ;;  %7097 = vpow2.f32 %v1355_v34  ;;  %v9230_v12 = vmul.f32 0.2, %v9197_v0  ;;  %v1223_v34 = vmax.f32 %v9131_v1, %v9164_v56  ;;  %v1779_v1 = vadd.f32 %v9126_v61, %v9107_v17  ;;  %v13397_v56 = vld [vmem:[#allocation45_spill] sm:$0xff] }
 0x14b   : > { %v1221_v21 = vmax.f32 %v9144_v44, %v1189_v43  ;;  %v1320_v44 = vsub.f32 %v1224_v35, %v8944_v16  ;;  %v9258_v41 = vadd.f32 %v8773_v22, %v13401_v47 }
 0x14c   : > { %6956 = vset.pattern.permute.xlu1 %v13389_v55  ;;  %6436 = vmatpush3.bf16.msra.mxu1 %v9052_v13  ;;  %v1219_v13 = vmax.f32 %v9116_v50, %v1187_v59  ;;  %v1399_v55 = vmul.f32 %v7082_v25, %v8424_v31  ;;  %v1406_v59 = vmul.f32 %v7084_v9, %v8438_v40  ;;  %v9227_v25 = vmul.f32 0.2, %v9190_v14  ;;  %v13393_v9 = vld [vmem:[#allocation47_spill] sm:$0xff]  ;;  %v13404_v40 = vld [vmem:[#allocation56_spill] sm:$0xff] }
 0x14d   : > { %2510 = vperm.xlu1 %6956, %v8976_v27   ;;  %6437 = vmatprep.subr.bf16.mxu1 %v9072_v37  ;;  %v1365_v37 = vmul.f32 1.442695, %v1318_v23  ;;  %v1317_v43 = vsub.f32 %v1221_v21, %v8890_v36  ;;  %v1322_v49 = vsub.f32 %v1226_v5, %v13393_v9  ;;  %v1198_v36 = vmul.f32 0.2, %v9211_v54  ;;  %v13394_v21 = vld [vmem:[#allocation32_spill] sm:$0xff] }
 0x14e   : > { %2558 = vperm.xlu0 %6955, %v8856_v15   ;;  %v9201_v18 = vpop.permute.xlu1 %1729  ;;  %v9203_v28 = vpop.permute.xlu0 %1749  ;;  %v1315_v50 = vsub.f32 %v1219_v13, %v8926_v53  ;;  %v1431_v7 = vpack.c.bf16 %v1401_v33, %v1399_v55  ;;  %v1434_v23 = vpack.c.bf16 %v1406_v59, %v1404_v20  ;;  %v9238_v20 = vadd.f32 %v9040_v45, %v8798_v4  ;;  %v13395_v55 = vld [vmem:[#allocation61_spill] sm:$0xff]  ;;  %v13405_v31 = vld [vmem:[#allocation64_spill] sm:$0xff] }
 0x14f   : > { %13390 = vst [vmem:[#allocation72_spill] sm:$0xff] %v9203_v28  ;;  %v7088_v26 = vpop.eup %7087  ;;  %7099 = vpow2.f32 %v1365_v37  ;;  %v9242_v35 = vadd.f32 %v8773_v22, %v13394_v21  ;;  %v1369_v37 = vmul.f32 1.442695, %v1320_v44  ;;  %v13396_v59 = vld [vmem:[#allocation17_spill] sm:$0xff]  ;;  %v13415_v28 = vld [vmem:[#allocation24_spill] sm:$0xff] }
 0x150   : > { %6438 = vmatpush3.bf16.msra.mxu1 %v9020_v6  ;;  %v7090_v39 = vpop.eup %7089  ;;  %v1359_v33 = vmul.f32 1.442695, %v1315_v50  ;;  %v1403_v5 = vmul.f32 %v7086_v58, %v13396_v59  ;;  %v1225_v50 = vmax.f32 %v9183_v62, %v1193_v11  ;;  %v1408_v44 = vmul.f32 %v7088_v26, %v13400_v29  ;;  %v13402_v11 = vld [vmem:[#allocation18_spill] sm:$0xff] }
 0x151   : > { %2514 = vperm.xlu1 %6956, %v9043_v63   ;;  %v7092_v13 = vpop.eup %7091  ;;  %v1373_v58 = vmul.f32 1.442695, %v1322_v49  ;;  %v1228_v62 = vmax.f32 %v9152_v30, %v9179_v48  ;;  %v13051_v59 = vmov 4  }
 0x152   : > { %2566 = vperm.xlu0 %6955, %v8878_v24   ;;  %v9222_v53 = vpop.permute.xlu1 %1737  ;;  %v9224_v6 = vpop.permute.xlu0 %1757  ;;  %7101 = vpow2.f32 %v1359_v33  ;;  %v1321_v29 = vsub.f32 %v1225_v50, %v13393_v9  ;;  %v1811_v33 = vmul.f32 0.2, %v1779_v1  ;;  %v1197_v9 = vmul.f32 0.2, %v9238_v20 }
 0x153   : > { %13391 = vst [vmem:[#allocation73_spill] sm:$0xff] %v9222_v53  ;;  %13392 = vst [vmem:[#allocation74_spill] sm:$0xff] %v9224_v6  ;;  %1528 = vmatmul.mubr.bf16.vlgmr.msra.gmra.mrb[0].mxu1 %v1431_v7  ;;  %v1363_v7 = vmul.f32 1.442695, %v1317_v43  ;;  %v1405_v43 = vmul.f32 %v7090_v39, %v13402_v11  ;;  %7103 = vpow2.f32 %v1369_v37  ;;  %v1324_v49 = vsub.f32 %v1228_v62, %v13404_v40  ;;  %v7094_v48 = vpop.eup %7093 }
 0x154   : > { %1535 = vmatprep.mubr.bf16.mxu1 %v1434_v23  ;;  %v1777_v39 = vadd.f32 %v9126_v61, %v9085_v42  ;;  %v9283_v62 = vmul.f32 0.2, %v9242_v35  ;;  %v1843_v11 = vmax.f32 %v1779_v1, %v1811_v33  ;;  %v13417_v33 = vld [vmem:[#allocation26_spill] sm:$0xff] }
 0x155   : > { %2522 = vperm.xlu1 %6956, %v13395_v55   ;;  %v1433_v30 = vpack.c.bf16 %v1405_v43, %v1403_v5  ;;  %7105 = vpow2.f32 %v1363_v7  ;;  %v1227_v5 = vmax.f32 %v9148_v52, %v9176_v2  ;;  %v9287_v43 = vadd.f32 %v9040_v45, %v13401_v47  ;;  %v13411_v47 = vld [vmem:[#allocation51_spill] sm:$0xff] }
 0x156   : > { %2715 = vrot.lane.b32.xlu0 %v13397_v56, %s8028_s15  ;;  %v9251_v4 = vpop.permute.xlu1 %1745  ;;  %v9253_v23 = vpop.permute.xlu0 %1765  ;;  %v1230_v56 = vmax.f32 %v9211_v54, %v1198_v36  ;;  %v13406_v54 = vld [vmem:[#allocation48_spill] sm:$0xff]  ;;  %7107 = vpow2.f32 %v1373_v58  ;;  %v1232_v58 = vmax.f32 %v9197_v0, %v9230_v12  ;;  %v1371_v52 = vmul.f32 1.442695, %v1321_v29  ;;  %v13413_v0 = vld [vmem:[#allocation25_spill] sm:$0xff]  ;;  %v13414_v29 = vld [vmem:[#allocation59_spill] sm:$0xff] }
 0x157   : > { %13398 = vst [vmem:[#allocation47_spill] sm:$0xff] %v9251_v4  ;;  %13399 = vst [vmem:[#allocation32_spill] sm:$0xff] %v9253_v23  ;;  %6957 = vset.pattern.permute.xlu0 %v13051_v59  ;;  %v1319_v23 = vsub.f32 %v1223_v34, %v8944_v16  ;;  %v13403_v4 = vld [vmem:[#allocation20_spill] sm:$0xff]  ;;  %v7096_v34 = vpop.eup %7095  ;;  %v1377_v2 = vmul.f32 1.442695, %v1324_v49 }
 0x158   : > { %v1410_v26 = vmul.f32 %v7092_v13, %v13403_v4  ;;  %v13408_v13 = vld [vmem:[#allocation50_spill] sm:$0xff]  ;;  %v7098_v50 = vpop.eup %7097  ;;  %v1809_v4 = vmul.f32 0.2, %v1777_v39  ;;  %v1412_v12 = vmul.f32 %v7096_v34, %v13413_v0  ;;  %v1328_v49 = vsub.f32 %v1232_v58, %v13414_v29 }
 0x159   : > { %2530 = vperm.xlu1 %6956, %v13405_v31   ;;  %v1326_v37 = vsub.f32 %v1230_v56, %v13408_v13  ;;  %v7100_v56 = vpop.eup %7099 }
 0x15a   : > { %2719 = vrot.lane.b32.xlu0 %v13406_v54, %s8028_s15  ;;  %v9274_v16 = vpop.permute.xlu1 %1753  ;;  %v1436_v36 = vpack.c.bf16 %v1410_v26, %v1408_v44  ;;  %v1367_v44 = vmul.f32 1.442695, %v1319_v23  ;;  %v1202_v26 = vmul.f32 0.2, %v9258_v41  ;;  %v13410_v54 = vld [vmem:[#allocation23_spill] sm:$0xff] }
 0x15b   : > { %13407 = vst [vmem:[#allocation61_spill] sm:$0xff] %v9274_v16  ;;  %1536 = vmatmul.mubr.bf16.gmra.mrb[4].mxu1 %v1433_v30  ;;  %v9280_v7 = vpop.permute.xlu0 %1877  ;;  %v13409_v30 = vld [vmem:[#allocation66_spill] sm:$0xff]  ;;  %v1407_v59 = vmul.f32 %v7094_v48, %v13410_v54  ;;  %v1323_v16 = vsub.f32 %v1227_v5, %v13404_v40  ;;  %v1381_v6 = vmul.f32 1.442695, %v1326_v37  ;;  %v1409_v48 = vmul.f32 %v7098_v50, %v13415_v28  ;;  %v13416_v54 = vld [vmem:[#allocation40_spill] sm:$0xff] }
 0x15c   : > { %1543 = vmatprep.mubr.bf16.mxu1 %v1436_v36  ;;  %v1229_v36 = vmax.f32 %v9238_v20, %v1197_v9  ;;  %v9307_v40 = vadd.f32 %v8773_v22, %v13416_v54  ;;  %7109 = vpow2.f32 %v1367_v44  ;;  %v1939_v1 = vsub.f32 %v1843_v11, %v9280_v7  ;;  %v13418_v9 = vld [vmem:[#allocation68_spill] sm:$0xff]  ;;  %v7102_v58 = vpop.eup %7101  ;;  %v13420_v11 = vld [vmem:[#allocation53_spill] sm:$0xff] }
 0x15d   : > { %2538 = vperm.xlu1 %6956, %v13409_v30   ;;  %v1414_v5 = vmul.f32 %v7100_v56, %v13417_v33  ;;  %v1234_v20 = vmax.f32 %v9258_v41, %v1202_v26  ;;  %7111 = vpow2.f32 %v1377_v2  ;;  %v1435_v37 = vpack.c.bf16 %v1409_v48, %v1407_v59  ;;  %v7104_v0 = vpop.eup %7103 }
 0x15e   : > { %2723 = vrot.lane.b32.xlu0 %v13411_v47, %s8028_s15  ;;  %v9297_v23 = vpop.permute.xlu1 %1761  ;;  %v1325_v34 = vsub.f32 %v1229_v36, %v13408_v13  ;;  %7113 = vpow2.f32 %v1371_v52  ;;  %v1375_v50 = vmul.f32 1.442695, %v1323_v16  ;;  %v13419_v47 = vld [vmem:[#allocation54_spill] sm:$0xff]  ;;  %v1841_v22 = vmax.f32 %v1777_v39, %v1809_v4 }
 0x15f   : > { %13412 = vst [vmem:[#allocation45_spill] sm:$0xff] %v9297_v23  ;;  %v9302_v53 = vpop.permute.xlu0 %1889  ;;  %v1438_v44 = vpack.c.bf16 %v1414_v5, %v1412_v12  ;;  %7115 = vpow2.f32 %v1381_v6  ;;  %v1330_v56 = vsub.f32 %v1234_v20, %v13420_v11  ;;  %v1385_v23 = vmul.f32 1.442695, %v1328_v49  ;;  %v7106_v26 = vpop.eup %7105  ;;  %v13421_v36 = vld [vmem:[#allocation70_spill] sm:$0xff]  ;;  %v13422_v49 = vld [vmem:[#allocation27_spill] sm:$0xff]  ;;  %v13424_v20 = vld [vmem:[#allocation13_spill] sm:$0xff] }
 0x160   : > { %v9323_v59 = vadd.f32 %v9040_v45, %v13394_v21  ;;  %v1201_v16 = vmul.f32 0.2, %v9287_v43  ;;  %v1974_v52 = vmul.f32 1.442695, %v1939_v1  ;;  %v7108_v6 = vpop.eup %7107  ;;  %v1206_v39 = vmul.f32 0.2, %v9307_v40 }
 0x161   : > { %2546 = vperm.xlu1 %6956, %v13418_v9   ;;  %v1231_v2 = vmax.f32 %v9190_v14, %v9227_v25  ;;  %v1236_v12 = vmax.f32 %v9242_v35, %v9283_v62  ;;  %v1411_v21 = vmul.f32 %v7102_v58, %v13422_v49  ;;  %v1379_v48 = vmul.f32 1.442695, %v1325_v34  ;;  %v13423_v1 = vld [vmem:[#allocation58_spill] sm:$0xff]  ;;  %v13425_v35 = vld [vmem:[#allocation28_spill] sm:$0xff] }
 0x162   : > { %2727 = vrot.lane.b32.xlu0 %v13419_v47, %s8028_s15  ;;  %7117 = vpow2.f32 %v1375_v50  ;;  %v1173_v47 = vadd.f32 %v9040_v45, %v13416_v54  ;;  %v1413_v62 = vmul.f32 %v7106_v26, %v13425_v35  ;;  %v1233_v34 = vmax.f32 %v9287_v43, %v1201_v16  ;;  %v13426_v50 = vld [vmem:[#allocation6_spill] sm:$0xff]  ;;  %v13428_v45 = vld [vmem:[#allocation71_spill] sm:$0xff]  ;;  %v13429_v43 = vld [vmem:[#allocation60_spill] sm:$0xff] }
 0x163   : > { %v9317_v13 = vpop.permute.xlu1 %1873  ;;  %1544 = vmatmul.mubr.bf16.gmra.mrb[8].mxu1 %v1435_v37  ;;  %v9319_v41 = vpop.permute.xlu0 %1897  ;;  %v1416_v37 = vmul.f32 %v7104_v0, %v13424_v20  ;;  %7119 = vpow2.f32 %v1385_v23  ;;  %v1327_v58 = vsub.f32 %v1231_v2, %v13414_v29  ;;  %v1238_v0 = vmax.f32 %v9307_v40, %v1206_v39 }
 0x164   : > { %v1937_v4 = vsub.f32 %v1841_v22, %v9317_v13  ;;  %1551 = vmatprep.mubr.bf16.mxu1 %v1438_v44  ;;  %v1389_v22 = vmul.f32 1.442695, %v1330_v56  ;;  %7121 = vpow2.f32 %v1974_v52  ;;  %v1418_v44 = vmul.f32 %v7108_v6, %v13426_v50  ;;  %v13430_v52 = vld [vmem:[#allocation57_spill] sm:$0xff] }
 0x165   : > { %2554 = vperm.xlu1 %6956, %v13421_v36   ;;  %v1437_v54 = vpack.c.bf16 %v1413_v62, %v1411_v21  ;;  %v1203_v56 = vmul.f32 0.2, %v9323_v59  ;;  %v1329_v26 = vsub.f32 %v1233_v34, %v13420_v11  ;;  %v1334_v40 = vsub.f32 %v1238_v0, %v13430_v52  ;;  %v13431_v11 = vld [vmem:[#allocation22_spill] sm:$0xff]  ;;  %v13432_v62 = vld [vmem:[#allocation33_spill] sm:$0xff]  ;;  %v13433_v34 = vld [vmem:[#allocation63_spill] sm:$0xff] }
 0x166   : > { %v1970_v5 = vmul.f32 1.442695, %v1937_v4  ;;  %2731 = vrot.lane.b32.xlu0 %v13423_v1, %s8028_s15  ;;  %v13427_v4 = vld [vmem:[#allocation62_spill] sm:$0xff]  ;;  %v7110_v23 = vpop.eup %7109  ;;  %v1440_v29 = vpack.c.bf16 %v1418_v44, %v1416_v37  ;;  %v1383_v21 = vmul.f32 1.442695, %v1327_v58  ;;  %v13434_v44 = vld [vmem:[#allocation21_spill] sm:$0xff] }
 0x167   : > { %v9339_v14 = vpop.permute.xlu1 %1881  ;;  %v9341_v25 = vpop.permute.xlu0 %1905  ;;  %v1332_v36 = vsub.f32 %v1236_v12, %v13427_v4  ;;  %v1205_v12 = vmul.f32 0.2, %v1173_v47  ;;  %v1415_v1 = vmul.f32 %v7110_v23, %v13431_v11  ;;  %v1387_v37 = vmul.f32 1.442695, %v1329_v26 }
 0x168   : > { %7123 = vpow2.f32 %v1970_v5  ;;  %v7112_v16 = vpop.eup %7111 }
 0x169   : > { %2562 = vperm.xlu1 %6956, %v13428_v45   ;;  %7125 = vpow2.f32 %v1379_v48  ;;  %v7114_v2 = vpop.eup %7113  ;;  %v1393_v5 = vmul.f32 1.442695, %v1332_v36  ;;  %v1420_v0 = vmul.f32 %v7112_v16, %v13434_v44  ;;  %v13435_v45 = vmov 4   ;;  %v13436_v36 = vld [vmem:[#allocation7_spill] sm:$0xff]  ;;  %v13438_v16 = vld [vmem:[#allocation37_spill] sm:$0xff] }
 0x16a   : > { %2735 = vrot.lane.b32.xlu0 %v13429_v43, %s8028_s15  ;;  %7127 = vpow2.f32 %v1389_v22  ;;  %v7116_v48 = vpop.eup %7115  ;;  %v1235_v22 = vmax.f32 %v9323_v59, %v1203_v56  ;;  %v1417_v23 = vmul.f32 %v7114_v2, %v13436_v36  ;;  %v1237_v11 = vmax.f32 %v1173_v47, %v1205_v12  ;;  %v13437_v59 = vld [vmem:[#allocation5_spill] sm:$0xff] }
 0x16b   : > { %v9355_v6 = vpop.permute.xlu1 %1885  ;;  %1552 = vmatmul.mubr.bf16.gmra.mrb[12].mxu1 %v1437_v54  ;;  %v9357_v39 = vpop.permute.xlu0 %1913  ;;  %v1397_v54 = vmul.f32 1.442695, %v1334_v40  ;;  %7129 = vpow2.f32 %v1383_v21  ;;  %v1422_v56 = vmul.f32 %v7116_v48, %v13437_v59  ;;  %v13439_v44 = vld [vmem:[#allocation65_spill] sm:$0xff] }
 0x16c   : > { %1559 = vmatprep.mubr.bf16.mxu1 %v1440_v29  ;;  %v7118_v29 = vpop.eup %7117  ;;  %v1331_v26 = vsub.f32 %v1235_v22, %v13427_v4  ;;  %7131 = vpow2.f32 %v1393_v5  ;;  %v13447_v59 = vld [vmem:[#allocation29_spill] sm:$0xff] }
 0x16d   : > { %2713 = vrot.lane.b32.xlu1 %v13432_v62, %s8028_s15  ;;  %v7120_v62 = vpop.eup %7119  ;;  %7133 = vpow2.f32 %v1387_v37  ;;  %v1442_v2 = vpack.c.bf16 %v1422_v56, %v1420_v0  ;;  %v13442_v37 = vld [vmem:[#allocation11_spill] sm:$0xff]  ;;  %v13446_v56 = vld [vmem:[#allocation30_spill] sm:$0xff] }
 0x16e   : > { %2739 = vrot.lane.b32.xlu0 %v13433_v34, %s8028_s15  ;;  %6958 = vset.pattern.permute.xlu1 %v13435_v45  ;;  %v1439_v34 = vpack.c.bf16 %v1417_v23, %v1415_v1  ;;  %v7122_v40 = vpop.eup %7121  ;;  %v1333_v45 = vsub.f32 %v1237_v11, %v13430_v52  ;;  %7135 = vpow2.f32 %v1397_v54  ;;  %v1391_v48 = vmul.f32 1.442695, %v1331_v26  ;;  %v13441_v1 = vld [vmem:[#allocation10_spill] sm:$0xff]  ;;  %v13443_v52 = vld [vmem:[#allocation9_spill] sm:$0xff]  ;;  %v13445_v54 = vld [vmem:[#allocation67_spill] sm:$0xff] }
 0x16f   : > { %v9367_v58 = vpop.permute.xlu1 %1893  ;;  %v9369_v43 = vpop.permute.xlu0 %1921  ;;  %v2035_v23 = vmul.f32 %v7122_v40, %v13442_v37  ;;  %v1419_v11 = vmul.f32 %v7118_v29, %v13443_v52  ;;  %v13449_v37 = vld [vmem:[#allocation44_spill] sm:$0xff] }
 0x170   : > { %v1395_v0 = vmul.f32 1.442695, %v1333_v45  ;;  %7137 = vpow2.f32 %v1391_v48 }
 0x171   : > { %2717 = vrot.lane.b32.xlu1 %v13438_v16, %s8028_s15 }
 0x172   : > { %2743 = vrot.lane.b32.xlu0 %v13439_v44, %s8028_s15  ;;  %v7124_v47 = vpop.eup %7123  ;;  %v13444_v44 = vld [vmem:[#allocation41_spill] sm:$0xff]  ;;  %7139 = vpow2.f32 %v1395_v0  ;;  %v9408_v0 = vld [vmem:[%s8132_s9 + $0x28] sm:$0xff] }
 0x173   : > { %v9379_v12 = vpop.permute.xlu1 %1901  ;;  %1560 = vmatmul.mubr.bf16.gmra.mrb[16].mxu1 %v1439_v34  ;;  %v9381_v4 = vpop.permute.xlu0 %1929  ;;  %v2033_v22 = vmul.f32 %v7124_v47, %v13441_v1  ;;  %v1424_v34 = vmul.f32 %v7120_v62, %v13446_v56  ;;  %v13448_v47 = vld [vmem:[#allocation31_spill] sm:$0xff]  ;;  %13453 = vst [vmem:[#allocation64_spill] sm:$0xff] %v9408_v0 }
 0x174   : > { %13440 = vst [vmem:[#allocation34_spill] sm:$0xff] %v9381_v4  ;;  %v7126_v21 = vpop.eup %7125  ;;  %1567 = vmatprep.mubr.bf16.mxu1 %v1442_v2  ;;  %v13456_v1 = vld [vmem:[#allocation39_spill] sm:$0xff] }
 0x175   : > { %v7128_v5 = vpop.eup %7127  ;;  %2721 = vrot.lane.b32.xlu1 %v13444_v44, %s8028_s15  ;;  %v2065_v26 = vpack.c.bf16 %v2035_v23, %v2033_v22  ;;  %v1421_v36 = vmul.f32 %v7126_v21, %v13447_v59  ;;  %v9397_v44 = vld [vmem:[%s8132_s9 + $0x18] sm:$0xff] }
 0x176   : > { %2971 = vperm.xlu0 %6957, %v13445_v54   ;;  %v1426_v40 = vmul.f32 %v7128_v5, %v13448_v47  ;;  %v7130_v45 = vpop.eup %7129  ;;  %13450 = vst [vmem:[#allocation56_spill] sm:$0xff] %v9397_v44  ;;  %v13451_v5 = vld [vmem:[#allocation35_spill] sm:$0xff]  ;;  %v13454_v54 = vld [vmem:[#allocation38_spill] sm:$0xff] }
 0x177   : > { %v9390_v16 = vpop.permute.xlu1 %1909  ;;  %v2081_v2 = vpop.permute.xlu0 %2080  ;;  %2160 = vmatprep.mubr.bf16.mxu0 %v2065_v26  ;;  %v1441_v29 = vpack.c.bf16 %v1421_v36, %v1419_v11  ;;  %v1423_v11 = vmul.f32 %v7130_v45, %v13451_v5  ;;  %v13457_v45 = vld [vmem:[#allocation49_spill] sm:$0xff] }
 0x178   : > { %v1444_v62 = vpack.c.bf16 %v1426_v40, %v1424_v34  ;;  %v7132_v22 = vpop.eup %7131 }
 0x179   : > { %2725 = vrot.lane.b32.xlu1 %v13449_v37, %s8028_s15  ;;  %v7134_v48 = vpop.eup %7133  ;;  %v13452_v37 = vld [vmem:[#allocation46_spill] sm:$0xff]  ;;  %v1428_v34 = vmul.f32 %v7132_v22, %v13454_v54 }
 0x17a   : > { %2983 = vperm.xlu0 %6957, %v9397_v44   ;;  %v7136_v36 = vpop.eup %7135 }
 0x17b   : > { %v9400_v23 = vpop.permute.xlu1 %1917  ;;  %1568 = vmatmul.mubr.bf16.gmra.mrb[20].mxu1 %v1441_v29  ;;  %v9402_v21 = vpop.permute.xlu0 %2084  ;;  %v13455_v29 = vld [vmem:[#allocation36_spill] sm:$0xff] }
 0x17c   : > { %1575 = vmatprep.mubr.bf16.mxu1 %v1444_v62  ;;  %v1425_v44 = vmul.f32 %v7134_v48, %v13455_v29  ;;  %v1430_v62 = vmul.f32 %v7136_v36, %v13456_v1  ;;  %v7138_v5 = vpop.eup %7137  ;;  %v13460_v48 = vld [vmem:[#allocation42_spill] sm:$0xff] }
 0x17d   : > { %2729 = vrot.lane.b32.xlu1 %v13452_v37, %s8028_s15  ;;  %v9421_v37 = vld [vmem:[%s8132_s9 + $0x38] sm:$0xff]  ;;  %v7140_v54 = vpop.eup %7139  ;;  %v1427_v29 = vmul.f32 %v7138_v5, %v13460_v48 }
 0x17e   : > { %2991 = vperm.xlu0 %6957, %v9408_v0   ;;  %v1443_v56 = vpack.c.bf16 %v1425_v44, %v1423_v11  ;;  %13458 = vst [vmem:[#allocation48_spill] sm:$0xff] %v9421_v37  ;;  %v1446_v0 = vpack.c.bf16 %v1430_v62, %v1428_v34  ;;  %v13461_v44 = vld [vmem:[#allocation52_spill] sm:$0xff]  ;;  %v13464_v62 = vsub.s32 2, %v13342_v60 }
 0x17f   : > { %v9412_v26 = vpop.permute.xlu1 %1925  ;;  %v9414_v40 = vpop.permute.xlu0 %2088 }
 0x181   : > { %2733 = vrot.lane.b32.xlu1 %v13457_v45, %s8028_s15  ;;  %v13462_v45 = vld [vmem:[#allocation43_spill] sm:$0xff] }
 0x182   : > { %2999 = vperm.xlu0 %6957, %v9421_v37   ;;  %v1429_v1 = vmul.f32 %v7140_v54, %v13462_v45  ;;  %v13062_v37 = vmov 12   ;;  %v1787_v45 = vadd.f32 %v9126_v61, %v9109_v51 }
 0x183   : > { %v9424_v52 = vpop.permute.xlu1 %1933  ;;  %1576 = vmatmul.mubr.bf16.gmra.mrb[24].mxu1 %v1443_v56  ;;  %v9426_v22 = vpop.permute.xlu0 %2092  ;;  %v13463_v56 = vld [vmem:[#allocation55_spill] sm:$0xff] }
 0x184   : > { %13459 = vst [vmem:[#allocation50_spill] sm:$0xff] %v9424_v52  ;;  %1583 = vmatprep.mubr.bf16.mxu1 %v1446_v0  ;;  %v1445_v34 = vpack.c.bf16 %v1429_v1, %v1427_v29  ;;  %v13466_v52 = vmov 8  }
 0x185   : > { %2737 = vrot.lane.b32.xlu1 %v13461_v44, %s8028_s15  ;;  %v13465_v44 = vld [vmem:[#allocation69_spill] sm:$0xff] }
 0x186   : > { %3007 = vperm.xlu0 %6957, %v8807_v10   ;;  %v9441_v10 = vrot.slane %v13465_v44, %v13464_v62 }
 0x187   : > { %v2083_v36 = vpop.permute.xlu1 %2082  ;;  %v2097_v11 = vpop.permute.xlu0 %2096 }
 0x188   : > { %6487 = vmatprep.subr.bf16.mxu0 %v2097_v11  ;;  %v1776_v1 = vadd.f32 %v9441_v10, %v9085_v42  ;;  %v1778_v29 = vadd.f32 %v9441_v10, %v9107_v17  ;;  %v1781_v11 = vadd.f32 %v9126_v61, %v9138_v32  ;;  %v1785_v17 = vadd.f32 %v9126_v61, %v9168_v19 }
 0x189   : > { %6488 = vmatpush3.bf16.msra.mxu0 %v2081_v2  ;;  %2741 = vrot.lane.b32.xlu1 %v13463_v56, %s8028_s15  ;;  %v1780_v4 = vadd.f32 %v9441_v10, %v9138_v32  ;;  %s8045_s15 = smov 40  }
 0x18a   : > { %3015 = vperm.xlu0 %6957, %v8832_v3   ;;  %v1783_v3 = vadd.f32 %v9126_v61, %v9092_v57  ;;  %v1810_v62 = vmul.f32 0.2, %v1778_v29  ;;  %v1813_v44 = vmul.f32 0.2, %v1781_v11 }
 0x18b   : > { %v9436_v0 = vpop.permute.xlu1 %2086  ;;  %1584 = vmatmul.mubr.bf16.gmra.mrb[28].mxu1 %v1445_v34  ;;  %v2101_v5 = vpop.permute.xlu0 %2100 }
 0x18c   : > { %v1815_v56 = vmul.f32 0.2, %v1783_v3  ;;  %v1842_v20 = vmax.f32 %v1778_v29, %v1810_v62 }
 0x18d   : > { %2975 = vperm.xlu1 %6958, %v8976_v27  }
 0x18e   : > { %3023 = vperm.xlu0 %6957, %v8856_v15   ;;  %v1808_v15 = vmul.f32 0.2, %v1776_v1  ;;  %v1847_v47 = vmax.f32 %v1783_v3, %v1815_v56  ;;  %v1938_v3 = vsub.f32 %v1842_v20, %v9280_v7  ;;  %v1819_v56 = vmul.f32 0.2, %v1787_v45 }
 0x18f   : > { %v9447_v2 = vpop.permute.xlu1 %2090  ;;  %v9449_v54 = vpop.permute.xlu0 %2104  ;;  %v9489_v7 = vadd.f32 %v9441_v10, %v9140_v38 }
 0x190   : > { %v1972_v20 = vmul.f32 1.442695, %v1938_v3 }
 0x191   : > { %2979 = vperm.xlu1 %6958, %v9043_v63   ;;  %v1782_v63 = vadd.f32 %v9441_v10, %v9092_v57  ;;  %v1817_v57 = vmul.f32 0.2, %v1785_v17 }
 0x192   : > { %3031 = vperm.xlu0 %6957, %v8878_v24   ;;  %v1840_v24 = vmax.f32 %v1776_v1, %v1808_v15  ;;  %v1845_v1 = vmax.f32 %v1781_v11, %v1813_v44  ;;  %v1786_v11 = vadd.f32 %v9441_v10, %v9109_v51  ;;  %v13064_v51 = vsub.s32 3, %v13342_v60 }
 0x193   : > { %v9459_v34 = vpop.permute.xlu1 %2094  ;;  %v9461_v42 = vpop.permute.xlu0 %2108  ;;  %v1814_v15 = vmul.f32 0.2, %v1782_v63 }
 0x194   : > { %v1941_v32 = vsub.f32 %v1845_v1, %v9339_v14 }
 0x195   : > { %2987 = vperm.xlu1 %6958, %v13395_v55   ;;  %v1846_v62 = vmax.f32 %v1782_v63, %v1814_v15  ;;  %v1818_v63 = vmul.f32 0.2, %v1786_v11 }
 0x196   : > { %6962 = vset.pattern.permute.xlu0 %v13062_v37  ;;  %v1936_v37 = vsub.f32 %v1840_v24, %v9317_v13  ;;  %v1812_v13 = vmul.f32 0.2, %v1780_v4  ;;  %v1978_v44 = vmul.f32 1.442695, %v1941_v32  ;;  %v1851_v24 = vmax.f32 %v1787_v45, %v1819_v56 }
 0x197   : > { %3143 = vperm.xlu0 %6962, %v8976_v27   ;;  %v2099_v48 = vpop.permute.xlu1 %2098  ;;  %v9472_v59 = vpop.permute.xlu0 %2342  ;;  %v1943_v27 = vsub.f32 %v1847_v47, %v9355_v6  ;;  %v1849_v47 = vmax.f32 %v1785_v17, %v1817_v57  ;;  %v1784_v57 = vadd.f32 %v9441_v10, %v9168_v19  ;;  %v9520_v56 = vrot.slane %v9121_v46, %v13064_v51 }
 0x198   : > { %6489 = vmatprep.subr.bf16.mxu0 %v2099_v48  ;;  %v1844_v1 = vmax.f32 %v1780_v4, %v1812_v13  ;;  %v1947_v45 = vsub.f32 %v1851_v24, %v9367_v58  ;;  %v9513_v4 = vadd.f32 %v9126_v61, %v9170_v8  ;;  %v1850_v32 = vmax.f32 %v1786_v11, %v1818_v63 }
 0x199   : > { %6490 = vmatpush3.bf16.msra.mxu0 %v2083_v36  ;;  %6959 = vset.pattern.permute.xlu1 %v13466_v52  ;;  %v1968_v36 = vmul.f32 1.442695, %v1936_v37  ;;  %v13477_v52 = vld [vmem:[#allocation47_spill] sm:$0xff] }
 0x19a   : > { %6491 = vmatprep.subr.bf16.mxu0 %v2101_v5  ;;  %v1982_v5 = vmul.f32 1.442695, %v1943_v27  ;;  %v9507_v27 = vmul.f32 0.2, %v9489_v7  ;;  %v1940_v19 = vsub.f32 %v1844_v1, %v9339_v14  ;;  %v1990_v13 = vmul.f32 1.442695, %v1947_v45 }
 0x19b   : > { %3155 = vperm.xlu0 %6962, %v13395_v55   ;;  %v2103_v48 = vpop.permute.xlu1 %2102  ;;  %v9482_v29 = vpop.permute.xlu0 %2354  ;;  %v1791_v55 = vadd.f32 %v9126_v61, %v9140_v38  ;;  %7141 = vpow2.f32 %v1968_v36  ;;  %v1942_v38 = vsub.f32 %v1846_v62, %v9355_v6  ;;  %v9529_v36 = vadd.f32 %v9441_v10, %v9201_v18  ;;  %v13469_v62 = vld [vmem:[#allocation73_spill] sm:$0xff] }
 0x19c   : > { %7143 = vpow2.f32 %v1982_v5  ;;  %v13476_v5 = vld [vmem:[#allocation16_spill] sm:$0xff] }
 0x19d   : > { %6492 = vmatpush3.bf16.msra.mxu0 %v9402_v21  ;;  %v1945_v21 = vsub.f32 %v1849_v47, %v9302_v53  ;;  %v1823_v15 = vmul.f32 0.2, %v1791_v55  ;;  %7145 = vpow2.f32 %v1972_v20  ;;  %v1976_v47 = vmul.f32 1.442695, %v1940_v19  ;;  %v13468_v20 = vld [vmem:[#allocation72_spill] sm:$0xff] }
 0x19e   : > { %6493 = vmatprep.subr.bf16.mxu0 %v2103_v48  ;;  %7147 = vpow2.f32 %v1978_v44  ;;  %v1816_v48 = vmul.f32 0.2, %v1784_v57  ;;  %v9541_v11 = vadd.f32 %v9441_v10, %v13468_v20  ;;  %v1946_v44 = vsub.f32 %v1850_v32, %v9367_v58 }
 0x19f   : > { %3163 = vperm.xlu0 %6962, %v13405_v31   ;;  %v2107_v37 = vpop.permute.xlu1 %2106  ;;  %v9496_v17 = vpop.permute.xlu0 %2362  ;;  %v1789_v31 = vadd.f32 %v9126_v61, %v9201_v18  ;;  %v1855_v46 = vmax.f32 %v1791_v55, %v1823_v15  ;;  %v9545_v18 = vadd.f32 %v9126_v61, %v13469_v62 }
 0x1a0   : > { %v1848_v55 = vmax.f32 %v1784_v57, %v1816_v48  ;;  %v1820_v57 = vmul.f32 0.2, %v9529_v36 }
 0x1a1   : > { %6494 = vmatpush3.bf16.msra.mxu0 %v9436_v0  ;;  %v1986_v0 = vmul.f32 1.442695, %v1945_v21  ;;  %v1821_v14 = vmul.f32 0.2, %v1789_v31 }
 0x1a2   : > { %6495 = vmatprep.subr.bf16.mxu0 %v9449_v54  ;;  %v1980_v54 = vmul.f32 1.442695, %v1942_v38  ;;  %v1951_v38 = vsub.f32 %v1855_v46, %v9379_v12  ;;  %v1944_v58 = vsub.f32 %v1848_v55, %v9302_v53  ;;  %v1988_v46 = vmul.f32 1.442695, %v1946_v44 }
 0x1a3   : > { %3171 = vperm.xlu0 %6962, %v13409_v30   ;;  %v2111_v6 = vpop.permute.xlu1 %2110  ;;  %v9515_v3 = vpop.permute.xlu0 %2370  ;;  %v9525_v30 = vadd.f32 %v9441_v10, %v9170_v8  ;;  %v9537_v8 = vmul.f32 0.2, %v9513_v4  ;;  %7149 = vpow2.f32 %v1986_v0  ;;  %v1853_v1 = vmax.f32 %v1789_v31, %v1821_v14 }
 0x1a4   : > { %13467 = vst [vmem:[#allocation66_spill] sm:$0xff] %v9515_v3  ;;  %7151 = vpow2.f32 %v1980_v54  ;;  %v1825_v54 = vmul.f32 0.2, %v9545_v18  ;;  %v9588_v55 = vadd.f32 %v9441_v10, %v13469_v62 }
 0x1a5   : > { %6496 = vmatpush3.bf16.msra.mxu0 %v9414_v40  ;;  %7153 = vpow2.f32 %v1990_v13  ;;  %v7142_v15 = vpop.eup %7141  ;;  %v9560_v19 = vmul.f32 0.2, %v9525_v30  ;;  %v9578_v13 = vmul.f32 0.2, %v9541_v11 }
 0x1a6   : > { %6497 = vmatprep.subr.bf16.mxu0 %v2107_v37  ;;  %7155 = vpow2.f32 %v1976_v47  ;;  %v7144_v48 = vpop.eup %7143 }
 0x1a7   : > { %3179 = vperm.xlu0 %6962, %v13418_v9   ;;  %v9534_v40 = vpop.permute.xlu1 %2338  ;;  %v9547_v21 = vpop.permute.xlu0 %2378  ;;  %v9551_v9 = vadd.f32 %v9126_v61, %v13468_v20  ;;  %v1859_v20 = vmax.f32 %v9513_v4, %v9537_v8  ;;  %v1984_v4 = vmul.f32 1.442695, %v1944_v58  ;;  %v9601_v8 = vld [vmem:[%s8132_s9 + $0x70] sm:$0xff]  ;;  %v13479_v58 = vld [vmem:[#allocation14_spill] sm:$0xff] }
 0x1a8   : > { %v6375_v37 = vpop.f32.mrb[0].mxu0  ;;  %13470 = vst [vmem:[#allocation51_spill] sm:$0xff] %v9547_v21  ;;  %v7146_v53 = vpop.eup %7145 }
 0x1a9   : > { %v6376_v24 = vpop.f32.mrb[1].mxu0  ;;  %6498 = vmatpush3.bf16.msra.mxu0 %v9447_v2  ;;  %v9565_v2 = vld [vmem:[%s8132_s9 + $0x60] sm:$0xff]  ;;  %v9581_v47 = vmul.f32 0.2, %v9551_v9 }
 0x1aa   : > { %v9556_v63 = vadd.f32 %v6376_v24, %v6375_v37  ;;  %v6378_v45 = vpop.f32.mrb[2].mxu0  ;;  %6499 = vmatprep.subr.bf16.mxu0 %v9461_v42  ;;  %v1949_v42 = vsub.f32 %v1853_v1, %v9319_v41  ;;  %v7148_v37 = vpop.eup %7147  ;;  %v13474_v24 = vld [vmem:[#allocation74_spill] sm:$0xff] }
 0x1ab   : > { %v6379_v0 = vpop.f32.mrb[3].mxu0  ;;  %3187 = vperm.xlu0 %6962, %v9565_v2   ;;  %v9568_v31 = vpop.permute.xlu1 %2346  ;;  %v9592_v1 = vadd.f32 %v9441_v10, %v13474_v24  ;;  %v9597_v44 = vadd.f32 %v9126_v61, %v13474_v24 }
 0x1ac   : > { %13471 = vst [vmem:[#allocation59_spill] sm:$0xff] %v9556_v63  ;;  %7157 = vrcp.f32 %v9556_v63  ;;  %v9573_v14 = vadd.f32 %v6379_v0, %v6378_v45  ;;  %v9575_v32 = vpop.permute.xlu0 %2386  ;;  %v1998_v45 = vmul.f32 1.442695, %v1951_v38  ;;  %v13475_v0 = vld [vmem:[#allocation12_spill] sm:$0xff]  ;;  %v2039_v63 = vmul.f32 %v7144_v48, %v13476_v5  ;;  %v13481_v48 = vld [vmem:[#allocation15_spill] sm:$0xff] }
 0x1ad   : > { %13473 = vst [vmem:[#allocation68_spill] sm:$0xff] %v9575_v32  ;;  %6500 = vmatpush3.bf16.msra.mxu0 %v9426_v22  ;;  %v2032_v51 = vmul.f32 %v7142_v15, %v13475_v0  ;;  %v1852_v22 = vmax.f32 %v9529_v36, %v1820_v57  ;;  %v1994_v38 = vmul.f32 1.442695, %v1949_v42  ;;  %v1857_v15 = vmax.f32 %v9545_v18, %v1825_v54  ;;  %v7150_v21 = vpop.eup %7149 }
 0x1ae   : > { %13472 = vst [vmem:[#allocation40_spill] sm:$0xff] %v9573_v14  ;;  %6501 = vmatprep.subr.bf16.mxu0 %v2111_v6  ;;  %v9609_v6 = vadd.f32 %v9126_v61, %v13477_v52  ;;  %v2034_v36 = vmul.f32 %v7146_v53, %v13479_v58  ;;  %7159 = vpow2.f32 %v1988_v46  ;;  %v13480_v57 = vmax.f32 %v9489_v7, %v9507_v27  ;;  %v7152_v53 = vpop.eup %7151  ;;  %v13489_v58 = vld [vmem:[#allocation19_spill] sm:$0xff] }
 0x1af   : > { %3195 = vperm.xlu0 %6962, %v9601_v8   ;;  %v9604_v62 = vpop.permute.xlu1 %2350  ;;  %v2037_v5 = vmul.f32 %v7148_v37, %v13481_v48  ;;  %7161 = vpow2.f32 %v1998_v45  ;;  %v1955_v18 = vsub.f32 %v1859_v20, %v9390_v16  ;;  %v1948_v46 = vsub.f32 %v1852_v22, %v9319_v41  ;;  %v7154_v20 = vpop.eup %7153 }
 0x1b0   : > { %v6381_v24 = vpop.f32.mrb[4].mxu0  ;;  %v9612_v14 = vpop.permute.xlu0 %2394  ;;  %v1950_v0 = vsub.f32 %v13480_v57, %v9379_v12  ;;  %7163 = vpow2.f32 %v1984_v4  ;;  %v1858_v12 = vmax.f32 %v9525_v30, %v9560_v19  ;;  %v1953_v41 = vsub.f32 %v1857_v15, %v9341_v25 }
 0x1b1   : > { %13478 = vst [vmem:[#allocation54_spill] sm:$0xff] %v9612_v14  ;;  %v6382_v32 = vpop.f32.mrb[5].mxu0  ;;  %6502 = vmatpush3.bf16.msra.mxu0 %v9459_v34  ;;  %v2064_v14 = vpack.c.bf16 %v2034_v36, %v2032_v51  ;;  %v7848_v34 = vld [vmem:[%s12934_s2] sm:$0xff]   ;;  %v1824_v51 = vmul.f32 0.2, %v9588_v55  ;;  %7165 = vpow2.f32 %v1994_v38  ;;  %v13070_v30 = vmov 5   ;;  %v7156_v19 = vpop.eup %7155 }
 0x1b2   : > { %v9622_v54 = vadd.f32 %v6382_v32, %v6381_v24  ;;  %v6384_v42 = vpop.f32.mrb[6].mxu0  ;;  %v2067_v32 = vpack.c.bf16 %v2039_v63, %v2037_v5  ;;  %v1829_v45 = vmul.f32 0.2, %v9609_v6  ;;  %v1996_v4 = vmul.f32 1.442695, %v1950_v0  ;;  %v13484_v36 = vld [vmem:[#allocation18_spill] sm:$0xff] }
 0x1b3   : > { %v6385_v7 = vpop.f32.mrb[7].mxu0  ;;  %3346 = vrot.lane.b32.xlu0 %v7848_v34, %s8031_s23  ;;  %v9631_v27 = vpop.permute.xlu1 %2358  ;;  %v1863_v5 = vmax.f32 %v9551_v9, %v9581_v47  ;;  %v9646_v15 = vmul.f32 0.2, %v9592_v1  ;;  %v2006_v24 = vmul.f32 1.442695, %v1955_v18  ;;  %v2038_v57 = vmul.f32 %v7152_v53, %v13484_v36  ;;  %v13486_v18 = vld [vmem:[#allocation20_spill] sm:$0xff] }
 0x1b4   : > { %13482 = vst [vmem:[#allocation53_spill] sm:$0xff] %v9622_v54  ;;  %v9635_v37 = vadd.f32 %v6385_v7, %v6384_v42  ;;  %2161 = vmatmul.mubr.bf16.vlgmr.msra.gmra.mrb[32].mxu0 %v2064_v14  ;;  %6965 = vset.pattern.permute.xlu0 %v13070_v30  ;;  %v9649_v14 = vmul.f32 0.2, %v9597_v44  ;;  %v9654_v0 = vadd.f32 %v9441_v10, %v13477_v52  ;;  %v13485_v42 = vld [vmem:[#allocation32_spill] sm:$0xff]  ;;  %v1992_v47 = vmul.f32 1.442695, %v1948_v46 }
 0x1b5   : > { %v9643_v63 = vpop.permute.xlu0 %2506  ;;  %2168 = vmatprep.mubr.bf16.mxu0 %v2067_v32  ;;  %v9658_v9 = vadd.f32 %v9126_v61, %v13485_v42  ;;  %v7849_v7 = vld [vmem:[%s12934_s2 + $0x10] sm:$0xff]   ;;  %v2043_v53 = vmul.f32 %v7154_v20, %v13486_v18  ;;  %v13487_v32 = vld [vmem:[#allocation61_spill] sm:$0xff]  ;;  %v1856_v30 = vmax.f32 %v9588_v55, %v1824_v51  ;;  %v2002_v22 = vmul.f32 1.442695, %v1953_v41 }
 0x1b6   : > { %13483 = vst [vmem:[#allocation70_spill] sm:$0xff] %v9635_v37  ;;  %v7158_v38 = vpop.eup %7157  ;;  %v9669_v52 = vadd.f32 %v9126_v61, %v13487_v32  ;;  %v13488_v46 = vld [vmem:[#allocation17_spill] sm:$0xff]  ;;  %v1861_v54 = vmax.f32 %v9609_v6, %v1829_v45  ;;  %7167 = vpow2.f32 %v1996_v4  ;;  %v1954_v36 = vsub.f32 %v1858_v12, %v9390_v16 }
 0x1b7   : > { %977 = vperm.xlu1 %6959, %v7158_v38   ;;  %3350 = vrot.lane.b32.xlu0 %v7849_v7, %s8031_s23  ;;  %v9664_v34 = vpop.permute.xlu1 %2366  ;;  %v2036_v38 = vmul.f32 %v7156_v19, %v13488_v46  ;;  %v2041_v20 = vmul.f32 %v7150_v21, %v13489_v58  ;;  %7169 = vpow2.f32 %v2006_v24  ;;  %v1959_v18 = vsub.f32 %v1863_v5, %v9400_v23  ;;  %v7850_v16 = vld [vmem:[%s12934_s2 + $0x20] sm:$0xff]  }
 0x1b8   : > { %v6387_v37 = vpop.f32.mrb[8].mxu0  ;;  %v7160_v41 = vpop.eup %7159  ;;  %v1828_v19 = vmul.f32 0.2, %v9654_v0  ;;  %7171 = vpow2.f32 %v1992_v47  ;;  %v1952_v6 = vsub.f32 %v1856_v30, %v9341_v25  ;;  %v1833_v4 = vmul.f32 0.2, %v9669_v52 }
 0x1b9   : > { %v6388_v7 = vpop.f32.mrb[9].mxu0  ;;  %v9675_v48 = vpop.permute.xlu0 %2518  ;;  %v2066_v51 = vpack.c.bf16 %v2038_v57, %v2036_v38  ;;  %v2069_v12 = vpack.c.bf16 %v2043_v53, %v2041_v20  ;;  %7173 = vpow2.f32 %v2002_v22  ;;  %v1957_v5 = vsub.f32 %v1861_v54, %v9357_v39 }
 0x1ba   : > { %v9679_v3 = vadd.f32 %v6388_v7, %v6387_v37  ;;  %v6390_v55 = vpop.f32.mrb[10].mxu0  ;;  %v7162_v37 = vpop.eup %7161  ;;  %v9695_v30 = vadd.f32 %v9441_v10, %v13485_v42  ;;  %v2004_v57 = vmul.f32 1.442695, %v1954_v36  ;;  %v1866_v47 = vmax.f32 %v9592_v1, %v9646_v15  ;;  %v7851_v15 = vld [vmem:[%s12934_s2 + $0x30] sm:$0xff]  }
 0x1bb   : > { %v6391_v45 = vpop.f32.mrb[11].mxu0  ;;  %3354 = vrot.lane.b32.xlu0 %v7850_v16, %s8031_s23  ;;  %v9687_v21 = vpop.permute.xlu1 %2374  ;;  %v1867_v53 = vmax.f32 %v9597_v44, %v9649_v14  ;;  %v9704_v54 = vmul.f32 0.2, %v9658_v9  ;;  %v2014_v7 = vmul.f32 1.442695, %v1959_v18  ;;  %v2410_v20 = vadd.f32 %v9520_v56, %v9534_v40 }
 0x1bc   : > { %13490 = vst [vmem:[#allocation58_spill] sm:$0xff] %v9679_v3  ;;  %v9691_v24 = vadd.f32 %v6391_v45, %v6390_v55  ;;  %2169 = vmatmul.mubr.bf16.gmra.mrb[36].mxu0 %v2066_v51  ;;  %v7164_v25 = vpop.eup %7163  ;;  %v2042_v42 = vmul.f32 %v7160_v41, %v13415_v28  ;;  %v9711_v36 = vadd.f32 %v9441_v10, %v13487_v32  ;;  %v2000_v1 = vmul.f32 1.442695, %v1952_v6  ;;  %v13492_v55 = vld [vmem:[#allocation45_spill] sm:$0xff]  ;;  %v13493_v45 = vld [vmem:[#allocation23_spill] sm:$0xff] }
 0x1bd   : > { %v9701_v38 = vpop.permute.xlu0 %2526  ;;  %2176 = vmatprep.mubr.bf16.mxu0 %v2069_v12  ;;  %v7166_v22 = vpop.eup %7165  ;;  %v1860_v44 = vmax.f32 %v9654_v0, %v1828_v19  ;;  %v2047_v18 = vmul.f32 %v7162_v37, %v13417_v33  ;;  %v9723_v51 = vadd.f32 %v9126_v61, %v13492_v55  ;;  %v2010_v41 = vmul.f32 1.442695, %v1957_v5 }
 0x1be   : > { %13491 = vst [vmem:[#allocation62_spill] sm:$0xff] %v9691_v24  ;;  %v1865_v32 = vmax.f32 %v9669_v52, %v1833_v4  ;;  %v2040_v0 = vmul.f32 %v7164_v25, %v13493_v45  ;;  %7175 = vpow2.f32 %v2004_v57  ;;  %v13494_v19 = vmax.f32 %v9541_v11, %v9578_v13  ;;  %v13495_v24 = vld [vmem:[#allocation25_spill] sm:$0xff] }
 0x1bf   : > { %3358 = vrot.lane.b32.xlu0 %v7851_v15, %s8031_s23  ;;  %v9718_v14 = vpop.permute.xlu1 %2382  ;;  %v1963_v12 = vsub.f32 %v1867_v53, %v9412_v26  ;;  %v2045_v61 = vmul.f32 %v7166_v22, %v13495_v24  ;;  %7177 = vpow2.f32 %v2014_v7  ;;  %v2442_v5 = vmul.f32 0.2, %v2410_v20  ;;  %v7852_v13 = vld [vmem:[%s12934_s2 + $0x40] sm:$0xff]  }
 0x1c0   : > { %v6393_v6 = vpop.f32.mrb[12].mxu0  ;;  %v1958_v16 = vsub.f32 %v13494_v19, %v9400_v23  ;;  %v2068_v4 = vpack.c.bf16 %v2042_v42, %v2040_v0  ;;  %v7168_v25 = vpop.eup %7167  ;;  %7179 = vpow2.f32 %v2000_v1  ;;  %v1956_v57 = vsub.f32 %v1860_v44, %v9357_v39 }
 0x1c1   : > { %v6394_v15 = vpop.f32.mrb[13].mxu0  ;;  %v9732_v37 = vpop.permute.xlu0 %2534  ;;  %v9740_v23 = vadd.f32 %v9520_v56, %v9472_v59  ;;  %v2071_v22 = vpack.c.bf16 %v2047_v18, %v2045_v61  ;;  %v1832_v42 = vmul.f32 0.2, %v9711_v36  ;;  %7181 = vpow2.f32 %v2010_v41 }
 0x1c2   : > { %v9735_v3 = vadd.f32 %v6394_v15, %v6393_v6  ;;  %v6396_v52 = vpop.f32.mrb[14].mxu0  ;;  %v7170_v7 = vpop.eup %7169  ;;  %v1961_v39 = vsub.f32 %v1865_v32, %v9369_v43  ;;  %v9753_v6 = vmul.f32 0.2, %v9695_v30  ;;  %v1837_v0 = vmul.f32 0.2, %v9723_v51 }
 0x1c3   : > { %v6397_v11 = vpop.f32.mrb[15].mxu0  ;;  %3362 = vrot.lane.b32.xlu0 %v7852_v13, %s8031_s23  ;;  %v9746_v53 = vpop.permute.xlu1 %2390  ;;  %v2012_v19 = vmul.f32 1.442695, %v1958_v16  ;;  %v1871_v15 = vmax.f32 %v9658_v9, %v9704_v54  ;;  %v9762_v41 = vadd.f32 %v9441_v10, %v13492_v55  ;;  %v2022_v32 = vmul.f32 1.442695, %v1963_v12  ;;  %v7853_v9 = vld [vmem:[%s12934_s2 + $0x50] sm:$0xff]  }
 0x1c4   : > { %13496 = vst [vmem:[#allocation71_spill] sm:$0xff] %v9735_v3  ;;  %v9750_v1 = vadd.f32 %v6397_v11, %v6396_v52  ;;  %2177 = vmatmul.mubr.bf16.gmra.mrb[40].mxu0 %v2068_v4  ;;  %v7172_v44 = vpop.eup %7171  ;;  %v2474_v52 = vmax.f32 %v2410_v20, %v2442_v5  ;;  %v2046_v4 = vmul.f32 %v7168_v25, %v13425_v35  ;;  %v2008_v11 = vmul.f32 1.442695, %v1956_v57  ;;  %v13498_v25 = vld [vmem:[#allocation50_spill] sm:$0xff] }
 0x1c5   : > { %v9758_v18 = vpop.permute.xlu0 %2542  ;;  %2184 = vmatprep.mubr.bf16.mxu0 %v2071_v22  ;;  %v7174_v61 = vpop.eup %7173  ;;  %v1962_v13 = vsub.f32 %v1866_v47, %v9412_v26  ;;  %v2444_v16 = vmul.f32 0.2, %v9740_v23  ;;  %v2051_v10 = vmul.f32 %v7170_v7, %v13426_v50  ;;  %v1864_v55 = vmax.f32 %v9711_v36, %v1832_v42 }
 0x1c6   : > { %13497 = vst [vmem:[#allocation60_spill] sm:$0xff] %v9750_v1  ;;  %v2018_v20 = vmul.f32 1.442695, %v1961_v39  ;;  %v2570_v12 = vsub.f32 %v2474_v52, %v9643_v63  ;;  %v2044_v26 = vmul.f32 %v7172_v44, %v13422_v49  ;;  %v1869_v47 = vmax.f32 %v9723_v51, %v1837_v0  ;;  %v7854_v51 = vld [vmem:[%s12934_s2 + $0x60] sm:$0xff]  }
 0x1c7   : > { %3366 = vrot.lane.b32.xlu0 %v7853_v9, %s8031_s23  ;;  %v9771_v54 = vpop.permute.xlu1 %2398  ;;  %7183 = vpow2.f32 %v2012_v19  ;;  %v1967_v57 = vsub.f32 %v1871_v15, %v13498_v25  ;;  %v13499_v9 = vld [vmem:[#allocation13_spill] sm:$0xff]  ;;  %v1960_v7 = vsub.f32 %v1864_v55, %v9369_v43  ;;  %v2020_v44 = vmul.f32 1.442695, %v1962_v13  ;;  %v13501_v43 = vld [vmem:[#allocation34_spill] sm:$0xff] }
 0x1c8   : > { %v6399_v5 = vpop.f32.mrb[16].mxu0  ;;  %v2049_v3 = vmul.f32 %v7174_v61, %v13499_v9  ;;  %7185 = vpow2.f32 %v2022_v32  ;;  %v2070_v39 = vpack.c.bf16 %v2046_v4, %v2044_v26  ;;  %v7176_v52 = vpop.eup %7175  ;;  %v2476_v0 = vmax.f32 %v9740_v23, %v2444_v16  ;;  %v13503_v16 = vld [vmem:[#allocation7_spill] sm:$0xff] }
 0x1c9   : > { %v6400_v22 = vpop.f32.mrb[17].mxu0  ;;  %v9779_v1 = vpop.permute.xlu0 %2550  ;;  %7187 = vpow2.f32 %v2008_v11  ;;  %v1965_v61 = vsub.f32 %v1869_v47, %v13501_v43  ;;  %v2603_v32 = vmul.f32 1.442695, %v2570_v12  ;;  %v1836_v13 = vmul.f32 0.2, %v9762_v41  ;;  %v7855_v12 = vld [vmem:[%s12934_s2 + $0x70] sm:$0xff]  }
 0x1ca   : > { %v9783_v36 = vadd.f32 %v6400_v22, %v6399_v5  ;;  %v6402_v42 = vpop.f32.mrb[18].mxu0  ;;  %v2073_v19 = vpack.c.bf16 %v2051_v10, %v2049_v3  ;;  %v7178_v15 = vpop.eup %7177  ;;  %7189 = vpow2.f32 %v2018_v20  ;;  %v2030_v5 = vmul.f32 1.442695, %v1967_v57  ;;  %v13504_v47 = vld [vmem:[#allocation5_spill] sm:$0xff] }
 0x1cb   : > { %v6403_v50 = vpop.f32.mrb[19].mxu0  ;;  %3370 = vrot.lane.b32.xlu0 %v7854_v51, %s8031_s23  ;;  %v7180_v11 = vpop.eup %7179  ;;  %v1870_v23 = vmax.f32 %v9695_v30, %v9753_v6  ;;  %v2050_v10 = vmul.f32 %v7176_v52, %v13503_v16  ;;  %7191 = vpow2.f32 %v2020_v44  ;;  %v2055_v57 = vmul.f32 %v7178_v15, %v13504_v47  ;;  %v9856_v16 = vld [vmem:[%s8132_s9 + $0x40] sm:$0xff] }
 0x1cc   : > { %13500 = vst [vmem:[#allocation57_spill] sm:$0xff] %v9783_v36  ;;  %v9791_v55 = vadd.f32 %v6403_v50, %v6402_v42  ;;  %v9793_v4 = vpop.permute.xlu1 %2510  ;;  %2185 = vmatmul.mubr.bf16.gmra.mrb[44].mxu0 %v2070_v39  ;;  %v7182_v3 = vpop.eup %7181  ;;  %v2016_v50 = vmul.f32 1.442695, %v1960_v7  ;;  %v2026_v42 = vmul.f32 1.442695, %v1965_v61  ;;  %7193 = vpow2.f32 %v2603_v32  ;;  %13522 = vst [vmem:[#allocation52_spill] sm:$0xff] %v9856_v16 }
 0x1cd   : > { %v2572_v26 = vsub.f32 %v2476_v0, %v9793_v4  ;;  %v9797_v22 = vpop.permute.xlu0 %2558  ;;  %2192 = vmatprep.mubr.bf16.mxu0 %v2073_v19  ;;  %v13505_v0 = vld [vmem:[#allocation22_spill] sm:$0xff]  ;;  %v1868_v6 = vmax.f32 %v9762_v41, %v1836_v13  ;;  %v1966_v7 = vsub.f32 %v1870_v23, %v13498_v25  ;;  %7195 = vpow2.f32 %v2030_v5  ;;  %v13507_v19 = vld [vmem:[#allocation21_spill] sm:$0xff] }
 0x1ce   : > { %13502 = vst [vmem:[#allocation33_spill] sm:$0xff] %v9791_v55  ;;  %v2048_v30 = vmul.f32 %v7180_v11, %v13505_v0  ;;  %v9819_v41 = vld [vmem:[%s8132_s9 + $0x8] sm:$0xff] }
 0x1cf   : > { %v2607_v20 = vmul.f32 1.442695, %v2572_v26  ;;  %3374 = vrot.lane.b32.xlu0 %v7855_v12, %s8031_s23  ;;  %v2053_v26 = vmul.f32 %v7182_v3, %v13507_v19  ;;  %v1964_v55 = vsub.f32 %v1868_v6, %v13501_v43  ;;  %13509 = vst [vmem:[#allocation65_spill] sm:$0xff] %v9819_v41  ;;  %v9830_v6 = vld [vmem:[%s8132_s9 + $0x20] sm:$0xff] }
 0x1d0   : > { %v6405_v39 = vpop.f32.mrb[20].mxu0  ;;  %v9807_v51 = vpop.permute.xlu1 %2514  ;;  %v2072_v32 = vpack.c.bf16 %v2050_v10, %v2048_v30  ;;  %v2028_v10 = vmul.f32 1.442695, %v1966_v7  ;;  %13512 = vst [vmem:[#allocation67_spill] sm:$0xff] %v9830_v6 }
 0x1d1   : > { %v6406_v52 = vpop.f32.mrb[21].mxu0  ;;  %v9812_v44 = vpop.permute.xlu0 %2566  ;;  %7197 = vpow2.f32 %v2607_v20  ;;  %v2075_v25 = vpack.c.bf16 %v2055_v57, %v2053_v26  ;;  %v13511_v20 = vld [vmem:[#allocation29_spill] sm:$0xff]  ;;  %v2024_v30 = vmul.f32 1.442695, %v1964_v55  ;;  %v13513_v57 = vld [vmem:[#allocation31_spill] sm:$0xff] }
 0x1d2   : > { %13506 = vst [vmem:[#allocation63_spill] sm:$0xff] %v9812_v44  ;;  %v9815_v15 = vadd.f32 %v6406_v52, %v6405_v39  ;;  %v6408_v61 = vpop.f32.mrb[22].mxu0  ;;  %v7184_v12 = vpop.eup %7183  ;;  %7199 = vpow2.f32 %v2016_v50 }
 0x1d3   : > { %v6409_v11 = vpop.f32.mrb[23].mxu0  ;;  %3608 = vperm.xlu0 %6965, %v9819_v41   ;;  %v7186_v13 = vpop.eup %7185  ;;  %7201 = vpow2.f32 %v2026_v42  ;;  %v2054_v39 = vmul.f32 %v7184_v12, %v13511_v20 }
 0x1d4   : > { %13508 = vst [vmem:[#allocation37_spill] sm:$0xff] %v9815_v15  ;;  %v9822_v5 = vadd.f32 %v6409_v11, %v6408_v61  ;;  %v9824_v3 = vpop.permute.xlu1 %2522  ;;  %2193 = vmatmul.mubr.bf16.gmra.mrb[48].mxu0 %v2072_v32  ;;  %v7188_v23 = vpop.eup %7187  ;;  %v2059_v42 = vmul.f32 %v7186_v13, %v13513_v57  ;;  %v13514_v61 = vld [vmem:[#allocation9_spill] sm:$0xff]  ;;  %7203 = vpow2.f32 %v2028_v10  ;;  %v9843_v57 = vld [vmem:[%s8132_s9 + $0x30] sm:$0xff] }
 0x1d5   : > { %2200 = vmatprep.mubr.bf16.mxu0 %v2075_v25  ;;  %v9826_v50 = vpop.permute.xlu0 %2715  ;;  %v7190_v43 = vpop.eup %7189  ;;  %v2052_v32 = vmul.f32 %v7188_v23, %v13514_v61  ;;  %v13515_v25 = vld [vmem:[#allocation30_spill] sm:$0xff]  ;;  %7205 = vpow2.f32 %v2024_v30  ;;  %13517 = vst [vmem:[#allocation46_spill] sm:$0xff] %v9843_v57  ;;  %v13521_v61 = vld [vmem:[#allocation36_spill] sm:$0xff] }
 0x1d6   : > { %13510 = vst [vmem:[#allocation41_spill] sm:$0xff] %v9822_v5  ;;  %v7192_v7 = vpop.eup %7191  ;;  %v2057_v5 = vmul.f32 %v7190_v43, %v13515_v25 }
 0x1d7   : > { %3620 = vperm.xlu0 %6965, %v9830_v6   ;;  %v7194_v55 = vpop.eup %7193  ;;  %v2074_v6 = vpack.c.bf16 %v2054_v39, %v2052_v32  ;;  %v13520_v39 = vld [vmem:[#allocation11_spill] sm:$0xff]  ;;  %v2058_v47 = vmul.f32 %v7192_v7, %v13521_v61 }
 0x1d8   : > { %v6411_v52 = vpop.f32.mrb[24].mxu0  ;;  %v9834_v26 = vpop.permute.xlu1 %2530  ;;  %v2077_v23 = vpack.c.bf16 %v2059_v42, %v2057_v5  ;;  %v13523_v5 = vld [vmem:[#allocation39_spill] sm:$0xff] }
 0x1d9   : > { %v6412_v11 = vpop.f32.mrb[25].mxu0  ;;  %v9838_v15 = vpop.permute.xlu0 %2719 }
 0x1da   : > { %v9840_v12 = vadd.f32 %v6412_v11, %v6411_v52  ;;  %v6414_v41 = vpop.f32.mrb[26].mxu0  ;;  %v7196_v36 = vpop.eup %7195  ;;  %v13519_v52 = vld [vmem:[#allocation10_spill] sm:$0xff] }
 0x1db   : > { %v6415_v13 = vpop.f32.mrb[27].mxu0  ;;  %3628 = vperm.xlu0 %6965, %v9843_v57   ;;  %v7198_v10 = vpop.eup %7197  ;;  %v2666_v11 = vmul.f32 %v7194_v55, %v13519_v52  ;;  %v2063_v42 = vmul.f32 %v7196_v36, %v13523_v5 }
 0x1dc   : > { %13516 = vst [vmem:[#allocation44_spill] sm:$0xff] %v9840_v12  ;;  %v9846_v20 = vadd.f32 %v6415_v13, %v6414_v41  ;;  %v9848_v43 = vpop.permute.xlu1 %2538  ;;  %2201 = vmatmul.mubr.bf16.gmra.mrb[52].mxu0 %v2074_v6  ;;  %v7200_v25 = vpop.eup %7199  ;;  %v2668_v32 = vmul.f32 %v7198_v10, %v13520_v39  ;;  %v13525_v10 = vld [vmem:[#allocation38_spill] sm:$0xff] }
 0x1dd   : > { %2208 = vmatprep.mubr.bf16.mxu0 %v2077_v23  ;;  %v9852_v30 = vpop.permute.xlu0 %2723  ;;  %v7202_v12 = vpop.eup %7201  ;;  %v13524_v23 = vld [vmem:[#allocation35_spill] sm:$0xff] }
 0x1de   : > { %13518 = vst [vmem:[#allocation49_spill] sm:$0xff] %v9846_v20  ;;  %v2698_v41 = vpack.c.bf16 %v2668_v32, %v2666_v11  ;;  %v2056_v55 = vmul.f32 %v7200_v25, %v13524_v23  ;;  %v2061_v39 = vmul.f32 %v7202_v12, %v13525_v10  ;;  %v7204_v19 = vpop.eup %7203  ;;  %v9869_v11 = vld [vmem:[%s8132_s9 + $0x50] sm:$0xff] }
 0x1df   : > { %3636 = vperm.xlu0 %6965, %v9856_v16   ;;  %13527 = vst [vmem:[#allocation69_spill] sm:$0xff] %v9869_v11  ;;  %v7206_v12 = vpop.eup %7205 }
 0x1e0   : > { %v6417_v6 = vpop.f32.mrb[28].mxu0  ;;  %v9860_v13 = vpop.permute.xlu1 %2546  ;;  %2793 = vmatprep.mubr.bf16.mxu1 %v2698_v41  ;;  %v2076_v61 = vpack.c.bf16 %v2058_v47, %v2056_v55  ;;  %v2079_v36 = vpack.c.bf16 %v2063_v42, %v2061_v39  ;;  %v13531_v55 = vld [vmem:[#allocation42_spill] sm:$0xff]  ;;  %v9886_v39 = vld [vmem:[%s8132_s9] sm:$0xff]  ;;  %v13532_v42 = vld [vmem:[#allocation56_spill] sm:$0xff] }
 0x1e1   : > { %v6418_v52 = vpop.f32.mrb[29].mxu0  ;;  %v9864_v20 = vpop.permute.xlu0 %2727 }
 0x1e2   : > { %v9866_v7 = vadd.f32 %v6418_v52, %v6417_v6  ;;  %v6420_v57 = vpop.f32.mrb[30].mxu0  ;;  %v13529_v52 = vld [vmem:[#allocation43_spill] sm:$0xff] }
 0x1e3   : > { %v6421_v16 = vpop.f32.mrb[31].mxu0  ;;  %3644 = vperm.xlu0 %6965, %v9869_v11   ;;  %v2062_v6 = vmul.f32 %v7204_v19, %v13529_v52 }
 0x1e4   : > { %13526 = vst [vmem:[#allocation55_spill] sm:$0xff] %v9866_v7  ;;  %v9872_v32 = vadd.f32 %v6421_v16, %v6420_v57  ;;  %v9874_v25 = vpop.permute.xlu1 %2554  ;;  %2209 = vmatmul.mubr.bf16.gmra.mrb[56].mxu0 %v2076_v61  ;;  %v2060_v7 = vmul.f32 %v7206_v12, %v13531_v55  ;;  %v13091_v61 = vmov 13  }
 0x1e5   : > { %2216 = vmatprep.mubr.bf16.mxu0 %v2079_v36  ;;  %v2732_v41 = vpop.permute.xlu0 %2731 }
 0x1e6   : > { %13528 = vst [vmem:[#allocation72_spill] sm:$0xff] %v9872_v32  ;;  %v2078_v11 = vpack.c.bf16 %v2062_v6, %v2060_v7 }
 0x1e7   : > { %3652 = vperm.xlu0 %6965, %v9565_v2  }
 0x1e8   : > { %v9878_v47 = vpop.permute.xlu1 %2562 }
 0x1e9   : > { %13530 = vst [vmem:[#allocation73_spill] sm:$0xff] %v9878_v47  ;;  %v2736_v5 = vpop.permute.xlu0 %2735 }
 0x1eb   : > { %3660 = vperm.xlu0 %6965, %v9601_v8   ;;  %v7862_v8 = vld [vmem:[%s12932_s0] sm:$0xff] }
 0x1ec   : > { %v2714_v16 = vpop.permute.xlu1 %2713  ;;  %2217 = vmatmul.mubr.bf16.gmra.mrb[60].mxu0 %v2078_v11  ;;  %v13534_v11 = vsub.s32 3, %v13342_v60  ;;  %v13537_v60 = vld [vmem:[#allocation48_spill] sm:$0xff] }
 0x1ed   : > { %v9882_v57 = vpop.permute.xlu0 %2739 }
 0x1ee   : > { %v9901_v12 = vrot.slane %v7862_v8, %v13534_v11  ;;  %v2416_v8 = vadd.f32 %v9520_v56, %v9604_v62 }
 0x1ef   : > { %6966 = vset.pattern.permute.xlu0 %v13091_v61  ;;  %v13535_v61 = vld [vmem:[#allocation64_spill] sm:$0xff] }
 0x1f0   : > { %3772 = vperm.xlu0 %6966, %v9886_v39   ;;  %v2718_v2 = vpop.permute.xlu1 %2717  ;;  %v2411_v6 = vadd.f32 %v9901_v12, %v9472_v59  ;;  %v2409_v52 = vadd.f32 %v9901_v12, %v9534_v40  ;;  %v2448_v23 = vmul.f32 0.2, %v2416_v8  ;;  %v9922_v40 = vld [vmem:[%s8132_s9 + $0x48] sm:$0xff] }
 0x1f1   : > { %v9889_v19 = vpop.permute.xlu0 %2743  ;;  %13539 = vst [vmem:[#allocation61_spill] sm:$0xff] %v9922_v40 }
 0x1f2   : > { %v2443_v11 = vmul.f32 0.2, %v2411_v6  ;;  %v2441_v10 = vmul.f32 0.2, %v2409_v52 }
 0x1f4   : > { %3784 = vperm.xlu0 %6966, %v13532_v42   ;;  %v9892_v36 = vpop.permute.xlu1 %2721  ;;  %v2414_v42 = vadd.f32 %v9520_v56, %v9568_v31  ;;  %v2475_v0 = vmax.f32 %v2411_v6, %v2443_v11  ;;  %v2480_v6 = vmax.f32 %v2416_v8, %v2448_v23 }
 0x1f5   : > { %v9894_v7 = vpop.permute.xlu0 %2971 }
 0x1f6   : > { %13533 = vst [vmem:[#allocation74_spill] sm:$0xff] %v9894_v7  ;;  %v2446_v55 = vmul.f32 0.2, %v2414_v42 }
 0x1f8   : > { %3792 = vperm.xlu0 %6966, %v13535_v61   ;;  %v9906_v32 = vpop.permute.xlu1 %2725 }
 0x1f9   : > { %v9910_v7 = vpop.permute.xlu0 %2983 }
 0x1fa   : > { %13536 = vst [vmem:[#allocation47_spill] sm:$0xff] %v9910_v7  ;;  %v2413_v7 = vadd.f32 %v9901_v12, %v9568_v31  ;;  %v2420_v31 = vadd.f32 %v9520_v56, %v9631_v27 }
 0x1fc   : > { %3800 = vperm.xlu0 %6966, %v13537_v60   ;;  %v2730_v59 = vpop.permute.xlu1 %2729  ;;  %v2418_v60 = vadd.f32 %v9520_v56, %v9482_v29  ;;  %v2452_v23 = vmul.f32 0.2, %v2420_v31 }
 0x1fd   : > { %6551 = vmatprep.subr.bf16.mxu1 %v2730_v59  ;;  %v9917_v61 = vpop.permute.xlu0 %2991  ;;  %v2478_v59 = vmax.f32 %v2414_v42, %v2446_v55  ;;  %v9938_v42 = vld [vmem:[%s8132_s9 + $0x58] sm:$0xff] }
 0x1fe   : > { %13538 = vst [vmem:[#allocation32_spill] sm:$0xff] %v9917_v61  ;;  %6552 = vmatpush3.bf16.msra.mxu1 %v2714_v16  ;;  %v2415_v16 = vadd.f32 %v9901_v12, %v9604_v62  ;;  %v2571_v61 = vsub.f32 %v2475_v0, %v9793_v4  ;;  %v2450_v62 = vmul.f32 0.2, %v2418_v60  ;;  %v2576_v4 = vsub.f32 %v2480_v6, %v9675_v48 }
 0x1ff   : > { %6553 = vmatprep.subr.bf16.mxu1 %v2732_v41  ;;  %v2473_v41 = vmax.f32 %v2409_v52, %v2441_v10  ;;  %v2574_v11 = vsub.f32 %v2478_v59, %v9807_v51  ;;  %v9947_v59 = vld [vmem:[%s8132_s9 + $0x68] sm:$0xff]  ;;  %v2422_v6 = vadd.f32 %v9520_v56, %v9496_v17 }
 0x200   : > { %3808 = vperm.xlu0 %6966, %v9922_v40   ;;  %v2734_v44 = vpop.permute.xlu1 %2733  ;;  %v2445_v40 = vmul.f32 0.2, %v2413_v7  ;;  %v2605_v10 = vmul.f32 1.442695, %v2571_v61  ;;  %v2482_v61 = vmax.f32 %v2418_v60, %v2450_v62 }
 0x201   : > { %v9927_v47 = vpop.permute.xlu0 %2999  ;;  %v2569_v55 = vsub.f32 %v2473_v41, %v9643_v63  ;;  %v2611_v52 = vmul.f32 1.442695, %v2574_v11 }
 0x202   : > { %6554 = vmatpush3.bf16.msra.mxu1 %v9826_v50  ;;  %v2447_v50 = vmul.f32 0.2, %v2415_v16  ;;  %v2477_v63 = vmax.f32 %v2413_v7, %v2445_v40  ;;  %7207 = vpow2.f32 %v2605_v10  ;;  %v2424_v7 = vadd.f32 %v9520_v56, %v9664_v34 }
 0x203   : > { %6555 = vmatprep.subr.bf16.mxu1 %v2734_v44  ;;  %v2417_v44 = vadd.f32 %v9901_v12, %v9482_v29  ;;  %v2601_v8 = vmul.f32 1.442695, %v2569_v55  ;;  %v2484_v40 = vmax.f32 %v2420_v31, %v2452_v23  ;;  %7209 = vpow2.f32 %v2611_v52  ;;  %v13542_v23 = vld [vmem:[#allocation66_spill] sm:$0xff] }
 0x204   : > { %3816 = vperm.xlu0 %6966, %v9938_v42   ;;  %v2738_v41 = vpop.permute.xlu1 %2737  ;;  %v2479_v11 = vmax.f32 %v2415_v16, %v2447_v50  ;;  %v2573_v29 = vsub.f32 %v2477_v63, %v9807_v51  ;;  %v2578_v55 = vsub.f32 %v2482_v61, %v9824_v3  ;;  %v2454_v51 = vmul.f32 0.2, %v2422_v6 }
 0x205   : > { %v9942_v0 = vpop.permute.xlu0 %3007  ;;  %v2449_v60 = vmul.f32 0.2, %v2417_v44  ;;  %7211 = vpow2.f32 %v2601_v8  ;;  %v2456_v10 = vmul.f32 0.2, %v2424_v7  ;;  %v9977_v52 = vadd.f32 %v9520_v56, %v13542_v23 }
 0x206   : > { %13540 = vst [vmem:[#allocation45_spill] sm:$0xff] %v9942_v0  ;;  %6556 = vmatpush3.bf16.msra.mxu1 %v2718_v2  ;;  %v2615_v0 = vmul.f32 1.442695, %v2576_v4  ;;  %v2575_v62 = vsub.f32 %v2479_v11, %v9675_v48  ;;  %v9963_v4 = vld [vmem:[%s8132_s9 + $0x78] sm:$0xff]  ;;  %v2609_v50 = vmul.f32 1.442695, %v2573_v29  ;;  %v2486_v61 = vmax.f32 %v2422_v6, %v2454_v51 }
 0x207   : > { %6557 = vmatprep.subr.bf16.mxu1 %v2736_v5  ;;  %v2419_v5 = vadd.f32 %v9901_v12, %v9631_v27  ;;  %v9968_v27 = vadd.f32 %v9901_v12, %v9496_v17  ;;  %v2619_v48 = vmul.f32 1.442695, %v2578_v55  ;;  %v2481_v8 = vmax.f32 %v2417_v44, %v2449_v60 }
 0x208   : > { %3824 = vperm.xlu0 %6966, %v9947_v59   ;;  %7213 = vpow2.f32 %v2615_v0  ;;  %v2613_v17 = vmul.f32 1.442695, %v2575_v62  ;;  %v7867_v0 = vld [vmem:[%s12934_s2 + $0x8] sm:$0xff]   ;;  %v2742_v63 = vpop.permute.xlu1 %2741  ;;  %v13101_v29 = vmov 6   ;;  %v9993_v44 = vadd.f32 %v9901_v12, %v13542_v23 }
 0x209   : > { %v9952_v2 = vpop.permute.xlu0 %3015  ;;  %v2451_v31 = vmul.f32 0.2, %v2419_v5  ;;  %7215 = vpow2.f32 %v2609_v50  ;;  %v2577_v55 = vsub.f32 %v2481_v8, %v9824_v3  ;;  %v2488_v60 = vmax.f32 %v2424_v7, %v2456_v10  ;;  %v7868_v3 = vld [vmem:[%s12934_s2 + $0x18] sm:$0xff]   ;;  %v13544_v10 = vld [vmem:[#allocation51_spill] sm:$0xff] }
 0x20a   : > { %6558 = vmatpush3.bf16.msra.mxu1 %v9838_v15  ;;  %v2580_v15 = vsub.f32 %v2484_v40, %v9701_v38  ;;  %7217 = vpow2.f32 %v2619_v48  ;;  %v2582_v6 = vsub.f32 %v2486_v61, %v9834_v26  ;;  %v2458_v51 = vmul.f32 0.2, %v9977_v52  ;;  %v13545_v61 = vld [vmem:[#allocation14_spill] sm:$0xff] }
 0x20b   : > { %6559 = vmatprep.subr.bf16.mxu1 %v2738_v41  ;;  %v9986_v41 = vadd.f32 %v9901_v12, %v9664_v34  ;;  %v2483_v40 = vmax.f32 %v2419_v5, %v2451_v31  ;;  %v2428_v34 = vadd.f32 %v9520_v56, %v9687_v21  ;;  %7219 = vpow2.f32 %v2613_v17 }
 0x20c   : > { %3832 = vperm.xlu0 %6966, %v9963_v4   ;;  %v7208_v62 = vpop.eup %7207  ;;  %v2584_v7 = vsub.f32 %v2488_v60, %v9732_v37  ;;  %v10009_v50 = vmul.f32 0.2, %v9993_v44  ;;  %v10013_v48 = vadd.f32 %v9901_v12, %v13544_v10  ;;  %v13546_v60 = vld [vmem:[#allocation68_spill] sm:$0xff] }
 0x20d   : > { %v9971_v16 = vpop.permute.xlu0 %3023  ;;  %v2455_v5 = vmul.f32 0.2, %v9986_v41 }
 0x20e   : > { %13541 = vst [vmem:[#allocation23_spill] sm:$0xff] %v9971_v16  ;;  %6560 = vmatpush3.bf16.msra.mxu1 %v9892_v36  ;;  %v2453_v36 = vmul.f32 0.2, %v9968_v27 }
 0x20f   : > { %6561 = vmatprep.subr.bf16.mxu1 %v9882_v57  ;;  %v2623_v57 = vmul.f32 1.442695, %v2580_v15  ;;  %v2579_v15 = vsub.f32 %v2483_v40, %v9701_v38  ;;  %v2617_v38 = vmul.f32 1.442695, %v2577_v55  ;;  %v2667_v40 = vmul.f32 %v7208_v62, %v13545_v61 }
 0x210   : > { %3981 = vrot.lane.b32.xlu0 %v7867_v0, %s8034_s7  ;;  %v2485_v23 = vmax.f32 %v9968_v27, %v2453_v36  ;;  %v10021_v0 = vadd.f32 %v9520_v56, %v13544_v10  ;;  %v10027_v55 = vadd.f32 %v9520_v56, %v13546_v60  ;;  %v7869_v36 = vld [vmem:[%s12934_s2 + $0x28] sm:$0xff]   ;;  %v2631_v62 = vmul.f32 1.442695, %v2584_v7 }
 0x211   : > { %v9988_v11 = vpop.permute.xlu0 %3031  ;;  %6969 = vset.pattern.permute.xlu0 %v13101_v29  ;;  %7221 = vpow2.f32 %v2623_v57  ;;  %v2627_v57 = vmul.f32 1.442695, %v2582_v6  ;;  %v2621_v27 = vmul.f32 1.442695, %v2579_v15  ;;  %v2487_v6 = vmax.f32 %v9986_v41, %v2455_v5  ;;  %v13548_v29 = vld [vmem:[#allocation12_spill] sm:$0xff] }
 0x212   : > { %13543 = vst [vmem:[#allocation50_spill] sm:$0xff] %v9988_v11  ;;  %6562 = vmatpush3.bf16.msra.mxu1 %v9852_v30  ;;  %v7210_v30 = vpop.eup %7209  ;;  %v10041_v15 = vadd.f32 %v9520_v56, %v9718_v14  ;;  %7223 = vpow2.f32 %v2617_v38  ;;  %v2462_v7 = vmul.f32 0.2, %v10021_v0 }
 0x213   : > { %6563 = vmatprep.subr.bf16.mxu1 %v2742_v63  ;;  %v7212_v31 = vpop.eup %7211  ;;  %v2460_v63 = vmul.f32 0.2, %v2428_v34  ;;  %7225 = vpow2.f32 %v2627_v57 }
 0x214   : > { %3985 = vrot.lane.b32.xlu0 %v7868_v3, %s8034_s7  ;;  %v7214_v8 = vpop.eup %7213  ;;  %v13547_v3 = vld [vmem:[#allocation15_spill] sm:$0xff]  ;;  %v2665_v11 = vmul.f32 %v7212_v31, %v13548_v29  ;;  %7227 = vpow2.f32 %v2621_v27  ;;  %v2583_v31 = vsub.f32 %v2487_v6, %v9732_v37  ;;  %v10063_v37 = vadd.f32 %v9901_v12, %v13546_v60 }
 0x215   : > { %v2670_v10 = vmul.f32 %v7210_v30, %v13547_v3  ;;  %v13549_v30 = vld [vmem:[#allocation16_spill] sm:$0xff]  ;;  %v2492_v16 = vmax.f32 %v2428_v34, %v2460_v63  ;;  %v7216_v5 = vpop.eup %7215  ;;  %7229 = vpow2.f32 %v2631_v62  ;;  %v2494_v6 = vmax.f32 %v10021_v0, %v2462_v7  ;;  %v10080_v62 = vld [vmem:[%s12934_s2 + $0x48] sm:$0xff]  }
 0x216   : > { %6564 = vmatpush3.bf16.msra.mxu1 %v9906_v32  ;;  %v10017_v17 = vpop.permute.xlu0 %3143  ;;  %v2490_v32 = vmax.f32 %v9977_v52, %v2458_v51  ;;  %v2581_v52 = vsub.f32 %v2485_v23, %v9834_v26  ;;  %v2697_v41 = vpack.c.bf16 %v2667_v40, %v2665_v11  ;;  %v7870_v26 = vld [vmem:[%s12934_s2 + $0x38] sm:$0xff]   ;;  %v7218_v38 = vpop.eup %7217  ;;  %v2489_v11 = vmax.f32 %v9993_v44, %v10009_v50 }
 0x217   : > { %6565 = vmatprep.subr.bf16.mxu1 %v9889_v19  ;;  %v2427_v19 = vadd.f32 %v9901_v12, %v9687_v21  ;;  %v2588_v34 = vsub.f32 %v2492_v16, %v9758_v18  ;;  %v7220_v23 = vpop.eup %7219  ;;  %v10068_v16 = vmul.f32 0.2, %v10027_v55  ;;  %v2464_v44 = vmul.f32 0.2, %v10041_v15 }
 0x218   : > { %3989 = vrot.lane.b32.xlu0 %v7869_v36, %s8034_s7  ;;  %v2672_v36 = vmul.f32 %v7214_v8, %v13549_v30  ;;  %v2586_v21 = vsub.f32 %v2490_v32, %v9848_v43  ;;  %v10059_v8 = vmul.f32 0.2, %v10013_v48  ;;  %v2625_v57 = vmul.f32 1.442695, %v2581_v52 }
 0x219   : > { %v2459_v63 = vmul.f32 0.2, %v2427_v19  ;;  %v2669_v32 = vmul.f32 %v7216_v5, %v13488_v46  ;;  %v2629_v60 = vmul.f32 1.442695, %v2583_v31  ;;  %v2674_v52 = vmul.f32 %v7218_v38, %v13489_v58  ;;  %v13551_v5 = vld [vmem:[#allocation18_spill] sm:$0xff] }
 0x21a   : > { %6566 = vmatpush3.bf16.msra.mxu1 %v9864_v20  ;;  %v10045_v51 = vpop.permute.xlu0 %3155  ;;  %v2700_v20 = vpack.c.bf16 %v2672_v36, %v2670_v10  ;;  %v2635_v50 = vmul.f32 1.442695, %v2586_v21  ;;  %v10074_v10 = vadd.f32 %v9901_v12, %v9718_v14  ;;  %v13550_v36 = vld [vmem:[#allocation54_spill] sm:$0xff]  ;;  %v2585_v14 = vsub.f32 %v2489_v11, %v9848_v43 }
 0x21b   : > { %v7222_v27 = vpop.eup %7221  ;;  %v10087_v21 = vadd.f32 %v9520_v56, %v13550_v36  ;;  %v2671_v31 = vmul.f32 %v7220_v23, %v13551_v5  ;;  %v10093_v0 = vadd.f32 %v9520_v56, %v9746_v53  ;;  %v2491_v7 = vmax.f32 %v2427_v19, %v2459_v63  ;;  %v10105_v19 = vld [vmem:[%s12934_s2 + $0x58] sm:$0xff]  }
 0x21c   : > { %3993 = vrot.lane.b32.xlu0 %v7870_v26, %s8034_s7  ;;  %7231 = vpow2.f32 %v2625_v57  ;;  %v2496_v38 = vmax.f32 %v10041_v15, %v2464_v44  ;;  %v2590_v58 = vsub.f32 %v2494_v6, %v9860_v13  ;;  %v7224_v3 = vpop.eup %7223  ;;  %v2463_v43 = vmul.f32 0.2, %v10074_v10 }
 0x21d   : > { %2794 = vmatmul.mubr.bf16.vlgmr.msra.gmra.mrb[32].mxu1 %v2697_v41  ;;  %v2639_v41 = vmul.f32 1.442695, %v2588_v34  ;;  %7233 = vpow2.f32 %v2635_v50  ;;  %v2699_v34 = vpack.c.bf16 %v2671_v31, %v2669_v32  ;;  %v2587_v11 = vsub.f32 %v2491_v7, %v9758_v18  ;;  %v7226_v15 = vpop.eup %7225 }
 0x21e   : > { %2801 = vmatprep.mubr.bf16.mxu1 %v2700_v20  ;;  %v10065_v40 = vpop.permute.xlu0 %3163  ;;  %v13552_v20 = vld [vmem:[#allocation20_spill] sm:$0xff]  ;;  %7235 = vpow2.f32 %v2629_v60  ;;  %v2592_v63 = vsub.f32 %v2496_v38, %v9779_v1  ;;  %v2633_v57 = vmul.f32 1.442695, %v2585_v14  ;;  %v10111_v44 = vmul.f32 0.2, %v10063_v37 }
 0x21f   : > { %v2676_v46 = vmul.f32 %v7222_v27, %v13552_v20  ;;  %7237 = vpow2.f32 %v2639_v41  ;;  %v7228_v27 = vpop.eup %7227  ;;  %v10114_v18 = vmul.f32 0.2, %v10087_v21  ;;  %v2493_v50 = vmax.f32 %v10013_v48, %v10059_v8 }
 0x220   : > { %3997 = vrot.lane.b32.xlu0 %v10080_v62, %s8034_s7  ;;  %v2498_v32 = vmax.f32 %v10027_v55, %v10068_v16  ;;  %v7230_v6 = vpop.eup %7229  ;;  %v2468_v41 = vmul.f32 0.2, %v10093_v0  ;;  %v2643_v14 = vmul.f32 1.442695, %v2590_v58  ;;  %v2673_v7 = vmul.f32 %v7224_v3, %v13493_v45  ;;  %v10134_v55 = vld [vmem:[%s12934_s2 + $0x68] sm:$0xff]  }
 0x221   : > { %v2702_v23 = vpack.c.bf16 %v2676_v46, %v2674_v52  ;;  %v10124_v52 = vadd.f32 %v9901_v12, %v9746_v53  ;;  %v2637_v38 = vmul.f32 1.442695, %v2587_v11  ;;  %v2495_v48 = vmax.f32 %v10074_v10, %v2463_v43 }
 0x222   : > { %v10095_v26 = vpop.permute.xlu0 %3171  ;;  %v2678_v16 = vmul.f32 %v7226_v15, %v13495_v24  ;;  %v2647_v58 = vmul.f32 1.442695, %v2592_v63  ;;  %7239 = vpow2.f32 %v2633_v57  ;;  %v2589_v3 = vsub.f32 %v2493_v50, %v9860_v13 }
 0x223   : > { %v2675_v10 = vmul.f32 %v7228_v27, %v13415_v28  ;;  %v10143_v43 = vadd.f32 %v9520_v56, %v9771_v54  ;;  %v2500_v15 = vmax.f32 %v10093_v0, %v2468_v41  ;;  %v2594_v13 = vsub.f32 %v2498_v32, %v9874_v25  ;;  %v10157_v56 = vld [vmem:[%s12934_s2 + $0x78] sm:$0xff]  }
 0x224   : > { %4001 = vrot.lane.b32.xlu0 %v10105_v19, %s8034_s7  ;;  %v2591_v27 = vsub.f32 %v2495_v48, %v9779_v1  ;;  %v2467_v0 = vmul.f32 0.2, %v10124_v52  ;;  %v2641_v41 = vmul.f32 1.442695, %v2589_v3  ;;  %v10166_v1 = vadd.f32 %v9901_v12, %v13550_v36 }
 0x225   : > { %2802 = vmatmul.mubr.bf16.gmra.mrb[36].mxu1 %v2699_v34  ;;  %v2701_v63 = vpack.c.bf16 %v2675_v10, %v2673_v7  ;;  %v2596_v32 = vsub.f32 %v2500_v15, %v9797_v22  ;;  %v2497_v7 = vmax.f32 %v10063_v37, %v10111_v44  ;;  %v2502_v3 = vmax.f32 %v10087_v21, %v10114_v18 }
 0x226   : > { %v6439_v46 = vpop.f32.mrb[0].mxu1  ;;  %2809 = vmatprep.mubr.bf16.mxu1 %v2702_v23  ;;  %v10120_v60 = vpop.permute.xlu0 %3179  ;;  %v10178_v36 = vadd.f32 %v9901_v12, %v9771_v54 }
 0x227   : > { %v6440_v31 = vpop.f32.mrb[1].mxu1  ;;  %v7232_v57 = vpop.eup %7231 }
 0x228   : > { %v10129_v8 = vadd.f32 %v6440_v31, %v6439_v46  ;;  %4005 = vrot.lane.b32.xlu0 %v10134_v55, %s8034_s7  ;;  %v6442_v53 = vpop.f32.mrb[2].mxu1  ;;  %v2680_v46 = vmul.f32 %v7230_v6, %v13417_v33  ;;  %v7234_v6 = vpop.eup %7233  ;;  %v13556_v31 = vld [vmem:[#allocation53_spill] sm:$0xff]  ;;  %v2677_v10 = vmul.f32 %v7232_v57, %v13422_v49  ;;  %v2593_v57 = vsub.f32 %v2497_v7, %v9874_v25  ;;  %v10197_v25 = vld [vmem:[%s8132_s9 + $0x18] sm:$0xff]  ;;  %v10428_v49 = vld [vmem:[%s8132_s9 + $0x30] sm:$0xff] }
 0x229   : > { %v6443_v34 = vpop.f32.mrb[3].mxu1  ;;  %v2682_v15 = vmul.f32 %v7234_v6, %v13499_v9  ;;  %v13650_v33 = vld [vmem:[#allocation41_spill] sm:$0xff] }
 0x22a   : > { %13553 = vst [vmem:[#allocation34_spill] sm:$0xff] %v10129_v8  ;;  %7241 = vrcp.f32 %v10129_v8  ;;  %v10146_v11 = vadd.f32 %v6443_v34, %v6442_v53  ;;  %v10148_v23 = vpop.permute.xlu0 %3187  ;;  %v2704_v50 = vpack.c.bf16 %v2680_v46, %v2678_v16  ;;  %v2472_v16 = vmul.f32 0.2, %v10143_v43 }
 0x22b   : > { %13555 = vst [vmem:[#allocation64_spill] sm:$0xff] %v10148_v23  ;;  %7243 = vpow2.f32 %v2643_v14  ;;  %v7236_v14 = vpop.eup %7235  ;;  %v2645_v46 = vmul.f32 1.442695, %v2591_v27  ;;  %v13646_v23 = vld [vmem:[#allocation60_spill] sm:$0xff] }
 0x22c   : > { %13554 = vst [vmem:[#allocation56_spill] sm:$0xff] %v10146_v11  ;;  %7245 = vpow2.f32 %v2637_v38  ;;  %4009 = vrot.lane.b32.xlu0 %v10157_v56, %s8034_s7  ;;  %v7238_v53 = vpop.eup %7237  ;;  %v2679_v18 = vmul.f32 %v7236_v14, %v13425_v35  ;;  %v2504_v6 = vmax.f32 %v10143_v43, %v2472_v16  ;;  %v2649_v16 = vmul.f32 1.442695, %v2593_v57 }
 0x22d   : > { %7247 = vpow2.f32 %v2647_v58  ;;  %2810 = vmatmul.mubr.bf16.gmra.mrb[40].mxu1 %v2701_v63  ;;  %v2651_v58 = vmul.f32 1.442695, %v2594_v13  ;;  %v2499_v13 = vmax.f32 %v10124_v52, %v2467_v0  ;;  %v2655_v63 = vmul.f32 1.442695, %v2596_v32  ;;  %v13561_v52 = vld [vmem:[#allocation73_spill] sm:$0xff] }
 0x22e   : > { %7249 = vrcp.f32 %v13556_v31  ;;  %v6445_v38 = vpop.f32.mrb[4].mxu1  ;;  %2817 = vmatprep.mubr.bf16.mxu1 %v2704_v50  ;;  %v10170_v48 = vpop.permute.xlu0 %3195  ;;  %v2598_v0 = vsub.f32 %v2502_v3, %v13561_v52  ;;  %v2703_v32 = vpack.c.bf16 %v2679_v18, %v2677_v10  ;;  %v2471_v3 = vmul.f32 0.2, %v10178_v36 }
 0x22f   : > { %13557 = vst [vmem:[#allocation48_spill] sm:$0xff] %v10170_v48  ;;  %v6446_v34 = vpop.f32.mrb[5].mxu1  ;;  %7251 = vpow2.f32 %v2641_v41  ;;  %v7240_v50 = vpop.eup %7239  ;;  %v2595_v14 = vsub.f32 %v2499_v13, %v9797_v22  ;;  %v13563_v13 = vld [vmem:[#allocation22_spill] sm:$0xff] }
 0x230   : > { %v10180_v37 = vadd.f32 %v6446_v34, %v6445_v38  ;;  %4237 = vperm.xlu0 %6969, %v9886_v39   ;;  %v6448_v44 = vpop.f32.mrb[6].mxu1  ;;  %v13560_v39 = vld [vmem:[#allocation6_spill] sm:$0xff]  ;;  %v2469_v34 = vmul.f32 0.2, %v10166_v1  ;;  %v2659_v10 = vmul.f32 1.442695, %v2598_v0 }
 0x231   : > { %v6449_v21 = vpop.f32.mrb[7].mxu1  ;;  %v2684_v27 = vmul.f32 %v7238_v53, %v13560_v39  ;;  %v13562_v53 = vld [vmem:[#allocation63_spill] sm:$0xff]  ;;  %v2653_v18 = vmul.f32 1.442695, %v2595_v14 }
 0x232   : > { %13558 = vst [vmem:[#allocation66_spill] sm:$0xff] %v10180_v37  ;;  %7253 = vrcp.f32 %v10180_v37  ;;  %v10188_v54 = vadd.f32 %v6449_v21, %v6448_v44  ;;  %v10190_v12 = vpop.permute.xlu0 %3346  ;;  %v2600_v44 = vsub.f32 %v2504_v6, %v13562_v53  ;;  %v10210_v6 = vld [vmem:[%s8132_s9 + $0x28] sm:$0xff]  ;;  %v2501_v0 = vmax.f32 %v10166_v1, %v2469_v34  ;;  %v10225_v1 = vld [vmem:[%s8132_s9 + $0x38] sm:$0xff] }
 0x233   : > { %7255 = vpow2.f32 %v2651_v58  ;;  %v2706_v7 = vpack.c.bf16 %v2684_v27, %v2682_v15 }
 0x234   : > { %13559 = vst [vmem:[#allocation51_spill] sm:$0xff] %v10188_v54  ;;  %v7242_v41 = vpop.eup %7241  ;;  %7257 = vpow2.f32 %v2645_v46  ;;  %4249 = vperm.xlu0 %6969, %v10197_v25   ;;  %v2663_v31 = vmul.f32 1.442695, %v2600_v44 }
 0x235   : > { %v7244_v38 = vpop.eup %7243  ;;  %7259 = vpow2.f32 %v2655_v63  ;;  %1610 = vperm.xlu1 %6959, %v7242_v41   ;;  %2818 = vmatmul.mubr.bf16.gmra.mrb[44].mxu1 %v2703_v32  ;;  %v2681_v63 = vmul.f32 %v7240_v50, %v13563_v13  ;;  %v13565_v32 = vld [vmem:[#allocation21_spill] sm:$0xff]  ;;  %v13567_v50 = vld [vmem:[#allocation7_spill] sm:$0xff]  ;;  %v2503_v13 = vmax.f32 %v10178_v36, %v2471_v3 }
 0x236   : > { %v7246_v43 = vpop.eup %7245  ;;  %7261 = vrcp.f32 %v10188_v54  ;;  %v6451_v58 = vpop.f32.mrb[8].mxu1  ;;  %2825 = vmatprep.mubr.bf16.mxu1 %v2706_v7  ;;  %v2686_v41 = vmul.f32 %v7244_v38, %v13565_v32  ;;  %v13566_v7 = vld [vmem:[#allocation58_spill] sm:$0xff]  ;;  %v2597_v38 = vsub.f32 %v2501_v0, %v13561_v52 }
 0x237   : > { %v7248_v22 = vpop.eup %7247  ;;  %v6452_v46 = vpop.f32.mrb[9].mxu1  ;;  %7263 = vrcp.f32 %v13566_v7  ;;  %v2683_v37 = vmul.f32 %v7246_v43, %v13567_v50  ;;  %v2599_v43 = vsub.f32 %v2503_v13, %v13562_v53  ;;  %v13573_v53 = vld [vmem:[#allocation30_spill] sm:$0xff] }
 0x238   : > { %v10204_v15 = vpop.permute.xlu0 %3350  ;;  %v7250_v21 = vpop.eup %7249  ;;  %v10207_v27 = vadd.f32 %v6452_v46, %v6451_v58  ;;  %4257 = vperm.xlu0 %6969, %v10210_v6   ;;  %7265 = vpow2.f32 %v2649_v16  ;;  %v13569_v58 = vld [vmem:[#allocation5_spill] sm:$0xff]  ;;  %v2657_v16 = vmul.f32 1.442695, %v2597_v38 }
 0x239   : > { %v6454_v57 = vpop.f32.mrb[10].mxu1  ;;  %987 = vperm.xlu1 %6959, %v7250_v21   ;;  %v2688_v46 = vmul.f32 %v7248_v22, %v13569_v58  ;;  %v7252_v8 = vpop.eup %7251  ;;  %7267 = vpow2.f32 %v2659_v10  ;;  %v2705_v7 = vpack.c.bf16 %v2683_v37, %v2681_v63  ;;  %v13570_v10 = vld [vmem:[#allocation9_spill] sm:$0xff] }
 0x23a   : > { %13564 = vst [vmem:[#allocation14_spill] sm:$0xff] %v10207_v27  ;;  %v6455_v54 = vpop.f32.mrb[11].mxu1  ;;  %7269 = vpow2.f32 %v2653_v18  ;;  %v2685_v63 = vmul.f32 %v7252_v8, %v13570_v10 }
 0x23b   : > { %v10217_v14 = vadd.f32 %v6455_v54, %v6454_v57  ;;  %v2708_v34 = vpack.c.bf16 %v2688_v46, %v2686_v41  ;;  %7271 = vpow2.f32 %v2663_v31  ;;  %v13572_v57 = vld [vmem:[#allocation61_spill] sm:$0xff]  ;;  %v13575_v46 = vld [vmem:[#allocation71_spill] sm:$0xff] }
 0x23c   : > { %v10222_v44 = vpop.permute.xlu0 %3354  ;;  %v7254_v32 = vpop.eup %7253  ;;  %4265 = vperm.xlu0 %6969, %v10225_v1  }
 0x23d   : > { %13568 = vst [vmem:[#allocation68_spill] sm:$0xff] %v10217_v14  ;;  %v7256_v54 = vpop.eup %7255  ;;  %1620 = vperm.xlu1 %6959, %v7254_v32   ;;  %2826 = vmatmul.mubr.bf16.gmra.mrb[48].mxu1 %v2705_v7  ;;  %7273 = vrcp.f32 %v10217_v14  ;;  %v2661_v32 = vmul.f32 1.442695, %v2599_v43  ;;  %v13574_v7 = vld [vmem:[#allocation29_spill] sm:$0xff] }
 0x23e   : > { %v7258_v36 = vpop.eup %7257  ;;  %v6457_v52 = vpop.f32.mrb[12].mxu1  ;;  %2833 = vmatprep.mubr.bf16.mxu1 %v2708_v34  ;;  %v2690_v13 = vmul.f32 %v7256_v54, %v13573_v53  ;;  %7275 = vrcp.f32 %v13575_v46  ;;  %v13577_v34 = vld [vmem:[#allocation31_spill] sm:$0xff] }
 0x23f   : > { %v7260_v37 = vpop.eup %7259  ;;  %v6458_v22 = vpop.f32.mrb[13].mxu1  ;;  %v2687_v0 = vmul.f32 %v7258_v36, %v13574_v7  ;;  %7277 = vpow2.f32 %v2657_v16  ;;  %v10399_v7 = vld [vmem:[%s8132_s9 + $0x40] sm:$0xff] }
 0x240   : > { %v10230_v3 = vpop.permute.xlu0 %3358  ;;  %v7262_v21 = vpop.eup %7261  ;;  %v10233_v18 = vadd.f32 %v6458_v22, %v6457_v52  ;;  %4273 = vperm.xlu0 %6969, %v13572_v57   ;;  %v2692_v14 = vmul.f32 %v7260_v37, %v13577_v34  ;;  %7279 = vpow2.f32 %v2661_v32  ;;  %v13580_v32 = vld [vmem:[#allocation38_spill] sm:$0xff] }
 0x241   : > { %v6460_v31 = vpop.f32.mrb[14].mxu1  ;;  %1625 = vperm.xlu1 %6959, %v7262_v21   ;;  %v7264_v8 = vpop.eup %7263  ;;  %v2707_v52 = vpack.c.bf16 %v2687_v0, %v2685_v63  ;;  %v13578_v21 = vld [vmem:[#allocation35_spill] sm:$0xff] }
 0x242   : > { %13571 = vst [vmem:[#allocation12_spill] sm:$0xff] %v10233_v18  ;;  %v6461_v41 = vpop.f32.mrb[15].mxu1  ;;  %v7266_v10 = vpop.eup %7265  ;;  %v2710_v57 = vpack.c.bf16 %v2692_v14, %v2690_v13 }
 0x243   : > { %v10239_v38 = vadd.f32 %v6461_v41, %v6460_v31  ;;  %v7268_v54 = vpop.eup %7267  ;;  %v2689_v31 = vmul.f32 %v7266_v10, %v13578_v21 }
 0x244   : > { %v3363_v22 = vpop.permute.xlu0 %3362  ;;  %4281 = vperm.xlu0 %6969, %v9938_v42   ;;  %v7270_v43 = vpop.eup %7269  ;;  %v2694_v41 = vmul.f32 %v7268_v54, %v13580_v32 }
 0x245   : > { %13576 = vst [vmem:[#allocation16_spill] sm:$0xff] %v10239_v38  ;;  %6615 = vmatprep.subr.bf16.mxu0 %v3363_v22  ;;  %997 = vperm.xlu1 %6959, %v7264_v8   ;;  %7281 = vrcp.f32 %v10239_v38  ;;  %v7272_v37 = vpop.eup %7271  ;;  %v13581_v8 = vld [vmem:[#allocation36_spill] sm:$0xff]  ;;  %v13582_v22 = vld [vmem:[#allocation57_spill] sm:$0xff] }
 0x246   : > { %2834 = vmatmul.mubr.bf16.gmra.mrb[52].mxu1 %v2707_v52  ;;  %v6463_v36 = vpop.f32.mrb[16].mxu1  ;;  %6616 = vmatpush3.bf16.msra.mxu0 %v10190_v12  ;;  %v2691_v52 = vmul.f32 %v7270_v43, %v13581_v8  ;;  %7283 = vrcp.f32 %v13582_v22  ;;  %v13590_v22 = vld [vmem:[#allocation43_spill] sm:$0xff] }
 0x247   : > { %2841 = vmatprep.mubr.bf16.mxu1 %v2710_v57  ;;  %v6464_v16 = vpop.f32.mrb[17].mxu1  ;;  %v7274_v42 = vpop.eup %7273  ;;  %v13584_v57 = vld [vmem:[#allocation39_spill] sm:$0xff] }
 0x248   : > { %v10245_v63 = vpop.permute.xlu0 %3366  ;;  %v10248_v14 = vadd.f32 %v6464_v16, %v6463_v36  ;;  %4289 = vperm.xlu0 %6969, %v9947_v59   ;;  %v6466_v13 = vpop.f32.mrb[18].mxu1  ;;  %v2696_v46 = vmul.f32 %v7272_v37, %v13584_v57  ;;  %v2709_v38 = vpack.c.bf16 %v2691_v52, %v2689_v31  ;;  %v13112_v31 = vmov 14   ;;  %v13592_v57 = vld [vmem:[#allocation67_spill] sm:$0xff] }
 0x249   : > { %v6467_v0 = vpop.f32.mrb[19].mxu1  ;;  %1635 = vperm.xlu1 %6959, %v7274_v42   ;;  %v7276_v36 = vpop.eup %7275 }
 0x24a   : > { %13579 = vst [vmem:[#allocation54_spill] sm:$0xff] %v10248_v14  ;;  %v10254_v12 = vadd.f32 %v6467_v0, %v6466_v13  ;;  %v2712_v16 = vpack.c.bf16 %v2696_v46, %v2694_v41  ;;  %v7278_v21 = vpop.eup %7277  ;;  %v13587_v41 = vld [vmem:[#allocation65_spill] sm:$0xff] }
 0x24b   : > { %v7280_v43 = vpop.eup %7279 }
 0x24c   : > { %13583 = vst [vmem:[#allocation18_spill] sm:$0xff] %v10254_v12  ;;  %v10257_v10 = vpop.permute.xlu0 %3370  ;;  %4297 = vperm.xlu0 %6969, %v9963_v4   ;;  %7285 = vrcp.f32 %v10254_v12  ;;  %v13586_v4 = vld [vmem:[#allocation42_spill] sm:$0xff]  ;;  %v2695_v12 = vmul.f32 %v7280_v43, %v13590_v22 }
 0x24d   : > { %1007 = vperm.xlu1 %6959, %v7276_v36   ;;  %v2693_v46 = vmul.f32 %v7278_v21, %v13586_v4  ;;  %v13588_v36 = vld [vmem:[#allocation37_spill] sm:$0xff] }
 0x24e   : > { %2842 = vmatmul.mubr.bf16.gmra.mrb[56].mxu1 %v2709_v38  ;;  %v6469_v54 = vpop.f32.mrb[20].mxu1  ;;  %7287 = vrcp.f32 %v13588_v36 }
 0x24f   : > { %2849 = vmatprep.mubr.bf16.mxu1 %v2712_v16  ;;  %v6470_v42 = vpop.f32.mrb[21].mxu1  ;;  %v7282_v0 = vpop.eup %7281 }
 0x250   : > { %v10261_v13 = vpop.permute.xlu0 %3374  ;;  %v10263_v37 = vadd.f32 %v6470_v42, %v6469_v54  ;;  %6972 = vset.pattern.permute.xlu0 %v13112_v31  ;;  %v6472_v52 = vpop.f32.mrb[22].mxu1  ;;  %v2711_v42 = vpack.c.bf16 %v2695_v12, %v2693_v46 }
 0x251   : > { %4409 = vperm.xlu0 %6972, %v13587_v41   ;;  %v6473_v38 = vpop.f32.mrb[23].mxu1  ;;  %1645 = vperm.xlu1 %6959, %v7282_v0   ;;  %v7284_v54 = vpop.eup %7283 }
 0x252   : > { %13585 = vst [vmem:[#allocation20_spill] sm:$0xff] %v10263_v37  ;;  %v10269_v16 = vadd.f32 %v6473_v38, %v6472_v52  ;;  %v13595_v38 = vld [vmem:[#allocation46_spill] sm:$0xff] }
 0x254   : > { %13589 = vst [vmem:[#allocation73_spill] sm:$0xff] %v10269_v16  ;;  %v10272_v32 = vpop.permute.xlu0 %3608  ;;  %7289 = vrcp.f32 %v10269_v16  ;;  %v13603_v16 = vld [vmem:[#allocation55_spill] sm:$0xff] }
 0x255   : > { %13591 = vst [vmem:[#allocation63_spill] sm:$0xff] %v10272_v32  ;;  %4421 = vperm.xlu0 %6972, %v13592_v57   ;;  %1017 = vperm.xlu1 %6959, %v7284_v54   ;;  %v13596_v32 = vld [vmem:[#allocation44_spill] sm:$0xff] }
 0x256   : > { %2850 = vmatmul.mubr.bf16.gmra.mrb[60].mxu1 %v2711_v42  ;;  %v6475_v21 = vpop.f32.mrb[24].mxu1  ;;  %v7286_v0 = vpop.eup %7285  ;;  %7291 = vrcp.f32 %v13596_v32  ;;  %v13599_v54 = vld [vmem:[#allocation52_spill] sm:$0xff] }
 0x257   : > { %v6476_v41 = vpop.f32.mrb[25].mxu1 }
 0x258   : > { %v10276_v31 = vpop.permute.xlu0 %3620  ;;  %v10278_v36 = vadd.f32 %v6476_v41, %v6475_v21  ;;  %v6478_v52 = vpop.f32.mrb[26].mxu1 }
 0x259   : > { %13593 = vst [vmem:[#allocation61_spill] sm:$0xff] %v10276_v31  ;;  %4429 = vperm.xlu0 %6972, %v13595_v38   ;;  %v6479_v43 = vpop.f32.mrb[27].mxu1  ;;  %1655 = vperm.xlu1 %6959, %v7286_v0   ;;  %v7288_v46 = vpop.eup %7287 }
 0x25a   : > { %13594 = vst [vmem:[#allocation65_spill] sm:$0xff] %v10278_v36  ;;  %v10282_v12 = vadd.f32 %v6479_v43, %v6478_v52  ;;  %v13602_v52 = vld [vmem:[#allocation69_spill] sm:$0xff] }
 0x25c   : > { %13597 = vst [vmem:[#allocation67_spill] sm:$0xff] %v10282_v12  ;;  %v10284_v57 = vpop.permute.xlu0 %3628  ;;  %7293 = vrcp.f32 %v10282_v12 }
 0x25d   : > { %13598 = vst [vmem:[#allocation46_spill] sm:$0xff] %v10284_v57  ;;  %4437 = vperm.xlu0 %6972, %v13599_v54   ;;  %1027 = vperm.xlu1 %6959, %v7288_v46   ;;  %7295 = vrcp.f32 %v13603_v16  ;;  %v10299_v57 = vld [vmem:[%s8132_s9 + $0x60] sm:$0xff] }
 0x25e   : > { %v6481_v42 = vpop.f32.mrb[28].mxu1  ;;  %v7290_v38 = vpop.eup %7289 }
 0x25f   : > { %v6482_v21 = vpop.f32.mrb[29].mxu1 }
 0x260   : > { %v10288_v41 = vpop.permute.xlu0 %3636  ;;  %v10290_v0 = vadd.f32 %v6482_v21, %v6481_v42  ;;  %v6484_v32 = vpop.f32.mrb[30].mxu1 }
 0x261   : > { %13600 = vst [vmem:[#allocation52_spill] sm:$0xff] %v10288_v41  ;;  %4445 = vperm.xlu0 %6972, %v13602_v52   ;;  %v6485_v43 = vpop.f32.mrb[31].mxu1  ;;  %1665 = vperm.xlu1 %6959, %v7290_v38   ;;  %v7292_v12 = vpop.eup %7291  ;;  %v10306_v52 = vld [vmem:[%s8132_s9 + $0x70] sm:$0xff] }
 0x262   : > { %13601 = vst [vmem:[#allocation75_spill] sm:$0xff] %v10290_v0  ;;  %v10294_v54 = vadd.f32 %v6485_v43, %v6484_v32  ;;  %v7880_v43 = vld [vmem:[%s12934_s2] sm:$0xff]  }
 0x264   : > { %13604 = vst [vmem:[#allocation69_spill] sm:$0xff] %v10294_v54  ;;  %v10296_v46 = vpop.permute.xlu0 %3644  ;;  %7297 = vrcp.f32 %v10294_v54 }
 0x265   : > { %13605 = vst [vmem:[#allocation76_spill] sm:$0xff] %v10296_v46  ;;  %4453 = vperm.xlu0 %6972, %v10299_v57   ;;  %1037 = vperm.xlu1 %6959, %v7292_v12   ;;  %v13119_v12 = vmov 7   ;;  %v7886_v46 = vld [vmem:[%s8132_s9 + $0x8] sm:$0xff] }
 0x266   : > { %v7294_v21 = vpop.eup %7293 }
 0x267   : > { %v7296_v38 = vpop.eup %7295 }
 0x268   : > { %v10303_v42 = vpop.permute.xlu0 %3652 }
 0x269   : > { %13606 = vst [vmem:[#allocation77_spill] sm:$0xff] %v10303_v42  ;;  %4461 = vperm.xlu0 %6972, %v10306_v52   ;;  %1675 = vperm.xlu1 %6959, %v7294_v21   ;;  %v7881_v21 = vld [vmem:[%s12934_s2 + $0x10] sm:$0xff]  }
 0x26c   : > { %v10309_v32 = vpop.permute.xlu0 %3660 }
 0x26d   : > { %13607 = vst [vmem:[#allocation78_spill] sm:$0xff] %v10309_v32  ;;  %4612 = vrot.lane.b32.xlu0 %v7880_v43, %s8037_s12  ;;  %1047 = vperm.xlu1 %6959, %v7296_v38   ;;  %v7882_v38 = vld [vmem:[%s12934_s2 + $0x20] sm:$0xff]   ;;  %v7883_v43 = vld [vmem:[%s12934_s2 + $0x30] sm:$0xff]  }
 0x26e   : > { %6974 = vset.pattern.permute.xlu0 %v13119_v12  ;;  %v7298_v54 = vpop.eup %7297 }
 0x270   : > { %v10316_v16 = vpop.permute.xlu0 %3772 }
 0x271   : > { %13608 = vst [vmem:[#allocation79_spill] sm:$0xff] %v10316_v16  ;;  %4616 = vrot.lane.b32.xlu0 %v7881_v21, %s8037_s12  ;;  %1685 = vperm.xlu1 %6959, %v7298_v54   ;;  %v7884_v54 = vld [vmem:[%s12934_s2 + $0x40] sm:$0xff]  }
 0x274   : > { %v10322_v32 = vpop.permute.xlu0 %3784 }
 0x275   : > { %13609 = vst [vmem:[#allocation80_spill] sm:$0xff] %v10322_v32  ;;  %4620 = vrot.lane.b32.xlu0 %v7882_v38, %s8037_s12  ;;  %v7885_v38 = vld [vmem:[%s12934_s2 + $0x50] sm:$0xff]  }
 0x278   : > { %v10332_v12 = vpop.permute.xlu0 %3792 }
 0x279   : > { %4624 = vrot.lane.b32.xlu0 %v7883_v43, %s8037_s12  ;;  %13610 = vst [vmem:[#allocation81_spill] sm:$0xff] %v10332_v12 }
 0x27c   : > { %v10338_v21 = vpop.permute.xlu0 %3800 }
 0x27d   : > { %4628 = vrot.lane.b32.xlu0 %v7884_v54, %s8037_s12  ;;  %13611 = vst [vmem:[#allocation82_spill] sm:$0xff] %v10338_v21 }
 0x280   : > { %v10344_v42 = vpop.permute.xlu0 %3808 }
 0x281   : > { %4632 = vrot.lane.b32.xlu0 %v7885_v38, %s8037_s12  ;;  %13612 = vst [vmem:[#allocation83_spill] sm:$0xff] %v10344_v42 }
 0x284   : > { %v10351_v32 = vpop.permute.xlu0 %3816 }
 0x285   : > { %4874 = vperm.xlu0 %6974, %v7886_v46   ;;  %13614 = vst [vmem:[#allocation85_spill] sm:$0xff] %v10351_v32 }
 0x287   : > { %v6503_v43 = vpop.f32.mrb[32].mxu0 }
 0x288   : > { %v6504_v41 = vpop.f32.mrb[33].mxu0  ;;  %v10356_v16 = vpop.permute.xlu0 %3824 }
 0x289   : > { %v10347_v12 = vadd.f32 %v6504_v41, %v6503_v43  ;;  %5263 = vrot.lane.b32.xlu0 %v10080_v62, %s8039_s11  ;;  %v6506_v54 = vpop.f32.mrb[34].mxu0  ;;  %13616 = vst [vmem:[#allocation87_spill] sm:$0xff] %v10356_v16 }
 0x28a   : > { %v6507_v21 = vpop.f32.mrb[35].mxu0 }
 0x28b   : > { %13613 = vst [vmem:[#allocation84_spill] sm:$0xff] %v10347_v12  ;;  %v10353_v31 = vadd.f32 %v6507_v21, %v6506_v54  ;;  %v7887_v21 = vld [vmem:[%s12934_s2 + $0x60] sm:$0xff]  }
 0x28c   : > { %v10368_v54 = vpop.permute.xlu0 %3832 }
 0x28d   : > { %13615 = vst [vmem:[#allocation86_spill] sm:$0xff] %v10353_v31  ;;  %4882 = vperm.xlu0 %6974, %v10197_v25   ;;  %13619 = vst [vmem:[#allocation90_spill] sm:$0xff] %v10368_v54 }
 0x28f   : > { %v6509_v38 = vpop.f32.mrb[36].mxu0 }
 0x290   : > { %v6510_v42 = vpop.f32.mrb[37].mxu0 }
 0x291   : > { %v10358_v4 = vadd.f32 %v6510_v42, %v6509_v38  ;;  %4634 = vrot.lane.b32.xlu0 %v10105_v19, %s8037_s12  ;;  %v6512_v41 = vpop.f32.mrb[38].mxu0 }
 0x292   : > { %v6513_v43 = vpop.f32.mrb[39].mxu0 }
 0x293   : > { %13617 = vst [vmem:[#allocation88_spill] sm:$0xff] %v10358_v4  ;;  %v10362_v62 = vadd.f32 %v6513_v43, %v6512_v41  ;;  %v10375_v41 = vpop.permute.xlu0 %3981 }
 0x294   : > { %13622 = vst [vmem:[#allocation93_spill] sm:$0xff] %v10375_v41 }
 0x295   : > { %13618 = vst [vmem:[#allocation89_spill] sm:$0xff] %v10362_v62  ;;  %4636 = vrot.lane.b32.xlu0 %v7887_v21, %s8037_s12 }
 0x297   : > { %v6515_v32 = vpop.f32.mrb[40].mxu0 }
 0x298   : > { %v6516_v22 = vpop.f32.mrb[41].mxu0 }
 0x299   : > { %v10370_v16 = vadd.f32 %v6516_v22, %v6515_v32  ;;  %4890 = vperm.xlu0 %6974, %v10210_v6   ;;  %v6518_v42 = vpop.f32.mrb[42].mxu0  ;;  %v7888_v22 = vld [vmem:[%s12934_s2 + $0x70] sm:$0xff]  }
 0x29a   : > { %v6519_v19 = vpop.f32.mrb[43].mxu0 }
 0x29b   : > { %13620 = vst [vmem:[#allocation91_spill] sm:$0xff] %v10370_v16  ;;  %v10373_v38 = vadd.f32 %v6519_v19, %v6518_v42  ;;  %v10385_v42 = vpop.permute.xlu0 %3985 }
 0x29c   : > { %13624 = vst [vmem:[#allocation95_spill] sm:$0xff] %v10385_v42 }
 0x29d   : > { %13621 = vst [vmem:[#allocation92_spill] sm:$0xff] %v10373_v38  ;;  %4638 = vrot.lane.b32.xlu0 %v10134_v55, %s8037_s12 }
 0x29f   : > { %v6521_v43 = vpop.f32.mrb[44].mxu0  ;;  %v10390_v53 = vpop.permute.xlu0 %3989 }
 0x2a0   : > { %v6522_v8 = vpop.f32.mrb[45].mxu0  ;;  %13626 = vst [vmem:[#allocation97_spill] sm:$0xff] %v10390_v53 }
 0x2a1   : > { %v10379_v21 = vadd.f32 %v6522_v8, %v6521_v43  ;;  %4640 = vrot.lane.b32.xlu0 %v7888_v22, %s8037_s12  ;;  %v6524_v32 = vpop.f32.mrb[46].mxu0 }
 0x2a2   : > { %v6525_v54 = vpop.f32.mrb[47].mxu0 }
 0x2a3   : > { %13623 = vst [vmem:[#allocation94_spill] sm:$0xff] %v10379_v21  ;;  %v10387_v19 = vadd.f32 %v6525_v54, %v6524_v32  ;;  %v10402_v54 = vpop.permute.xlu0 %3993 }
 0x2a4   : > { %13629 = vst [vmem:[#allocation100_spill] sm:$0xff] %v10402_v54 }
 0x2a5   : > { %13625 = vst [vmem:[#allocation96_spill] sm:$0xff] %v10387_v19  ;;  %4898 = vperm.xlu0 %6974, %v10225_v1  }
 0x2a7   : > { %v6527_v55 = vpop.f32.mrb[48].mxu0 }
 0x2a8   : > { %v6528_v41 = vpop.f32.mrb[49].mxu0 }
 0x2a9   : > { %v10392_v8 = vadd.f32 %v6528_v41, %v6527_v55  ;;  %4642 = vrot.lane.b32.xlu0 %v10157_v56, %s8037_s12  ;;  %v6530_v43 = vpop.f32.mrb[50].mxu0 }
 0x2aa   : > { %v6531_v34 = vpop.f32.mrb[51].mxu0 }
 0x2ab   : > { %13627 = vst [vmem:[#allocation98_spill] sm:$0xff] %v10392_v8  ;;  %v10396_v22 = vadd.f32 %v6531_v34, %v6530_v43  ;;  %v10409_v34 = vpop.permute.xlu0 %3997  ;;  %v13134_v43 = vmov 15  }
 0x2ac   : > { %13632 = vst [vmem:[#allocation103_spill] sm:$0xff] %v10409_v34  ;;  %v7891_v34 = vld [vmem:[%s8132_s9 + $0x20] sm:$0xff] }
 0x2ad   : > { %13628 = vst [vmem:[#allocation99_spill] sm:$0xff] %v10396_v22  ;;  %4902 = vperm.xlu0 %6974, %v10399_v7  }
 0x2af   : > { %v6533_v32 = vpop.f32.mrb[52].mxu0 }
 0x2b0   : > { %v6534_v42 = vpop.f32.mrb[53].mxu0 }
 0x2b1   : > { %v10404_v58 = vadd.f32 %v6534_v42, %v6533_v32  ;;  %4918 = vperm.xlu0 %6974, %v10299_v57   ;;  %v6536_v41 = vpop.f32.mrb[54].mxu0  ;;  %v10415_v32 = vld [vmem:[%s8132_s9 + $0x10] sm:$0xff] }
 0x2b2   : > { %v6537_v56 = vpop.f32.mrb[55].mxu0 }
 0x2b3   : > { %13630 = vst [vmem:[#allocation101_spill] sm:$0xff] %v10404_v58  ;;  %v10407_v55 = vadd.f32 %v6537_v56, %v6536_v41  ;;  %v10418_v41 = vpop.permute.xlu0 %4001 }
 0x2b4   : > { %13634 = vst [vmem:[#allocation105_spill] sm:$0xff] %v10418_v41  ;;  %v10434_v41 = vld [vmem:[%s8132_s9 + $0x48] sm:$0xff] }
 0x2b5   : > { %13631 = vst [vmem:[#allocation102_spill] sm:$0xff] %v10407_v55  ;;  %6986 = vset.pattern.permute.xlu0 %v13134_v43 }
 0x2b6   : > { %5042 = vperm.xlu0 %6986, %v7886_v46  }
 0x2b7   : > { %v6539_v53 = vpop.f32.mrb[56].mxu0  ;;  %v10423_v9 = vpop.permute.xlu0 %4005 }
 0x2b8   : > { %v6540_v54 = vpop.f32.mrb[57].mxu0  ;;  %13636 = vst [vmem:[#allocation107_spill] sm:$0xff] %v10423_v9 }
 0x2b9   : > { %v10412_v50 = vadd.f32 %v6540_v54, %v6539_v53  ;;  %v6542_v42 = vpop.f32.mrb[58].mxu0 }
 0x2ba   : > { %5046 = vperm.xlu0 %6986, %v10415_v32   ;;  %v6543_v48 = vpop.f32.mrb[59].mxu0 }
 0x2bb   : > { %13633 = vst [vmem:[#allocation104_spill] sm:$0xff] %v10412_v50  ;;  %v10420_v56 = vadd.f32 %v6543_v48, %v6542_v42  ;;  %v10437_v48 = vpop.permute.xlu0 %4009 }
 0x2bc   : > { %13639 = vst [vmem:[#allocation110_spill] sm:$0xff] %v10437_v48  ;;  %v13645_v48 = vmov 8  }
 0x2bd   : > { %13635 = vst [vmem:[#allocation106_spill] sm:$0xff] %v10420_v56 }
 0x2be   : > { %5054 = vperm.xlu0 %6986, %v7891_v34   ;;  %v10440_v34 = vld [vmem:[%s8132_s9 + $0x50] sm:$0xff] }
 0x2bf   : > { %v6545_v46 = vpop.f32.mrb[60].mxu0  ;;  %v10444_v42 = vpop.permute.xlu0 %4237 }
 0x2c0   : > { %v6546_v43 = vpop.f32.mrb[61].mxu0  ;;  %13641 = vst [vmem:[#allocation111_spill] sm:$0xff] %v10444_v42  ;;  %v13648_v42 = vld [vmem:[#allocation33_spill] sm:$0xff] }
 0x2c1   : > { %v10425_v53 = vadd.f32 %v6546_v43, %v6545_v46  ;;  %v6548_v54 = vpop.f32.mrb[62].mxu0  ;;  %v13640_v43 = vld [vmem:[#allocation40_spill] sm:$0xff]  ;;  %v13642_v46 = vld [vmem:[#allocation70_spill] sm:$0xff] }
 0x2c2   : > { %5062 = vperm.xlu0 %6986, %v10428_v49   ;;  %v6549_v39 = vpop.f32.mrb[63].mxu0  ;;  %7299 = vrcp.f32 %v13640_v43 }
 0x2c3   : > { %13637 = vst [vmem:[#allocation108_spill] sm:$0xff] %v10425_v53  ;;  %v10431_v35 = vadd.f32 %v6549_v39, %v6548_v54  ;;  %7301 = vrcp.f32 %v13642_v46  ;;  %v10449_v39 = vpop.permute.xlu0 %4249  ;;  %v13644_v54 = vld [vmem:[#allocation62_spill] sm:$0xff] }
 0x2c4   : > { %13643 = vst [vmem:[#allocation112_spill] sm:$0xff] %v10449_v39  ;;  %7303 = vrcp.f32 %v13644_v54  ;;  %v13651_v54 = vld [vmem:[#allocation49_spill] sm:$0xff] }
 0x2c5   : > { %13638 = vst [vmem:[#allocation109_spill] sm:$0xff] %v10431_v35  ;;  %7305 = vrcp.f32 %v13646_v23  ;;  %v13653_v23 = vld [vmem:[#allocation72_spill] sm:$0xff] }
 0x2c6   : > { %5074 = vperm.xlu0 %6986, %v10434_v41   ;;  %7307 = vrcp.f32 %v13648_v42 }
 0x2c7   : > { %v10454_v24 = vpop.permute.xlu0 %4257  ;;  %7309 = vrcp.f32 %v13650_v33 }
 0x2c8   : > { %13647 = vst [vmem:[#allocation113_spill] sm:$0xff] %v10454_v24  ;;  %7311 = vrcp.f32 %v13651_v54 }
 0x2c9   : > { %7313 = vrcp.f32 %v13653_v23 }
 0x2ca   : > { %5078 = vperm.xlu0 %6986, %v10440_v34   ;;  %7315 = vrcp.f32 %v10146_v11 }
 0x2cb   : > { %v10457_v46 = vpop.permute.xlu0 %4265  ;;  %7317 = vrcp.f32 %v10207_v27 }
 0x2cc   : > { %v7300_v9 = vpop.eup %7299  ;;  %13649 = vst [vmem:[#allocation114_spill] sm:$0xff] %v10457_v46  ;;  %7319 = vrcp.f32 %v10233_v18 }
 0x2cd   : > { %v7302_v43 = vpop.eup %7301 }
 0x2ce   : > { %5090 = vperm.xlu0 %6986, %v9947_v59   ;;  %v7304_v59 = vpop.eup %7303 }
 0x2cf   : > { %v7306_v39 = vpop.eup %7305  ;;  %v10461_v28 = vpop.permute.xlu0 %4273 }
 0x2d0   : > { %13652 = vst [vmem:[#allocation115_spill] sm:$0xff] %v10461_v28 }
 0x2d2   : > { %5094 = vperm.xlu0 %6986, %v10306_v52  }
 0x2d6   : > { %6990 = vset.pattern.permute.xlu0 %v13645_v48 }
 0x2d7   : > { %982 = vperm.xlu0 %6990, %v7300_v9   ;;  %v7308_v9 = vpop.eup %7307 }
 0x2d8   : > { %v7310_v24 = vpop.eup %7309 }
 0x2d9   : > { %v7312_v42 = vpop.eup %7311 }
 0x2da   : > { %v7314_v33 = vpop.eup %7313 }
 0x2db   : > { %992 = vperm.xlu0 %6990, %v7302_v43   ;;  %v10464_v43 = vpop.permute.xlu0 %4281  ;;  %v7316_v11 = vpop.eup %7315 }
 0x2dc   : > { %13654 = vst [vmem:[#allocation116_spill] sm:$0xff] %v10464_v43 }
 0x2df   : > { %1002 = vperm.xlu0 %6990, %v7304_v59  }
 0x2e3   : > { %1012 = vperm.xlu0 %6990, %v7306_v39   ;;  %v10468_v39 = vpop.permute.xlu0 %4289 }
 0x2e4   : > { %13655 = vst [vmem:[#allocation117_spill] sm:$0xff] %v10468_v39 }
 0x2e7   : > { %1022 = vperm.xlu0 %6990, %v7308_v9  }
 0x2eb   : > { %1032 = vperm.xlu0 %6990, %v7310_v24  }
 0x2ef   : > { %1042 = vperm.xlu0 %6990, %v7312_v42   ;;  %v10477_v42 = vpop.permute.xlu0 %4297 }
 0x2f0   : > { %v6567_v59 = vpop.f32.mrb[32].mxu1  ;;  %13658 = vst [vmem:[#allocation120_spill] sm:$0xff] %v10477_v42 }
 0x2f1   : > { %v6568_v54 = vpop.f32.mrb[33].mxu1 }
 0x2f2   : > { %v10470_v28 = vadd.f32 %v6568_v54, %v6567_v59  ;;  %v6570_v9 = vpop.f32.mrb[34].mxu1  ;;  %v7318_v59 = vpop.eup %7317 }
 0x2f3   : > { %1052 = vperm.xlu0 %6990, %v7314_v33   ;;  %v6571_v23 = vpop.f32.mrb[35].mxu1 }
 0x2f4   : > { %13656 = vst [vmem:[#allocation118_spill] sm:$0xff] %v10470_v28  ;;  %7321 = vrcp.f32 %v10470_v28  ;;  %v10474_v24 = vadd.f32 %v6571_v23, %v6570_v9  ;;  %v7320_v9 = vpop.eup %7319  ;;  %v10486_v28 = vpop.permute.xlu0 %4409 }
 0x2f5   : > { %7323 = vrcp.f32 %v10248_v14  ;;  %13661 = vst [vmem:[#allocation123_spill] sm:$0xff] %v10486_v28 }
 0x2f6   : > { %13657 = vst [vmem:[#allocation119_spill] sm:$0xff] %v10474_v24  ;;  %7325 = vrcp.f32 %v10353_v31 }
 0x2f7   : > { %1615 = vperm.xlu0 %6990, %v7316_v11   ;;  %7327 = vrcp.f32 %v10263_v37 }
 0x2f8   : > { %v6573_v27 = vpop.f32.mrb[36].mxu1  ;;  %7329 = vrcp.f32 %v10358_v4 }
 0x2f9   : > { %v6574_v54 = vpop.f32.mrb[37].mxu1  ;;  %7331 = vrcp.f32 %v10278_v36  ;;  %v10502_v36 = vpop.permute.xlu1 %2975 }
 0x2fa   : > { %v10480_v39 = vadd.f32 %v6574_v54, %v6573_v27  ;;  %v6576_v18 = vpop.f32.mrb[38].mxu1 }
 0x2fb   : > { %1630 = vperm.xlu0 %6990, %v7318_v59   ;;  %v6577_v33 = vpop.f32.mrb[39].mxu1 }
 0x2fc   : > { %13659 = vst [vmem:[#allocation121_spill] sm:$0xff] %v10480_v39  ;;  %v10484_v23 = vadd.f32 %v6577_v33, %v6576_v18  ;;  %7333 = vrcp.f32 %v10480_v39  ;;  %v10493_v18 = vpop.permute.xlu0 %4421 }
 0x2fd   : > { %7335 = vrcp.f32 %v10290_v0  ;;  %13663 = vst [vmem:[#allocation125_spill] sm:$0xff] %v10493_v18 }
 0x2fe   : > { %13660 = vst [vmem:[#allocation122_spill] sm:$0xff] %v10484_v23  ;;  %v7322_v11 = vpop.eup %7321  ;;  %7337 = vrcp.f32 %v10484_v23 }
 0x2ff   : > { %1640 = vperm.xlu0 %6990, %v7320_v9   ;;  %2876 = vperm.xlu1 %6959, %v7322_v11   ;;  %v7324_v54 = vpop.eup %7323  ;;  %7339 = vrcp.f32 %v10347_v12 }
 0x300   : > { %v6579_v27 = vpop.f32.mrb[40].mxu1  ;;  %v7326_v37 = vpop.eup %7325  ;;  %7341 = vrcp.f32 %v10370_v16 }
 0x301   : > { %v6580_v31 = vpop.f32.mrb[41].mxu1  ;;  %v7328_v11 = vpop.eup %7327  ;;  %7343 = vrcp.f32 %v10362_v62 }
 0x302   : > { %v10490_v59 = vadd.f32 %v6580_v31, %v6579_v27  ;;  %v6582_v14 = vpop.f32.mrb[42].mxu1  ;;  %v7330_v39 = vpop.eup %7329 }
 0x303   : > { %1650 = vperm.xlu0 %6990, %v7324_v54   ;;  %v6583_v33 = vpop.f32.mrb[43].mxu1  ;;  %2248 = vperm.xlu1 %6959, %v7326_v37   ;;  %v7332_v27 = vpop.eup %7331 }
 0x304   : > { %13662 = vst [vmem:[#allocation124_spill] sm:$0xff] %v10490_v59  ;;  %v10496_v9 = vadd.f32 %v6583_v33, %v6582_v14  ;;  %v10500_v4 = vpop.permute.xlu0 %4429 }
 0x305   : > { %13665 = vst [vmem:[#allocation127_spill] sm:$0xff] %v10500_v4  ;;  %v10749_v4 = vld [vmem:[%s12932_s0] sm:$0xff] }
 0x306   : > { %13664 = vst [vmem:[#allocation126_spill] sm:$0xff] %v10496_v9  ;;  %v7334_v54 = vpop.eup %7333  ;;  %7345 = vrcp.f32 %v10496_v9  ;;  %13731 = vst [vmem:[#allocation186_spill] sm:$0xff] %v10749_v4 }
 0x307   : > { %1660 = vperm.xlu0 %6990, %v7328_v11   ;;  %2253 = vperm.xlu1 %6959, %v7330_v39   ;;  %v7336_v11 = vpop.eup %7335  ;;  %7347 = vrcp.f32 %v10373_v38 }
 0x308   : > { %v6585_v31 = vpop.f32.mrb[44].mxu1  ;;  %v7338_v23 = vpop.eup %7337  ;;  %7349 = vrcp.f32 %v10379_v21 }
 0x309   : > { %v6586_v0 = vpop.f32.mrb[45].mxu1  ;;  %v10511_v16 = vpop.permute.xlu0 %4437  ;;  %7351 = vrcp.f32 %v10387_v19 }
 0x30a   : > { %v10504_v37 = vadd.f32 %v6586_v0, %v6585_v31  ;;  %v6588_v14 = vpop.f32.mrb[46].mxu1  ;;  %13668 = vst [vmem:[#allocation130_spill] sm:$0xff] %v10511_v16  ;;  %v10513_v0 = vpop.permute.xlu1 %2979 }
 0x30b   : > { %1670 = vperm.xlu0 %6990, %v7332_v27   ;;  %v6589_v33 = vpop.f32.mrb[47].mxu1  ;;  %2886 = vperm.xlu1 %6959, %v7334_v54   ;;  %v7340_v27 = vpop.eup %7339 }
 0x30c   : > { %13666 = vst [vmem:[#allocation128_spill] sm:$0xff] %v10504_v37  ;;  %v10508_v39 = vadd.f32 %v6589_v33, %v6588_v14  ;;  %v7342_v54 = vpop.eup %7341 }
 0x30d   : > { %v10522_v9 = vpop.permute.xlu0 %4445 }
 0x30e   : > { %13667 = vst [vmem:[#allocation129_spill] sm:$0xff] %v10508_v39  ;;  %7353 = vrcp.f32 %v10508_v39  ;;  %13671 = vst [vmem:[#allocation133_spill] sm:$0xff] %v10522_v9  ;;  %v10524_v38 = vpop.permute.xlu1 %2987 }
 0x30f   : > { %1680 = vperm.xlu0 %6990, %v7336_v11   ;;  %2891 = vperm.xlu1 %6959, %v7338_v23   ;;  %v7344_v23 = vpop.eup %7343  ;;  %7355 = vrcp.f32 %v10392_v8 }
 0x310   : > { %v6591_v31 = vpop.f32.mrb[48].mxu1  ;;  %v7346_v21 = vpop.eup %7345  ;;  %7357 = vrcp.f32 %v10396_v22 }
 0x311   : > { %v6592_v62 = vpop.f32.mrb[49].mxu1  ;;  %7359 = vrcp.f32 %v10407_v55 }
 0x312   : > { %v10516_v12 = vadd.f32 %v6592_v62, %v6591_v31  ;;  %v6594_v14 = vpop.f32.mrb[50].mxu1  ;;  %v7348_v31 = vpop.eup %7347 }
 0x313   : > { %2243 = vperm.xlu0 %6990, %v7340_v27   ;;  %v6595_v33 = vpop.f32.mrb[51].mxu1  ;;  %2263 = vperm.xlu1 %6959, %v7342_v54   ;;  %v7350_v54 = vpop.eup %7349 }
 0x314   : > { %13669 = vst [vmem:[#allocation131_spill] sm:$0xff] %v10516_v12  ;;  %v10520_v11 = vadd.f32 %v6595_v33, %v6594_v14  ;;  %v10531_v33 = vpop.permute.xlu0 %4453  ;;  %v10533_v42 = vpop.permute.xlu1 %977 }
 0x315   : > { %13673 = vst [vmem:[#allocation135_spill] sm:$0xff] %v10531_v33  ;;  %13674 = vst [vmem:[#allocation136_spill] sm:$0xff] %v10533_v42 }
 0x316   : > { %13670 = vst [vmem:[#allocation132_spill] sm:$0xff] %v10520_v11  ;;  %7361 = vrcp.f32 %v10520_v11 }
 0x317   : > { %2258 = vperm.xlu0 %6990, %v7344_v23   ;;  %2901 = vperm.xlu1 %6959, %v7346_v21   ;;  %v7352_v23 = vpop.eup %7351  ;;  %7363 = vrcp.f32 %v10404_v58 }
 0x318   : > { %v7354_v22 = vpop.eup %7353  ;;  %7365 = vrcp.f32 %v10420_v56  ;;  %v10542_v55 = vpop.permute.xlu0 %4461 }
 0x319   : > { %v6597_v62 = vpop.f32.mrb[52].mxu1  ;;  %13677 = vst [vmem:[#allocation139_spill] sm:$0xff] %v10542_v55  ;;  %7367 = vrcp.f32 %v10431_v35 }
 0x31a   : > { %v6598_v27 = vpop.f32.mrb[53].mxu1 }
 0x31b   : > { %v10528_v19 = vadd.f32 %v6598_v27, %v6597_v62  ;;  %v6600_v14 = vpop.f32.mrb[54].mxu1  ;;  %2268 = vperm.xlu0 %6990, %v7348_v31   ;;  %2273 = vperm.xlu1 %6959, %v7350_v54   ;;  %v10539_v62 = vpop.permute.xlu1 %1610 }
 0x31c   : > { %v6601_v39 = vpop.f32.mrb[55].mxu1  ;;  %13676 = vst [vmem:[#allocation138_spill] sm:$0xff] %v10539_v62  ;;  %v7356_v31 = vpop.eup %7355 }
 0x31d   : > { %13672 = vst [vmem:[#allocation134_spill] sm:$0xff] %v10528_v19  ;;  %v10536_v21 = vadd.f32 %v6601_v39, %v6600_v14  ;;  %v7358_v42 = vpop.eup %7357  ;;  %v10553_v58 = vpop.permute.xlu0 %4612 }
 0x31f   : > { %13675 = vst [vmem:[#allocation137_spill] sm:$0xff] %v10536_v21  ;;  %2278 = vperm.xlu0 %6990, %v7352_v23   ;;  %2911 = vperm.xlu1 %6959, %v7354_v22   ;;  %7369 = vrcp.f32 %v10536_v21  ;;  %v7360_v23 = vpop.eup %7359  ;;  %v10550_v56 = vpop.permute.xlu1 %987 }
 0x320   : > { %v7362_v11 = vpop.eup %7361  ;;  %13680 = vst [vmem:[#allocation142_spill] sm:$0xff] %v10550_v56  ;;  %7371 = vrcp.f32 %v10412_v50 }
 0x321   : > { %v6603_v27 = vpop.f32.mrb[56].mxu1  ;;  %7373 = vrcp.f32 %v10474_v24 }
 0x322   : > { %v6604_v54 = vpop.f32.mrb[57].mxu1  ;;  %7375 = vrcp.f32 %v10490_v59 }
 0x323   : > { %v10544_v8 = vadd.f32 %v6604_v54, %v6603_v27  ;;  %v6606_v39 = vpop.f32.mrb[58].mxu1  ;;  %2288 = vperm.xlu0 %6990, %v7358_v42   ;;  %2283 = vperm.xlu1 %6959, %v7356_v31   ;;  %v7364_v27 = vpop.eup %7363 }
 0x324   : > { %v6607_v14 = vpop.f32.mrb[59].mxu1  ;;  %v7366_v54 = vpop.eup %7365 }
 0x325   : > { %13678 = vst [vmem:[#allocation140_spill] sm:$0xff] %v10544_v8  ;;  %v10548_v22 = vadd.f32 %v6607_v14, %v6606_v39  ;;  %v10559_v56 = vpop.permute.xlu1 %1620 }
 0x326   : > { %13682 = vst [vmem:[#allocation144_spill] sm:$0xff] %v10559_v56 }
 0x327   : > { %13679 = vst [vmem:[#allocation141_spill] sm:$0xff] %v10548_v22  ;;  %2298 = vperm.xlu0 %6990, %v7360_v23   ;;  %2921 = vperm.xlu1 %6959, %v7362_v11   ;;  %7377 = vrcp.f32 %v10548_v22  ;;  %v7368_v23 = vpop.eup %7367  ;;  %v10562_v11 = vpop.permute.xlu0 %4616 }
 0x328   : > { %13683 = vst [vmem:[#allocation145_spill] sm:$0xff] %v10562_v11  ;;  %7379 = vrcp.f32 %v10425_v53 }
 0x329   : > { %v6609_v42 = vpop.f32.mrb[60].mxu1  ;;  %v7370_v35 = vpop.eup %7369  ;;  %7381 = vrcp.f32 %v10504_v37 }
 0x32a   : > { %v6610_v31 = vpop.f32.mrb[61].mxu1  ;;  %7383 = vrcp.f32 %v10516_v12 }
 0x32b   : > { %v10557_v39 = vadd.f32 %v6610_v31, %v6609_v42  ;;  %v6612_v14 = vpop.f32.mrb[62].mxu1  ;;  %2308 = vperm.xlu0 %6990, %v7366_v54   ;;  %2293 = vperm.xlu1 %6959, %v7364_v27   ;;  %v7372_v42 = vpop.eup %7371 }
 0x32c   : > { %v6613_v21 = vpop.f32.mrb[63].mxu1  ;;  %v7374_v54 = vpop.eup %7373 }
 0x32d   : > { %13681 = vst [vmem:[#allocation143_spill] sm:$0xff] %v10557_v39  ;;  %v10564_v24 = vadd.f32 %v6613_v21, %v6612_v14  ;;  %v10568_v27 = vpop.permute.xlu1 %1625  ;;  %v10570_v31 = vpop.permute.xlu0 %4620 }
 0x32e   : > { %13685 = vst [vmem:[#allocation147_spill] sm:$0xff] %v10568_v27  ;;  %13686 = vst [vmem:[#allocation148_spill] sm:$0xff] %v10570_v31  ;;  %v7376_v21 = vpop.eup %7375  ;;  %v13732_v31 = vld [vmem:[#allocation47_spill] sm:$0xff] }
 0x32f   : > { %13684 = vst [vmem:[#allocation146_spill] sm:$0xff] %v10564_v24  ;;  %2318 = vperm.xlu0 %6990, %v7368_v23   ;;  %2931 = vperm.xlu1 %6959, %v7370_v35   ;;  %7385 = vrcp.f32 %v10564_v24 }
 0x330   : > { %7387 = vrcp.f32 %v10528_v19 }
 0x331   : > { %v7378_v14 = vpop.eup %7377  ;;  %v10574_v23 = vpop.permute.xlu1 %997  ;;  %7389 = vrcp.f32 %v10544_v8 }
 0x332   : > { %13687 = vst [vmem:[#allocation149_spill] sm:$0xff] %v10574_v23  ;;  %v7380_v35 = vpop.eup %7379  ;;  %v10577_v22 = vpop.permute.xlu0 %4624  ;;  %7391 = vrcp.f32 %v10557_v39 }
 0x333   : > { %2881 = vperm.xlu0 %6990, %v7374_v54   ;;  %2303 = vperm.xlu1 %6959, %v7372_v42   ;;  %13688 = vst [vmem:[#allocation150_spill] sm:$0xff] %v10577_v22  ;;  %v7382_v37 = vpop.eup %7381  ;;  %v13728_v22 = vld [vmem:[#allocation10_spill] sm:$0xff] }
 0x334   : > { %v7384_v54 = vpop.eup %7383 }
 0x335   : > { %v10580_v12 = vpop.permute.xlu1 %1635 }
 0x336   : > { %13689 = vst [vmem:[#allocation151_spill] sm:$0xff] %v10580_v12  ;;  %v10582_v24 = vpop.permute.xlu0 %4628 }
 0x337   : > { %2896 = vperm.xlu0 %6990, %v7376_v21   ;;  %2941 = vperm.xlu1 %6959, %v7378_v14   ;;  %v13690_v14 = vmov 4  }
 0x339   : > { %v7386_v42 = vpop.eup %7385  ;;  %v10586_v23 = vpop.permute.xlu1 %1007 }
 0x33a   : > { %v7388_v21 = vpop.eup %7387  ;;  %13691 = vst [vmem:[#allocation152_spill] sm:$0xff] %v10586_v23 }
 0x33b   : > { %2906 = vperm.xlu0 %6990, %v7382_v37   ;;  %2313 = vperm.xlu1 %6959, %v7380_v35   ;;  %v10589_v37 = vpop.permute.xlu0 %4632  ;;  %v7390_v35 = vpop.eup %7389 }
 0x33c   : > { %13692 = vst [vmem:[#allocation153_spill] sm:$0xff] %v10589_v37  ;;  %v7392_v8 = vpop.eup %7391 }
 0x33f   : > { %2916 = vperm.xlu0 %6990, %v7384_v54   ;;  %2951 = vperm.xlu1 %6959, %v7386_v42   ;;  %v10592_v54 = vpop.permute.xlu1 %1645  ;;  %v10594_v42 = vpop.permute.xlu0 %4874 }
 0x340   : > { %13693 = vst [vmem:[#allocation154_spill] sm:$0xff] %v10592_v54  ;;  %13694 = vst [vmem:[#allocation155_spill] sm:$0xff] %v10594_v42 }
 0x343   : > { %2926 = vperm.xlu0 %6990, %v7388_v21   ;;  %6960 = vset.pattern.permute.xlu1 %v13690_v14  ;;  %v10597_v21 = vpop.permute.xlu1 %1017  ;;  %v13697_v14 = vmov 12  }
 0x344   : > { %2995 = vperm.xlu1 %6960, %v10428_v49   ;;  %13695 = vst [vmem:[#allocation156_spill] sm:$0xff] %v10597_v21  ;;  %v7901_v21 = vld [vmem:[%s12934_s2 + $0x28] sm:$0xff]  }
 0x347   : > { %2936 = vperm.xlu0 %6990, %v7390_v35   ;;  %v10601_v49 = vpop.permute.xlu1 %1655  ;;  %v10622_v35 = vld [vmem:[%s8132_s9 + $0x58] sm:$0xff] }
 0x348   : > { %3003 = vperm.xlu1 %6960, %v10399_v7   ;;  %13696 = vst [vmem:[#allocation157_spill] sm:$0xff] %v10601_v49  ;;  %v10605_v7 = vld [vmem:[%s8132_s9] sm:$0xff]  ;;  %13703 = vst [vmem:[#allocation163_spill] sm:$0xff] %v10622_v35 }
 0x349   : > { %13698 = vst [vmem:[#allocation158_spill] sm:$0xff] %v10605_v7 }
 0x34b   : > { %2946 = vperm.xlu0 %6990, %v7392_v8   ;;  %v10608_v8 = vpop.permute.xlu1 %1027 }
 0x34c   : > { %3011 = vperm.xlu1 %6960, %v10440_v34   ;;  %13699 = vst [vmem:[#allocation159_spill] sm:$0xff] %v10608_v8 }
 0x34f   : > { %v10612_v34 = vpop.permute.xlu1 %1665 }
 0x350   : > { %3019 = vperm.xlu1 %6960, %v10299_v57   ;;  %13700 = vst [vmem:[#allocation160_spill] sm:$0xff] %v10612_v34 }
 0x353   : > { %v10615_v57 = vpop.permute.xlu1 %1037 }
 0x354   : > { %3027 = vperm.xlu1 %6960, %v10306_v52   ;;  %13701 = vst [vmem:[#allocation161_spill] sm:$0xff] %v10615_v57  ;;  %v7900_v57 = vld [vmem:[%s12934_s2 + $0x18] sm:$0xff]  }
 0x357   : > { %v10619_v52 = vpop.permute.xlu1 %1675 }
 0x358   : > { %6961 = vset.pattern.permute.xlu1 %v13697_v14  ;;  %13702 = vst [vmem:[#allocation162_spill] sm:$0xff] %v10619_v52 }
 0x359   : > { %3139 = vperm.xlu1 %6961, %v10605_v7  }
 0x35b   : > { %v10625_v14 = vpop.permute.xlu1 %1047 }
 0x35c   : > { %13704 = vst [vmem:[#allocation164_spill] sm:$0xff] %v10625_v14 }
 0x35d   : > { %3147 = vperm.xlu1 %6961, %v10415_v32   ;;  %v10628_v32 = vld [vmem:[%s8132_s9 + $0x68] sm:$0xff] }
 0x35e   : > { %13705 = vst [vmem:[#allocation165_spill] sm:$0xff] %v10628_v32 }
 0x361   : > { %3151 = vperm.xlu1 %6961, %v10197_v25   ;;  %v10632_v25 = vld [vmem:[%s8132_s9 + $0x78] sm:$0xff] }
 0x362   : > { %13706 = vst [vmem:[#allocation166_spill] sm:$0xff] %v10632_v25 }
 0x365   : > { %3159 = vperm.xlu1 %6961, %v10210_v6   ;;  %v10635_v6 = vpop.permute.xlu1 %1685 }
 0x366   : > { %13707 = vst [vmem:[#allocation167_spill] sm:$0xff] %v10635_v6 }
 0x369   : > { %3167 = vperm.xlu1 %6961, %v10225_v1   ;;  %v7899_v1 = vld [vmem:[%s12934_s2 + $0x8] sm:$0xff]  }
 0x36d   : > { %3175 = vperm.xlu1 %6961, %v10434_v41  }
 0x371   : > { %3183 = vperm.xlu1 %6961, %v10622_v35  }
 0x375   : > { %3191 = vperm.xlu1 %6961, %v10628_v32  }
 0x379   : > { %3199 = vperm.xlu1 %6961, %v10632_v25  }
 0x37d   : > { %3348 = vrot.lane.b32.xlu1 %v7899_v1, %s8031_s23  ;;  %v7902_v1 = vld [vmem:[%s12934_s2 + $0x38] sm:$0xff]  }
 0x37e   : > { %v10641_v41 = vpop.permute.xlu1 %2876  ;;  %6963 = vset.pattern.permute.xlu1 %v13645_v48 }
 0x37f   : > { %13708 = vst [vmem:[#allocation168_spill] sm:$0xff] %v10641_v41 }
 0x381   : > { %3352 = vrot.lane.b32.xlu1 %v7900_v57, %s8031_s23  ;;  %v7903_v57 = vld [vmem:[%s12934_s2 + $0x48] sm:$0xff]  }
 0x382   : > { %v10648_v8 = vpop.permute.xlu1 %2248 }
 0x383   : > { %13709 = vst [vmem:[#allocation169_spill] sm:$0xff] %v10648_v8 }
 0x385   : > { %3356 = vrot.lane.b32.xlu1 %v7901_v21, %s8031_s23  ;;  %v7904_v21 = vld [vmem:[%s12934_s2 + $0x58] sm:$0xff]  }
 0x386   : > { %v10654_v23 = vpop.permute.xlu1 %2253 }
 0x387   : > { %13710 = vst [vmem:[#allocation170_spill] sm:$0xff] %v10654_v23 }
 0x389   : > { %3360 = vrot.lane.b32.xlu1 %v7902_v1, %s8031_s23  ;;  %v7905_v1 = vld [vmem:[%s12934_s2 + $0x68] sm:$0xff]  }
 0x38a   : > { %v10660_v14 = vpop.permute.xlu1 %2886 }
 0x38b   : > { %13711 = vst [vmem:[#allocation171_spill] sm:$0xff] %v10660_v14 }
 0x38d   : > { %3364 = vrot.lane.b32.xlu1 %v7903_v57, %s8031_s23  ;;  %v7906_v57 = vld [vmem:[%s12934_s2 + $0x78] sm:$0xff]  }
 0x38e   : > { %v10666_v39 = vpop.permute.xlu1 %2891 }
 0x38f   : > { %13712 = vst [vmem:[#allocation172_spill] sm:$0xff] %v10666_v39 }
 0x391   : > { %3368 = vrot.lane.b32.xlu1 %v7904_v21, %s8031_s23 }
 0x392   : > { %v10672_v19 = vpop.permute.xlu1 %2263 }
 0x393   : > { %13713 = vst [vmem:[#allocation173_spill] sm:$0xff] %v10672_v19 }
 0x395   : > { %3372 = vrot.lane.b32.xlu1 %v7905_v1, %s8031_s23 }
 0x396   : > { %v10678_v59 = vpop.permute.xlu1 %2901 }
 0x397   : > { %13714 = vst [vmem:[#allocation174_spill] sm:$0xff] %v10678_v59 }
 0x399   : > { %3376 = vrot.lane.b32.xlu1 %v7906_v57, %s8031_s23  ;;  %v13725_v57 = vld [vmem:[#allocation8_spill] sm:$0xff]  ;;  %s12785_s23 = scalar_lea.vmem [#allocation2], %s6313_s30 }
 0x39a   : > { %v10684_v39 = vpop.permute.xlu1 %2273  ;;  %s6235_s10 = sshll.u32 %s12785_s23, 4  ;;  %s12884_s10 = int_to_ptr.vmem [resolvable:$true] %s6235_s10 }
 0x39b   : > { %13715 = vst [vmem:[#allocation175_spill] sm:$0xff] %v10684_v39  ;;  %v3036_v39 = vsub.s32 4, %v13725_v57 }
 0x39e   : > { %v10686_v14 = vpop.permute.xlu1 %2911 }
 0x39f   : > { %13716 = vst [vmem:[#allocation176_spill] sm:$0xff] %v10686_v14 }
 0x3a2   : > { %v10688_v21 = vpop.permute.xlu1 %2283 }
 0x3a3   : > { %13717 = vst [vmem:[#allocation177_spill] sm:$0xff] %v10688_v21 }
 0x3a6   : > { %v10690_v41 = vpop.permute.xlu1 %2921 }
 0x3a7   : > { %13718 = vst [vmem:[#allocation178_spill] sm:$0xff] %v10690_v41  ;;  %v10710_v41 = vld [vmem:[%s12932_s0 + $0x8] sm:$0xff] }
 0x3a8   : > { %13726 = vst [vmem:[#allocation185_spill] sm:$0xff] %v10710_v41  ;;  %v10713_v14 = vrot.slane %v10710_v41, %v3036_v39  ;;  %v13733_v41 = vld [vmem:[#allocation32_spill] sm:$0xff] }
 0x3aa   : > { %v10692_v53 = vpop.permute.xlu1 %2293  ;;  %v3049_v18 = vadd.f32 %v10713_v14, %v13732_v31  ;;  %v3047_v11 = vadd.f32 %v10713_v14, %v10513_v0  ;;  %v3053_v57 = vadd.f32 %v10713_v14, %v13733_v41 }
 0x3ab   : > { %13719 = vst [vmem:[#allocation179_spill] sm:$0xff] %v10692_v53 }
 0x3ae   : > { %v10694_v50 = vpop.permute.xlu1 %2931 }
 0x3af   : > { %13720 = vst [vmem:[#allocation180_spill] sm:$0xff] %v10694_v50 }
 0x3b2   : > { %v10696_v1 = vpop.permute.xlu1 %2303 }
 0x3b3   : > { %13721 = vst [vmem:[#allocation181_spill] sm:$0xff] %v10696_v1  ;;  %v13727_v1 = vld [vmem:[#allocation74_spill] sm:$0xff] }
 0x3b4   : > { %v3043_v53 = vadd.f32 %v10713_v14, %v13727_v1 }
 0x3b6   : > { %v10698_v59 = vpop.permute.xlu1 %2941  ;;  %v3075_v52 = vmul.f32 0.2, %v3043_v53 }
 0x3b7   : > { %13722 = vst [vmem:[#allocation182_spill] sm:$0xff] %v10698_v59  ;;  %v3045_v59 = vadd.f32 %v10713_v14, %v10502_v36 }
 0x3b8   : > { %v3107_v54 = vmax.f32 %v3043_v53, %v3075_v52 }
 0x3ba   : > { %v10700_v19 = vpop.permute.xlu1 %2313 }
 0x3bb   : > { %13723 = vst [vmem:[#allocation183_spill] sm:$0xff] %v10700_v19 }
 0x3be   : > { %v10702_v23 = vpop.permute.xlu1 %2951 }
 0x3bf   : > { %13724 = vst [vmem:[#allocation184_spill] sm:$0xff] %v10702_v23  ;;  %v3077_v23 = vmul.f32 0.2, %v3045_v59 }
 0x3c1   : > { %v3109_v6 = vmax.f32 %v3045_v59, %v3077_v23 }
 0x3c3   : > { %v10705_v8 = vpop.permute.xlu1 %2995  ;;  %v3205_v49 = vsub.f32 %v3109_v6, %v10017_v17  ;;  %v13729_v6 = vld [vmem:[#allocation11_spill] sm:$0xff] }
 0x3c5   : > { %v3240_v56 = vmul.f32 1.442695, %v3205_v49 }
 0x3c7   : > { %v10715_v50 = vpop.permute.xlu1 %3003  ;;  %7393 = vpow2.f32 %v3240_v56 }
 0x3cb   : > { %v10719_v19 = vpop.permute.xlu1 %3011 }
 0x3cf   : > { %v10723_v21 = vpop.permute.xlu1 %3019 }
 0x3d1   : > { %v7394_v16 = vpop.eup %7393 }
 0x3d2   : > { %v3301_v53 = vmul.f32 %v7394_v16, %v13729_v6 }
 0x3d3   : > { %v10725_v34 = vpop.permute.xlu1 %3027 }
 0x3d8   : > { %v3140_v12 = vpop.permute.xlu1 %3139 }
 0x3d9   : > { %v3203_v27 = vsub.f32 %v3107_v54, %v3140_v12 }
 0x3db   : > { %v3236_v62 = vmul.f32 1.442695, %v3203_v27 }
 0x3dc   : > { %v10728_v55 = vpop.permute.xlu1 %3147 }
 0x3dd   : > { %7395 = vpow2.f32 %v3236_v62 }
 0x3e0   : > { %v10730_v33 = vpop.permute.xlu1 %3151 }
 0x3e4   : > { %v10732_v9 = vpop.permute.xlu1 %3159 }
 0x3e7   : > { %v7396_v23 = vpop.eup %7395 }
 0x3e8   : > { %v10734_v59 = vpop.permute.xlu1 %3167  ;;  %v3299_v43 = vmul.f32 %v7396_v23, %v13728_v22  ;;  %v10752_v23 = vrot.slane %v10749_v4, %v3036_v39  ;;  %v3081_v39 = vmul.f32 0.2, %v3049_v18  ;;  %v3079_v4 = vmul.f32 0.2, %v3047_v11 }
 0x3ea   : > { %v3331_v54 = vpack.c.bf16 %v3301_v53, %v3299_v43  ;;  %v3044_v43 = vadd.f32 %v10752_v23, %v10502_v36  ;;  %v3042_v53 = vadd.f32 %v10752_v23, %v13727_v1  ;;  %v3048_v36 = vadd.f32 %v10752_v23, %v13732_v31 }
 0x3eb   : > { %v3051_v1 = vadd.f32 %v10713_v14, %v10524_v38  ;;  %v3113_v25 = vmax.f32 %v3049_v18, %v3081_v39  ;;  %v3046_v32 = vadd.f32 %v10752_v23, %v10513_v0  ;;  %v3050_v31 = vadd.f32 %v10752_v23, %v10524_v38 }
 0x3ec   : > { %v10738_v52 = vpop.permute.xlu1 %3175  ;;  %3426 = vmatprep.mubr.bf16.mxu0 %v3331_v54  ;;  %v3076_v46 = vmul.f32 0.2, %v3044_v43  ;;  %v3074_v37 = vmul.f32 0.2, %v3042_v53 }
 0x3ed   : > { %v3209_v35 = vsub.f32 %v3113_v25, %v10730_v33  ;;  %v3078_v18 = vmul.f32 0.2, %v3046_v32 }
 0x3ee   : > { %v3108_v28 = vmax.f32 %v3044_v43, %v3076_v46  ;;  %v3106_v6 = vmax.f32 %v3042_v53, %v3074_v37  ;;  %v3111_v43 = vmax.f32 %v3047_v11, %v3079_v4  ;;  %v3080_v37 = vmul.f32 0.2, %v3048_v36 }
 0x3ef   : > { %v3083_v53 = vmul.f32 0.2, %v3051_v1  ;;  %v3248_v0 = vmul.f32 1.442695, %v3209_v35  ;;  %v3052_v4 = vadd.f32 %v10752_v23, %v13733_v41 }
 0x3f0   : > { %v10740_v27 = vpop.permute.xlu1 %3183  ;;  %v3204_v48 = vsub.f32 %v3108_v28, %v10017_v17  ;;  %v3202_v46 = vsub.f32 %v3106_v6, %v3140_v12  ;;  %v3207_v17 = vsub.f32 %v3111_v43, %v10728_v55  ;;  %v3082_v12 = vmul.f32 0.2, %v3050_v31 }
 0x3f1   : > { %v3115_v38 = vmax.f32 %v3051_v1, %v3083_v53  ;;  %v3112_v11 = vmax.f32 %v3048_v36, %v3080_v37  ;;  %v3084_v41 = vmul.f32 0.2, %v3052_v4 }
 0x3f2   : > { %v3238_v28 = vmul.f32 1.442695, %v3204_v48  ;;  %v3055_v48 = vadd.f32 %v10713_v14, %v10705_v8  ;;  %v3244_v25 = vmul.f32 1.442695, %v3207_v17 }
 0x3f3   : > { %v3116_v37 = vmax.f32 %v3052_v4, %v3084_v41 }
 0x3f4   : > { %v10742_v56 = vpop.permute.xlu1 %3191  ;;  %7397 = vpow2.f32 %v3238_v28  ;;  %v3087_v43 = vmul.f32 0.2, %v3055_v48 }
 0x3f6   : > { %v3119_v28 = vmax.f32 %v3055_v48, %v3087_v43  ;;  %v3065_v48 = vadd.f32 %v10713_v14, %v9952_v2 }
 0x3f8   : > { %v10744_v62 = vpop.permute.xlu1 %3199 }
 0x3f9   : > { %13730 = vst [vmem:[#allocation74_spill] sm:$0xff] %v10744_v62  ;;  %v3085_v62 = vmul.f32 0.2, %v3053_v57 }
 0x3fb   : > { %v3117_v6 = vmax.f32 %v3053_v57, %v3085_v62 }
 0x3fc   : > { %v3349_v49 = vpop.permute.xlu1 %3348 }
 0x3fd   : > { %v3213_v35 = vsub.f32 %v3117_v6, %v10732_v9 }
 0x3ff   : > { %v3256_v62 = vmul.f32 1.442695, %v3213_v35  ;;  %v3058_v35 = vadd.f32 %v10752_v23, %v10715_v50 }
 0x400   : > { %v3353_v16 = vpop.permute.xlu1 %3352 }
 0x404   : > { %v10758_v54 = vpop.permute.xlu1 %3356 }
 0x408   : > { %v10764_v42 = vpop.permute.xlu1 %3360 }
 0x40c   : > { %v3365_v22 = vpop.permute.xlu1 %3364 }
 0x40d   : > { %6617 = vmatprep.subr.bf16.mxu0 %v3365_v22  ;;  %v3234_v22 = vmul.f32 1.442695, %v3202_v46  ;;  %v3211_v46 = vsub.f32 %v3115_v38, %v10045_v51 }
 0x40e   : > { %6618 = vmatpush3.bf16.msra.mxu0 %v3349_v49  ;;  %v3110_v49 = vmax.f32 %v3046_v32, %v3078_v18 }
 0x40f   : > { %6619 = vmatprep.subr.bf16.mxu0 %v10245_v63  ;;  %v3057_v63 = vadd.f32 %v10713_v14, %v9927_v47  ;;  %7399 = vpow2.f32 %v3234_v22  ;;  %v3252_v53 = vmul.f32 1.442695, %v3211_v46 }
 0x410   : > { %v3369_v7 = vpop.permute.xlu1 %3368  ;;  %7401 = vpow2.f32 %v3248_v0  ;;  %v3206_v39 = vsub.f32 %v3110_v49, %v10728_v55  ;;  %v3054_v55 = vadd.f32 %v10752_v23, %v10705_v8 }
 0x411   : > { %v3089_v1 = vmul.f32 0.2, %v3057_v63  ;;  %7403 = vpow2.f32 %v3244_v25 }
 0x412   : > { %6620 = vmatpush3.bf16.msra.mxu0 %v10204_v15  ;;  %v3208_v15 = vsub.f32 %v3112_v11, %v10730_v33  ;;  %v3056_v33 = vadd.f32 %v10752_v23, %v9927_v47  ;;  %v3212_v47 = vsub.f32 %v3116_v37, %v10732_v9  ;;  %v3086_v0 = vmul.f32 0.2, %v3054_v55 }
 0x413   : > { %6621 = vmatprep.subr.bf16.mxu0 %v3369_v7  ;;  %v3114_v7 = vmax.f32 %v3050_v31, %v3082_v12  ;;  %v3242_v31 = vmul.f32 1.442695, %v3206_v39  ;;  %v3121_v17 = vmax.f32 %v3057_v63, %v3089_v1  ;;  %v3215_v63 = vsub.f32 %v3119_v28, %v10065_v40 }
 0x414   : > { %v3373_v36 = vpop.permute.xlu1 %3372  ;;  %v3246_v57 = vmul.f32 1.442695, %v3208_v15  ;;  %v3088_v12 = vmul.f32 0.2, %v3056_v33  ;;  %v3254_v25 = vmul.f32 1.442695, %v3212_v47 }
 0x415   : > { %v3210_v32 = vsub.f32 %v3114_v7, %v10045_v51  ;;  %v7398_v51 = vpop.eup %7397  ;;  %v3217_v22 = vsub.f32 %v3121_v17, %v10734_v59  ;;  %v3118_v7 = vmax.f32 %v3054_v55, %v3086_v0  ;;  %v3090_v37 = vmul.f32 0.2, %v3058_v35  ;;  %v13736_v17 = vld [vmem:[#allocation23_spill] sm:$0xff] }
 0x416   : > { %6622 = vmatpush3.bf16.msra.mxu0 %v3353_v16  ;;  %7405 = vpow2.f32 %v3246_v57  ;;  %v3300_v15 = vmul.f32 %v7398_v51, %v13545_v61  ;;  %v3120_v41 = vmax.f32 %v3056_v33, %v3088_v12  ;;  %v3069_v47 = vadd.f32 %v10713_v14, %v13736_v17 }
 0x417   : > { %6623 = vmatprep.subr.bf16.mxu0 %v10257_v10  ;;  %v13734_v10 = vld [vmem:[#allocation45_spill] sm:$0xff]  ;;  %v3250_v18 = vmul.f32 1.442695, %v3210_v32  ;;  %7407 = vpow2.f32 %v3256_v62  ;;  %v3264_v6 = vmul.f32 1.442695, %v3217_v22  ;;  %v13735_v32 = vld [vmem:[#allocation15_spill] sm:$0xff]  ;;  %v3122_v0 = vmax.f32 %v3058_v35, %v3090_v37 }
 0x418   : > { %v3061_v16 = vadd.f32 %v10713_v14, %v13734_v10  ;;  %7409 = vpow2.f32 %v3242_v31  ;;  %v3377_v4 = vpop.permute.xlu1 %3376  ;;  %v3216_v57 = vsub.f32 %v3120_v41, %v10734_v59  ;;  %v3214_v31 = vsub.f32 %v3118_v7, %v10065_v40 }
 0x419   : > { %v7400_v8 = vpop.eup %7399  ;;  %7411 = vpow2.f32 %v3252_v53  ;;  %v3218_v7 = vsub.f32 %v3122_v0, %v10095_v26 }
 0x41a   : > { %6624 = vmatpush3.bf16.msra.mxu0 %v10222_v44  ;;  %v3059_v44 = vadd.f32 %v10713_v14, %v10715_v50  ;;  %v7402_v38 = vpop.eup %7401  ;;  %v3093_v11 = vmul.f32 0.2, %v3061_v16  ;;  %7413 = vpow2.f32 %v3250_v18  ;;  %v3298_v49 = vmul.f32 %v7400_v8, %v13548_v29 }
 0x41b   : > { %6625 = vmatprep.subr.bf16.mxu0 %v3373_v36  ;;  %v3305_v39 = vmul.f32 %v7402_v38, %v13549_v30  ;;  %v3260_v36 = vmul.f32 1.442695, %v3215_v63  ;;  %7415 = vpow2.f32 %v3254_v25  ;;  %v3262_v51 = vmul.f32 1.442695, %v3216_v57 }
 0x41c   : > { %v3091_v9 = vmul.f32 0.2, %v3059_v44  ;;  %v3125_v46 = vmax.f32 %v3061_v16, %v3093_v11  ;;  %7417 = vpow2.f32 %v3264_v6  ;;  %v3330_v33 = vpack.c.bf16 %v3300_v15, %v3298_v49 }
 0x41d   : > { %7419 = vpow2.f32 %v3260_v36  ;;  %v3258_v12 = vmul.f32 1.442695, %v3214_v31  ;;  %v3101_v36 = vmul.f32 0.2, %v3069_v47  ;;  %v3266_v31 = vmul.f32 1.442695, %v3218_v7 }
 0x41e   : > { %6626 = vmatpush3.bf16.msra.mxu0 %v10758_v54  ;;  %v3060_v54 = vadd.f32 %v10752_v23, %v13734_v10  ;;  %v3123_v1 = vmax.f32 %v3059_v44, %v3091_v9  ;;  %v3097_v10 = vmul.f32 0.2, %v3065_v48  ;;  %v3221_v50 = vsub.f32 %v3125_v46, %v10738_v52  ;;  %v13739_v46 = vld [vmem:[#allocation50_spill] sm:$0xff] }
 0x41f   : > { %6627 = vmatprep.subr.bf16.mxu0 %v10261_v13  ;;  %v7404_v13 = vpop.eup %7403  ;;  %v3064_v44 = vadd.f32 %v10752_v23, %v9952_v2  ;;  %v3067_v9 = vadd.f32 %v10713_v14, %v10723_v21  ;;  %7421 = vpow2.f32 %v3262_v51  ;;  %v3133_v51 = vmax.f32 %v3069_v47, %v3101_v36  ;;  %v13745_v7 = vld [vmem:[#allocation6_spill] sm:$0xff] }
 0x420   : > { %v3092_v43 = vmul.f32 0.2, %v3060_v54  ;;  %v3303_v62 = vmul.f32 %v7404_v13, %v13735_v32  ;;  %v7406_v55 = vpop.eup %7405  ;;  %v3219_v59 = vsub.f32 %v3123_v1, %v10095_v26  ;;  %v3272_v18 = vmul.f32 1.442695, %v3221_v50 }
 0x421   : > { %v7408_v53 = vpop.eup %7407  ;;  %v3129_v22 = vmax.f32 %v3065_v48, %v3097_v10  ;;  %v3304_v8 = vmul.f32 %v7406_v55, %v13551_v5  ;;  %v13738_v48 = vld [vmem:[#allocation19_spill] sm:$0xff]  ;;  %v3096_v6 = vmul.f32 0.2, %v3064_v44 }
 0x422   : > { %6628 = vmatpush3.bf16.msra.mxu0 %v10230_v3  ;;  %v3063_v3 = vadd.f32 %v10713_v14, %v10719_v19  ;;  %v3333_v16 = vpack.c.bf16 %v3305_v39, %v3303_v62  ;;  %v3309_v2 = vmul.f32 %v7408_v53, %v13552_v20  ;;  %v3268_v11 = vmul.f32 1.442695, %v3219_v59  ;;  %v13741_v53 = vld [vmem:[#allocation26_spill] sm:$0xff] }
 0x423   : > { %6629 = vmatprep.subr.bf16.mxu0 %v3377_v4  ;;  %v3062_v4 = vadd.f32 %v10752_v23, %v10719_v19  ;;  %7423 = vpow2.f32 %v3272_v18  ;;  %v3225_v49 = vsub.f32 %v3129_v22, %v10740_v27  ;;  %v3128_v10 = vmax.f32 %v3064_v44, %v3096_v6  ;;  %v13744_v6 = vld [vmem:[#allocation28_spill] sm:$0xff] }
 0x424   : > { %v3095_v28 = vmul.f32 0.2, %v3063_v3  ;;  %7425 = vpow2.f32 %v3258_v12  ;;  %v3229_v22 = vsub.f32 %v3133_v51, %v10742_v56 }
 0x425   : > { %v3094_v35 = vmul.f32 0.2, %v3062_v4  ;;  %7427 = vpow2.f32 %v3268_v11  ;;  %v3280_v26 = vmul.f32 1.442695, %v3225_v49  ;;  %v3224_v44 = vsub.f32 %v3128_v10, %v10740_v27  ;;  %v13748_v10 = vld [vmem:[#allocation74_spill] sm:$0xff] }
 0x426   : > { %6630 = vmatpush3.bf16.msra.mxu0 %v10764_v42  ;;  %v7410_v42 = vpop.eup %7409  ;;  %v3127_v63 = vmax.f32 %v3063_v3, %v3095_v28  ;;  %v3099_v3 = vmul.f32 0.2, %v3067_v9 }
 0x427   : > { %6743 = vmatprep.subr.bf16.mxu0 %v10582_v24  ;;  %v7412_v40 = vpop.eup %7411  ;;  %v3124_v24 = vmax.f32 %v3060_v54, %v3092_v43  ;;  %v3073_v43 = vadd.f32 %v10713_v14, %v13739_v46  ;;  %v3126_v37 = vmax.f32 %v3062_v4, %v3094_v35 }
 0x428   : > { %v7414_v38 = vpop.eup %7413  ;;  %v3307_v13 = vmul.f32 %v7412_v40, %v13738_v48  ;;  %v3223_v1 = vsub.f32 %v3127_v63, %v10120_v60  ;;  %v13742_v40 = vld [vmem:[#allocation25_spill] sm:$0xff]  ;;  %v3278_v63 = vmul.f32 1.442695, %v3224_v44 }
 0x429   : > { %3427 = vmatmul.mubr.bf16.vlgmr.msra.gmra.mrb[64].mxu0 %v3330_v33  ;;  %v3220_v54 = vsub.f32 %v3124_v24, %v10738_v52  ;;  %v7416_v15 = vpop.eup %7415  ;;  %v3068_v52 = vadd.f32 %v10752_v23, %v13736_v17  ;;  %v3306_v50 = vmul.f32 %v7414_v38, %v13493_v45  ;;  %v13740_v33 = vld [vmem:[#allocation24_spill] sm:$0xff]  ;;  %v3071_v17 = vadd.f32 %v10713_v14, %v10725_v34 }
 0x42a   : > { %3434 = vmatprep.mubr.bf16.mxu0 %v3333_v16  ;;  %6744 = vmatpush3.bf16.msra.mxu0 %v10553_v58  ;;  %v13737_v58 = vld [vmem:[#allocation17_spill] sm:$0xff]  ;;  %v3335_v41 = vpack.c.bf16 %v3309_v2, %v3307_v13  ;;  %v7418_v39 = vpop.eup %7417  ;;  %v3308_v55 = vmul.f32 %v7416_v15, %v13740_v33  ;;  %v3066_v16 = vadd.f32 %v10752_v23, %v10723_v21  ;;  %v3276_v28 = vmul.f32 1.442695, %v3223_v1  ;;  %v13743_v14 = vld [vmem:[#allocation64_spill] sm:$0xff]  ;;  %v13746_v1 = vld [vmem:[#allocation27_spill] sm:$0xff] }
 0x42b   : > { %v3302_v25 = vmul.f32 %v7410_v42, %v13737_v58  ;;  %v3270_v57 = vmul.f32 1.442695, %v3220_v54  ;;  %v7420_v62 = vpop.eup %7419  ;;  %v3313_v59 = vmul.f32 %v7418_v39, %v13741_v53  ;;  %v3131_v42 = vmax.f32 %v3067_v9, %v3099_v3 }
 0x42c   : > { %v3311_v24 = vmul.f32 %v7420_v62, %v13742_v40  ;;  %v3100_v18 = vmul.f32 0.2, %v3068_v52  ;;  %v7422_v12 = vpop.eup %7421  ;;  %v3222_v21 = vsub.f32 %v3126_v37, %v10120_v60  ;;  %v3098_v0 = vmul.f32 0.2, %v3066_v16 }
 0x42d   : > { %v3332_v19 = vpack.c.bf16 %v3304_v8, %v3302_v25  ;;  %7429 = vpow2.f32 %v3270_v57  ;;  %v3334_v8 = vpack.c.bf16 %v3308_v55, %v3306_v50  ;;  %v7424_v2 = vpop.eup %7423  ;;  %v3105_v38 = vmul.f32 0.2, %v3073_v43 }
 0x42e   : > { %7431 = vpow2.f32 %v3280_v26  ;;  %v3337_v4 = vpack.c.bf16 %v3313_v59, %v3311_v24  ;;  %v3227_v47 = vsub.f32 %v3131_v42, %v13743_v14  ;;  %v3103_v11 = vmul.f32 0.2, %v3071_v17  ;;  %v7426_v27 = vpop.eup %7425 }
 0x42f   : > { %7433 = vpow2.f32 %v3266_v31  ;;  %v7428_v9 = vpop.eup %7427  ;;  %v3072_v25 = vadd.f32 %v10752_v23, %v13739_v46  ;;  %v3132_v54 = vmax.f32 %v3068_v52, %v3100_v18  ;;  %v3288_v13 = vmul.f32 1.442695, %v3229_v22  ;;  %v13747_v46 = vld [vmem:[#allocation13_spill] sm:$0xff] }
 0x430   : > { %7435 = vpow2.f32 %v3276_v28  ;;  %v3312_v60 = vmul.f32 %v7422_v12, %v13744_v6  ;;  %v3274_v49 = vmul.f32 1.442695, %v3222_v21  ;;  %v3070_v15 = vadd.f32 %v10752_v23, %v10725_v34  ;;  %v13751_v22 = vld [vmem:[#allocation5_spill] sm:$0xff]  ;;  %v13752_v21 = vld [vmem:[#allocation22_spill] sm:$0xff] }
 0x431   : > { %3435 = vmatmul.mubr.bf16.gmra.mrb[68].mxu0 %v3332_v19  ;;  %v3130_v19 = vmax.f32 %v3066_v16, %v3098_v0  ;;  %v3317_v35 = vmul.f32 %v7424_v2, %v13745_v7  ;;  %v3135_v39 = vmax.f32 %v3071_v17, %v3103_v11  ;;  %v3137_v36 = vmax.f32 %v3073_v43, %v3105_v38  ;;  %v13749_v43 = vld [vmem:[#allocation48_spill] sm:$0xff]  ;;  %v13750_v17 = vld [vmem:[#allocation7_spill] sm:$0xff]  ;;  %v13753_v2 = vld [vmem:[#allocation21_spill] sm:$0xff] }
 0x432   : > { %3442 = vmatprep.mubr.bf16.mxu0 %v3335_v41  ;;  %v3284_v41 = vmul.f32 1.442695, %v3227_v47  ;;  %v3310_v3 = vmul.f32 %v7426_v27, %v13746_v1  ;;  %7437 = vpow2.f32 %v3278_v63  ;;  %v3228_v57 = vsub.f32 %v3132_v54, %v10742_v56 }
 0x433   : > { %v3315_v52 = vmul.f32 %v7428_v9, %v13747_v46  ;;  %v3104_v62 = vmul.f32 0.2, %v3072_v25  ;;  %7439 = vpow2.f32 %v3288_v13  ;;  %v3233_v26 = vsub.f32 %v3137_v36, %v13748_v10  ;;  %v13754_v13 = vld [vmem:[#allocation29_spill] sm:$0xff] }
 0x434   : > { %v3336_v50 = vpack.c.bf16 %v3312_v60, %v3310_v3  ;;  %7441 = vpow2.f32 %v3274_v49  ;;  %v3226_v34 = vsub.f32 %v3130_v19, %v13743_v14  ;;  %v3102_v23 = vmul.f32 0.2, %v3070_v15  ;;  %v13755_v19 = vld [vmem:[#allocation31_spill] sm:$0xff] }
 0x435   : > { %v3339_v31 = vpack.c.bf16 %v3317_v35, %v3315_v52  ;;  %7443 = vpow2.f32 %v3284_v41  ;;  %v3231_v16 = vsub.f32 %v3135_v39, %v13749_v43  ;;  %v3286_v56 = vmul.f32 1.442695, %v3228_v57  ;;  %v13756_v35 = vld [vmem:[#allocation9_spill] sm:$0xff]  ;;  %v13757_v39 = vld [vmem:[#allocation30_spill] sm:$0xff] }
 0x436   : > { %v3296_v42 = vmul.f32 1.442695, %v3233_v26  ;;  %v3282_v44 = vmul.f32 1.442695, %v3226_v34  ;;  %v3134_v24 = vmax.f32 %v3070_v15, %v3102_v23  ;;  %v3136_v18 = vmax.f32 %v3072_v25, %v3104_v62  ;;  %v13759_v34 = vld [vmem:[#allocation39_spill] sm:$0xff] }
 0x437   : > { %v7430_v55 = vpop.eup %7429  ;;  %v3292_v12 = vmul.f32 1.442695, %v3231_v16  ;;  %7445 = vpow2.f32 %v3286_v56 }
 0x438   : > { %v7432_v37 = vpop.eup %7431  ;;  %v3316_v51 = vmul.f32 %v7430_v55, %v13750_v17  ;;  %7447 = vpow2.f32 %v3296_v42  ;;  %v3230_v11 = vsub.f32 %v3134_v24, %v13749_v43  ;;  %v13761_v43 = vld [vmem:[#allocation38_spill] sm:$0xff]  ;;  %v13834_v17 = vld [vmem:[#allocation95_spill] sm:$0xff] }
 0x439   : > { %3443 = vmatmul.mubr.bf16.gmra.mrb[72].mxu0 %v3334_v8  ;;  %v7434_v59 = vpop.eup %7433  ;;  %v3321_v8 = vmul.f32 %v7432_v37, %v13751_v22  ;;  %7449 = vpow2.f32 %v3282_v44  ;;  %v13763_v24 = vld [vmem:[#allocation42_spill] sm:$0xff] }
 0x43a   : > { %3450 = vmatprep.mubr.bf16.mxu0 %v3337_v4  ;;  %v7436_v28 = vpop.eup %7435  ;;  %v3314_v0 = vmul.f32 %v7434_v59, %v13752_v21  ;;  %v3232_v4 = vsub.f32 %v3136_v18, %v13748_v10  ;;  %7451 = vpow2.f32 %v3292_v12  ;;  %v3290_v49 = vmul.f32 1.442695, %v3230_v11 }
 0x43b   : > { %v3319_v38 = vmul.f32 %v7436_v28, %v13753_v2 }
 0x43c   : > { %v3338_v14 = vpack.c.bf16 %v3316_v51, %v3314_v0  ;;  %v7438_v47 = vpop.eup %7437  ;;  %v3294_v25 = vmul.f32 1.442695, %v3232_v4  ;;  %v13762_v51 = vld [vmem:[#allocation43_spill] sm:$0xff] }
 0x43d   : > { %v3341_v27 = vpack.c.bf16 %v3321_v8, %v3319_v38  ;;  %v7440_v63 = vpop.eup %7439  ;;  %v3320_v60 = vmul.f32 %v7438_v47, %v13754_v13 }
 0x43e   : > { %v7442_v9 = vpop.eup %7441  ;;  %v3325_v15 = vmul.f32 %v7440_v63, %v13755_v19  ;;  %7453 = vpow2.f32 %v3294_v25 }
 0x43f   : > { %v7444_v54 = vpop.eup %7443  ;;  %v3318_v41 = vmul.f32 %v7442_v9, %v13756_v35  ;;  %7455 = vpow2.f32 %v3290_v49  ;;  %v10899_v49 = vpop.permute.xlu0 %5263 }
 0x440   : > { %v3323_v36 = vmul.f32 %v7444_v54, %v13757_v39  ;;  %13768 = vst [vmem:[#allocation23_spill] sm:$0xff] %v10899_v49 }
 0x441   : > { %3451 = vmatmul.mubr.bf16.gmra.mrb[76].mxu0 %v3336_v50  ;;  %v3340_v3 = vpack.c.bf16 %v3320_v60, %v3318_v41  ;;  %v7446_v57 = vpop.eup %7445  ;;  %v13758_v50 = vld [vmem:[#allocation36_spill] sm:$0xff] }
 0x442   : > { %3458 = vmatprep.mubr.bf16.mxu0 %v3339_v31  ;;  %v3343_v52 = vpack.c.bf16 %v3325_v15, %v3323_v36  ;;  %v7448_v62 = vpop.eup %7447  ;;  %v3324_v55 = vmul.f32 %v7446_v57, %v13758_v50  ;;  %v13760_v31 = vld [vmem:[#allocation35_spill] sm:$0xff] }
 0x443   : > { %v7450_v10 = vpop.eup %7449  ;;  %v3329_v23 = vmul.f32 %v7448_v62, %v13759_v34 }
 0x444   : > { %v7452_v26 = vpop.eup %7451  ;;  %v3322_v37 = vmul.f32 %v7450_v10, %v13760_v31 }
 0x445   : > { %v3327_v16 = vmul.f32 %v7452_v26, %v13761_v43  ;;  %v13829_v43 = vld [vmem:[#allocation61_spill] sm:$0xff] }
 0x446   : > { %v3342_v59 = vpack.c.bf16 %v3324_v55, %v3322_v37 }
 0x447   : > { %v3345_v28 = vpack.c.bf16 %v3329_v23, %v3327_v16  ;;  %v10907_v23 = vpop.permute.xlu0 %4882 }
 0x448   : > { %v7454_v56 = vpop.eup %7453  ;;  %13771 = vst [vmem:[#allocation50_spill] sm:$0xff] %v10907_v23 }
 0x449   : > { %3459 = vmatmul.mubr.bf16.gmra.mrb[80].mxu0 %v3338_v14  ;;  %v7456_v42 = vpop.eup %7455  ;;  %v3328_v44 = vmul.f32 %v7454_v56, %v13762_v51 }
 0x44a   : > { %3466 = vmatprep.mubr.bf16.mxu0 %v3341_v27  ;;  %v3326_v18 = vmul.f32 %v7456_v42, %v13763_v24 }
 0x44c   : > { %v3344_v8 = vpack.c.bf16 %v3328_v44, %v3326_v18 }
 0x451   : > { %3467 = vmatmul.mubr.bf16.gmra.mrb[84].mxu0 %v3340_v3 }
 0x452   : > { %3474 = vmatprep.mubr.bf16.mxu0 %v3343_v52 }
 0x459   : > { %3475 = vmatmul.mubr.bf16.gmra.mrb[88].mxu0 %v3342_v59 }
 0x45a   : > { %3482 = vmatprep.mubr.bf16.mxu0 %v3345_v28 }
 0x461   : > { %3483 = vmatmul.mubr.bf16.gmra.mrb[92].mxu0 %v3344_v8  ;;  %v10915_v8 = vpop.permute.xlu0 %4634 }
 0x462   : > { %13774 = vst [vmem:[#allocation25_spill] sm:$0xff] %v10915_v8 }
 0x4fc   : > { %v6631_v12 = vpop.f32.mrb[64].mxu0 }
 0x4fd   : > { %v6632_v0 = vpop.f32.mrb[65].mxu0 }
 0x4fe   : > { %v10887_v4 = vadd.f32 %v6632_v0, %v6631_v12  ;;  %v6634_v38 = vpop.f32.mrb[66].mxu0 }
 0x4ff   : > { %v6635_v14 = vpop.f32.mrb[67].mxu0 }
 0x500   : > { %13764 = vst [vmem:[#allocation47_spill] sm:$0xff] %v10887_v4  ;;  %7457 = vrcp.f32 %v10887_v4  ;;  %v10890_v47 = vadd.f32 %v6635_v14, %v6634_v38 }
 0x502   : > { %13765 = vst [vmem:[#allocation32_spill] sm:$0xff] %v10890_v47  ;;  %7459 = vrcp.f32 %v10890_v47 }
 0x504   : > { %v6637_v11 = vpop.f32.mrb[68].mxu0 }
 0x505   : > { %v6638_v27 = vpop.f32.mrb[69].mxu0 }
 0x506   : > { %v10893_v63 = vadd.f32 %v6638_v27, %v6637_v11  ;;  %v6640_v9 = vpop.f32.mrb[70].mxu0 }
 0x507   : > { %v6641_v25 = vpop.f32.mrb[71].mxu0 }
 0x508   : > { %13766 = vst [vmem:[#allocation45_spill] sm:$0xff] %v10893_v63  ;;  %7461 = vrcp.f32 %v10893_v63  ;;  %v10896_v54 = vadd.f32 %v6641_v25, %v6640_v9 }
 0x50a   : > { %13767 = vst [vmem:[#allocation15_spill] sm:$0xff] %v10896_v54  ;;  %v7458_v60 = vpop.eup %7457  ;;  %7463 = vrcp.f32 %v10896_v54 }
 0x50b   : > { %3509 = vperm.xlu0 %6990, %v7458_v60   ;;  %v10923_v60 = vpop.permute.xlu0 %4636 }
 0x50c   : > { %v7460_v15 = vpop.eup %7459  ;;  %v6643_v41 = vpop.f32.mrb[72].mxu0  ;;  %13777 = vst [vmem:[#allocation48_spill] sm:$0xff] %v10923_v60 }
 0x50d   : > { %v6644_v36 = vpop.f32.mrb[73].mxu0  ;;  %3514 = vperm.xlu1 %6963, %v7460_v15  }
 0x50e   : > { %v10901_v3 = vadd.f32 %v6644_v36, %v6643_v41  ;;  %v6646_v57 = vpop.f32.mrb[74].mxu0 }
 0x50f   : > { %v6647_v52 = vpop.f32.mrb[75].mxu0 }
 0x510   : > { %13769 = vst [vmem:[#allocation17_spill] sm:$0xff] %v10901_v3  ;;  %7465 = vrcp.f32 %v10901_v3  ;;  %v10904_v62 = vadd.f32 %v6647_v52, %v6646_v57 }
 0x512   : > { %13770 = vst [vmem:[#allocation19_spill] sm:$0xff] %v10904_v62  ;;  %v7462_v10 = vpop.eup %7461  ;;  %7467 = vrcp.f32 %v10904_v62  ;;  %v7928_v62 = vld [vmem:[%s12934_s2 + $0x70] sm:$0xff]  }
 0x513   : > { %3519 = vperm.xlu1 %6963, %v7462_v10  }
 0x514   : > { %v7464_v26 = vpop.eup %7463  ;;  %v6649_v55 = vpop.f32.mrb[76].mxu0 }
 0x515   : > { %v6650_v37 = vpop.f32.mrb[77].mxu0  ;;  %3524 = vperm.xlu0 %6990, %v7464_v26  }
 0x516   : > { %v10909_v16 = vadd.f32 %v6650_v37, %v6649_v55  ;;  %v6652_v59 = vpop.f32.mrb[78].mxu0  ;;  %v10931_v37 = vpop.permute.xlu0 %4890 }
 0x517   : > { %v6653_v56 = vpop.f32.mrb[79].mxu0  ;;  %13780 = vst [vmem:[#allocation189_spill] sm:$0xff] %v10931_v37 }
 0x518   : > { %13772 = vst [vmem:[#allocation24_spill] sm:$0xff] %v10909_v16  ;;  %7469 = vrcp.f32 %v10909_v16  ;;  %v10912_v28 = vadd.f32 %v6653_v56, %v6652_v59 }
 0x51a   : > { %13773 = vst [vmem:[#allocation26_spill] sm:$0xff] %v10912_v28  ;;  %v7466_v42 = vpop.eup %7465  ;;  %7471 = vrcp.f32 %v10912_v28  ;;  %v11042_v28 = vld [vmem:[%s12934_s2 + $0x50] sm:$0xff]  }
 0x51b   : > { %3529 = vperm.xlu1 %6963, %v7466_v42   ;;  %13811 = vst [vmem:[#allocation209_spill] sm:$0xff] %v11042_v28 }
 0x51c   : > { %v7468_v44 = vpop.eup %7467  ;;  %v6655_v18 = vpop.f32.mrb[80].mxu0 }
 0x51d   : > { %v6656_v12 = vpop.f32.mrb[81].mxu0  ;;  %3534 = vperm.xlu0 %6990, %v7468_v44  }
 0x51e   : > { %v10917_v0 = vadd.f32 %v6656_v12, %v6655_v18  ;;  %v6658_v38 = vpop.f32.mrb[82].mxu0 }
 0x51f   : > { %v6659_v14 = vpop.f32.mrb[83].mxu0 }
 0x520   : > { %13775 = vst [vmem:[#allocation64_spill] sm:$0xff] %v10917_v0  ;;  %7473 = vrcp.f32 %v10917_v0  ;;  %v10920_v11 = vadd.f32 %v6659_v14, %v6658_v38  ;;  %v11035_v0 = vld [vmem:[%s12934_s2 + $0x40] sm:$0xff]  }
 0x521   : > { %13810 = vst [vmem:[#allocation208_spill] sm:$0xff] %v11035_v0 }
 0x522   : > { %13776 = vst [vmem:[#allocation74_spill] sm:$0xff] %v10920_v11  ;;  %v7470_v27 = vpop.eup %7469  ;;  %7475 = vrcp.f32 %v10920_v11  ;;  %v7924_v11 = vld [vmem:[%s12934_s2 + $0x30] sm:$0xff]  }
 0x523   : > { %3539 = vperm.xlu1 %6963, %v7470_v27   ;;  %v10939_v27 = vpop.permute.xlu0 %4638 }
 0x524   : > { %v7472_v9 = vpop.eup %7471  ;;  %v6661_v25 = vpop.f32.mrb[84].mxu0  ;;  %13783 = vst [vmem:[#allocation192_spill] sm:$0xff] %v10939_v27 }
 0x525   : > { %v6662_v15 = vpop.f32.mrb[85].mxu0  ;;  %3544 = vperm.xlu0 %6990, %v7472_v9  }
 0x526   : > { %v10925_v41 = vadd.f32 %v6662_v15, %v6661_v25  ;;  %v6664_v36 = vpop.f32.mrb[86].mxu0 }
 0x527   : > { %v6665_v57 = vpop.f32.mrb[87].mxu0 }
 0x528   : > { %13778 = vst [vmem:[#allocation187_spill] sm:$0xff] %v10925_v41  ;;  %7477 = vrcp.f32 %v10925_v41  ;;  %v10928_v52 = vadd.f32 %v6665_v57, %v6664_v36  ;;  %v11024_v41 = vld [vmem:[%s12934_s2 + $0x20] sm:$0xff]  }
 0x529   : > { %13809 = vst [vmem:[#allocation207_spill] sm:$0xff] %v11024_v41 }
 0x52a   : > { %13779 = vst [vmem:[#allocation188_spill] sm:$0xff] %v10928_v52  ;;  %v7474_v10 = vpop.eup %7473  ;;  %7479 = vrcp.f32 %v10928_v52  ;;  %v11017_v52 = vld [vmem:[%s12934_s2 + $0x10] sm:$0xff]  }
 0x52b   : > { %3549 = vperm.xlu1 %6963, %v7474_v10   ;;  %13808 = vst [vmem:[#allocation206_spill] sm:$0xff] %v11017_v52 }
 0x52c   : > { %v7476_v26 = vpop.eup %7475  ;;  %v6667_v55 = vpop.f32.mrb[88].mxu0 }
 0x52d   : > { %v6668_v59 = vpop.f32.mrb[89].mxu0  ;;  %3554 = vperm.xlu0 %6990, %v7476_v26  }
 0x52e   : > { %v10933_v56 = vadd.f32 %v6668_v59, %v6667_v55  ;;  %v6670_v42 = vpop.f32.mrb[90].mxu0  ;;  %v10947_v55 = vpop.permute.xlu0 %4640 }
 0x52f   : > { %v6671_v44 = vpop.f32.mrb[91].mxu0  ;;  %13786 = vst [vmem:[#allocation195_spill] sm:$0xff] %v10947_v55 }
 0x530   : > { %13781 = vst [vmem:[#allocation190_spill] sm:$0xff] %v10933_v56  ;;  %7481 = vrcp.f32 %v10933_v56  ;;  %v10936_v18 = vadd.f32 %v6671_v44, %v6670_v42  ;;  %v13807_v56 = vmov 8  }
 0x532   : > { %13782 = vst [vmem:[#allocation191_spill] sm:$0xff] %v10936_v18  ;;  %v7478_v12 = vpop.eup %7477  ;;  %7483 = vrcp.f32 %v10936_v18  ;;  %v10949_v44 = vpop.permute.xlu0 %4898  ;;  %v11009_v18 = vld [vmem:[%s12934_s2] sm:$0xff]  }
 0x533   : > { %3559 = vperm.xlu1 %6963, %v7478_v12   ;;  %13787 = vst [vmem:[#allocation196_spill] sm:$0xff] %v10949_v44  ;;  %v13788_v12 = vmov 5   ;;  %13806 = vst [vmem:[#allocation205_spill] sm:$0xff] %v11009_v18 }
 0x534   : > { %v7480_v38 = vpop.eup %7479  ;;  %v6673_v14 = vpop.f32.mrb[92].mxu0 }
 0x535   : > { %v6674_v9 = vpop.f32.mrb[93].mxu0  ;;  %3564 = vperm.xlu0 %6990, %v7480_v38   ;;  %v13789_v38 = vld [vmem:[#allocation158_spill] sm:$0xff] }
 0x536   : > { %v10941_v25 = vadd.f32 %v6674_v9, %v6673_v14  ;;  %v6676_v15 = vpop.f32.mrb[94].mxu0  ;;  %v10954_v14 = vld [vmem:[%s8132_s9 + $0x10] sm:$0xff]  ;;  %v10958_v9 = vld [vmem:[%s8132_s9 + $0x18] sm:$0xff] }
 0x537   : > { %v6677_v36 = vpop.f32.mrb[95].mxu0  ;;  %13790 = vst [vmem:[#allocation158_spill] sm:$0xff] %v10954_v14  ;;  %13791 = vst [vmem:[#allocation197_spill] sm:$0xff] %v10958_v9 }
 0x538   : > { %13784 = vst [vmem:[#allocation193_spill] sm:$0xff] %v10941_v25  ;;  %7485 = vrcp.f32 %v10941_v25  ;;  %v10944_v57 = vadd.f32 %v6677_v36, %v6676_v15  ;;  %v10962_v15 = vld [vmem:[%s8132_s9 + $0x28] sm:$0xff]  ;;  %v10966_v36 = vld [vmem:[%s8132_s9 + $0x38] sm:$0xff]  ;;  %v10987_v25 = vld [vmem:[%s8132_s9 + $0x30] sm:$0xff] }
 0x539   : > { %13792 = vst [vmem:[#allocation198_spill] sm:$0xff] %v10962_v15  ;;  %13793 = vst [vmem:[#allocation199_spill] sm:$0xff] %v10966_v36 }
 0x53a   : > { %13785 = vst [vmem:[#allocation194_spill] sm:$0xff] %v10944_v57  ;;  %v7482_v10 = vpop.eup %7481  ;;  %7487 = vrcp.f32 %v10944_v57  ;;  %v10983_v57 = vld [vmem:[%s8132_s9 + $0x20] sm:$0xff] }
 0x53b   : > { %3569 = vperm.xlu1 %6963, %v7482_v10   ;;  %v10970_v10 = vld [vmem:[%s8132_s9 + $0x48] sm:$0xff] }
 0x53c   : > { %v7484_v26 = vpop.eup %7483  ;;  %13794 = vst [vmem:[#allocation200_spill] sm:$0xff] %v10970_v10 }
 0x53d   : > { %3574 = vperm.xlu0 %6990, %v7484_v26   ;;  %v13795_v26 = vld [vmem:[#allocation163_spill] sm:$0xff] }
 0x542   : > { %v7486_v59 = vpop.eup %7485 }
 0x543   : > { %3579 = vperm.xlu1 %6963, %v7486_v59   ;;  %v13796_v59 = vld [vmem:[#allocation165_spill] sm:$0xff] }
 0x544   : > { %v7488_v42 = vpop.eup %7487  ;;  %13800 = vst [vmem:[#allocation165_spill] sm:$0xff] %v10983_v57 }
 0x545   : > { %3584 = vperm.xlu0 %6990, %v7488_v42   ;;  %v13797_v42 = vld [vmem:[#allocation166_spill] sm:$0xff] }
 0x546   : > { %13801 = vst [vmem:[#allocation166_spill] sm:$0xff] %v10987_v25 }
 0x547   : > { %6964 = vset.pattern.permute.xlu1 %v13788_v12  ;;  %v13798_v12 = vmov 13  }
 0x548   : > { %3604 = vperm.xlu1 %6964, %v13789_v38   ;;  %v10978_v38 = vld [vmem:[%s8132_s9 + $0x8] sm:$0xff] }
 0x549   : > { %13799 = vst [vmem:[#allocation163_spill] sm:$0xff] %v10978_v38 }
 0x54c   : > { %3612 = vperm.xlu1 %6964, %v10954_v14  }
 0x550   : > { %3616 = vperm.xlu1 %6964, %v10958_v9  }
 0x554   : > { %3624 = vperm.xlu1 %6964, %v10962_v15  }
 0x558   : > { %3632 = vperm.xlu1 %6964, %v10966_v36  }
 0x55c   : > { %3640 = vperm.xlu1 %6964, %v10970_v10  }
 0x560   : > { %3648 = vperm.xlu1 %6964, %v13795_v26   ;;  %v10991_v26 = vld [vmem:[%s8132_s9 + $0x40] sm:$0xff] }
 0x561   : > { %13802 = vst [vmem:[#allocation201_spill] sm:$0xff] %v10991_v26 }
 0x564   : > { %3656 = vperm.xlu1 %6964, %v13796_v59   ;;  %v10995_v59 = vld [vmem:[%s8132_s9 + $0x50] sm:$0xff] }
 0x565   : > { %13803 = vst [vmem:[#allocation202_spill] sm:$0xff] %v10995_v59 }
 0x568   : > { %3664 = vperm.xlu1 %6964, %v13797_v42   ;;  %v10999_v42 = vld [vmem:[%s8132_s9 + $0x60] sm:$0xff] }
 0x569   : > { %13804 = vst [vmem:[#allocation203_spill] sm:$0xff] %v10999_v42 }
 0x56c   : > { %6967 = vset.pattern.permute.xlu1 %v13798_v12  ;;  %v11003_v12 = vld [vmem:[%s8132_s9 + $0x70] sm:$0xff] }
 0x56d   : > { %3776 = vperm.xlu1 %6967, %v10978_v38   ;;  %13805 = vst [vmem:[#allocation204_spill] sm:$0xff] %v11003_v12 }
 0x571   : > { %3780 = vperm.xlu1 %6967, %v10954_v14  }
 0x575   : > { %3788 = vperm.xlu1 %6967, %v10983_v57  }
 0x579   : > { %3796 = vperm.xlu1 %6967, %v10987_v25   ;;  %v13827_v25 = vld [vmem:[#allocation186_spill] sm:$0xff] }
 0x57d   : > { %3804 = vperm.xlu1 %6967, %v10991_v26  }
 0x581   : > { %3812 = vperm.xlu1 %6967, %v10995_v59   ;;  %v13825_v59 = vld [vmem:[#allocation10_spill] sm:$0xff] }
 0x585   : > { %3820 = vperm.xlu1 %6967, %v10999_v42  }
 0x589   : > { %3828 = vperm.xlu1 %6967, %v11003_v12  }
 0x58c   : > { %v11053_v16 = vpop.permute.xlu1 %3514 }
 0x58d   : > { %3979 = vrot.lane.b32.xlu1 %v11009_v18, %s8034_s7  ;;  %13813 = vst [vmem:[#allocation211_spill] sm:$0xff] %v11053_v16 }
 0x58e   : > { %6968 = vset.pattern.permute.xlu1 %v13807_v56 }
 0x591   : > { %3983 = vrot.lane.b32.xlu1 %v11017_v52, %s8034_s7  ;;  %v13824_v52 = vld [vmem:[#allocation79_spill] sm:$0xff] }
 0x592   : > { %v11059_v3 = vpop.permute.xlu1 %3519 }
 0x593   : > { %13814 = vst [vmem:[#allocation212_spill] sm:$0xff] %v11059_v3 }
 0x595   : > { %3987 = vrot.lane.b32.xlu1 %v11024_v41, %s8034_s7 }
 0x599   : > { %3991 = vrot.lane.b32.xlu1 %v7924_v11, %s8034_s7  ;;  %v11049_v11 = vld [vmem:[%s12934_s2 + $0x60] sm:$0xff]  }
 0x59a   : > { %13812 = vst [vmem:[#allocation210_spill] sm:$0xff] %v11049_v11  ;;  %v11061_v54 = vpop.permute.xlu1 %3529 }
 0x59b   : > { %13815 = vst [vmem:[#allocation213_spill] sm:$0xff] %v11061_v54  ;;  %v13822_v54 = vld [vmem:[#allocation185_spill] sm:$0xff] }
 0x59d   : > { %3995 = vrot.lane.b32.xlu1 %v11035_v0, %s8034_s7 }
 0x5a1   : > { %3999 = vrot.lane.b32.xlu1 %v11042_v28, %s8034_s7 }
 0x5a2   : > { %v11063_v63 = vpop.permute.xlu1 %3539 }
 0x5a3   : > { %13816 = vst [vmem:[#allocation214_spill] sm:$0xff] %v11063_v63 }
 0x5a5   : > { %4003 = vrot.lane.b32.xlu1 %v11049_v11, %s8034_s7 }
 0x5a9   : > { %4007 = vrot.lane.b32.xlu1 %v7928_v62, %s8034_s7  ;;  %v13821_v62 = vld [vmem:[#allocation8_spill] sm:$0xff]  ;;  %s8047_s7 = smov 56  }
 0x5aa   : > { %v11065_v47 = vpop.permute.xlu1 %3549  ;;  %v3669_v27 = vsub.s32 5, %v13821_v62 }
 0x5ab   : > { %13817 = vst [vmem:[#allocation215_spill] sm:$0xff] %v11065_v47 }
 0x5ac   : > { %v11079_v49 = vrot.slane %v13822_v54, %v3669_v27  ;;  %v11110_v57 = vrot.slane %v13827_v25, %v3669_v27  ;;  %v13828_v27 = vld [vmem:[#allocation103_spill] sm:$0xff] }
 0x5ae   : > { %v3684_v31 = vadd.f32 %v11079_v49, %v13829_v43 }
 0x5b2   : > { %v11067_v4 = vpop.permute.xlu1 %3559 }
 0x5b3   : > { %13818 = vst [vmem:[#allocation216_spill] sm:$0xff] %v11067_v4 }
 0x5ba   : > { %v11069_v44 = vpop.permute.xlu1 %3569 }
 0x5bb   : > { %13819 = vst [vmem:[#allocation217_spill] sm:$0xff] %v11069_v44 }
 0x5c2   : > { %v11071_v37 = vpop.permute.xlu1 %3579 }
 0x5c3   : > { %13820 = vst [vmem:[#allocation218_spill] sm:$0xff] %v11071_v37  ;;  %v13823_v37 = vld [vmem:[#allocation63_spill] sm:$0xff] }
 0x5c4   : > { %v3678_v60 = vadd.f32 %v11079_v49, %v13823_v37  ;;  %v3677_v38 = vadd.f32 %v11110_v57, %v13823_v37 }
 0x5c6   : > { %v3710_v11 = vmul.f32 0.2, %v3678_v60 }
 0x5c7   : > { %v3605_v16 = vpop.permute.xlu1 %3604 }
 0x5c8   : > { %v3676_v4 = vadd.f32 %v11079_v49, %v3605_v16  ;;  %v3742_v54 = vmax.f32 %v3678_v60, %v3710_v11 }
 0x5ca   : > { %v3708_v44 = vmul.f32 0.2, %v3676_v4 }
 0x5cb   : > { %v3613_v23 = vpop.permute.xlu1 %3612 }
 0x5cc   : > { %v3740_v41 = vmax.f32 %v3676_v4, %v3708_v44  ;;  %v3679_v37 = vadd.f32 %v11110_v57, %v3613_v23 }
 0x5ce   : > { %v3836_v28 = vsub.f32 %v3740_v41, %v13824_v52  ;;  %v13826_v41 = vld [vmem:[#allocation11_spill] sm:$0xff] }
 0x5cf   : > { %v3617_v55 = vpop.permute.xlu1 %3616 }
 0x5d0   : > { %v3869_v10 = vmul.f32 1.442695, %v3836_v28 }
 0x5d2   : > { %7489 = vpow2.f32 %v3869_v10 }
 0x5d3   : > { %v11073_v56 = vpop.permute.xlu1 %3624 }
 0x5d4   : > { %v3686_v13 = vadd.f32 %v11079_v49, %v11073_v56 }
 0x5d7   : > { %v11076_v3 = vpop.permute.xlu1 %3632 }
 0x5db   : > { %v11081_v63 = vpop.permute.xlu1 %3640 }
 0x5dc   : > { %v7490_v42 = vpop.eup %7489 }
 0x5dd   : > { %v3932_v26 = vmul.f32 %v7490_v42, %v13825_v59  ;;  %v3675_v42 = vadd.f32 %v11110_v57, %v3605_v16  ;;  %v3681_v16 = vadd.f32 %v11110_v57, %v3617_v55 }
 0x5df   : > { %v11084_v47 = vpop.permute.xlu1 %3648 }
 0x5e3   : > { %v11088_v8 = vpop.permute.xlu1 %3656 }
 0x5e7   : > { %v11090_v62 = vpop.permute.xlu1 %3664 }
 0x5ec   : > { %v3777_v18 = vpop.permute.xlu1 %3776 }
 0x5ed   : > { %v3838_v0 = vsub.f32 %v3742_v54, %v3777_v18 }
 0x5ef   : > { %v3873_v36 = vmul.f32 1.442695, %v3838_v0 }
 0x5f0   : > { %v11093_v15 = vpop.permute.xlu1 %3780 }
 0x5f1   : > { %7491 = vpow2.f32 %v3873_v36 }
 0x5f4   : > { %v11095_v9 = vpop.permute.xlu1 %3788 }
 0x5f8   : > { %v11097_v12 = vpop.permute.xlu1 %3796 }
 0x5fb   : > { %v7492_v44 = vpop.eup %7491 }
 0x5fc   : > { %v11099_v4 = vpop.permute.xlu1 %3804  ;;  %v3934_v60 = vmul.f32 %v7492_v44, %v13826_v41  ;;  %v3707_v41 = vmul.f32 0.2, %v3675_v42 }
 0x5fe   : > { %v3964_v28 = vpack.c.bf16 %v3934_v60, %v3932_v26  ;;  %v3680_v26 = vadd.f32 %v11079_v49, %v3613_v23  ;;  %v3682_v60 = vadd.f32 %v11079_v49, %v3617_v55  ;;  %v3739_v25 = vmax.f32 %v3675_v42, %v3707_v41  ;;  %v13831_v42 = vld [vmem:[#allocation80_spill] sm:$0xff] }
 0x5ff   : > { %v3711_v41 = vmul.f32 0.2, %v3679_v37  ;;  %v3713_v55 = vmul.f32 0.2, %v3681_v16 }
 0x600   : > { %v11103_v11 = vpop.permute.xlu1 %3812  ;;  %4059 = vmatprep.mubr.bf16.mxu1 %v3964_v28  ;;  %v3709_v28 = vmul.f32 0.2, %v3677_v38  ;;  %v3712_v51 = vmul.f32 0.2, %v3680_v26  ;;  %v3714_v24 = vmul.f32 0.2, %v3682_v60  ;;  %v3835_v23 = vsub.f32 %v3739_v25, %v13824_v52 }
 0x601   : > { %v3685_v52 = vadd.f32 %v11110_v57, %v11073_v56 }
 0x602   : > { %v3741_v34 = vmax.f32 %v3677_v38, %v3709_v28  ;;  %v3746_v19 = vmax.f32 %v3682_v60, %v3714_v24  ;;  %v3744_v39 = vmax.f32 %v3680_v26, %v3712_v51  ;;  %v3716_v38 = vmul.f32 0.2, %v3684_v31  ;;  %v13832_v51 = vld [vmem:[#allocation46_spill] sm:$0xff]  ;;  %v13833_v26 = vld [vmem:[#allocation105_spill] sm:$0xff] }
 0x603   : > { %v3683_v24 = vadd.f32 %v11110_v57, %v13829_v43  ;;  %v3743_v60 = vmax.f32 %v3679_v37, %v3711_v41  ;;  %v3717_v37 = vmul.f32 0.2, %v3685_v52 }
 0x604   : > { %v11105_v0 = vpop.permute.xlu1 %3820  ;;  %v3837_v35 = vsub.f32 %v3741_v34, %v3777_v18  ;;  %v3842_v28 = vsub.f32 %v3746_v19, %v13831_v42  ;;  %v3688_v34 = vadd.f32 %v11079_v49, %v13832_v51 }
 0x605   : > { %v3839_v43 = vsub.f32 %v3743_v60, %v11093_v15 }
 0x606   : > { %v3871_v22 = vmul.f32 1.442695, %v3837_v35  ;;  %v3881_v19 = vmul.f32 1.442695, %v3842_v28  ;;  %v3690_v35 = vadd.f32 %v11079_v49, %v11076_v3  ;;  %v13837_v28 = vld [vmem:[#allocation107_spill] sm:$0xff] }
 0x608   : > { %v11107_v10 = vpop.permute.xlu1 %3828  ;;  %7493 = vpow2.f32 %v3871_v22  ;;  %v3687_v22 = vadd.f32 %v11110_v57, %v13832_v51 }
 0x60c   : > { %v3980_v36 = vpop.permute.xlu1 %3979 }
 0x610   : > { %v3984_v54 = vpop.permute.xlu1 %3983 }
 0x614   : > { %v3988_v14 = vpop.permute.xlu1 %3987 }
 0x618   : > { %v11115_v44 = vpop.permute.xlu1 %3991 }
 0x61c   : > { %v3996_v59 = vpop.permute.xlu1 %3995 }
 0x61d   : > { %6679 = vmatprep.subr.bf16.mxu1 %v3996_v59  ;;  %v13830_v59 = vld [vmem:[#allocation93_spill] sm:$0xff] }
 0x61e   : > { %6680 = vmatpush3.bf16.msra.mxu1 %v3980_v36  ;;  %v3840_v36 = vsub.f32 %v3744_v39, %v11093_v15  ;;  %v3867_v39 = vmul.f32 1.442695, %v3835_v23  ;;  %v3720_v23 = vmul.f32 0.2, %v3688_v34 }
 0x61f   : > { %6681 = vmatprep.subr.bf16.mxu1 %v13828_v27  ;;  %v3718_v27 = vmul.f32 0.2, %v3686_v13 }
 0x620   : > { %v4000_v50 = vpop.permute.xlu1 %3999  ;;  %v3877_v18 = vmul.f32 1.442695, %v3840_v36 }
 0x622   : > { %6682 = vmatpush3.bf16.msra.mxu1 %v13830_v59  ;;  %v3750_v59 = vmax.f32 %v3686_v13, %v3718_v27  ;;  %7495 = vpow2.f32 %v3877_v18  ;;  %v13835_v13 = vld [vmem:[#allocation81_spill] sm:$0xff]  ;;  %v3749_v18 = vmax.f32 %v3685_v52, %v3717_v37  ;;  %v13840_v37 = vld [vmem:[#allocation76_spill] sm:$0xff] }
 0x623   : > { %6683 = vmatprep.subr.bf16.mxu1 %v4000_v50  ;;  %v3745_v50 = vmax.f32 %v3681_v16, %v3713_v55  ;;  %v3715_v16 = vmul.f32 0.2, %v3683_v24  ;;  %7497 = vpow2.f32 %v3867_v39  ;;  %v3722_v55 = vmul.f32 0.2, %v3690_v35 }
 0x624   : > { %v4004_v25 = vpop.permute.xlu1 %4003  ;;  %7499 = vpow2.f32 %v3881_v19  ;;  %v3846_v41 = vsub.f32 %v3750_v59, %v13835_v13  ;;  %v13838_v19 = vld [vmem:[#allocation97_spill] sm:$0xff]  ;;  %v3719_v59 = vmul.f32 0.2, %v3687_v22 }
 0x625   : > { %v3841_v56 = vsub.f32 %v3745_v50, %v13831_v42  ;;  %v3689_v42 = vadd.f32 %v11110_v57, %v11076_v3  ;;  %v3754_v60 = vmax.f32 %v3690_v35, %v3722_v55  ;;  %v7494_v3 = vpop.eup %7493 }
 0x626   : > { %6684 = vmatpush3.bf16.msra.mxu1 %v3984_v54  ;;  %v3748_v54 = vmax.f32 %v3684_v31, %v3716_v38  ;;  %v3875_v31 = vmul.f32 1.442695, %v3839_v43  ;;  %v3889_v50 = vmul.f32 1.442695, %v3846_v41 }
 0x627   : > { %6685 = vmatprep.subr.bf16.mxu1 %v13833_v26  ;;  %v3879_v27 = vmul.f32 1.442695, %v3841_v56  ;;  %v3747_v26 = vmax.f32 %v3683_v24, %v3715_v16  ;;  %v3845_v24 = vsub.f32 %v3749_v18, %v13835_v13  ;;  %v3721_v35 = vmul.f32 0.2, %v3689_v42 }
 0x628   : > { %v3844_v36 = vsub.f32 %v3748_v54, %v11095_v9  ;;  %v4008_v39 = vpop.permute.xlu1 %4007  ;;  %7501 = vpow2.f32 %v3875_v31  ;;  %v3751_v31 = vmax.f32 %v3687_v22, %v3719_v59 }
 0x629   : > { %v3843_v51 = vsub.f32 %v3747_v26, %v11095_v9  ;;  %v3887_v18 = vmul.f32 1.442695, %v3845_v24  ;;  %v3753_v26 = vmax.f32 %v3689_v42, %v3721_v35  ;;  %v13843_v35 = vld [vmem:[#allocation83_spill] sm:$0xff] }
 0x62a   : > { %6686 = vmatpush3.bf16.msra.mxu1 %v13834_v17  ;;  %v13836_v17 = vld [vmem:[#allocation52_spill] sm:$0xff]  ;;  %v3885_v38 = vmul.f32 1.442695, %v3844_v36  ;;  %v13839_v36 = vld [vmem:[#allocation82_spill] sm:$0xff] }
 0x62b   : > { %6687 = vmatprep.subr.bf16.mxu1 %v4004_v25  ;;  %v3692_v15 = vadd.f32 %v11079_v49, %v13836_v17  ;;  %v3752_v25 = vmax.f32 %v3688_v34, %v3720_v23  ;;  %v3850_v34 = vsub.f32 %v3754_v60, %v13839_v36  ;;  %v3691_v9 = vadd.f32 %v11110_v57, %v13836_v17 }
 0x62c   : > { %7503 = vpow2.f32 %v3885_v38  ;;  %v7496_v43 = vpop.eup %7495  ;;  %v3696_v23 = vadd.f32 %v11079_v49, %v13840_v37  ;;  %v3883_v41 = vmul.f32 1.442695, %v3843_v51  ;;  %v13842_v51 = vld [vmem:[#allocation100_spill] sm:$0xff] }
 0x62d   : > { %v3724_v54 = vmul.f32 0.2, %v3692_v15  ;;  %v3848_v52 = vsub.f32 %v3752_v25, %v11097_v12  ;;  %7505 = vpow2.f32 %v3879_v27  ;;  %v7498_v56 = vpop.eup %7497  ;;  %v3933_v27 = vmul.f32 %v7494_v3, %v13545_v61 }
 0x62e   : > { %6688 = vmatpush3.bf16.msra.mxu1 %v3988_v14  ;;  %v3694_v14 = vadd.f32 %v11079_v49, %v11081_v63  ;;  %7507 = vpow2.f32 %v3889_v50  ;;  %v7500_v55 = vpop.eup %7499  ;;  %v3936_v17 = vmul.f32 %v7496_v43, %v13735_v32  ;;  %v3897_v50 = vmul.f32 1.442695, %v3850_v34 }
 0x62f   : > { %6689 = vmatprep.subr.bf16.mxu1 %v13837_v28  ;;  %v3893_v38 = vmul.f32 1.442695, %v3848_v52  ;;  %v3756_v13 = vmax.f32 %v3692_v15, %v3724_v54  ;;  %v13841_v28 = vld [vmem:[#allocation110_spill] sm:$0xff]  ;;  %v3931_v22 = vmul.f32 %v7498_v56, %v13548_v29  ;;  %v3723_v25 = vmul.f32 0.2, %v3691_v9  ;;  %v13844_v56 = vld [vmem:[#allocation77_spill] sm:$0xff] }
 0x630   : > { %v3726_v16 = vmul.f32 0.2, %v3694_v14  ;;  %7509 = vpow2.f32 %v3883_v41  ;;  %v3847_v15 = vsub.f32 %v3751_v31, %v11097_v12  ;;  %v3938_v42 = vmul.f32 %v7500_v55, %v13549_v30 }
 0x631   : > { %7511 = vpow2.f32 %v3893_v38  ;;  %v3963_v59 = vpack.c.bf16 %v3933_v27, %v3931_v22  ;;  %v3700_v41 = vadd.f32 %v11079_v49, %v13844_v56  ;;  %v3755_v38 = vmax.f32 %v3691_v9, %v3723_v25 }
 0x632   : > { %6690 = vmatpush3.bf16.msra.mxu1 %v13838_v19  ;;  %v3758_v60 = vmax.f32 %v3694_v14, %v3726_v16  ;;  %v3728_v19 = vmul.f32 0.2, %v3696_v23  ;;  %v7502_v54 = vpop.eup %7501  ;;  %7513 = vpow2.f32 %v3887_v18  ;;  %v3849_v14 = vsub.f32 %v3753_v26, %v13839_v36 }
 0x633   : > { %6691 = vmatprep.subr.bf16.mxu1 %v4008_v39  ;;  %v3693_v39 = vadd.f32 %v11110_v57, %v11081_v63  ;;  %v3852_v63 = vsub.f32 %v3756_v13, %v11099_v4  ;;  %v3966_v3 = vpack.c.bf16 %v3938_v42, %v3936_v17  ;;  %7515 = vpow2.f32 %v3897_v50 }
 0x634   : > { %v3854_v43 = vsub.f32 %v3758_v60, %v13843_v35  ;;  %v3695_v16 = vadd.f32 %v11110_v57, %v13840_v37  ;;  %v3891_v55 = vmul.f32 1.442695, %v3847_v15  ;;  %v3760_v13 = vmax.f32 %v3696_v23, %v3728_v19 }
 0x635   : > { %v3725_v52 = vmul.f32 0.2, %v3693_v39  ;;  %v3901_v36 = vmul.f32 1.442695, %v3852_v63  ;;  %v3895_v27 = vmul.f32 1.442695, %v3849_v14  ;;  %v3697_v26 = vadd.f32 %v11110_v57, %v11084_v47 }
 0x636   : > { %6692 = vmatpush3.bf16.msra.mxu1 %v11115_v44  ;;  %v3698_v44 = vadd.f32 %v11079_v49, %v11084_v47  ;;  %v7504_v24 = vpop.eup %7503  ;;  %v3905_v50 = vmul.f32 1.442695, %v3854_v43  ;;  %v3702_v60 = vadd.f32 %v11079_v49, %v11088_v8  ;;  %v3727_v15 = vmul.f32 0.2, %v3695_v16 }
 0x637   : > { %6693 = vmatprep.subr.bf16.mxu1 %v13841_v28  ;;  %v7506_v34 = vpop.eup %7505  ;;  %v3935_v28 = vmul.f32 %v7502_v54, %v13737_v58  ;;  %v3757_v18 = vmax.f32 %v3693_v39, %v3725_v52  ;;  %v3940_v17 = vmul.f32 %v7504_v24, %v13738_v48  ;;  %7517 = vpow2.f32 %v3891_v55 }
 0x638   : > { %v3730_v12 = vmul.f32 0.2, %v3698_v44  ;;  %v7508_v31 = vpop.eup %7507  ;;  %v3937_v22 = vmul.f32 %v7506_v34, %v13551_v5  ;;  %v3851_v9 = vsub.f32 %v3755_v38, %v11099_v4  ;;  %v3732_v25 = vmul.f32 0.2, %v3700_v41 }
 0x639   : > { %v3942_v23 = vmul.f32 %v7508_v31, %v13552_v20  ;;  %7519 = vpow2.f32 %v3901_v36  ;;  %v3856_v39 = vsub.f32 %v3760_v13, %v11103_v11  ;;  %v3729_v42 = vmul.f32 0.2, %v3697_v26 }
 0x63a   : > { %6694 = vmatpush3.bf16.msra.mxu1 %v13842_v51  ;;  %v3762_v37 = vmax.f32 %v3698_v44, %v3730_v12  ;;  %v3965_v47 = vpack.c.bf16 %v3937_v22, %v3935_v28  ;;  %v7510_v51 = vpop.eup %7509  ;;  %7521 = vpow2.f32 %v3895_v27  ;;  %v3853_v44 = vsub.f32 %v3757_v18, %v13843_v35 }
 0x63b   : > { %v3968_v19 = vpack.c.bf16 %v3942_v23, %v3940_v17  ;;  %v7512_v63 = vpop.eup %7511  ;;  %7523 = vpow2.f32 %v3905_v50  ;;  %v3734_v14 = vmul.f32 0.2, %v3702_v60  ;;  %v3699_v52 = vadd.f32 %v11110_v57, %v13844_v56  ;;  %v13847_v23 = vld [vmem:[#allocation87_spill] sm:$0xff] }
 0x63c   : > { %v7514_v4 = vpop.eup %7513  ;;  %v3899_v43 = vmul.f32 1.442695, %v3851_v9  ;;  %v3759_v34 = vmax.f32 %v3695_v16, %v3727_v15  ;;  %v3909_v35 = vmul.f32 1.442695, %v3856_v39  ;;  %v3764_v55 = vmax.f32 %v3700_v41, %v3732_v25 }
 0x63d   : > { %4060 = vmatmul.mubr.bf16.vlgmr.msra.gmra.mrb[64].mxu1 %v3963_v59  ;;  %v13845_v59 = vld [vmem:[#allocation85_spill] sm:$0xff]  ;;  %v7516_v12 = vpop.eup %7515  ;;  %v3939_v31 = vmul.f32 %v7510_v51, %v13493_v45  ;;  %v3903_v38 = vmul.f32 1.442695, %v3853_v44  ;;  %v3761_v36 = vmax.f32 %v3697_v26, %v3729_v42  ;;  %v3701_v13 = vadd.f32 %v11110_v57, %v11088_v8 }
 0x63e   : > { %4067 = vmatprep.mubr.bf16.mxu1 %v3966_v3  ;;  %v3858_v54 = vsub.f32 %v3762_v37, %v13845_v59  ;;  %v13846_v3 = vld [vmem:[#allocation78_spill] sm:$0xff]  ;;  %v3944_v28 = vmul.f32 %v7512_v63, %v13742_v40  ;;  %v3766_v56 = vmax.f32 %v3702_v60, %v3734_v14  ;;  %v3706_v18 = vadd.f32 %v11079_v49, %v11090_v62 }
 0x63f   : > { %v3704_v24 = vadd.f32 %v11079_v49, %v13846_v3  ;;  %v3941_v17 = vmul.f32 %v7514_v4, %v13740_v33  ;;  %7525 = vpow2.f32 %v3899_v43  ;;  %v3855_v16 = vsub.f32 %v3759_v34, %v11103_v11 }
 0x640   : > { %v3913_v27 = vmul.f32 1.442695, %v3858_v54  ;;  %v3946_v41 = vmul.f32 %v7516_v12, %v13741_v53  ;;  %v3731_v50 = vmul.f32 0.2, %v3699_v52  ;;  %7527 = vpow2.f32 %v3909_v35 }
 0x641   : > { %v3860_v26 = vsub.f32 %v3764_v55, %v11105_v0  ;;  %v3967_v37 = vpack.c.bf16 %v3941_v17, %v3939_v31  ;;  %v7518_v8 = vpop.eup %7517  ;;  %7529 = vpow2.f32 %v3903_v38  ;;  %v3857_v22 = vsub.f32 %v3761_v36, %v13845_v59 }
 0x642   : > { %v3733_v60 = vmul.f32 0.2, %v3701_v13  ;;  %v3970_v15 = vpack.c.bf16 %v3946_v41, %v3944_v28  ;;  %v3736_v49 = vmul.f32 0.2, %v3704_v24  ;;  %7531 = vpow2.f32 %v3913_v27 }
 0x643   : > { %v7520_v9 = vpop.eup %7519  ;;  %v3862_v25 = vsub.f32 %v3766_v56, %v13847_v23  ;;  %v3738_v39 = vmul.f32 0.2, %v3706_v18  ;;  %v3703_v44 = vadd.f32 %v11110_v57, %v13846_v3  ;;  %v3763_v42 = vmax.f32 %v3699_v52, %v3731_v50 }
 0x644   : > { %v7522_v11 = vpop.eup %7521  ;;  %v3943_v63 = vmul.f32 %v7518_v8, %v13746_v1  ;;  %v3911_v59 = vmul.f32 1.442695, %v3857_v22  ;;  %v3765_v54 = vmax.f32 %v3701_v13, %v3733_v60  ;;  %v3705_v14 = vadd.f32 %v11110_v57, %v11090_v62  ;;  %v13849_v22 = vld [vmem:[#allocation7_spill] sm:$0xff] }
 0x645   : > { %4068 = vmatmul.mubr.bf16.gmra.mrb[68].mxu1 %v3965_v47  ;;  %v3907_v47 = vmul.f32 1.442695, %v3855_v16  ;;  %v7524_v51 = vpop.eup %7523  ;;  %v3948_v4 = vmul.f32 %v7520_v9, %v13747_v46  ;;  %v3921_v43 = vmul.f32 1.442695, %v3862_v25  ;;  %v3770_v12 = vmax.f32 %v3706_v18, %v3738_v39  ;;  %v13850_v9 = vld [vmem:[#allocation5_spill] sm:$0xff] }
 0x646   : > { %4075 = vmatprep.mubr.bf16.mxu1 %v3968_v19  ;;  %v3917_v19 = vmul.f32 1.442695, %v3860_v26  ;;  %v3768_v34 = vmax.f32 %v3704_v24, %v3736_v49  ;;  %v3945_v35 = vmul.f32 %v7522_v11, %v13744_v6  ;;  %v3859_v55 = vsub.f32 %v3763_v42, %v11105_v0  ;;  %v13848_v24 = vld [vmem:[#allocation90_spill] sm:$0xff]  ;;  %v13924_v46 = vld [vmem:[#allocation113_spill] sm:$0xff] }
 0x647   : > { %7533 = vpow2.f32 %v3907_v47  ;;  %v3950_v52 = vmul.f32 %v7524_v51, %v13745_v7  ;;  %v3735_v3 = vmul.f32 0.2, %v3703_v44  ;;  %v3861_v57 = vsub.f32 %v3765_v54, %v13847_v23  ;;  %v13925_v7 = vld [vmem:[#allocation153_spill] sm:$0xff] }
 0x648   : > { %7535 = vpow2.f32 %v3917_v19  ;;  %v3864_v31 = vsub.f32 %v3768_v34, %v11107_v10  ;;  %v3969_v38 = vpack.c.bf16 %v3945_v35, %v3943_v63  ;;  %v3737_v62 = vmul.f32 0.2, %v3705_v14  ;;  %v13851_v19 = vld [vmem:[#allocation9_spill] sm:$0xff] }
 0x649   : > { %v7526_v36 = vpop.eup %7525  ;;  %7537 = vpow2.f32 %v3911_v59  ;;  %v3972_v13 = vpack.c.bf16 %v3950_v52, %v3948_v4  ;;  %v3866_v27 = vsub.f32 %v3770_v12, %v13848_v24  ;;  %v3915_v0 = vmul.f32 1.442695, %v3859_v55 }
 0x64a   : > { %v7528_v28 = vpop.eup %7527  ;;  %7539 = vpow2.f32 %v3921_v43  ;;  %v3925_v17 = vmul.f32 1.442695, %v3864_v31  ;;  %v3947_v16 = vmul.f32 %v7526_v36, %v13752_v21  ;;  %v3919_v41 = vmul.f32 1.442695, %v3861_v57  ;;  %v13854_v43 = vld [vmem:[#allocation31_spill] sm:$0xff]  ;;  %v13856_v57 = vld [vmem:[#allocation38_spill] sm:$0xff] }
 0x64b   : > { %v7530_v56 = vpop.eup %7529  ;;  %v3769_v50 = vmax.f32 %v3705_v14, %v3737_v62  ;;  %v3767_v26 = vmax.f32 %v3703_v44, %v3735_v3  ;;  %v3929_v8 = vmul.f32 1.442695, %v3866_v27  ;;  %7541 = vpow2.f32 %v3915_v0  ;;  %v13853_v14 = vld [vmem:[#allocation29_spill] sm:$0xff] }
 0x64c   : > { %v7532_v18 = vpop.eup %7531  ;;  %v3949_v60 = vmul.f32 %v7530_v56, %v13849_v22  ;;  %7543 = vpow2.f32 %v3925_v17  ;;  %v7952_v22 = vld [vmem:[%s8132_s9 + $0x60] sm:$0xff] }
 0x64d   : > { %4076 = vmatmul.mubr.bf16.gmra.mrb[72].mxu1 %v3967_v37  ;;  %v3952_v37 = vmul.f32 %v7528_v28, %v13753_v2  ;;  %v3954_v49 = vmul.f32 %v7532_v18, %v13850_v9  ;;  %7545 = vpow2.f32 %v3919_v41  ;;  %v3865_v39 = vsub.f32 %v3769_v50, %v13848_v24  ;;  %v13858_v24 = vld [vmem:[#allocation39_spill] sm:$0xff] }
 0x64e   : > { %4083 = vmatprep.mubr.bf16.mxu1 %v3970_v15  ;;  %v3863_v15 = vsub.f32 %v3767_v26, %v11107_v10  ;;  %v3971_v23 = vpack.c.bf16 %v3949_v60, %v3947_v16  ;;  %7547 = vpow2.f32 %v3929_v8  ;;  %v13852_v10 = vld [vmem:[#allocation30_spill] sm:$0xff]  ;;  %v13860_v50 = vld [vmem:[#allocation43_spill] sm:$0xff] }
 0x64f   : > { %v3974_v11 = vpack.c.bf16 %v3954_v49, %v3952_v37  ;;  %v3927_v59 = vmul.f32 1.442695, %v3865_v39  ;;  %v13859_v16 = vld [vmem:[#allocation42_spill] sm:$0xff] }
 0x650   : > { %v3923_v44 = vmul.f32 1.442695, %v3863_v15 }
 0x651   : > { %v7534_v25 = vpop.eup %7533 }
 0x652   : > { %v7536_v47 = vpop.eup %7535  ;;  %v3951_v63 = vmul.f32 %v7534_v25, %v13851_v19  ;;  %7549 = vpow2.f32 %v3923_v44 }
 0x653   : > { %v7538_v51 = vpop.eup %7537  ;;  %v3956_v54 = vmul.f32 %v7536_v47, %v13852_v10  ;;  %7551 = vpow2.f32 %v3927_v59  ;;  %v13922_v10 = vld [vmem:[#allocation112_spill] sm:$0xff] }
 0x654   : > { %v7540_v42 = vpop.eup %7539  ;;  %v3953_v4 = vmul.f32 %v7538_v51, %v13853_v14 }
 0x655   : > { %4084 = vmatmul.mubr.bf16.gmra.mrb[76].mxu1 %v3969_v38  ;;  %v3958_v12 = vmul.f32 %v7540_v42, %v13854_v43  ;;  %v7542_v35 = vpop.eup %7541  ;;  %v13855_v38 = vld [vmem:[#allocation35_spill] sm:$0xff] }
 0x656   : > { %4091 = vmatprep.mubr.bf16.mxu1 %v3972_v13  ;;  %v3973_v34 = vpack.c.bf16 %v3953_v4, %v3951_v63  ;;  %v7544_v52 = vpop.eup %7543  ;;  %v3955_v36 = vmul.f32 %v7542_v35, %v13855_v38  ;;  %v13857_v13 = vld [vmem:[#allocation36_spill] sm:$0xff]  ;;  %v11249_v4 = vpop.permute.xlu0 %4642  ;;  %v7949_v38 = vld [vmem:[%s8132_s9 + $0x40] sm:$0xff]  ;;  %v13923_v43 = vld [vmem:[#allocation155_spill] sm:$0xff] }
 0x657   : > { %v3976_v55 = vpack.c.bf16 %v3958_v12, %v3956_v54  ;;  %v7546_v3 = vpop.eup %7545  ;;  %v3960_v62 = vmul.f32 %v7544_v52, %v13856_v57  ;;  %v7948_v57 = vld [vmem:[%s8132_s9 + $0x48] sm:$0xff] }
 0x658   : > { %v7548_v31 = vpop.eup %7547  ;;  %v3957_v28 = vmul.f32 %v7546_v3, %v13857_v13 }
 0x659   : > { %v3962_v27 = vmul.f32 %v7548_v31, %v13858_v24 }
 0x65a   : > { %v3975_v56 = vpack.c.bf16 %v3957_v28, %v3955_v36 }
 0x65b   : > { %v3978_v18 = vpack.c.bf16 %v3962_v27, %v3960_v62 }
 0x65c   : > { %v7550_v0 = vpop.eup %7549 }
 0x65d   : > { %4092 = vmatmul.mubr.bf16.gmra.mrb[80].mxu1 %v3971_v23  ;;  %v7552_v17 = vpop.eup %7551  ;;  %v3959_v41 = vmul.f32 %v7550_v0, %v13859_v16  ;;  %v13918_v16 = vld [vmem:[#allocation11_spill] sm:$0xff] }
 0x65e   : > { %4099 = vmatprep.mubr.bf16.mxu1 %v3974_v11  ;;  %v3961_v26 = vmul.f32 %v7552_v17, %v13860_v50  ;;  %v11263_v17 = vpop.permute.xlu0 %4902 }
 0x65f   : > { %13869 = vst [vmem:[#allocation46_spill] sm:$0xff] %v11263_v17 }
 0x660   : > { %v3977_v37 = vpack.c.bf16 %v3961_v26, %v3959_v41 }
 0x665   : > { %4100 = vmatmul.mubr.bf16.gmra.mrb[84].mxu1 %v3973_v34 }
 0x666   : > { %4107 = vmatprep.mubr.bf16.mxu1 %v3976_v55 }
 0x66d   : > { %4108 = vmatmul.mubr.bf16.gmra.mrb[88].mxu1 %v3975_v56 }
 0x66e   : > { %4115 = vmatprep.mubr.bf16.mxu1 %v3978_v18 }
 0x675   : > { %4116 = vmatmul.mubr.bf16.gmra.mrb[92].mxu1 %v3977_v37 }
 0x710   : > { %v6695_v8 = vpop.f32.mrb[64].mxu1 }
 0x711   : > { %v6696_v60 = vpop.f32.mrb[65].mxu1 }
 0x712   : > { %v11237_v15 = vadd.f32 %v6696_v60, %v6695_v8  ;;  %v6698_v49 = vpop.f32.mrb[66].mxu1 }
 0x713   : > { %v6699_v23 = vpop.f32.mrb[67].mxu1 }
 0x714   : > { %13861 = vst [vmem:[#allocation185_spill] sm:$0xff] %v11237_v15  ;;  %7553 = vrcp.f32 %v11237_v15  ;;  %v11240_v25 = vadd.f32 %v6699_v23, %v6698_v49 }
 0x716   : > { %13862 = vst [vmem:[#allocation63_spill] sm:$0xff] %v11240_v25  ;;  %7555 = vrcp.f32 %v11240_v25 }
 0x718   : > { %v6701_v39 = vpop.f32.mrb[68].mxu1 }
 0x719   : > { %v6702_v11 = vpop.f32.mrb[69].mxu1 }
 0x71a   : > { %v11243_v47 = vadd.f32 %v6702_v11, %v6701_v39  ;;  %v6704_v51 = vpop.f32.mrb[70].mxu1  ;;  %v11271_v11 = vpop.permute.xlu0 %4918 }
 0x71b   : > { %v6705_v44 = vpop.f32.mrb[71].mxu1  ;;  %13872 = vst [vmem:[#allocation81_spill] sm:$0xff] %v11271_v11  ;;  %v7943_v11 = vld [vmem:[%s8132_s9 + $0x30] sm:$0xff] }
 0x71c   : > { %13863 = vst [vmem:[#allocation79_spill] sm:$0xff] %v11243_v47  ;;  %7557 = vrcp.f32 %v11243_v47  ;;  %v11246_v42 = vadd.f32 %v6705_v44, %v6704_v51 }
 0x71e   : > { %13864 = vst [vmem:[#allocation186_spill] sm:$0xff] %v11246_v42  ;;  %v7554_v63 = vpop.eup %7553  ;;  %7559 = vrcp.f32 %v11246_v42 }
 0x71f   : > { %4142 = vperm.xlu1 %6968, %v7554_v63  }
 0x720   : > { %v7556_v59 = vpop.eup %7555  ;;  %v6707_v54 = vpop.f32.mrb[72].mxu1 }
 0x721   : > { %v6708_v12 = vpop.f32.mrb[73].mxu1  ;;  %4147 = vperm.xlu0 %6990, %v7556_v59  }
 0x722   : > { %v11251_v34 = vadd.f32 %v6708_v12, %v6707_v54  ;;  %v6710_v35 = vpop.f32.mrb[74].mxu1 }
 0x723   : > { %v6711_v55 = vpop.f32.mrb[75].mxu1 }
 0x724   : > { %13865 = vst [vmem:[#allocation103_spill] sm:$0xff] %v11251_v34  ;;  %7561 = vrcp.f32 %v11251_v34  ;;  %v11254_v52 = vadd.f32 %v6711_v55, %v6710_v35 }
 0x726   : > { %13866 = vst [vmem:[#allocation61_spill] sm:$0xff] %v11254_v52  ;;  %v7558_v3 = vpop.eup %7557  ;;  %7563 = vrcp.f32 %v11254_v52 }
 0x727   : > { %4152 = vperm.xlu1 %6968, %v7558_v3   ;;  %v11279_v3 = vpop.permute.xlu0 %5042 }
 0x728   : > { %v6713_v31 = vpop.f32.mrb[76].mxu1  ;;  %v7560_v62 = vpop.eup %7559  ;;  %13875 = vst [vmem:[#allocation97_spill] sm:$0xff] %v11279_v3 }
 0x729   : > { %v6714_v36 = vpop.f32.mrb[77].mxu1 }
 0x72a   : > { %v11257_v28 = vadd.f32 %v6714_v36, %v6713_v31  ;;  %v6716_v27 = vpop.f32.mrb[78].mxu1 }
 0x72b   : > { %v6717_v56 = vpop.f32.mrb[79].mxu1  ;;  %4157 = vperm.xlu1 %6968, %v7560_v62  }
 0x72c   : > { %13867 = vst [vmem:[#allocation93_spill] sm:$0xff] %v11257_v28  ;;  %7565 = vrcp.f32 %v11257_v28  ;;  %v11260_v0 = vadd.f32 %v6717_v56, %v6716_v27 }
 0x72e   : > { %13868 = vst [vmem:[#allocation80_spill] sm:$0xff] %v11260_v0  ;;  %v7562_v18 = vpop.eup %7561  ;;  %7567 = vrcp.f32 %v11260_v0  ;;  %v13907_v0 = vld [vmem:[#allocation209_spill] sm:$0xff] }
 0x72f   : > { %4162 = vperm.xlu0 %6990, %v7562_v18  }
 0x730   : > { %v7564_v41 = vpop.eup %7563  ;;  %v6719_v26 = vpop.f32.mrb[80].mxu1 }
 0x731   : > { %v6720_v37 = vpop.f32.mrb[81].mxu1  ;;  %4167 = vperm.xlu1 %6968, %v7564_v41  }
 0x732   : > { %v11265_v8 = vadd.f32 %v6720_v37, %v6719_v26  ;;  %v6722_v60 = vpop.f32.mrb[82].mxu1  ;;  %v11287_v37 = vpop.permute.xlu0 %5046 }
 0x733   : > { %v6723_v49 = vpop.f32.mrb[83].mxu1  ;;  %13878 = vst [vmem:[#allocation110_spill] sm:$0xff] %v11287_v37 }
 0x734   : > { %13870 = vst [vmem:[#allocation105_spill] sm:$0xff] %v11265_v8  ;;  %7569 = vrcp.f32 %v11265_v8  ;;  %v11268_v23 = vadd.f32 %v6723_v49, %v6722_v60 }
 0x736   : > { %13871 = vst [vmem:[#allocation95_spill] sm:$0xff] %v11268_v23  ;;  %v7566_v39 = vpop.eup %7565  ;;  %7571 = vrcp.f32 %v11268_v23 }
 0x737   : > { %4172 = vperm.xlu0 %6990, %v7566_v39  }
 0x738   : > { %v7568_v51 = vpop.eup %7567  ;;  %v6725_v44 = vpop.f32.mrb[84].mxu1 }
 0x739   : > { %v6726_v63 = vpop.f32.mrb[85].mxu1  ;;  %4177 = vperm.xlu1 %6968, %v7568_v51  }
 0x73a   : > { %v11273_v59 = vadd.f32 %v6726_v63, %v6725_v44  ;;  %v6728_v54 = vpop.f32.mrb[86].mxu1 }
 0x73b   : > { %v6729_v12 = vpop.f32.mrb[87].mxu1 }
 0x73c   : > { %13873 = vst [vmem:[#allocation52_spill] sm:$0xff] %v11273_v59  ;;  %7573 = vrcp.f32 %v11273_v59  ;;  %v11276_v35 = vadd.f32 %v6729_v12, %v6728_v54  ;;  %v13902_v59 = vld [vmem:[#allocation205_spill] sm:$0xff] }
 0x73e   : > { %13874 = vst [vmem:[#allocation107_spill] sm:$0xff] %v11276_v35  ;;  %v7570_v55 = vpop.eup %7569  ;;  %7575 = vrcp.f32 %v11276_v35  ;;  %v13901_v35 = vmov 15  }
 0x73f   : > { %4182 = vperm.xlu0 %6990, %v7570_v55   ;;  %v11295_v55 = vpop.permute.xlu0 %5054 }
 0x740   : > { %v7572_v31 = vpop.eup %7571  ;;  %v6731_v36 = vpop.f32.mrb[88].mxu1  ;;  %13881 = vst [vmem:[#allocation77_spill] sm:$0xff] %v11295_v55 }
 0x741   : > { %v6732_v62 = vpop.f32.mrb[89].mxu1  ;;  %4187 = vperm.xlu1 %6968, %v7572_v31  }
 0x742   : > { %v11281_v27 = vadd.f32 %v6732_v62, %v6731_v36  ;;  %v6734_v56 = vpop.f32.mrb[90].mxu1 }
 0x743   : > { %v6735_v18 = vpop.f32.mrb[91].mxu1  ;;  %v11297_v62 = vpop.permute.xlu0 %5062 }
 0x744   : > { %13876 = vst [vmem:[#allocation82_spill] sm:$0xff] %v11281_v27  ;;  %7577 = vrcp.f32 %v11281_v27  ;;  %v11284_v41 = vadd.f32 %v6735_v18, %v6734_v56  ;;  %13882 = vst [vmem:[#allocation85_spill] sm:$0xff] %v11297_v62  ;;  %v13883_v18 = vmov 6   ;;  %v13900_v27 = vld [vmem:[#allocation208_spill] sm:$0xff] }
 0x746   : > { %13877 = vst [vmem:[#allocation76_spill] sm:$0xff] %v11284_v41  ;;  %v7574_v26 = vpop.eup %7573  ;;  %7579 = vrcp.f32 %v11284_v41 }
 0x747   : > { %4192 = vperm.xlu0 %6990, %v7574_v26   ;;  %v13884_v26 = vld [vmem:[#allocation163_spill] sm:$0xff] }
 0x748   : > { %v7576_v60 = vpop.eup %7575  ;;  %v6737_v49 = vpop.f32.mrb[92].mxu1 }
 0x749   : > { %v6738_v39 = vpop.f32.mrb[93].mxu1  ;;  %4197 = vperm.xlu1 %6968, %v7576_v60   ;;  %v13885_v60 = vld [vmem:[#allocation158_spill] sm:$0xff] }
 0x74a   : > { %v11289_v51 = vadd.f32 %v6738_v39, %v6737_v49  ;;  %v6740_v44 = vpop.f32.mrb[94].mxu1  ;;  %v13886_v49 = vld [vmem:[#allocation165_spill] sm:$0xff]  ;;  %v13887_v39 = vld [vmem:[#allocation166_spill] sm:$0xff] }
 0x74b   : > { %v6741_v63 = vpop.f32.mrb[95].mxu1 }
 0x74c   : > { %13879 = vst [vmem:[#allocation100_spill] sm:$0xff] %v11289_v51  ;;  %7581 = vrcp.f32 %v11289_v51  ;;  %v11292_v54 = vadd.f32 %v6741_v63, %v6740_v44  ;;  %v13888_v44 = vld [vmem:[#allocation201_spill] sm:$0xff]  ;;  %v13889_v63 = vld [vmem:[#allocation202_spill] sm:$0xff] }
 0x74e   : > { %13880 = vst [vmem:[#allocation83_spill] sm:$0xff] %v11292_v54  ;;  %v7578_v12 = vpop.eup %7577  ;;  %7583 = vrcp.f32 %v11292_v54  ;;  %v11316_v54 = vld [vmem:[%s8132_s9 + $0x58] sm:$0xff] }
 0x74f   : > { %4202 = vperm.xlu0 %6990, %v7578_v12   ;;  %v13890_v12 = vld [vmem:[#allocation203_spill] sm:$0xff] }
 0x750   : > { %v7580_v31 = vpop.eup %7579 }
 0x751   : > { %4207 = vperm.xlu1 %6968, %v7580_v31   ;;  %v13891_v31 = vld [vmem:[#allocation204_spill] sm:$0xff] }
 0x756   : > { %v7582_v36 = vpop.eup %7581 }
 0x757   : > { %4212 = vperm.xlu0 %6990, %v7582_v36   ;;  %v13892_v36 = vmov 14  }
 0x758   : > { %v7584_v56 = vpop.eup %7583 }
 0x759   : > { %4217 = vperm.xlu1 %6968, %v7584_v56   ;;  %v7929_v56 = vld [vmem:[%s8132_s9] sm:$0xff] }
 0x75d   : > { %6970 = vset.pattern.permute.xlu1 %v13883_v18  ;;  %v13893_v18 = vld [vmem:[#allocation197_spill] sm:$0xff] }
 0x75e   : > { %4241 = vperm.xlu1 %6970, %v13884_v26   ;;  %v13894_v26 = vld [vmem:[#allocation198_spill] sm:$0xff] }
 0x762   : > { %4245 = vperm.xlu1 %6970, %v13885_v60  }
 0x766   : > { %4253 = vperm.xlu1 %6970, %v13886_v49  }
 0x76a   : > { %4261 = vperm.xlu1 %6970, %v13887_v39   ;;  %v13895_v39 = vld [vmem:[#allocation199_spill] sm:$0xff] }
 0x76e   : > { %4269 = vperm.xlu1 %6970, %v13888_v44   ;;  %v13896_v44 = vld [vmem:[#allocation200_spill] sm:$0xff] }
 0x772   : > { %4277 = vperm.xlu1 %6970, %v13889_v63   ;;  %v11320_v63 = vld [vmem:[%s8132_s9 + $0x68] sm:$0xff] }
 0x776   : > { %4285 = vperm.xlu1 %6970, %v13890_v12   ;;  %v11324_v12 = vld [vmem:[%s8132_s9 + $0x78] sm:$0xff] }
 0x77a   : > { %4293 = vperm.xlu1 %6970, %v13891_v31   ;;  %v7933_v31 = vld [vmem:[%s12934_s2 + $0x8] sm:$0xff]  }
 0x77e   : > { %6971 = vset.pattern.permute.xlu1 %v13892_v36  ;;  %v13897_v36 = vmov 7  }
 0x77f   : > { %4405 = vperm.xlu1 %6971, %v7929_v56  }
 0x783   : > { %4413 = vperm.xlu1 %6971, %v13885_v60  }
 0x787   : > { %4417 = vperm.xlu1 %6971, %v13893_v18   ;;  %v7934_v18 = vld [vmem:[%s12934_s2 + $0x18] sm:$0xff]  }
 0x78b   : > { %4425 = vperm.xlu1 %6971, %v13894_v26   ;;  %v7935_v26 = vld [vmem:[%s12934_s2 + $0x28] sm:$0xff]  }
 0x78f   : > { %4433 = vperm.xlu1 %6971, %v13895_v39   ;;  %v11343_v39 = vld [vmem:[%s12934_s2 + $0x38] sm:$0xff]  }
 0x793   : > { %4441 = vperm.xlu1 %6971, %v13896_v44   ;;  %v7937_v44 = vld [vmem:[%s12934_s2 + $0x48] sm:$0xff]  }
 0x797   : > { %4449 = vperm.xlu1 %6971, %v11316_v54  }
 0x79b   : > { %4457 = vperm.xlu1 %6971, %v11320_v63  }
 0x79e   : > { %v11351_v51 = vpop.permute.xlu1 %4142 }
 0x79f   : > { %4465 = vperm.xlu1 %6971, %v11324_v12   ;;  %13898 = vst [vmem:[#allocation78_spill] sm:$0xff] %v11351_v51  ;;  %v13916_v51 = vld [vmem:[#allocation123_spill] sm:$0xff] }
 0x7a3   : > { %4614 = vrot.lane.b32.xlu1 %v7933_v31, %s8037_s12 }
 0x7a4   : > { %6973 = vset.pattern.permute.xlu1 %v13897_v36 }
 0x7a6   : > { %v11353_v41 = vpop.permute.xlu1 %4152 }
 0x7a7   : > { %4618 = vrot.lane.b32.xlu1 %v7934_v18, %s8037_s12  ;;  %13899 = vst [vmem:[#allocation87_spill] sm:$0xff] %v11353_v41 }
 0x7aa   : > { %v11360_v23 = vpop.permute.xlu1 %4157 }
 0x7ab   : > { %4622 = vrot.lane.b32.xlu1 %v7935_v26, %s8037_s12  ;;  %13903 = vst [vmem:[#allocation90_spill] sm:$0xff] %v11360_v23  ;;  %v13915_v23 = vld [vmem:[#allocation111_spill] sm:$0xff] }
 0x7af   : > { %4626 = vrot.lane.b32.xlu1 %v11343_v39, %s8037_s12 }
 0x7b0   : > { %v11362_v8 = vpop.permute.xlu1 %4167 }
 0x7b1   : > { %13904 = vst [vmem:[#allocation163_spill] sm:$0xff] %v11362_v8  ;;  %v7941_v8 = vld [vmem:[%s12934_s2 + $0x68] sm:$0xff]  }
 0x7b3   : > { %4630 = vrot.lane.b32.xlu1 %v7937_v44, %s8037_s12  ;;  %s8043_s12 = smov 24  }
 0x7b7   : > { %4870 = vperm.xlu1 %6973, %v7929_v56  }
 0x7b8   : > { %v11365_v44 = vpop.permute.xlu1 %4177 }
 0x7b9   : > { %13905 = vst [vmem:[#allocation158_spill] sm:$0xff] %v11365_v44 }
 0x7bb   : > { %5261 = vrot.lane.b32.xlu1 %v13900_v27, %s8039_s11 }
 0x7bc   : > { %6975 = vset.pattern.permute.xlu1 %v13901_v35 }
 0x7bf   : > { %5245 = vrot.lane.b32.xlu1 %v13902_v59, %s8039_s11 }
 0x7c0   : > { %v11369_v27 = vpop.permute.xlu1 %4187 }
 0x7c1   : > { %13906 = vst [vmem:[#allocation165_spill] sm:$0xff] %v11369_v27  ;;  %v7939_v27 = vld [vmem:[%s8132_s9 + $0x18] sm:$0xff] }
 0x7c3   : > { %5038 = vperm.xlu1 %6975, %v7929_v56   ;;  %v13909_v56 = vld [vmem:[#allocation206_spill] sm:$0xff] }
 0x7c7   : > { %5247 = vrot.lane.b32.xlu1 %v7933_v31, %s8039_s11  ;;  %v7938_v31 = vld [vmem:[%s12934_s2 + $0x58] sm:$0xff]  }
 0x7c8   : > { %6976 = vset.pattern.permute.xlu1 %v13897_v36  ;;  %v11373_v59 = vpop.permute.xlu1 %4197 }
 0x7c9   : > { %13908 = vst [vmem:[#allocation166_spill] sm:$0xff] %v11373_v59 }
 0x7cb   : > { %4878 = vperm.xlu1 %6976, %v13885_v60  }
 0x7cf   : > { %5265 = vrot.lane.b32.xlu1 %v13907_v0, %s8039_s11 }
 0x7d0   : > { %6977 = vset.pattern.permute.xlu1 %v13901_v35  ;;  %v11378_v28 = vpop.permute.xlu1 %4207 }
 0x7d1   : > { %13910 = vst [vmem:[#allocation201_spill] sm:$0xff] %v11378_v28  ;;  %v13912_v28 = vld [vmem:[#allocation8_spill] sm:$0xff] }
 0x7d2   : > { %v13258_v44 = vsub.s32 6, %v13912_v28 }
 0x7d3   : > { %5249 = vrot.lane.b32.xlu1 %v13909_v56, %s8039_s11 }
 0x7d7   : > { %5267 = vrot.lane.b32.xlu1 %v7938_v31, %s8039_s11  ;;  %v13913_v31 = vld [vmem:[#allocation210_spill] sm:$0xff] }
 0x7d8   : > { %v11384_v60 = vpop.permute.xlu1 %4217 }
 0x7d9   : > { %13911 = vst [vmem:[#allocation202_spill] sm:$0xff] %v11384_v60  ;;  %v13914_v60 = vld [vmem:[#allocation207_spill] sm:$0xff] }
 0x7db   : > { %5050 = vperm.xlu1 %6977, %v7939_v27  }
 0x7dd   : > { %v11387_v0 = vpop.permute.xlu1 %4241 }
 0x7df   : > { %5251 = vrot.lane.b32.xlu1 %v7934_v18, %s8039_s11  ;;  %v11405_v18 = vld [vmem:[%s12932_s0 + $0x8] sm:$0xff] }
 0x7e0   : > { %6978 = vset.pattern.permute.xlu1 %v13897_v36 }
 0x7e1   : > { %v11391_v59 = vpop.permute.xlu1 %4245 }
 0x7e3   : > { %4886 = vperm.xlu1 %6978, %v13886_v49   ;;  %v11410_v49 = vrot.slane %v11405_v18, %v13258_v44  ;;  %v7942_v44 = vld [vmem:[%s8132_s9 + $0x28] sm:$0xff] }
 0x7e5   : > { %v11394_v56 = vpop.permute.xlu1 %4253 }
 0x7e7   : > { %5269 = vrot.lane.b32.xlu1 %v13913_v31, %s8039_s11  ;;  %v4311_v31 = vadd.f32 %v11410_v49, %v11387_v0 }
 0x7e8   : > { %6979 = vset.pattern.permute.xlu1 %v13901_v35 }
 0x7e9   : > { %v11400_v27 = vpop.permute.xlu1 %4261  ;;  %v4343_v42 = vmul.f32 0.2, %v4311_v31 }
 0x7eb   : > { %5253 = vrot.lane.b32.xlu1 %v13914_v60, %s8039_s11  ;;  %v4309_v60 = vadd.f32 %v11410_v49, %v13915_v23  ;;  %v4375_v41 = vmax.f32 %v4311_v31, %v4343_v42  ;;  %v7944_v42 = vld [vmem:[%s12934_s2 + $0x70] sm:$0xff]  }
 0x7ed   : > { %v11414_v52 = vpop.permute.xlu1 %4269  ;;  %v4341_v25 = vmul.f32 0.2, %v4309_v60 }
 0x7ef   : > { %5271 = vrot.lane.b32.xlu1 %v7941_v8, %s8039_s11  ;;  %v4471_v8 = vsub.f32 %v4375_v41, %v13916_v51  ;;  %v4373_v17 = vmax.f32 %v4309_v60, %v4341_v25  ;;  %v7945_v25 = vld [vmem:[%s12934_s2 + $0x30] sm:$0xff]   ;;  %v7947_v60 = vld [vmem:[%s8132_s9 + $0x38] sm:$0xff] }
 0x7f1   : > { %v11422_v34 = vpop.permute.xlu1 %4277  ;;  %v4506_v62 = vmul.f32 1.442695, %v4471_v8 }
 0x7f3   : > { %5058 = vperm.xlu1 %6979, %v7942_v44   ;;  %7585 = vpow2.f32 %v4506_v62 }
 0x7f5   : > { %v11427_v47 = vpop.permute.xlu1 %4285 }
 0x7f7   : > { %5255 = vrot.lane.b32.xlu1 %v7935_v26, %s8039_s11 }
 0x7f8   : > { %6980 = vset.pattern.permute.xlu1 %v13897_v36 }
 0x7f9   : > { %v11431_v15 = vpop.permute.xlu1 %4293 }
 0x7fb   : > { %4894 = vperm.xlu1 %6980, %v7943_v11  }
 0x7fd   : > { %v7586_v8 = vpop.eup %7585 }
 0x7fe   : > { %v11435_v44 = vpop.permute.xlu1 %4405  ;;  %v4567_v55 = vmul.f32 %v7586_v8, %v13918_v16 }
 0x7ff   : > { %5273 = vrot.lane.b32.xlu1 %v7944_v42, %s8039_s11  ;;  %v4469_v26 = vsub.f32 %v4373_v17, %v11435_v44  ;;  %v7946_v17 = vld [vmem:[%s12934_s2 + $0x78] sm:$0xff]  }
 0x800   : > { %6981 = vset.pattern.permute.xlu1 %v13901_v35 }
 0x801   : > { %v4502_v31 = vmul.f32 1.442695, %v4469_v26 }
 0x802   : > { %v11443_v41 = vpop.permute.xlu1 %4413 }
 0x803   : > { %5257 = vrot.lane.b32.xlu1 %v7945_v25, %s8039_s11  ;;  %7587 = vpow2.f32 %v4502_v31  ;;  %v13917_v31 = vld [vmem:[#allocation10_spill] sm:$0xff] }
 0x806   : > { %v11449_v11 = vpop.permute.xlu1 %4417 }
 0x807   : > { %5275 = vrot.lane.b32.xlu1 %v7946_v17, %s8039_s11 }
 0x80a   : > { %v11455_v62 = vpop.permute.xlu1 %4425 }
 0x80b   : > { %5066 = vperm.xlu1 %6981, %v7947_v60  }
 0x80d   : > { %v7588_v42 = vpop.eup %7587 }
 0x80e   : > { %v11458_v26 = vpop.permute.xlu1 %4433  ;;  %v4565_v25 = vmul.f32 %v7588_v42, %v13917_v31 }
 0x80f   : > { %5259 = vrot.lane.b32.xlu1 %v11343_v39, %s8039_s11  ;;  %v7950_v39 = vld [vmem:[%s8132_s9 + $0x50] sm:$0xff] }
 0x810   : > { %6982 = vset.pattern.permute.xlu1 %v13897_v36  ;;  %v4597_v17 = vpack.c.bf16 %v4567_v55, %v4565_v25 }
 0x812   : > { %v11465_v50 = vpop.permute.xlu1 %4441  ;;  %4692 = vmatprep.mubr.bf16.mxu0 %v4597_v17  ;;  %v13269_v17 = vsub.s32 7, %v13912_v28 }
 0x813   : > { %4906 = vperm.xlu1 %6982, %v7948_v57   ;;  %v11483_v57 = vld [vmem:[%s12932_s0] sm:$0xff] }
 0x814   : > { %13920 = vst [vmem:[#allocation204_spill] sm:$0xff] %v11483_v57 }
 0x816   : > { %v11468_v60 = vpop.permute.xlu1 %4449 }
 0x817   : > { %6983 = vset.pattern.permute.xlu1 %v13901_v35 }
 0x818   : > { %5070 = vperm.xlu1 %6983, %v7949_v38   ;;  %v13921_v38 = vsub.s32 6, %v13912_v28  ;;  %v4317_v28 = vadd.f32 %v11410_v49, %v11394_v56 }
 0x81a   : > { %v11472_v24 = vpop.permute.xlu1 %4457  ;;  %v11488_v42 = vrot.slane %v11483_v57, %v13921_v38  ;;  %v4315_v38 = vadd.f32 %v11410_v49, %v13922_v10  ;;  %v4319_v57 = vadd.f32 %v11410_v49, %v13924_v46 }
 0x81c   : > { %6984 = vset.pattern.permute.xlu1 %v13897_v36  ;;  %v4310_v37 = vadd.f32 %v11488_v42, %v11387_v0  ;;  %v4313_v0 = vadd.f32 %v11410_v49, %v11391_v59  ;;  %v4347_v21 = vmul.f32 0.2, %v4315_v38 }
 0x81d   : > { %4910 = vperm.xlu1 %6984, %v7950_v39   ;;  %v4308_v39 = vadd.f32 %v11488_v42, %v13915_v23 }
 0x81e   : > { %v11476_v8 = vpop.permute.xlu1 %4465  ;;  %v4342_v14 = vmul.f32 0.2, %v4310_v37  ;;  %v4379_v1 = vmax.f32 %v4315_v38, %v4347_v21  ;;  %v4351_v38 = vmul.f32 0.2, %v4319_v57 }
 0x81f   : > { %13919 = vst [vmem:[#allocation203_spill] sm:$0xff] %v11476_v8  ;;  %v4340_v19 = vmul.f32 0.2, %v4308_v39 }
 0x820   : > { %v4374_v8 = vmax.f32 %v4310_v37, %v4342_v14  ;;  %v4475_v14 = vsub.f32 %v4379_v1, %v11449_v11  ;;  %v7953_v37 = vld [vmem:[%s8132_s9 + $0x70] sm:$0xff]  ;;  %v13927_v1 = vld [vmem:[#allocation145_spill] sm:$0xff]  ;;  %s8041_s9 = smov 8  }
 0x821   : > { %4914 = vperm.xlu1 %6984, %v11316_v54   ;;  %v4372_v9 = vmax.f32 %v4308_v39, %v4340_v19  ;;  %v4312_v19 = vadd.f32 %v11488_v42, %v11391_v59  ;;  %v4349_v59 = vmul.f32 0.2, %v4317_v28 }
 0x822   : > { %v4615_v55 = vpop.permute.xlu1 %4614  ;;  %v4470_v21 = vsub.f32 %v4374_v8, %v13916_v51  ;;  %v13928_v8 = vld [vmem:[#allocation25_spill] sm:$0xff] }
 0x825   : > { %6985 = vset.pattern.permute.xlu1 %v13901_v35 }
 0x826   : > { %5082 = vperm.xlu1 %6985, %v11316_v54   ;;  %v11491_v25 = vpop.permute.xlu1 %4618  ;;  %v11506_v54 = vrot.slane %v11405_v18, %v13269_v17  ;;  %v4345_v17 = vmul.f32 0.2, %v4313_v0 }
 0x828   : > { %v4944_v23 = vadd.f32 %v11506_v54, %v13923_v43 }
 0x82a   : > { %6987 = vset.pattern.permute.xlu1 %v13897_v36  ;;  %v11499_v13 = vpop.permute.xlu1 %4622  ;;  %v4976_v18 = vmul.f32 0.2, %v4944_v23 }
 0x82b   : > { %4922 = vperm.xlu1 %6987, %v11320_v63   ;;  %v4314_v63 = vadd.f32 %v11488_v42, %v13922_v10  ;;  %v4377_v10 = vmax.f32 %v4313_v0, %v4345_v17 }
 0x82c   : > { %v5008_v39 = vmax.f32 %v4944_v23, %v4976_v18  ;;  %v13929_v23 = vld [vmem:[#allocation114_spill] sm:$0xff]  ;;  %v4504_v18 = vmul.f32 1.442695, %v4470_v21 }
 0x82d   : > { %v4346_v6 = vmul.f32 0.2, %v4314_v63  ;;  %v4323_v0 = vadd.f32 %v11410_v49, %v13929_v23 }
 0x82e   : > { %v11513_v2 = vpop.permute.xlu1 %4626  ;;  %v5104_v17 = vsub.f32 %v5008_v39, %v11279_v3  ;;  %v11550_v39 = vadd.f32 %v11410_v49, %v11400_v27 }
 0x82f   : > { %6988 = vset.pattern.permute.xlu1 %v13901_v35 }
 0x830   : > { %5086 = vperm.xlu1 %6988, %v7952_v22   ;;  %v4468_v22 = vsub.f32 %v4372_v9, %v11435_v44  ;;  %v4473_v9 = vsub.f32 %v4377_v10, %v11443_v41  ;;  %v4344_v44 = vmul.f32 0.2, %v4312_v19  ;;  %v5139_v21 = vmul.f32 1.442695, %v5104_v17  ;;  %v13934_v17 = vld [vmem:[#allocation23_spill] sm:$0xff] }
 0x832   : > { %v4631_v43 = vpop.permute.xlu1 %4630 }
 0x833   : > { %6745 = vmatprep.subr.bf16.mxu0 %v4631_v43 }
 0x834   : > { %6989 = vset.pattern.permute.xlu1 %v13897_v36  ;;  %6746 = vmatpush3.bf16.msra.mxu0 %v4615_v55  ;;  %v11536_v36 = vadd.f32 %v11488_v42, %v13924_v46  ;;  %v4500_v55 = vmul.f32 1.442695, %v4468_v22  ;;  %v4316_v46 = vadd.f32 %v11488_v42, %v11394_v56  ;;  %v4378_v22 = vmax.f32 %v4314_v63, %v4346_v6  ;;  %v13930_v56 = vld [vmem:[#allocation48_spill] sm:$0xff] }
 0x835   : > { %4926 = vperm.xlu1 %6989, %v7953_v37   ;;  %6747 = vmatprep.subr.bf16.mxu0 %v13925_v7  ;;  %v4514_v7 = vmul.f32 1.442695, %v4475_v14  ;;  %v4381_v37 = vmax.f32 %v4317_v28, %v4349_v59  ;;  %v4510_v14 = vmul.f32 1.442695, %v4473_v9  ;;  %v4355_v63 = vmul.f32 0.2, %v4323_v0 }
 0x836   : > { %v11531_v43 = vpop.permute.xlu1 %4870  ;;  %v4350_v3 = vmul.f32 0.2, %v11536_v36  ;;  %7589 = vpow2.f32 %v4500_v55  ;;  %v11564_v9 = vadd.f32 %v11488_v42, %v13929_v23 }
 0x837   : > { %13926 = vst [vmem:[#allocation197_spill] sm:$0xff] %v11531_v43  ;;  %v4942_v51 = vadd.f32 %v11506_v54, %v11531_v43  ;;  %v4474_v43 = vsub.f32 %v4378_v22, %v11449_v11  ;;  %7591 = vpow2.f32 %v4514_v7  ;;  %v13931_v11 = vld [vmem:[#allocation125_spill] sm:$0xff]  ;;  %v4320_v7 = vadd.f32 %v11488_v42, %v11400_v27  ;;  %v13935_v22 = vld [vmem:[#allocation192_spill] sm:$0xff] }
 0x838   : > { %6748 = vmatpush3.bf16.msra.mxu0 %v13927_v1  ;;  %v4383_v1 = vmax.f32 %v4319_v57, %v4351_v38  ;;  %7593 = vpow2.f32 %v4504_v18  ;;  %v4348_v57 = vmul.f32 0.2, %v4316_v46 }
 0x839   : > { %4930 = vperm.xlu1 %6989, %v11324_v12   ;;  %6749 = vmatprep.subr.bf16.mxu0 %v13928_v8  ;;  %v4376_v8 = vmax.f32 %v4312_v19, %v4344_v44  ;;  %v4974_v28 = vmul.f32 0.2, %v4942_v51  ;;  %v4477_v19 = vsub.f32 %v4381_v37, %v13931_v11  ;;  %7595 = vpow2.f32 %v4510_v14 }
 0x83a   : > { %v5262_v10 = vpop.permute.xlu1 %5261  ;;  %v4479_v6 = vsub.f32 %v4383_v1, %v11455_v62  ;;  %v4512_v55 = vmul.f32 1.442695, %v4474_v43  ;;  %7597 = vpow2.f32 %v5139_v21  ;;  %v4382_v14 = vmax.f32 %v11536_v36, %v4350_v3 }
 0x83b   : > { %6807 = vmatprep.subr.bf16.mxu1 %v5262_v10  ;;  %v4472_v38 = vsub.f32 %v4376_v8, %v11443_v41  ;;  %v5006_v23 = vmax.f32 %v4942_v51, %v4974_v28  ;;  %v4380_v10 = vmax.f32 %v4316_v46, %v4348_v57  ;;  %v4387_v1 = vmax.f32 %v4323_v0, %v4355_v63 }
 0x83c   : > { %6750 = vmatpush3.bf16.msra.mxu0 %v11491_v25  ;;  %v4353_v25 = vmul.f32 0.2, %v11550_v39  ;;  %v4522_v18 = vmul.f32 1.442695, %v4479_v6  ;;  %v13936_v43 = vmov 8   ;;  %v11586_v21 = vadd.f32 %v11410_v49, %v11414_v52  ;;  %v13937_v6 = vld [vmem:[#allocation195_spill] sm:$0xff] }
 0x83d   : > { %6991 = vset.pattern.permute.xlu1 %v13901_v35  ;;  %6751 = vmatprep.subr.bf16.mxu0 %v13930_v56  ;;  %v13932_v35 = vld [vmem:[#allocation115_spill] sm:$0xff]  ;;  %v4508_v37 = vmul.f32 1.442695, %v4472_v38  ;;  %v4518_v56 = vmul.f32 1.442695, %v4477_v19  ;;  %7599 = vpow2.f32 %v4512_v55  ;;  %v4478_v46 = vsub.f32 %v4382_v14, %v11455_v62  ;;  %v13939_v55 = vld [vmem:[#allocation116_spill] sm:$0xff] }
 0x83e   : > { %v5246_v59 = vpop.permute.xlu1 %5245  ;;  %5098 = vperm.xlu1 %6991, %v11324_v12   ;;  %v11568_v44 = vadd.f32 %v11488_v42, %v13932_v35  ;;  %v11572_v41 = vadd.f32 %v11410_v49, %v13932_v35  ;;  %v13933_v12 = vld [vmem:[#allocation148_spill] sm:$0xff]  ;;  %v4354_v51 = vmul.f32 0.2, %v11564_v9  ;;  %v4352_v3 = vmul.f32 0.2, %v4320_v7 }
 0x83f   : > { %6808 = vmatpush3.bf16.msra.mxu1 %v5246_v59  ;;  %v4385_v59 = vmax.f32 %v11550_v39, %v4353_v25  ;;  %7601 = vpow2.f32 %v4522_v18  ;;  %v4483_v36 = vsub.f32 %v4387_v1, %v11458_v26  ;;  %v4476_v63 = vsub.f32 %v4380_v10, %v13931_v11  ;;  %v13940_v18 = vld [vmem:[#allocation150_spill] sm:$0xff] }
 0x840   : > { %6752 = vmatpush3.bf16.msra.mxu0 %v13933_v12  ;;  %6809 = vmatprep.subr.bf16.mxu1 %v13934_v17  ;;  %v7590_v39 = vpop.eup %7589  ;;  %v11595_v28 = vmul.f32 0.2, %v11568_v44  ;;  %7603 = vpow2.f32 %v4508_v37  ;;  %v4359_v62 = vmul.f32 0.2, %v11572_v41  ;;  %v4357_v25 = vmul.f32 0.2, %v11586_v21 }
 0x841   : > { %6753 = vmatprep.subr.bf16.mxu0 %v13935_v22  ;;  %v7592_v38 = vpop.eup %7591  ;;  %7605 = vpow2.f32 %v4518_v56  ;;  %v11603_v12 = vadd.f32 %v11488_v42, %v13939_v55  ;;  %v11607_v17 = vadd.f32 %v11410_v49, %v13939_v55  ;;  %v4520_v11 = vmul.f32 1.442695, %v4478_v46 }
 0x842   : > { %v11580_v8 = vpop.permute.xlu1 %5038  ;;  %6992 = vset.pattern.permute.xlu1 %v13936_v43  ;;  %v7594_v35 = vpop.eup %7593  ;;  %v4384_v22 = vmax.f32 %v4320_v7, %v4352_v3  ;;  %v4386_v10 = vmax.f32 %v11564_v9, %v4354_v51  ;;  %v4530_v37 = vmul.f32 1.442695, %v4483_v36  ;;  %v4564_v14 = vmul.f32 %v7590_v39, %v13548_v29 }
 0x843   : > { %v5102_v27 = vsub.f32 %v5006_v23, %v11580_v8  ;;  %v7596_v23 = vpop.eup %7595  ;;  %v4516_v1 = vmul.f32 1.442695, %v4476_v63  ;;  %v11615_v43 = vadd.f32 %v11488_v42, %v11414_v52  ;;  %v11619_v56 = vadd.f32 %v11410_v49, %v11422_v34 }
 0x844   : > { %6754 = vmatpush3.bf16.msra.mxu0 %v11499_v13  ;;  %v13938_v13 = vld [vmem:[#allocation127_spill] sm:$0xff]  ;;  %v4571_v7 = vmul.f32 %v7592_v38, %v13549_v30  ;;  %v4389_v51 = vmax.f32 %v11586_v21, %v4357_v25  ;;  %v4566_v46 = vmul.f32 %v7594_v35, %v13545_v61  ;;  %v4363_v3 = vmul.f32 0.2, %v11607_v17  ;;  %v13942_v25 = vld [vmem:[#allocation117_spill] sm:$0xff] }
 0x845   : > { %v5135_v0 = vmul.f32 1.442695, %v5102_v27  ;;  %6755 = vmatprep.subr.bf16.mxu0 %v13937_v6  ;;  %v4481_v19 = vsub.f32 %v4385_v59, %v13938_v13  ;;  %v7598_v27 = vpop.eup %7597  ;;  %v4482_v52 = vsub.f32 %v4386_v10, %v11458_v26  ;;  %v4569_v36 = vmul.f32 %v7596_v23, %v13735_v32 }
 0x846   : > { %v5248_v57 = vpop.permute.xlu1 %5247  ;;  %v4596_v39 = vpack.c.bf16 %v4566_v46, %v4564_v14  ;;  %v4361_v63 = vmul.f32 0.2, %v11619_v56  ;;  %v11636_v26 = vmul.f32 0.2, %v11603_v12  ;;  %v11641_v35 = vadd.f32 %v11410_v49, %v13942_v25 }
 0x847   : > { %6810 = vmatpush3.bf16.msra.mxu1 %v5248_v57  ;;  %7607 = vpow2.f32 %v5135_v0  ;;  %v4526_v9 = vmul.f32 1.442695, %v4481_v19  ;;  %v4480_v0 = vsub.f32 %v4384_v22, %v13938_v13  ;;  %v7600_v21 = vpop.eup %7599  ;;  %v4599_v38 = vpack.c.bf16 %v4571_v7, %v4569_v36 }
 0x848   : > { %6756 = vmatpush3.bf16.msra.mxu0 %v13940_v18  ;;  %7609 = vpow2.f32 %v4520_v11  ;;  %v4528_v55 = vmul.f32 1.442695, %v4482_v52  ;;  %v4390_v11 = vmax.f32 %v11568_v44, %v11595_v28  ;;  %v4395_v18 = vmax.f32 %v11607_v17, %v4363_v3 }
 0x849   : > { %6757 = vmatprep.subr.bf16.mxu0 %v11249_v4  ;;  %v4391_v4 = vmax.f32 %v11572_v41, %v4359_v62  ;;  %7611 = vpow2.f32 %v4530_v37  ;;  %v4356_v41 = vmul.f32 0.2, %v11615_v43  ;;  %v7602_v62 = vpop.eup %7601  ;;  %v4524_v22 = vmul.f32 1.442695, %v4480_v0 }
 0x84a   : > { %v11621_v59 = vpop.permute.xlu1 %4878  ;;  %7613 = vpow2.f32 %v4516_v1  ;;  %v7604_v13 = vpop.eup %7603  ;;  %v4570_v37 = vmul.f32 %v7600_v21, %v13551_v5  ;;  %v5200_v14 = vmul.f32 %v7598_v27, %v13918_v16  ;;  %v4575_v44 = vmul.f32 %v7602_v62, %v13552_v20  ;;  %v13944_v62 = vld [vmem:[#allocation120_spill] sm:$0xff] }
 0x84b   : > { %v4487_v6 = vsub.f32 %v4391_v4, %v11465_v50  ;;  %7615 = vpow2.f32 %v4526_v9  ;;  %v7606_v23 = vpop.eup %7605  ;;  %v4388_v7 = vmax.f32 %v11615_v43, %v4356_v41  ;;  %v4328_v9 = vadd.f32 %v11488_v42, %v11422_v34  ;;  %v13943_v41 = vld [vmem:[#allocation133_spill] sm:$0xff] }
 0x84c   : > { %6758 = vmatpush3.bf16.msra.mxu0 %v11513_v2  ;;  %v13941_v2 = vld [vmem:[#allocation130_spill] sm:$0xff]  ;;  %v4333_v17 = vadd.f32 %v11410_v49, %v11427_v47  ;;  %v4568_v46 = vmul.f32 %v7604_v13, %v13737_v58  ;;  %v4367_v27 = vmul.f32 0.2, %v11641_v35  ;;  %7617 = vpow2.f32 %v4528_v55 }
 0x84d   : > { %v4485_v19 = vsub.f32 %v4389_v51, %v13941_v2  ;;  %v4538_v10 = vmul.f32 1.442695, %v4487_v6  ;;  %v4393_v51 = vmax.f32 %v11619_v56, %v4361_v63  ;;  %v4486_v43 = vsub.f32 %v4390_v11, %v11465_v50 }
 0x84e   : > { %v5266_v57 = vpop.permute.xlu1 %5265  ;;  %v4573_v34 = vmul.f32 %v7606_v23, %v13738_v48  ;;  %v4491_v56 = vsub.f32 %v4395_v18, %v11468_v60  ;;  %v4598_v3 = vpack.c.bf16 %v4570_v37, %v4568_v46  ;;  %v4484_v0 = vsub.f32 %v4388_v7, %v13941_v2 }
 0x84f   : > { %4693 = vmatmul.mubr.bf16.vlgmr.msra.gmra.mrb[96].mxu0 %v4596_v39  ;;  %6811 = vmatprep.subr.bf16.mxu1 %v5266_v57  ;;  %v4534_v28 = vmul.f32 1.442695, %v4485_v19  ;;  %7619 = vpow2.f32 %v4538_v10  ;;  %v4360_v6 = vmul.f32 0.2, %v4328_v9  ;;  %v4489_v63 = vsub.f32 %v4393_v51, %v13943_v41 }
 0x850   : > { %4700 = vmatprep.mubr.bf16.mxu0 %v4599_v38  ;;  %7621 = vpow2.f32 %v4524_v22  ;;  %v4601_v21 = vpack.c.bf16 %v4575_v44, %v4573_v34  ;;  %v4365_v57 = vmul.f32 0.2, %v4333_v17  ;;  %v4334_v38 = vadd.f32 %v11488_v42, %v13942_v25 }
 0x851   : > { %v7608_v1 = vpop.eup %7607  ;;  %7623 = vpow2.f32 %v4534_v28  ;;  %v4339_v19 = vadd.f32 %v11410_v49, %v13944_v62  ;;  %v4536_v13 = vmul.f32 1.442695, %v4486_v43  ;;  %v4394_v55 = vmax.f32 %v11603_v12, %v11636_v26  ;;  %v13945_v43 = vld [vmem:[#allocation135_spill] sm:$0xff] }
 0x852   : > { %v5250_v4 = vpop.permute.xlu1 %5249  ;;  %v5198_v16 = vmul.f32 %v7608_v1, %v13917_v31  ;;  %v7610_v36 = vpop.eup %7609  ;;  %v4546_v11 = vmul.f32 1.442695, %v4491_v56  ;;  %v4399_v18 = vmax.f32 %v11641_v35, %v4367_v27  ;;  %v4532_v22 = vmul.f32 1.442695, %v4484_v0 }
 0x853   : > { %6812 = vmatpush3.bf16.msra.mxu1 %v5250_v4  ;;  %v7612_v31 = vpop.eup %7611  ;;  %v4574_v23 = vmul.f32 %v7610_v36, %v13740_v33  ;;  %v4392_v10 = vmax.f32 %v4328_v9, %v4360_v6  ;;  %v4332_v25 = vadd.f32 %v11488_v42, %v11427_v47  ;;  %v4542_v1 = vmul.f32 1.442695, %v4489_v63 }
 0x854   : > { %v5230_v52 = vpack.c.bf16 %v5200_v14, %v5198_v16  ;;  %v7614_v50 = vpop.eup %7613  ;;  %v4579_v14 = vmul.f32 %v7612_v31, %v13741_v53  ;;  %v4397_v7 = vmax.f32 %v4333_v17, %v4365_v57  ;;  %v4337_v51 = vadd.f32 %v11410_v49, %v11431_v15 }
 0x855   : > { %v7616_v2 = vpop.eup %7615  ;;  %v4572_v12 = vmul.f32 %v7614_v50, %v13493_v45  ;;  %7625 = vpow2.f32 %v4536_v13  ;;  %v4490_v26 = vsub.f32 %v4394_v55, %v11468_v60  ;;  %v4366_v9 = vmul.f32 0.2, %v4334_v38  ;;  %v13947_v50 = vld [vmem:[#allocation6_spill] sm:$0xff] }
 0x856   : > { %v5268_v39 = vpop.permute.xlu1 %5267  ;;  %5325 = vmatprep.mubr.bf16.mxu1 %v5230_v52  ;;  %v4577_v35 = vmul.f32 %v7616_v2, %v13742_v40  ;;  %7627 = vpow2.f32 %v4546_v11  ;;  %v4495_v47 = vsub.f32 %v4399_v18, %v11472_v24  ;;  %v7618_v44 = vpop.eup %7617  ;;  %v4488_v28 = vsub.f32 %v4392_v10, %v13943_v41  ;;  %v13948_v18 = vld [vmem:[#allocation27_spill] sm:$0xff] }
 0x857   : > { %4701 = vmatmul.mubr.bf16.gmra.mrb[100].mxu0 %v4598_v3  ;;  %6813 = vmatprep.subr.bf16.mxu1 %v5268_v39  ;;  %v4600_v4 = vpack.c.bf16 %v4574_v23, %v4572_v12  ;;  %7629 = vpow2.f32 %v4532_v22  ;;  %v4364_v17 = vmul.f32 0.2, %v4332_v25  ;;  %v4371_v27 = vmul.f32 0.2, %v4339_v19  ;;  %v13946_v39 = vld [vmem:[#allocation28_spill] sm:$0xff] }
 0x858   : > { %4708 = vmatprep.mubr.bf16.mxu0 %v4601_v21  ;;  %v4603_v16 = vpack.c.bf16 %v4579_v14, %v4577_v35  ;;  %7631 = vpow2.f32 %v4542_v1  ;;  %v4493_v34 = vsub.f32 %v4397_v7, %v13945_v43  ;;  %v4369_v60 = vmul.f32 0.2, %v4337_v51  ;;  %v13949_v22 = vld [vmem:[#allocation8_spill] sm:$0xff]  ;;  %v13952_v14 = vld [vmem:[#allocation13_spill] sm:$0xff] }
 0x859   : > { %v7620_v49 = vpop.eup %7619  ;;  %v4544_v3 = vmul.f32 1.442695, %v4490_v26  ;;  %v4338_v36 = vadd.f32 %v11488_v42, %v13944_v62  ;;  %v4398_v0 = vmax.f32 %v4334_v38, %v4366_v9  ;;  %v4554_v6 = vmul.f32 1.442695, %v4495_v47  ;;  %v13951_v38 = vld [vmem:[#allocation204_spill] sm:$0xff] }
 0x85a   : > { %v11673_v37 = vpop.permute.xlu1 %5050  ;;  %v7622_v56 = vpop.eup %7621  ;;  %v4578_v21 = vmul.f32 %v7618_v44, %v13946_v39  ;;  %v4540_v31 = vmul.f32 1.442695, %v4488_v28  ;;  %v4396_v41 = vmax.f32 %v4332_v25, %v4364_v17  ;;  %v4336_v63 = vadd.f32 %v11488_v42, %v11431_v15  ;;  %v13953_v42 = vld [vmem:[#allocation203_spill] sm:$0xff] }
 0x85b   : > { %v7624_v52 = vpop.eup %7623  ;;  %v4583_v13 = vmul.f32 %v7620_v49, %v13947_v50  ;;  %v4550_v2 = vmul.f32 1.442695, %v4493_v34  ;;  %v4401_v55 = vmax.f32 %v4337_v51, %v4369_v60  ;;  %v4403_v11 = vmax.f32 %v4339_v19, %v4371_v27  ;;  %v13955_v28 = vld [vmem:[#allocation155_spill] sm:$0xff] }
 0x85c   : > { %v4576_v23 = vmul.f32 %v7622_v56, %v13948_v18  ;;  %v13950_v62 = vsub.s32 7, %v13949_v22  ;;  %7633 = vpow2.f32 %v4544_v3  ;;  %v4494_v25 = vsub.f32 %v4398_v0, %v11472_v24  ;;  %v13956_v27 = vld [vmem:[#allocation7_spill] sm:$0xff]  ;;  %v13961_v22 = vld [vmem:[#allocation197_spill] sm:$0xff] }
 0x85d   : > { %v4581_v1 = vmul.f32 %v7624_v52, %v13952_v14  ;;  %v4370_v15 = vmul.f32 0.2, %v4338_v36  ;;  %7635 = vpow2.f32 %v4554_v6  ;;  %v4499_v7 = vsub.f32 %v4403_v11, %v13953_v42  ;;  %v13957_v52 = vld [vmem:[#allocation5_spill] sm:$0xff]  ;;  %v13960_v11 = vld [vmem:[#allocation50_spill] sm:$0xff] }
 0x85e   : > { %v5252_v46 = vpop.permute.xlu1 %5251  ;;  %v11696_v10 = vrot.slane %v13951_v38, %v13950_v62  ;;  %v4602_v12 = vpack.c.bf16 %v4578_v21, %v4576_v23  ;;  %7637 = vpow2.f32 %v4540_v31  ;;  %v4492_v19 = vsub.f32 %v4396_v41, %v13945_v43  ;;  %v13958_v21 = vld [vmem:[#allocation22_spill] sm:$0xff] }
 0x85f   : > { %4709 = vmatmul.mubr.bf16.gmra.mrb[104].mxu0 %v4600_v4  ;;  %6814 = vmatpush3.bf16.msra.mxu1 %v5252_v46  ;;  %v7626_v26 = vpop.eup %7625  ;;  %v4368_v51 = vmul.f32 0.2, %v4336_v63  ;;  %v4605_v9 = vpack.c.bf16 %v4583_v13, %v4581_v1  ;;  %7639 = vpow2.f32 %v4550_v2  ;;  %v13954_v4 = vld [vmem:[#allocation139_spill] sm:$0xff]  ;;  %v4552_v46 = vmul.f32 1.442695, %v4494_v25  ;;  %v13959_v2 = vld [vmem:[#allocation21_spill] sm:$0xff] }
 0x860   : > { %4716 = vmatprep.mubr.bf16.mxu0 %v4603_v16  ;;  %v7628_v47 = vpop.eup %7627  ;;  %v4497_v44 = vsub.f32 %v4401_v55, %v13954_v4  ;;  %v4943_v17 = vadd.f32 %v11696_v10, %v13955_v28  ;;  %v4562_v49 = vmul.f32 1.442695, %v4499_v7  ;;  %v4582_v34 = vmul.f32 %v7626_v26, %v13956_v27  ;;  %v13963_v28 = vld [vmem:[#allocation31_spill] sm:$0xff] }
 0x861   : > { %v7630_v24 = vpop.eup %7629  ;;  %v4548_v43 = vmul.f32 1.442695, %v4492_v19  ;;  %v4400_v60 = vmax.f32 %v4336_v63, %v4368_v51  ;;  %v4402_v56 = vmax.f32 %v4338_v36, %v4370_v15  ;;  %v4587_v0 = vmul.f32 %v7628_v47, %v13957_v52 }
 0x862   : > { %v11689_v57 = vpop.permute.xlu1 %4886  ;;  %v7632_v16 = vpop.eup %7631  ;;  %v4558_v6 = vmul.f32 1.442695, %v4497_v44  ;;  %v4580_v31 = vmul.f32 %v7630_v24, %v13958_v21  ;;  %v4975_v41 = vmul.f32 0.2, %v4943_v17  ;;  %7641 = vpow2.f32 %v4552_v46 }
 0x863   : > { %v4498_v13 = vsub.f32 %v4402_v56, %v13953_v42  ;;  %v4585_v55 = vmul.f32 %v7632_v16, %v13959_v2  ;;  %v4948_v23 = vadd.f32 %v11506_v54, %v13960_v11  ;;  %7643 = vpow2.f32 %v4562_v49  ;;  %v13964_v49 = vld [vmem:[#allocation9_spill] sm:$0xff] }
 0x864   : > { %v4941_v36 = vadd.f32 %v11696_v10, %v13961_v22  ;;  %v4604_v63 = vpack.c.bf16 %v4582_v34, %v4580_v31  ;;  %7645 = vpow2.f32 %v4548_v43  ;;  %v4496_v38 = vsub.f32 %v4400_v60, %v13954_v4  ;;  %v13965_v43 = vld [vmem:[#allocation189_spill] sm:$0xff] }
 0x865   : > { %v4946_v25 = vadd.f32 %v11506_v54, %v11621_v59  ;;  %v4607_v15 = vpack.c.bf16 %v4587_v0, %v4585_v55  ;;  %7647 = vpow2.f32 %v4558_v6  ;;  %v4560_v26 = vmul.f32 1.442695, %v4498_v13  ;;  %v13966_v60 = vld [vmem:[#allocation97_spill] sm:$0xff] }
 0x866   : > { %v5270_v35 = vpop.permute.xlu1 %5269  ;;  %v7634_v62 = vpop.eup %7633  ;;  %v4980_v51 = vmul.f32 0.2, %v4948_v23  ;;  %v4556_v44 = vmul.f32 1.442695, %v4496_v38  ;;  %v4947_v16 = vadd.f32 %v11696_v10, %v13960_v11  ;;  %v4945_v31 = vadd.f32 %v11696_v10, %v11621_v59 }
 0x867   : > { %4717 = vmatmul.mubr.bf16.gmra.mrb[108].mxu0 %v4602_v12  ;;  %6815 = vmatprep.subr.bf16.mxu1 %v5270_v35  ;;  %v7636_v42 = vpop.eup %7635  ;;  %v5007_v12 = vmax.f32 %v4943_v17, %v4975_v41  ;;  %v4973_v35 = vmul.f32 0.2, %v4941_v36  ;;  %v4978_v4 = vmul.f32 0.2, %v4946_v25  ;;  %v4952_v17 = vadd.f32 %v11506_v54, %v13965_v43 }
 0x868   : > { %4724 = vmatprep.mubr.bf16.mxu0 %v4605_v9  ;;  %v7638_v7 = vpop.eup %7637  ;;  %v13962_v9 = vld [vmem:[#allocation29_spill] sm:$0xff]  ;;  %v4591_v46 = vmul.f32 %v7636_v42, %v13963_v28  ;;  %7649 = vpow2.f32 %v4560_v26  ;;  %v5012_v41 = vmax.f32 %v4948_v23, %v4980_v51  ;;  %v4950_v11 = vadd.f32 %v11506_v54, %v11689_v57 }
 0x869   : > { %v7640_v19 = vpop.eup %7639  ;;  %v4586_v47 = vmul.f32 %v7634_v62, %v13962_v9  ;;  %v4584_v34 = vmul.f32 %v7638_v7, %v13964_v49  ;;  %v5103_v56 = vsub.f32 %v5007_v12, %v13966_v60  ;;  %v5005_v6 = vmax.f32 %v4941_v36, %v4973_v35  ;;  %v13971_v60 = vld [vmem:[#allocation35_spill] sm:$0xff] }
 0x86a   : > { %v5254_v3 = vpop.permute.xlu1 %5253  ;;  %7651 = vpow2.f32 %v4556_v44  ;;  %v5010_v22 = vmax.f32 %v4946_v25, %v4978_v4  ;;  %v4979_v36 = vmul.f32 0.2, %v4947_v16  ;;  %v5108_v59 = vsub.f32 %v5012_v41, %v11673_v37  ;;  %v13968_v25 = vld [vmem:[#allocation36_spill] sm:$0xff]  ;;  %v13970_v44 = vld [vmem:[#allocation39_spill] sm:$0xff]  ;;  %v13972_v41 = vld [vmem:[#allocation38_spill] sm:$0xff] }
 0x86b   : > { %6816 = vmatpush3.bf16.msra.mxu1 %v5254_v3  ;;  %v13967_v3 = vld [vmem:[#allocation30_spill] sm:$0xff]  ;;  %v4606_v13 = vpack.c.bf16 %v4586_v47, %v4584_v34  ;;  %v5137_v42 = vmul.f32 1.442695, %v5103_v56  ;;  %v4984_v7 = vmul.f32 0.2, %v4952_v17  ;;  %v4949_v35 = vadd.f32 %v11696_v10, %v11689_v57 }
 0x86c   : > { %v4589_v0 = vmul.f32 %v7640_v19, %v13967_v3  ;;  %v7642_v55 = vpop.eup %7641  ;;  %v4977_v12 = vmul.f32 0.2, %v4945_v31  ;;  %v13969_v19 = vld [vmem:[#allocation110_spill] sm:$0xff]  ;;  %v4982_v47 = vmul.f32 0.2, %v4950_v11 }
 0x86d   : > { %v7644_v38 = vpop.eup %7643  ;;  %v4590_v26 = vmul.f32 %v7642_v55, %v13968_v25  ;;  %v5106_v51 = vsub.f32 %v5010_v22, %v13969_v19  ;;  %7653 = vpow2.f32 %v5137_v42  ;;  %v5016_v22 = vmax.f32 %v4952_v17, %v4984_v7  ;;  %v13975_v7 = vld [vmem:[#allocation77_spill] sm:$0xff] }
 0x86e   : > { %v5272_v1 = vpop.permute.xlu1 %5271  ;;  %v4609_v62 = vpack.c.bf16 %v4591_v46, %v4589_v0  ;;  %v4595_v4 = vmul.f32 %v7644_v38, %v13970_v44  ;;  %v4951_v46 = vadd.f32 %v11696_v10, %v13965_v43  ;;  %v5011_v0 = vmax.f32 %v4947_v16, %v4979_v36 }
 0x86f   : > { %4725 = vmatmul.mubr.bf16.gmra.mrb[112].mxu0 %v4604_v63  ;;  %6817 = vmatprep.subr.bf16.mxu1 %v5272_v1  ;;  %v5101_v1 = vsub.f32 %v5005_v6, %v11580_v8  ;;  %v5147_v6 = vmul.f32 1.442695, %v5108_v59  ;;  %v5009_v55 = vmax.f32 %v4945_v31, %v4977_v12  ;;  %v5143_v3 = vmul.f32 1.442695, %v5106_v51  ;;  %v13976_v51 = vld [vmem:[#allocation42_spill] sm:$0xff] }
 0x870   : > { %4732 = vmatprep.mubr.bf16.mxu0 %v4607_v15  ;;  %v7646_v15 = vpop.eup %7645  ;;  %v4981_v28 = vmul.f32 0.2, %v4949_v35  ;;  %v5014_v38 = vmax.f32 %v4950_v11, %v4982_v47  ;;  %v5107_v43 = vsub.f32 %v5011_v0, %v11673_v37  ;;  %v13974_v11 = vld [vmem:[#allocation43_spill] sm:$0xff] }
 0x871   : > { %v7648_v23 = vpop.eup %7647  ;;  %v5133_v34 = vmul.f32 1.442695, %v5101_v1  ;;  %v4588_v56 = vmul.f32 %v7646_v15, %v13971_v60  ;;  %v4983_v1 = vmul.f32 0.2, %v4951_v46  ;;  %v13973_v15 = vld [vmem:[#allocation196_spill] sm:$0xff]  ;;  %v5105_v36 = vsub.f32 %v5009_v55, %v13969_v19 }
 0x872   : > { %v11718_v24 = vpop.permute.xlu1 %5058  ;;  %v4956_v31 = vadd.f32 %v11506_v54, %v13973_v15  ;;  %v5110_v37 = vsub.f32 %v5014_v38, %v13975_v7 }
 0x873   : > { %v4608_v57 = vpack.c.bf16 %v4590_v26, %v4588_v56  ;;  %7655 = vpow2.f32 %v5133_v34  ;;  %v5112_v17 = vsub.f32 %v5016_v22, %v11718_v24  ;;  %v5145_v26 = vmul.f32 1.442695, %v5107_v43 }
 0x874   : > { %7657 = vpow2.f32 %v5147_v6  ;;  %v5015_v34 = vmax.f32 %v4951_v46, %v4983_v1  ;;  %v5141_v56 = vmul.f32 1.442695, %v5105_v36 }
 0x875   : > { %7659 = vpow2.f32 %v5143_v3 }
 0x876   : > { %v5256_v63 = vpop.permute.xlu1 %5255  ;;  %7661 = vpow2.f32 %v5145_v26  ;;  %v5111_v55 = vsub.f32 %v5015_v34, %v11718_v24 }
 0x877   : > { %4733 = vmatmul.mubr.bf16.gmra.mrb[116].mxu0 %v4606_v13  ;;  %6818 = vmatpush3.bf16.msra.mxu1 %v5256_v63  ;;  %v4593_v13 = vmul.f32 %v7648_v23, %v13972_v41  ;;  %v5013_v23 = vmax.f32 %v4949_v35, %v4981_v28  ;;  %v5151_v35 = vmul.f32 1.442695, %v5110_v37 }
 0x878   : > { %4740 = vmatprep.mubr.bf16.mxu0 %v4609_v62  ;;  %v7650_v62 = vpop.eup %7649  ;;  %v5153_v1 = vmul.f32 1.442695, %v5111_v55 }
 0x879   : > { %v4611_v25 = vpack.c.bf16 %v4595_v4, %v4593_v13  ;;  %v7652_v16 = vpop.eup %7651  ;;  %v4594_v59 = vmul.f32 %v7650_v62, %v13974_v11  ;;  %v4988_v4 = vmul.f32 0.2, %v4956_v31  ;;  %v5109_v28 = vsub.f32 %v5013_v23, %v13975_v7  ;;  %v13977_v62 = vld [vmem:[#allocation85_spill] sm:$0xff] }
 0x87a   : > { %v4895_v8 = vpop.permute.xlu1 %4894  ;;  %v4592_v47 = vmul.f32 %v7652_v16, %v13976_v51  ;;  %v7654_v3 = vpop.eup %7653 }
 0x87b   : > { %v4954_v63 = vadd.f32 %v11506_v54, %v4895_v8  ;;  %v4953_v19 = vadd.f32 %v11696_v10, %v4895_v8  ;;  %v5020_v8 = vmax.f32 %v4956_v31, %v4988_v4  ;;  %v5149_v43 = vmul.f32 1.442695, %v5109_v28 }
 0x87c   : > { %v4610_v6 = vpack.c.bf16 %v4594_v59, %v4592_v47 }
 0x87d   : > { %v4986_v42 = vmul.f32 0.2, %v4954_v63  ;;  %v4985_v46 = vmul.f32 0.2, %v4953_v19 }
 0x87e   : > { %v5274_v44 = vpop.permute.xlu1 %5273 }
 0x87f   : > { %4741 = vmatmul.mubr.bf16.gmra.mrb[120].mxu0 %v4608_v57  ;;  %6819 = vmatprep.subr.bf16.mxu1 %v5274_v44  ;;  %v4955_v44 = vadd.f32 %v11696_v10, %v13973_v15  ;;  %v5018_v0 = vmax.f32 %v4954_v63, %v4986_v42  ;;  %v7656_v57 = vpop.eup %7655  ;;  %v5199_v42 = vmul.f32 %v7654_v3, %v13545_v61 }
 0x880   : > { %4748 = vmatprep.mubr.bf16.mxu0 %v4611_v25  ;;  %v5155_v25 = vmul.f32 1.442695, %v5112_v17  ;;  %v7658_v63 = vpop.eup %7657  ;;  %v5197_v24 = vmul.f32 %v7656_v57, %v13548_v29  ;;  %v5017_v59 = vmax.f32 %v4953_v19, %v4985_v46 }
 0x881   : > { %v4987_v22 = vmul.f32 0.2, %v4955_v44  ;;  %v5114_v38 = vsub.f32 %v5018_v0, %v13977_v62  ;;  %v7660_v17 = vpop.eup %7659  ;;  %v5204_v37 = vmul.f32 %v7658_v63, %v13549_v30 }
 0x882   : > { %v5258_v12 = vpop.permute.xlu1 %5257  ;;  %7663 = vpow2.f32 %v5155_v25  ;;  %v5202_v29 = vmul.f32 %v7660_v17, %v13735_v32  ;;  %v5229_v61 = vpack.c.bf16 %v5199_v42, %v5197_v24  ;;  %v5113_v34 = vsub.f32 %v5017_v59, %v13977_v62  ;;  %v5075_v17 = vpop.permute.xlu0 %5074 }
 0x883   : > { %6820 = vmatpush3.bf16.msra.mxu1 %v5258_v12  ;;  %7665 = vpow2.f32 %v5141_v56  ;;  %v5019_v36 = vmax.f32 %v4955_v44, %v4987_v22  ;;  %v5159_v23 = vmul.f32 1.442695, %v5114_v38  ;;  %v13978_v12 = vld [vmem:[#allocation46_spill] sm:$0xff]  ;;  %v7662_v44 = vpop.eup %7661 }
 0x884   : > { %7667 = vpow2.f32 %v5151_v35  ;;  %v4957_v31 = vadd.f32 %v11696_v10, %v13978_v12  ;;  %v4958_v26 = vadd.f32 %v11506_v54, %v13978_v12  ;;  %v5232_v30 = vpack.c.bf16 %v5204_v37, %v5202_v29 }
 0x885   : > { %7669 = vpow2.f32 %v5149_v43  ;;  %v5157_v55 = vmul.f32 1.442695, %v5113_v34 }
 0x886   : > { %v5276_v13 = vpop.permute.xlu1 %5275  ;;  %7671 = vpow2.f32 %v5153_v1  ;;  %v4989_v56 = vmul.f32 0.2, %v4957_v31  ;;  %v4990_v19 = vmul.f32 0.2, %v4958_v26 }
 0x887   : > { %4749 = vmatmul.mubr.bf16.gmra.mrb[124].mxu0 %v4610_v6  ;;  %6821 = vmatprep.subr.bf16.mxu1 %v5276_v13  ;;  %v5203_v13 = vmul.f32 %v7662_v44, %v13551_v5 }
 0x888   : > { %v5021_v62 = vmax.f32 %v4957_v31, %v4989_v56  ;;  %v5022_v38 = vmax.f32 %v4958_v26, %v4990_v19 }
 0x88a   : > { %v5067_v16 = vpop.permute.xlu1 %5066 }
 0x88b   : > { %v5116_v15 = vsub.f32 %v5020_v8, %v5067_v16  ;;  %v5115_v4 = vsub.f32 %v5019_v36, %v5067_v16 }
 0x88c   : > { %v7664_v25 = vpop.eup %7663 }
 0x88d   : > { %v5163_v7 = vmul.f32 1.442695, %v5116_v15  ;;  %v7666_v6 = vpop.eup %7665  ;;  %v5161_v3 = vmul.f32 1.442695, %v5115_v4  ;;  %v5208_v46 = vmul.f32 %v7664_v25, %v13552_v20 }
 0x88e   : > { %v5260_v47 = vpop.permute.xlu1 %5259  ;;  %v7668_v32 = vpop.eup %7667  ;;  %v5201_v8 = vmul.f32 %v7666_v6, %v13737_v58 }
 0x88f   : > { %6822 = vmatpush3.bf16.msra.mxu1 %v5260_v47  ;;  %7673 = vpow2.f32 %v5163_v7  ;;  %v5206_v1 = vmul.f32 %v7668_v32, %v13738_v48  ;;  %v7670_v15 = vpop.eup %7669 }
 0x890   : > { %7675 = vpow2.f32 %v5159_v23  ;;  %v5231_v5 = vpack.c.bf16 %v5203_v13, %v5201_v8  ;;  %v7672_v42 = vpop.eup %7671  ;;  %v5205_v44 = vmul.f32 %v7670_v15, %v13493_v45 }
 0x891   : > { %7677 = vpow2.f32 %v5161_v3  ;;  %v5234_v20 = vpack.c.bf16 %v5208_v46, %v5206_v1  ;;  %v5207_v47 = vmul.f32 %v7672_v42, %v13740_v33 }
 0x892   : > { %v4907_v0 = vpop.permute.xlu1 %4906  ;;  %5326 = vmatmul.mubr.bf16.vlgmr.msra.gmra.mrb[96].mxu1 %v5229_v61  ;;  %7679 = vpow2.f32 %v5157_v55 }
 0x893   : > { %v4959_v28 = vadd.f32 %v11696_v10, %v4907_v0  ;;  %v4960_v35 = vadd.f32 %v11506_v54, %v4907_v0  ;;  %5333 = vmatprep.mubr.bf16.mxu1 %v5232_v30  ;;  %v5233_v19 = vpack.c.bf16 %v5207_v47, %v5205_v44 }
 0x895   : > { %v4991_v22 = vmul.f32 0.2, %v4959_v28  ;;  %v4992_v57 = vmul.f32 0.2, %v4960_v35 }
 0x897   : > { %v5023_v63 = vmax.f32 %v4959_v28, %v4991_v22  ;;  %v5024_v43 = vmax.f32 %v4960_v35, %v4992_v57  ;;  %v5071_v16 = vpop.permute.xlu1 %5070  ;;  %v5079_v35 = vpop.permute.xlu0 %5078 }
 0x898   : > { %v5117_v36 = vsub.f32 %v5021_v62, %v5071_v16  ;;  %v5118_v24 = vsub.f32 %v5022_v38, %v5071_v16 }
 0x899   : > { %v5119_v59 = vsub.f32 %v5023_v63, %v5075_v17  ;;  %v5120_v23 = vsub.f32 %v5024_v43, %v5075_v17  ;;  %v7674_v7 = vpop.eup %7673  ;;  %v13979_v63 = vld [vmem:[#allocation81_spill] sm:$0xff] }
 0x89a   : > { %v5165_v37 = vmul.f32 1.442695, %v5117_v36  ;;  %5334 = vmatmul.mubr.bf16.gmra.mrb[100].mxu1 %v5231_v5  ;;  %v7676_v58 = vpop.eup %7675  ;;  %v5167_v26 = vmul.f32 1.442695, %v5118_v24  ;;  %v5212_v4 = vmul.f32 %v7674_v7, %v13741_v53  ;;  %v4965_v43 = vadd.f32 %v11696_v10, %v13979_v63 }
 0x89b   : > { %v5169_v12 = vmul.f32 1.442695, %v5119_v59  ;;  %v5171_v31 = vmul.f32 1.442695, %v5120_v23  ;;  %5341 = vmatprep.mubr.bf16.mxu1 %v5234_v20  ;;  %v5210_v34 = vmul.f32 %v7676_v58, %v13742_v40  ;;  %v7678_v6 = vpop.eup %7677  ;;  %v4966_v16 = vadd.f32 %v11506_v54, %v13979_v63 }
 0x89c   : > { %7681 = vpow2.f32 %v5165_v37  ;;  %v4911_v48 = vpop.permute.xlu1 %4910  ;;  %v7680_v32 = vpop.eup %7679  ;;  %v5211_v22 = vmul.f32 %v7678_v6, %v13946_v39  ;;  %v4997_v7 = vmul.f32 0.2, %v4965_v43 }
 0x89d   : > { %7683 = vpow2.f32 %v5169_v12  ;;  %v4961_v29 = vadd.f32 %v11696_v10, %v4911_v48  ;;  %v4962_v61 = vadd.f32 %v11506_v54, %v4911_v48  ;;  %v5236_v0 = vpack.c.bf16 %v5212_v4, %v5210_v34 }
 0x89e   : > { %7685 = vpow2.f32 %v5171_v31  ;;  %v5209_v15 = vmul.f32 %v7680_v32, %v13948_v18  ;;  %v4998_v37 = vmul.f32 0.2, %v4966_v16 }
 0x89f   : > { %7687 = vpow2.f32 %v5167_v26  ;;  %v4993_v30 = vmul.f32 0.2, %v4961_v29  ;;  %v4994_v25 = vmul.f32 0.2, %v4962_v61 }
 0x8a0   : > { %v4915_v56 = vpop.permute.xlu1 %4914  ;;  %v5235_v42 = vpack.c.bf16 %v5211_v22, %v5209_v15 }
 0x8a1   : > { %v5025_v33 = vmax.f32 %v4961_v29, %v4993_v30  ;;  %v5026_v3 = vmax.f32 %v4962_v61, %v4994_v25  ;;  %v4963_v53 = vadd.f32 %v11696_v10, %v4915_v56  ;;  %v4964_v28 = vadd.f32 %v11506_v54, %v4915_v56 }
 0x8a2   : > { %5342 = vmatmul.mubr.bf16.gmra.mrb[104].mxu1 %v5233_v19  ;;  %v5029_v29 = vmax.f32 %v4965_v43, %v4997_v7  ;;  %v5030_v61 = vmax.f32 %v4966_v16, %v4998_v37 }
 0x8a3   : > { %v5121_v13 = vsub.f32 %v5025_v33, %v5079_v35  ;;  %v5122_v45 = vsub.f32 %v5026_v3, %v5079_v35  ;;  %v4995_v55 = vmul.f32 0.2, %v4963_v53  ;;  %v4996_v40 = vmul.f32 0.2, %v4964_v28  ;;  %5349 = vmatprep.mubr.bf16.mxu1 %v5236_v0 }
 0x8a5   : > { %v5173_v57 = vmul.f32 1.442695, %v5121_v13  ;;  %v5027_v46 = vmax.f32 %v4963_v53, %v4995_v55  ;;  %v5028_v62 = vmax.f32 %v4964_v28, %v4996_v40  ;;  %v5083_v38 = vpop.permute.xlu1 %5082  ;;  %v5175_v1 = vmul.f32 1.442695, %v5122_v45 }
 0x8a6   : > { %v7682_v8 = vpop.eup %7681 }
 0x8a7   : > { %v7684_v17 = vpop.eup %7683  ;;  %v5123_v36 = vsub.f32 %v5027_v46, %v5083_v38  ;;  %v5124_v24 = vsub.f32 %v5028_v62, %v5083_v38  ;;  %7689 = vpow2.f32 %v5173_v57  ;;  %v5213_v48 = vmul.f32 %v7682_v8, %v13958_v21 }
 0x8a8   : > { %v7686_v5 = vpop.eup %7685  ;;  %7691 = vpow2.f32 %v5175_v1  ;;  %v5215_v47 = vmul.f32 %v7684_v17, %v13956_v27 }
 0x8a9   : > { %v7688_v39 = vpop.eup %7687  ;;  %v5177_v59 = vmul.f32 1.442695, %v5123_v36  ;;  %v5179_v23 = vmul.f32 1.442695, %v5124_v24  ;;  %v5216_v20 = vmul.f32 %v7686_v5, %v13947_v50 }
 0x8aa   : > { %v4923_v58 = vpop.permute.xlu1 %4922  ;;  %5350 = vmatmul.mubr.bf16.gmra.mrb[108].mxu1 %v5235_v42  ;;  %v5214_v12 = vmul.f32 %v7688_v39, %v13952_v14  ;;  %v5091_v14 = vpop.permute.xlu0 %5090  ;;  %v5237_v19 = vpack.c.bf16 %v5215_v47, %v5213_v48  ;;  %v13981_v48 = vld [vmem:[#allocation31_spill] sm:$0xff] }
 0x8ab   : > { %7693 = vpow2.f32 %v5177_v59  ;;  %v4967_v18 = vadd.f32 %v11696_v10, %v4923_v58  ;;  %v4968_v31 = vadd.f32 %v11506_v54, %v4923_v58  ;;  %v13980_v58 = vld [vmem:[#allocation36_spill] sm:$0xff] }
 0x8ac   : > { %7695 = vpow2.f32 %v5179_v23  ;;  %v5238_v26 = vpack.c.bf16 %v5216_v20, %v5214_v12 }
 0x8ad   : > { %v4999_v4 = vmul.f32 0.2, %v4967_v18  ;;  %v5000_v50 = vmul.f32 0.2, %v4968_v31 }
 0x8ae   : > { %5357 = vmatprep.mubr.bf16.mxu1 %v5238_v26  ;;  %v5095_v17 = vpop.permute.xlu0 %5094 }
 0x8af   : > { %v5031_v44 = vmax.f32 %v4967_v18, %v4999_v4  ;;  %v5032_v34 = vmax.f32 %v4968_v31, %v5000_v50  ;;  %v5087_v30 = vpop.permute.xlu1 %5086  ;;  %v13982_v4 = vld [vmem:[#allocation30_spill] sm:$0xff] }
 0x8b0   : > { %v5125_v25 = vsub.f32 %v5029_v29, %v5087_v30  ;;  %v5126_v56 = vsub.f32 %v5030_v61, %v5087_v30 }
 0x8b1   : > { %v5127_v0 = vsub.f32 %v5031_v44, %v5091_v14  ;;  %v5128_v6 = vsub.f32 %v5032_v34, %v5091_v14  ;;  %v7690_v3 = vpop.eup %7689 }
 0x8b2   : > { %v5181_v33 = vmul.f32 1.442695, %v5125_v25  ;;  %5358 = vmatmul.mubr.bf16.gmra.mrb[112].mxu1 %v5237_v19  ;;  %v5183_v27 = vmul.f32 1.442695, %v5126_v56  ;;  %v7692_v28 = vpop.eup %7691  ;;  %v5217_v40 = vmul.f32 %v7690_v3, %v13964_v49  ;;  %v13983_v19 = vld [vmem:[#allocation39_spill] sm:$0xff]  ;;  %v11809_v3 = vpop.permute.xlu0 %982 }
 0x8b3   : > { %v5185_v21 = vmul.f32 1.442695, %v5127_v0  ;;  %v5187_v53 = vmul.f32 1.442695, %v5128_v6  ;;  %v5218_v8 = vmul.f32 %v7692_v28, %v13959_v2 }
 0x8b4   : > { %7697 = vpow2.f32 %v5181_v33  ;;  %v4927_v35 = vpop.permute.xlu1 %4926 }
 0x8b5   : > { %v7694_v32 = vpop.eup %7693  ;;  %7699 = vpow2.f32 %v5185_v21  ;;  %v4969_v13 = vadd.f32 %v11696_v10, %v4927_v35  ;;  %v4970_v45 = vadd.f32 %v11506_v54, %v4927_v35 }
 0x8b6   : > { %v7696_v55 = vpop.eup %7695  ;;  %7701 = vpow2.f32 %v5187_v53  ;;  %v5219_v22 = vmul.f32 %v7694_v32, %v13962_v9  ;;  %v11811_v21 = vpop.permute.xlu0 %992 }
 0x8b7   : > { %7703 = vpow2.f32 %v5183_v27  ;;  %v5001_v57 = vmul.f32 0.2, %v4969_v13  ;;  %v5002_v46 = vmul.f32 0.2, %v4970_v45  ;;  %v5220_v62 = vmul.f32 %v7696_v55, %v13957_v52  ;;  %13984 = vst [vmem:[#allocation198_spill] sm:$0xff] %v11811_v21 }
 0x8b8   : > { %v4931_v38 = vpop.permute.xlu1 %4930  ;;  %v5239_v63 = vpack.c.bf16 %v5219_v22, %v5217_v40 }
 0x8b9   : > { %v5033_v43 = vmax.f32 %v4969_v13, %v5001_v57  ;;  %v5034_v16 = vmax.f32 %v4970_v45, %v5002_v46  ;;  %v4971_v1 = vadd.f32 %v11696_v10, %v4931_v38  ;;  %v4972_v15 = vadd.f32 %v11506_v54, %v4931_v38 }
 0x8ba   : > { %v5240_v36 = vpack.c.bf16 %v5220_v62, %v5218_v8  ;;  %v11813_v53 = vpop.permute.xlu0 %1002 }
 0x8bb   : > { %v5129_v49 = vsub.f32 %v5033_v43, %v5095_v17  ;;  %v5130_v24 = vsub.f32 %v5034_v16, %v5095_v17  ;;  %v5003_v9 = vmul.f32 0.2, %v4971_v1  ;;  %v5004_v5 = vmul.f32 0.2, %v4972_v15  ;;  %13985 = vst [vmem:[#allocation199_spill] sm:$0xff] %v11813_v53  ;;  %v14076_v53 = vld [vmem:[#allocation184_spill] sm:$0xff] }
 0x8bc   : > { %5365 = vmatprep.mubr.bf16.mxu1 %v5240_v36 }
 0x8bd   : > { %v5189_v42 = vmul.f32 1.442695, %v5129_v49  ;;  %5366 = vmatmul.mubr.bf16.gmra.mrb[116].mxu1 %v5239_v63  ;;  %v5035_v52 = vmax.f32 %v4971_v1, %v5003_v9  ;;  %v5036_v39 = vmax.f32 %v4972_v15, %v5004_v5  ;;  %v5099_v59 = vpop.permute.xlu1 %5098  ;;  %v5191_v23 = vmul.f32 1.442695, %v5130_v24 }
 0x8be   : > { %v7698_v2 = vpop.eup %7697  ;;  %v11815_v27 = vpop.permute.xlu0 %1012 }
 0x8bf   : > { %v7700_v20 = vpop.eup %7699  ;;  %v5131_v7 = vsub.f32 %v5035_v52, %v5099_v59  ;;  %v5132_v37 = vsub.f32 %v5036_v39, %v5099_v59  ;;  %v5221_v10 = vmul.f32 %v7698_v2, %v13971_v60  ;;  %7705 = vpow2.f32 %v5189_v42  ;;  %13986 = vst [vmem:[#allocation200_spill] sm:$0xff] %v11815_v27  ;;  %v14067_v27 = vld [vmem:[#allocation178_spill] sm:$0xff] }
 0x8c0   : > { %v7702_v54 = vpop.eup %7701  ;;  %v5223_v12 = vmul.f32 %v7700_v20, %v13980_v58  ;;  %7707 = vpow2.f32 %v5191_v23 }
 0x8c1   : > { %v7704_v18 = vpop.eup %7703  ;;  %v5193_v31 = vmul.f32 1.442695, %v5131_v7  ;;  %v5195_v26 = vmul.f32 1.442695, %v5132_v37  ;;  %v5224_v47 = vmul.f32 %v7702_v54, %v13981_v48 }
 0x8c2   : > { %v5222_v50 = vmul.f32 %v7704_v18, %v13982_v4  ;;  %v5241_v29 = vpack.c.bf16 %v5223_v12, %v5221_v10 }
 0x8c3   : > { %7709 = vpow2.f32 %v5193_v31 }
 0x8c4   : > { %7711 = vpow2.f32 %v5195_v26  ;;  %v5242_v61 = vpack.c.bf16 %v5224_v47, %v5222_v50 }
 0x8c6   : > { %5373 = vmatprep.mubr.bf16.mxu1 %v5242_v61 }
 0x8c7   : > { %5374 = vmatmul.mubr.bf16.gmra.mrb[120].mxu1 %v5241_v29 }
 0x8c9   : > { %v7706_v44 = vpop.eup %7705 }
 0x8ca   : > { %v7708_v60 = vpop.eup %7707  ;;  %v5225_v14 = vmul.f32 %v7706_v44, %v13976_v51 }
 0x8cb   : > { %v5226_v56 = vmul.f32 %v7708_v60, %v13972_v41  ;;  %v11819_v41 = vpop.permute.xlu0 %1022 }
 0x8cc   : > { %13987 = vst [vmem:[#allocation208_spill] sm:$0xff] %v11819_v41 }
 0x8cd   : > { %v7710_v34 = vpop.eup %7709 }
 0x8ce   : > { %v7712_v30 = vpop.eup %7711  ;;  %v5227_v25 = vmul.f32 %v7710_v34, %v13974_v11 }
 0x8cf   : > { %v5228_v0 = vmul.f32 %v7712_v30, %v13983_v19  ;;  %v11825_v55 = vpop.permute.xlu0 %1032 }
 0x8d0   : > { %v5243_v6 = vpack.c.bf16 %v5227_v25, %v5225_v14  ;;  %13988 = vst [vmem:[#allocation205_spill] sm:$0xff] %v11825_v55  ;;  %v14006_v55 = vld [vmem:[#allocation56_spill] sm:$0xff] }
 0x8d1   : > { %v5244_v33 = vpack.c.bf16 %v5228_v0, %v5226_v56 }
 0x8d3   : > { %5381 = vmatprep.mubr.bf16.mxu1 %v5244_v33  ;;  %v11833_v8 = vpop.permute.xlu0 %1042 }
 0x8d4   : > { %5382 = vmatmul.mubr.bf16.gmra.mrb[124].mxu1 %v5243_v6  ;;  %13989 = vst [vmem:[#allocation209_spill] sm:$0xff] %v11833_v8 }
 0x8d7   : > { %v11840_v49 = vpop.permute.xlu0 %1052 }
 0x8db   : > { %v11845_v59 = vpop.permute.xlu0 %1615 }
 0x8df   : > { %v11851_v10 = vpop.permute.xlu0 %1630 }
 0x8e3   : > { %v11859_v48 = vpop.permute.xlu0 %1640 }
 0x8e7   : > { %v11866_v34 = vpop.permute.xlu0 %1650 }
 0x8eb   : > { %v11871_v6 = vpop.permute.xlu0 %1660 }
 0x922   : > { %v6759_v28 = vpop.f32.mrb[96].mxu0 }
 0x923   : > { %v6760_v51 = vpop.f32.mrb[97].mxu0 }
 0x924   : > { %v11817_v35 = vadd.f32 %v6760_v51, %v6759_v28  ;;  %v6762_v11 = vpop.f32.mrb[98].mxu0 }
 0x925   : > { %v6763_v32 = vpop.f32.mrb[99].mxu0 }
 0x926   : > { %7713 = vrcp.f32 %v11817_v35  ;;  %v11822_v13 = vadd.f32 %v6763_v32, %v6762_v11 }
 0x928   : > { %7715 = vrcp.f32 %v11822_v13 }
 0x92a   : > { %v6765_v45 = vpop.f32.mrb[100].mxu0 }
 0x92b   : > { %v6766_v40 = vpop.f32.mrb[101].mxu0 }
 0x92c   : > { %v11827_v22 = vadd.f32 %v6766_v40, %v6765_v45  ;;  %v6768_v57 = vpop.f32.mrb[102].mxu0  ;;  %v11877_v45 = vpop.permute.xlu0 %1670 }
 0x92d   : > { %v6769_v46 = vpop.f32.mrb[103].mxu0 }
 0x92e   : > { %7717 = vrcp.f32 %v11827_v22  ;;  %v11830_v62 = vadd.f32 %v6769_v46, %v6768_v57 }
 0x930   : > { %v7714_v38 = vpop.eup %7713  ;;  %7719 = vrcp.f32 %v11830_v62 }
 0x931   : > { %4775 = vperm.xlu0 %6990, %v7714_v38  }
 0x932   : > { %v7716_v63 = vpop.eup %7715  ;;  %v6771_v43 = vpop.f32.mrb[104].mxu0 }
 0x933   : > { %v6772_v16 = vpop.f32.mrb[105].mxu0  ;;  %4780 = vperm.xlu1 %6992, %v7716_v63  }
 0x934   : > { %v11835_v1 = vadd.f32 %v6772_v16, %v6771_v43  ;;  %v6774_v15 = vpop.f32.mrb[106].mxu0  ;;  %v11885_v16 = vpop.permute.xlu0 %1680 }
 0x935   : > { %v6775_v17 = vpop.f32.mrb[107].mxu0 }
 0x936   : > { %7721 = vrcp.f32 %v11835_v1  ;;  %v11838_v36 = vadd.f32 %v6775_v17, %v6774_v15 }
 0x938   : > { %v7718_v24 = vpop.eup %7717  ;;  %7723 = vrcp.f32 %v11838_v36 }
 0x939   : > { %4785 = vperm.xlu1 %6992, %v7718_v24  }
 0x93a   : > { %v7720_v9 = vpop.eup %7719  ;;  %v6777_v5 = vpop.f32.mrb[108].mxu0 }
 0x93b   : > { %v6778_v42 = vpop.f32.mrb[109].mxu0  ;;  %4790 = vperm.xlu0 %6990, %v7720_v9   ;;  %v11887_v9 = vpop.permute.xlu0 %2243 }
 0x93c   : > { %v11843_v52 = vadd.f32 %v6778_v42, %v6777_v5  ;;  %v6780_v39 = vpop.f32.mrb[110].mxu0 }
 0x93d   : > { %v6781_v2 = vpop.f32.mrb[111].mxu0 }
 0x93e   : > { %7725 = vrcp.f32 %v11843_v52  ;;  %v11848_v23 = vadd.f32 %v6781_v2, %v6780_v39 }
 0x940   : > { %v7722_v20 = vpop.eup %7721  ;;  %7727 = vrcp.f32 %v11848_v23 }
 0x941   : > { %4795 = vperm.xlu1 %6992, %v7722_v20  }
 0x942   : > { %v7724_v7 = vpop.eup %7723  ;;  %v6783_v37 = vpop.f32.mrb[112].mxu0 }
 0x943   : > { %v6784_v54 = vpop.f32.mrb[113].mxu0  ;;  %4800 = vperm.xlu0 %6990, %v7724_v7  }
 0x944   : > { %v11853_v58 = vadd.f32 %v6784_v54, %v6783_v37  ;;  %v6786_v12 = vpop.f32.mrb[114].mxu0  ;;  %v11895_v37 = vpop.permute.xlu0 %2258 }
 0x945   : > { %v6787_v18 = vpop.f32.mrb[115].mxu0 }
 0x946   : > { %7729 = vrcp.f32 %v11853_v58  ;;  %v11856_v31 = vadd.f32 %v6787_v18, %v6786_v12 }
 0x948   : > { %v7726_v26 = vpop.eup %7725  ;;  %7731 = vrcp.f32 %v11856_v31 }
 0x949   : > { %4805 = vperm.xlu1 %6992, %v7726_v26  }
 0x94a   : > { %v7728_v47 = vpop.eup %7727  ;;  %v6789_v4 = vpop.f32.mrb[116].mxu0 }
 0x94b   : > { %v6790_v50 = vpop.f32.mrb[117].mxu0  ;;  %4810 = vperm.xlu0 %6990, %v7728_v47  }
 0x94c   : > { %v11861_v29 = vadd.f32 %v6790_v50, %v6789_v4  ;;  %v6792_v61 = vpop.f32.mrb[118].mxu0 }
 0x94d   : > { %v6793_v44 = vpop.f32.mrb[119].mxu0 }
 0x94e   : > { %7733 = vrcp.f32 %v11861_v29  ;;  %v11864_v60 = vadd.f32 %v6793_v44, %v6792_v61  ;;  %v11902_v61 = vpop.permute.xlu0 %2268 }
 0x950   : > { %v7730_v30 = vpop.eup %7729  ;;  %7735 = vrcp.f32 %v11864_v60 }
 0x951   : > { %4815 = vperm.xlu1 %6992, %v7730_v30  }
 0x952   : > { %v7732_v14 = vpop.eup %7731  ;;  %v6795_v25 = vpop.f32.mrb[120].mxu0 }
 0x953   : > { %v6796_v56 = vpop.f32.mrb[121].mxu0  ;;  %4820 = vperm.xlu0 %6990, %v7732_v14  }
 0x954   : > { %v11869_v19 = vadd.f32 %v6796_v56, %v6795_v25  ;;  %v6798_v0 = vpop.f32.mrb[122].mxu0 }
 0x955   : > { %v6799_v33 = vpop.f32.mrb[123].mxu0 }
 0x956   : > { %7737 = vrcp.f32 %v11869_v19  ;;  %v11874_v28 = vadd.f32 %v6799_v33, %v6798_v0  ;;  %v11907_v33 = vpop.permute.xlu0 %2278 }
 0x958   : > { %v7734_v51 = vpop.eup %7733  ;;  %7739 = vrcp.f32 %v11874_v28 }
 0x959   : > { %4825 = vperm.xlu1 %6992, %v7734_v51  }
 0x95a   : > { %v7736_v11 = vpop.eup %7735  ;;  %v6801_v32 = vpop.f32.mrb[124].mxu0 }
 0x95b   : > { %v6802_v40 = vpop.f32.mrb[125].mxu0  ;;  %4830 = vperm.xlu0 %6990, %v7736_v11  }
 0x95c   : > { %v11879_v57 = vadd.f32 %v6802_v40, %v6801_v32  ;;  %v6804_v46 = vpop.f32.mrb[126].mxu0 }
 0x95d   : > { %v6805_v38 = vpop.f32.mrb[127].mxu0 }
 0x95e   : > { %7741 = vrcp.f32 %v11879_v57  ;;  %v11882_v63 = vadd.f32 %v6805_v38, %v6804_v46  ;;  %v11913_v38 = vpop.permute.xlu0 %2288 }
 0x960   : > { %v7738_v43 = vpop.eup %7737  ;;  %7743 = vrcp.f32 %v11882_v63 }
 0x961   : > { %4835 = vperm.xlu1 %6992, %v7738_v43  }
 0x962   : > { %v7740_v15 = vpop.eup %7739 }
 0x963   : > { %4840 = vperm.xlu0 %6990, %v7740_v15  }
 0x965   : > { %v6823_v17 = vpop.f32.mrb[96].mxu1 }
 0x966   : > { %v6824_v24 = vpop.f32.mrb[97].mxu1 }
 0x967   : > { %v11889_v5 = vadd.f32 %v6824_v24, %v6823_v17  ;;  %v6826_v42 = vpop.f32.mrb[98].mxu1 }
 0x968   : > { %v7742_v39 = vpop.eup %7741  ;;  %v6827_v2 = vpop.f32.mrb[99].mxu1 }
 0x969   : > { %7745 = vrcp.f32 %v11889_v5  ;;  %v11892_v20 = vadd.f32 %v6827_v2, %v6826_v42  ;;  %4845 = vperm.xlu1 %6992, %v7742_v39   ;;  %v11921_v2 = vpop.permute.xlu0 %2298 }
 0x96a   : > { %v7744_v7 = vpop.eup %7743 }
 0x96b   : > { %7747 = vrcp.f32 %v11892_v20  ;;  %4850 = vperm.xlu0 %6990, %v7744_v7  }
 0x96d   : > { %v6829_v54 = vpop.f32.mrb[100].mxu1 }
 0x96e   : > { %v6830_v12 = vpop.f32.mrb[101].mxu1 }
 0x96f   : > { %v11897_v18 = vadd.f32 %v6830_v12, %v6829_v54  ;;  %v6832_v26 = vpop.f32.mrb[102].mxu1 }
 0x970   : > { %v6833_v47 = vpop.f32.mrb[103].mxu1 }
 0x971   : > { %13990 = vst [vmem:[#allocation206_spill] sm:$0xff] %v11897_v18  ;;  %7749 = vrcp.f32 %v11897_v18  ;;  %v11900_v4 = vadd.f32 %v6833_v47, %v6832_v26 }
 0x973   : > { %13991 = vst [vmem:[#allocation210_spill] sm:$0xff] %v11900_v4  ;;  %v7746_v50 = vpop.eup %7745  ;;  %7751 = vrcp.f32 %v11900_v4  ;;  %v14079_v4 = vld [vmem:[#allocation211_spill] sm:$0xff] }
 0x974   : > { %5408 = vperm.xlu1 %6992, %v7746_v50  }
 0x975   : > { %v7748_v44 = vpop.eup %7747  ;;  %v6835_v30 = vpop.f32.mrb[104].mxu1 }
 0x976   : > { %v6836_v14 = vpop.f32.mrb[105].mxu1  ;;  %5413 = vperm.xlu0 %6990, %v7748_v44  }
 0x977   : > { %v11905_v25 = vadd.f32 %v6836_v14, %v6835_v30  ;;  %v6838_v56 = vpop.f32.mrb[106].mxu1  ;;  %v11928_v30 = vpop.permute.xlu0 %2308 }
 0x978   : > { %v6839_v0 = vpop.f32.mrb[107].mxu1 }
 0x979   : > { %13992 = vst [vmem:[#allocation207_spill] sm:$0xff] %v11905_v25  ;;  %7753 = vrcp.f32 %v11905_v25  ;;  %v11910_v51 = vadd.f32 %v6839_v0, %v6838_v56  ;;  %v14073_v25 = vld [vmem:[#allocation182_spill] sm:$0xff] }
 0x97b   : > { %13993 = vst [vmem:[#allocation111_spill] sm:$0xff] %v11910_v51  ;;  %v7750_v11 = vpop.eup %7749  ;;  %7755 = vrcp.f32 %v11910_v51  ;;  %v11931_v0 = vpop.permute.xlu0 %2318  ;;  %v14070_v51 = vld [vmem:[#allocation180_spill] sm:$0xff] }
 0x97c   : > { %5418 = vperm.xlu1 %6992, %v7750_v11  }
 0x97d   : > { %v7752_v32 = vpop.eup %7751  ;;  %v6841_v40 = vpop.f32.mrb[108].mxu1 }
 0x97e   : > { %v6842_v46 = vpop.f32.mrb[109].mxu1  ;;  %5423 = vperm.xlu0 %6990, %v7752_v32  }
 0x97f   : > { %v11915_v43 = vadd.f32 %v6842_v46, %v6841_v40  ;;  %v6844_v15 = vpop.f32.mrb[110].mxu1 }
 0x980   : > { %v6845_v17 = vpop.f32.mrb[111].mxu1 }
 0x981   : > { %13994 = vst [vmem:[#allocation123_spill] sm:$0xff] %v11915_v43  ;;  %7757 = vrcp.f32 %v11915_v43  ;;  %v11918_v24 = vadd.f32 %v6845_v17, %v6844_v15  ;;  %v14064_v43 = vld [vmem:[#allocation176_spill] sm:$0xff] }
 0x983   : > { %13995 = vst [vmem:[#allocation10_spill] sm:$0xff] %v11918_v24  ;;  %v7754_v42 = vpop.eup %7753  ;;  %7759 = vrcp.f32 %v11918_v24  ;;  %v14061_v24 = vld [vmem:[#allocation174_spill] sm:$0xff] }
 0x984   : > { %5428 = vperm.xlu1 %6992, %v7754_v42  }
 0x985   : > { %v7756_v39 = vpop.eup %7755  ;;  %v6847_v7 = vpop.f32.mrb[112].mxu1 }
 0x986   : > { %v6848_v54 = vpop.f32.mrb[113].mxu1  ;;  %5433 = vperm.xlu0 %6990, %v7756_v39   ;;  %v11939_v39 = vpop.permute.xlu0 %2881 }
 0x987   : > { %v11923_v12 = vadd.f32 %v6848_v54, %v6847_v7  ;;  %v6850_v26 = vpop.f32.mrb[114].mxu1 }
 0x988   : > { %v6851_v47 = vpop.f32.mrb[115].mxu1 }
 0x989   : > { %13996 = vst [vmem:[#allocation11_spill] sm:$0xff] %v11923_v12  ;;  %7761 = vrcp.f32 %v11923_v12  ;;  %v11926_v50 = vadd.f32 %v6851_v47, %v6850_v26 }
 0x98b   : > { %13997 = vst [vmem:[#allocation112_spill] sm:$0xff] %v11926_v50  ;;  %v7758_v44 = vpop.eup %7757  ;;  %7763 = vrcp.f32 %v11926_v50  ;;  %v1689_v50 = vmul.f32 %v14006_v55, %v11845_v59  ;;  %v14012_v59 = vld [vmem:[#allocation151_spill] sm:$0xff] }
 0x98c   : > { %5438 = vperm.xlu1 %6992, %v7758_v44   ;;  %v11943_v44 = vpop.permute.xlu0 %2896 }
 0x98d   : > { %v7760_v14 = vpop.eup %7759 }
 0x98e   : > { %5443 = vperm.xlu0 %6990, %v7760_v14  }
 0x990   : > { %v6853_v56 = vpop.f32.mrb[116].mxu1 }
 0x991   : > { %v6854_v11 = vpop.f32.mrb[117].mxu1 }
 0x992   : > { %v11933_v32 = vadd.f32 %v6854_v11, %v6853_v56  ;;  %v6856_v40 = vpop.f32.mrb[118].mxu1 }
 0x993   : > { %v7762_v46 = vpop.eup %7761  ;;  %v6857_v15 = vpop.f32.mrb[119].mxu1 }
 0x994   : > { %13998 = vst [vmem:[#allocation113_spill] sm:$0xff] %v11933_v32  ;;  %7765 = vrcp.f32 %v11933_v32  ;;  %v11936_v17 = vadd.f32 %v6857_v15, %v6856_v40  ;;  %5448 = vperm.xlu1 %6992, %v7762_v46   ;;  %v11949_v46 = vpop.permute.xlu0 %2906 }
 0x995   : > { %v7764_v42 = vpop.eup %7763 }
 0x996   : > { %13999 = vst [vmem:[#allocation153_spill] sm:$0xff] %v11936_v17  ;;  %7767 = vrcp.f32 %v11936_v17  ;;  %5453 = vperm.xlu0 %6990, %v7764_v42  }
 0x99a   : > { %v6859_v7 = vpop.f32.mrb[120].mxu1 }
 0x99b   : > { %v6860_v54 = vpop.f32.mrb[121].mxu1 }
 0x99c   : > { %v11941_v26 = vadd.f32 %v6860_v54, %v6859_v7  ;;  %v6862_v47 = vpop.f32.mrb[122].mxu1  ;;  %v11951_v54 = vpop.permute.xlu0 %2916 }
 0x99d   : > { %v6863_v14 = vpop.f32.mrb[123].mxu1 }
 0x99e   : > { %14000 = vst [vmem:[#allocation145_spill] sm:$0xff] %v11941_v26  ;;  %v7766_v56 = vpop.eup %7765  ;;  %7769 = vrcp.f32 %v11941_v26  ;;  %v11946_v11 = vadd.f32 %v6863_v14, %v6862_v47 }
 0x99f   : > { %5458 = vperm.xlu1 %6992, %v7766_v56  }
 0x9a0   : > { %14001 = vst [vmem:[#allocation25_spill] sm:$0xff] %v11946_v11  ;;  %v7768_v40 = vpop.eup %7767  ;;  %7771 = vrcp.f32 %v11946_v11  ;;  %v11959_v14 = vpop.permute.xlu0 %2926 }
 0x9a1   : > { %5463 = vperm.xlu0 %6990, %v7768_v40  }
 0x9a4   : > { %v11961_v40 = vpop.permute.xlu0 %2936 }
 0x9a7   : > { %v6865_v15 = vpop.f32.mrb[124].mxu1 }
 0x9a8   : > { %v7770_v42 = vpop.eup %7769  ;;  %v6866_v7 = vpop.f32.mrb[125].mxu1 }
 0x9a9   : > { %5468 = vperm.xlu1 %6992, %v7770_v42   ;;  %v11953_v8 = vadd.f32 %v6866_v7, %v6865_v15  ;;  %v6868_v17 = vpop.f32.mrb[126].mxu1  ;;  %v14004_v42 = vld [vmem:[#allocation138_spill] sm:$0xff] }
 0x9aa   : > { %v7772_v32 = vpop.eup %7771  ;;  %v6869_v26 = vpop.f32.mrb[127].mxu1  ;;  %v14005_v15 = vld [vmem:[#allocation34_spill] sm:$0xff] }
 0x9ab   : > { %14002 = vst [vmem:[#allocation114_spill] sm:$0xff] %v11953_v8  ;;  %7773 = vrcp.f32 %v11953_v8  ;;  %v11956_v47 = vadd.f32 %v6869_v26, %v6868_v17  ;;  %5473 = vperm.xlu0 %6990, %v7772_v32   ;;  %v1688_v7 = vmul.f32 %v14005_v15, %v14004_v42  ;;  %v11968_v32 = vpop.permute.xlu0 %2946  ;;  %v14007_v17 = vld [vmem:[#allocation144_spill] sm:$0xff]  ;;  %v14008_v26 = vld [vmem:[#allocation66_spill] sm:$0xff]  ;;  %v14009_v8 = vld [vmem:[#allocation147_spill] sm:$0xff] }
 0x9ac   : > { %v14013_v15 = vld [vmem:[#allocation68_spill] sm:$0xff] }
 0x9ad   : > { %14003 = vst [vmem:[#allocation48_spill] sm:$0xff] %v11956_v47  ;;  %7775 = vrcp.f32 %v11956_v47  ;;  %v1690_v47 = vmul.f32 %v14008_v26, %v14007_v17 }
 0x9af   : > { %v11976_v42 = vpop.permute.xlu0 %3509 }
 0x9b3   : > { %v11984_v17 = vpop.permute.xlu0 %3524 }
 0x9b5   : > { %v7774_v56 = vpop.eup %7773 }
 0x9b6   : > { %5478 = vperm.xlu1 %6992, %v7774_v56   ;;  %v14010_v56 = vld [vmem:[#allocation51_spill] sm:$0xff] }
 0x9b7   : > { %v7776_v11 = vpop.eup %7775  ;;  %v1691_v12 = vmul.f32 %v14010_v56, %v14009_v8  ;;  %v14015_v8 = vld [vmem:[#allocation154_spill] sm:$0xff] }
 0x9b8   : > { %5483 = vperm.xlu0 %6990, %v7776_v11   ;;  %v14011_v11 = vld [vmem:[#allocation14_spill] sm:$0xff] }
 0x9b9   : > { %v1692_v55 = vmul.f32 %v14011_v11, %v11851_v10  ;;  %v11992_v10 = vpop.permute.xlu0 %3534 }
 0x9ba   : > { %5518 = vrot.lane.b32.xlu1 %v1688_v7, %s8041_s9  ;;  %v1693_v7 = vmul.f32 %v14013_v15, %v14012_v59  ;;  %v14019_v59 = vld [vmem:[#allocation18_spill] sm:$0xff] }
 0x9bc   : > { %5520 = vrot.lane.b32.xlu0 %v1689_v50, %s8041_s9  ;;  %v14014_v50 = vld [vmem:[#allocation12_spill] sm:$0xff] }
 0x9bd   : > { %v1694_v26 = vmul.f32 %v14014_v50, %v11859_v48  ;;  %v12000_v48 = vpop.permute.xlu0 %3544 }
 0x9be   : > { %5522 = vrot.lane.b32.xlu1 %v1690_v47, %s8041_s9  ;;  %v14016_v47 = vld [vmem:[#allocation16_spill] sm:$0xff] }
 0x9bf   : > { %v1695_v56 = vmul.f32 %v14016_v47, %v14015_v8  ;;  %v14022_v8 = vld [vmem:[#allocation73_spill] sm:$0xff] }
 0x9c0   : > { %5524 = vrot.lane.b32.xlu0 %v1691_v12, %s8041_s9  ;;  %v14017_v12 = vld [vmem:[#allocation54_spill] sm:$0xff] }
 0x9c1   : > { %v1696_v11 = vmul.f32 %v14017_v12, %v11866_v34  ;;  %v12008_v34 = vpop.permute.xlu0 %3554 }
 0x9c2   : > { %5526 = vrot.lane.b32.xlu1 %v1692_v55, %s8041_s9  ;;  %v14018_v55 = vld [vmem:[#allocation157_spill] sm:$0xff] }
 0x9c3   : > { %v1697_v15 = vmul.f32 %v14019_v59, %v14018_v55  ;;  %v14025_v55 = vld [vmem:[#allocation67_spill] sm:$0xff] }
 0x9c4   : > { %5528 = vrot.lane.b32.xlu0 %v1693_v7, %s8041_s9  ;;  %v14020_v7 = vld [vmem:[#allocation20_spill] sm:$0xff] }
 0x9c5   : > { %v1698_v50 = vmul.f32 %v14020_v7, %v11871_v6  ;;  %v12016_v6 = vpop.permute.xlu0 %3564 }
 0x9c6   : > { %5530 = vrot.lane.b32.xlu1 %v1694_v26, %s8041_s9  ;;  %v14021_v26 = vld [vmem:[#allocation160_spill] sm:$0xff] }
 0x9c7   : > { %v1699_v47 = vmul.f32 %v14022_v8, %v14021_v26  ;;  %v14028_v26 = vld [vmem:[#allocation69_spill] sm:$0xff] }
 0x9c8   : > { %5532 = vrot.lane.b32.xlu0 %v1695_v56, %s8041_s9  ;;  %v14023_v56 = vld [vmem:[#allocation65_spill] sm:$0xff] }
 0x9c9   : > { %v1700_v12 = vmul.f32 %v14023_v56, %v11877_v45  ;;  %v12024_v45 = vpop.permute.xlu0 %3574 }
 0x9ca   : > { %5534 = vrot.lane.b32.xlu1 %v1696_v11, %s8041_s9  ;;  %v14024_v11 = vld [vmem:[#allocation162_spill] sm:$0xff] }
 0x9cb   : > { %v1701_v59 = vmul.f32 %v14025_v55, %v14024_v11  ;;  %v14031_v11 = vld [vmem:[#allocation86_spill] sm:$0xff] }
 0x9cc   : > { %5536 = vrot.lane.b32.xlu0 %v1697_v15, %s8041_s9  ;;  %v14026_v15 = vld [vmem:[#allocation75_spill] sm:$0xff] }
 0x9cd   : > { %v1702_v7 = vmul.f32 %v14026_v15, %v11885_v16  ;;  %v12032_v16 = vpop.permute.xlu0 %3584  ;;  %v14033_v15 = vld [vmem:[#allocation88_spill] sm:$0xff] }
 0x9ce   : > { %5538 = vrot.lane.b32.xlu1 %v1698_v50, %s8041_s9  ;;  %v14027_v50 = vld [vmem:[#allocation167_spill] sm:$0xff] }
 0x9cf   : > { %v1703_v8 = vmul.f32 %v14028_v26, %v14027_v50 }
 0x9d0   : > { %5540 = vrot.lane.b32.xlu0 %v1699_v47, %s8041_s9  ;;  %v14029_v47 = vld [vmem:[#allocation84_spill] sm:$0xff] }
 0x9d1   : > { %v2321_v56 = vmul.f32 %v14029_v47, %v11887_v9  ;;  %v12040_v9 = vpop.permute.xlu0 %4147  ;;  %v14036_v47 = vld [vmem:[#allocation91_spill] sm:$0xff] }
 0x9d2   : > { %5542 = vrot.lane.b32.xlu1 %v1700_v12, %s8041_s9  ;;  %v14030_v12 = vld [vmem:[#allocation169_spill] sm:$0xff] }
 0x9d3   : > { %v2322_v55 = vmul.f32 %v14031_v11, %v14030_v12 }
 0x9d4   : > { %5544 = vrot.lane.b32.xlu0 %v1701_v59, %s8041_s9  ;;  %v14032_v59 = vld [vmem:[#allocation170_spill] sm:$0xff] }
 0x9d5   : > { %v2323_v50 = vmul.f32 %v14033_v15, %v14032_v59  ;;  %v12048_v59 = vpop.permute.xlu0 %4162  ;;  %v14039_v15 = vld [vmem:[#allocation94_spill] sm:$0xff] }
 0x9d6   : > { %5546 = vrot.lane.b32.xlu1 %v1702_v7, %s8041_s9  ;;  %v14034_v7 = vld [vmem:[#allocation89_spill] sm:$0xff] }
 0x9d7   : > { %v2324_v26 = vmul.f32 %v14034_v7, %v11895_v37  ;;  %v14040_v37 = vld [vmem:[#allocation96_spill] sm:$0xff] }
 0x9d8   : > { %5548 = vrot.lane.b32.xlu0 %v1703_v8, %s8041_s9  ;;  %v14035_v8 = vld [vmem:[#allocation173_spill] sm:$0xff] }
 0x9d9   : > { %v2325_v12 = vmul.f32 %v14036_v47, %v14035_v8  ;;  %v12056_v7 = vpop.permute.xlu0 %4172  ;;  %v14042_v8 = vld [vmem:[#allocation98_spill] sm:$0xff] }
 0x9da   : > { %5582 = vrot.lane.b32.xlu1 %v2321_v56, %s8042_s13  ;;  %v14037_v56 = vld [vmem:[#allocation92_spill] sm:$0xff] }
 0x9db   : > { %v2326_v11 = vmul.f32 %v14037_v56, %v11902_v61  ;;  %v14043_v61 = vld [vmem:[#allocation99_spill] sm:$0xff] }
 0x9dc   : > { %5584 = vrot.lane.b32.xlu0 %v2322_v55, %s8042_s13  ;;  %v14038_v55 = vld [vmem:[#allocation175_spill] sm:$0xff] }
 0x9dd   : > { %v2327_v41 = vmul.f32 %v14039_v15, %v14038_v55  ;;  %v12064_v56 = vpop.permute.xlu0 %4182  ;;  %v14045_v55 = vld [vmem:[#allocation101_spill] sm:$0xff] }
 0x9de   : > { %5586 = vrot.lane.b32.xlu1 %v2323_v50, %s8042_s13  ;;  %v2328_v50 = vmul.f32 %v14040_v37, %v11907_v33 }
 0x9e0   : > { %5588 = vrot.lane.b32.xlu0 %v2324_v26, %s8042_s13  ;;  %v14041_v26 = vld [vmem:[#allocation177_spill] sm:$0xff] }
 0x9e1   : > { %v2329_v47 = vmul.f32 %v14042_v8, %v14041_v26  ;;  %v12072_v37 = vpop.permute.xlu0 %4192  ;;  %v14048_v26 = vld [vmem:[#allocation104_spill] sm:$0xff] }
 0x9e2   : > { %5590 = vrot.lane.b32.xlu1 %v2325_v12, %s8042_s13  ;;  %v2330_v12 = vmul.f32 %v14043_v61, %v11913_v38  ;;  %v14049_v38 = vld [vmem:[#allocation106_spill] sm:$0xff] }
 0x9e4   : > { %5592 = vrot.lane.b32.xlu0 %v2326_v11, %s8042_s13  ;;  %v14044_v11 = vld [vmem:[#allocation179_spill] sm:$0xff] }
 0x9e5   : > { %v2331_v15 = vmul.f32 %v14045_v55, %v14044_v11  ;;  %v12080_v61 = vpop.permute.xlu0 %4202  ;;  %v14051_v11 = vld [vmem:[#allocation108_spill] sm:$0xff] }
 0x9e6   : > { %5594 = vrot.lane.b32.xlu1 %v2327_v41, %s8042_s13  ;;  %v14046_v41 = vld [vmem:[#allocation102_spill] sm:$0xff] }
 0x9e7   : > { %v2332_v33 = vmul.f32 %v14046_v41, %v11921_v2  ;;  %v14052_v2 = vld [vmem:[#allocation109_spill] sm:$0xff] }
 0x9e8   : > { %5596 = vrot.lane.b32.xlu0 %v2328_v50, %s8042_s13  ;;  %v14047_v50 = vld [vmem:[#allocation181_spill] sm:$0xff] }
 0x9e9   : > { %v2333_v8 = vmul.f32 %v14048_v26, %v14047_v50  ;;  %v12088_v41 = vpop.permute.xlu0 %4212  ;;  %v14054_v50 = vld [vmem:[#allocation118_spill] sm:$0xff] }
 0x9ea   : > { %5598 = vrot.lane.b32.xlu1 %v2329_v47, %s8042_s13  ;;  %v2334_v47 = vmul.f32 %v14049_v38, %v11928_v30  ;;  %v12093_v30 = vpop.permute.xlu1 %4780 }
 0x9ec   : > { %5600 = vrot.lane.b32.xlu0 %v2330_v12, %s8042_s13  ;;  %v14050_v12 = vld [vmem:[#allocation183_spill] sm:$0xff] }
 0x9ed   : > { %v2335_v55 = vmul.f32 %v14051_v11, %v14050_v12  ;;  %v14057_v12 = vld [vmem:[#allocation121_spill] sm:$0xff] }
 0x9ee   : > { %5602 = vrot.lane.b32.xlu1 %v2331_v15, %s8042_s13  ;;  %v2336_v15 = vmul.f32 %v14052_v2, %v11931_v0  ;;  %v14056_v0 = vld [vmem:[#allocation171_spill] sm:$0xff]  ;;  %v14058_v2 = vld [vmem:[#allocation172_spill] sm:$0xff] }
 0x9ef   : > { %v2956_v11 = vmul.f32 %v14057_v12, %v14056_v0  ;;  %v14062_v0 = vld [vmem:[#allocation126_spill] sm:$0xff] }
 0x9f0   : > { %5604 = vrot.lane.b32.xlu0 %v2332_v33, %s8042_s13  ;;  %v14053_v33 = vld [vmem:[#allocation168_spill] sm:$0xff]  ;;  %v2959_v12 = vmul.f32 %v14062_v0, %v14061_v24  ;;  %v14066_v24 = vld [vmem:[#allocation131_spill] sm:$0xff] }
 0x9f1   : > { %v2954_v26 = vmul.f32 %v14054_v50, %v14053_v33  ;;  %v14059_v33 = vld [vmem:[#allocation122_spill] sm:$0xff]  ;;  %v2962_v0 = vmul.f32 %v14066_v24, %v11951_v54  ;;  %v14071_v54 = vld [vmem:[#allocation137_spill] sm:$0xff] }
 0x9f2   : > { %5606 = vrot.lane.b32.xlu1 %v2333_v8, %s8042_s13  ;;  %v14055_v8 = vld [vmem:[#allocation119_spill] sm:$0xff]  ;;  %v2965_v24 = vmul.f32 %v14071_v54, %v14070_v51 }
 0x9f3   : > { %v2955_v38 = vmul.f32 %v14055_v8, %v11939_v39  ;;  %v14060_v39 = vld [vmem:[#allocation124_spill] sm:$0xff]  ;;  %v14075_v51 = vld [vmem:[#allocation143_spill] sm:$0xff] }
 0x9f4   : > { %5608 = vrot.lane.b32.xlu0 %v2334_v47, %s8042_s13  ;;  %v12098_v47 = vpop.permute.xlu0 %4775  ;;  %v2958_v8 = vmul.f32 %v14060_v39, %v11943_v44  ;;  %v14065_v44 = vld [vmem:[#allocation129_spill] sm:$0xff]  ;;  %v2968_v54 = vmul.f32 %v14075_v51, %v11968_v32  ;;  %v14080_v32 = vld [vmem:[#allocation32_spill] sm:$0xff] }
 0x9f5   : > { %v2961_v39 = vmul.f32 %v14065_v44, %v14064_v43  ;;  %v14069_v43 = vld [vmem:[#allocation134_spill] sm:$0xff]  ;;  %v3588_v51 = vmul.f32 %v14080_v32, %v14079_v4  ;;  %v14085_v4 = vld [vmem:[#allocation213_spill] sm:$0xff] }
 0x9f6   : > { %5610 = vrot.lane.b32.xlu1 %v2335_v55, %s8042_s13  ;;  %v12103_v55 = vpop.permute.xlu1 %4785  ;;  %v2964_v44 = vmul.f32 %v14069_v43, %v11959_v14  ;;  %v14074_v14 = vld [vmem:[#allocation141_spill] sm:$0xff] }
 0x9f7   : > { %v2967_v43 = vmul.f32 %v14074_v14, %v14073_v25  ;;  %v14078_v25 = vld [vmem:[#allocation47_spill] sm:$0xff]  ;;  %v14086_v32 = vld [vmem:[#allocation17_spill] sm:$0xff] }
 0x9f8   : > { %5612 = vrot.lane.b32.xlu0 %v2336_v15, %s8042_s13  ;;  %v2957_v15 = vmul.f32 %v14059_v33, %v14058_v2  ;;  %v12108_v50 = vpop.permute.xlu0 %4790  ;;  %v14063_v2 = vld [vmem:[#allocation128_spill] sm:$0xff]  ;;  %v3587_v14 = vmul.f32 %v14078_v25, %v11976_v42  ;;  %v14084_v42 = vld [vmem:[#allocation15_spill] sm:$0xff]  ;;  %v3591_v21 = vmul.f32 %v14086_v32, %v14085_v4  ;;  %v14092_v4 = vld [vmem:[#allocation26_spill] sm:$0xff]  ;;  %s12881_s13 = scalar_lea.hbm %s12937_s5, %s6358_s6 }
 0x9f9   : > { %v2960_v33 = vmul.f32 %v14063_v2, %v11949_v46  ;;  %v14068_v46 = vld [vmem:[#allocation132_spill] sm:$0xff]  ;;  %v3594_v32 = vmul.f32 %v14092_v4, %v12000_v48  ;;  %v14099_v48 = vld [vmem:[#allocation187_spill] sm:$0xff] }
 0x9fa   : > { %5646 = vrot.lane.b32.xlu1 %v2954_v26, %s8043_s12  ;;  %v12113_v26 = vpop.permute.xlu1 %4795  ;;  %v2963_v2 = vmul.f32 %v14068_v46, %v14067_v27  ;;  %v14072_v27 = vld [vmem:[#allocation140_spill] sm:$0xff] }
 0x9fb   : > { %v2966_v46 = vmul.f32 %v14072_v27, %v11961_v40  ;;  %v14077_v40 = vld [vmem:[#allocation146_spill] sm:$0xff] }
 0x9fc   : > { %5648 = vrot.lane.b32.xlu0 %v2955_v38, %s8043_s12  ;;  %v12118_v38 = vpop.permute.xlu0 %4800  ;;  %v2969_v27 = vmul.f32 %v14077_v40, %v14076_v53  ;;  %v14081_v53 = vld [vmem:[#allocation212_spill] sm:$0xff]  ;;  %v14082_v40 = vld [vmem:[#allocation45_spill] sm:$0xff] }
 0x9fe   : > { %5650 = vrot.lane.b32.xlu1 %v2956_v11, %s8043_s12  ;;  %v12123_v11 = vpop.permute.xlu1 %4805 }
 0xa00   : > { %5652 = vrot.lane.b32.xlu0 %v2957_v15, %s8043_s12  ;;  %v12128_v15 = vpop.permute.xlu0 %4810 }
 0xa02   : > { %5654 = vrot.lane.b32.xlu1 %v2958_v8, %s8043_s12  ;;  %v12133_v8 = vpop.permute.xlu1 %4815 }
 0xa04   : > { %5656 = vrot.lane.b32.xlu0 %v2959_v12, %s8043_s12  ;;  %v12138_v12 = vpop.permute.xlu0 %4820 }
 0xa06   : > { %5658 = vrot.lane.b32.xlu1 %v2960_v33, %s8043_s12  ;;  %v12143_v33 = vpop.permute.xlu1 %4825 }
 0xa08   : > { %5660 = vrot.lane.b32.xlu0 %v2961_v39, %s8043_s12  ;;  %v12148_v39 = vpop.permute.xlu0 %4830 }
 0xa0a   : > { %5662 = vrot.lane.b32.xlu1 %v2962_v0, %s8043_s12  ;;  %v12153_v0 = vpop.permute.xlu1 %4835 }
 0xa0c   : > { %5664 = vrot.lane.b32.xlu0 %v2963_v2, %s8043_s12  ;;  %v12158_v2 = vpop.permute.xlu0 %4840 }
 0xa0e   : > { %5666 = vrot.lane.b32.xlu1 %v2964_v44, %s8043_s12  ;;  %v12163_v44 = vpop.permute.xlu1 %4845 }
 0xa10   : > { %5668 = vrot.lane.b32.xlu0 %v2965_v24, %s8043_s12  ;;  %v12168_v24 = vpop.permute.xlu0 %4850 }
 0xa12   : > { %5670 = vrot.lane.b32.xlu1 %v2966_v46, %s8043_s12  ;;  %v12173_v46 = vpop.permute.xlu1 %5408 }
 0xa14   : > { %5672 = vrot.lane.b32.xlu0 %v2967_v43, %s8043_s12  ;;  %v12178_v43 = vpop.permute.xlu0 %5413 }
 0xa16   : > { %5674 = vrot.lane.b32.xlu1 %v2968_v54, %s8043_s12  ;;  %v3589_v54 = vmul.f32 %v14082_v40, %v14081_v53  ;;  %v12183_v18 = vpop.permute.xlu1 %5418  ;;  %v14088_v53 = vld [vmem:[#allocation19_spill] sm:$0xff] }
 0xa17   : > { %14083 = vst [vmem:[#allocation125_spill] sm:$0xff] %v12183_v18  ;;  %v3592_v40 = vmul.f32 %v14088_v53, %v11992_v10  ;;  %v14089_v18 = vld [vmem:[#allocation214_spill] sm:$0xff]  ;;  %v14094_v10 = vld [vmem:[#allocation64_spill] sm:$0xff] }
 0xa18   : > { %5676 = vrot.lane.b32.xlu0 %v2969_v27, %s8043_s12  ;;  %v3590_v27 = vmul.f32 %v14084_v42, %v11984_v17  ;;  %v12188_v25 = vpop.permute.xlu0 %5423  ;;  %v14090_v17 = vld [vmem:[#allocation24_spill] sm:$0xff]  ;;  %s7954_s12 = scalar_lea.vmem %s12884_s10, 2048 }
 0xa19   : > { %v3593_v42 = vmul.f32 %v14090_v17, %v14089_v18  ;;  %v14096_v18 = vld [vmem:[#allocation74_spill] sm:$0xff]  ;;  %p7955_p12 = scmp.ne.s32.totalorder %s12884_s10, %s7954_s12 }
 0xa1a   : > { %5710 = vrot.lane.b32.xlu1 %v3587_v14, %s8044_s14  ;;  %v12193_v14 = vpop.permute.xlu1 %5428  ;;  %v3596_v17 = vmul.f32 %v14096_v18, %v12008_v34  ;;  %v14104_v34 = vld [vmem:[#allocation190_spill] sm:$0xff] }
 0xa1b   : > { %14087 = vst [vmem:[#allocation115_spill] sm:$0xff] %v12193_v14  ;;  %v14093_v14 = vld [vmem:[#allocation215_spill] sm:$0xff]  ;;  %p7956_p13 = pnand %p7955_p12, %p8118_p5 }
 0xa1c   : > { %5712 = vrot.lane.b32.xlu0 %v3588_v51, %s8044_s14  ;;  %v12198_v51 = vpop.permute.xlu0 %5433  ;;  %v3595_v53 = vmul.f32 %v14094_v10, %v14093_v14  ;;  %v14101_v14 = vld [vmem:[#allocation188_spill] sm:$0xff] }
 0xa1d   : > { %v3598_v10 = vmul.f32 %v14101_v14, %v12016_v6  ;;  %v14109_v6 = vld [vmem:[#allocation193_spill] sm:$0xff]  ;;  %p7957_p0 = pneg %p7956_p13 }
 0xa1e   : > { %5714 = vrot.lane.b32.xlu1 %v3589_v54, %s8044_s14  ;;  %v12203_v54 = vpop.permute.xlu1 %5438 }
 0xa1f   : > { %14091 = vst [vmem:[#allocation148_spill] sm:$0xff] %v12203_v54  ;;  %v14098_v54 = vld [vmem:[#allocation216_spill] sm:$0xff] }
 0xa20   : > { %5716 = vrot.lane.b32.xlu0 %v3590_v27, %s8044_s14  ;;  %v12208_v27 = vpop.permute.xlu0 %5443  ;;  %v3597_v4 = vmul.f32 %v14099_v48, %v14098_v54  ;;  %v14106_v54 = vld [vmem:[#allocation191_spill] sm:$0xff] }
 0xa21   : > { %v3600_v48 = vmul.f32 %v14106_v54, %v12024_v45  ;;  %v14114_v45 = vld [vmem:[#allocation185_spill] sm:$0xff] }
 0xa22   : > { %5718 = vrot.lane.b32.xlu1 %v3591_v21, %s8044_s14  ;;  %v12213_v21 = vpop.permute.xlu1 %5448 }
 0xa23   : > { %14095 = vst [vmem:[#allocation23_spill] sm:$0xff] %v12213_v21  ;;  %v14103_v21 = vld [vmem:[#allocation217_spill] sm:$0xff] }
 0xa24   : > { %5720 = vrot.lane.b32.xlu0 %v3592_v40, %s8044_s14  ;;  %v12218_v40 = vpop.permute.xlu0 %5453  ;;  %v3599_v18 = vmul.f32 %v14104_v34, %v14103_v21  ;;  %v14111_v21 = vld [vmem:[#allocation194_spill] sm:$0xff] }
 0xa25   : > { %14097 = vst [vmem:[#allocation192_spill] sm:$0xff] %v12218_v40  ;;  %v3602_v34 = vmul.f32 %v14111_v21, %v12032_v16  ;;  %v14116_v16 = vld [vmem:[#allocation87_spill] sm:$0xff]  ;;  %v14128_v40 = vld [vmem:[#allocation165_spill] sm:$0xff] }
 0xa26   : > { %5722 = vrot.lane.b32.xlu1 %v3593_v42, %s8044_s14  ;;  %v12223_v42 = vpop.permute.xlu1 %5458  ;;  %v14117_v21 = vld [vmem:[#allocation79_spill] sm:$0xff] }
 0xa27   : > { %14100 = vst [vmem:[#allocation195_spill] sm:$0xff] %v12223_v42  ;;  %v14108_v42 = vld [vmem:[#allocation218_spill] sm:$0xff] }
 0xa28   : > { %5724 = vrot.lane.b32.xlu0 %v3594_v32, %s8044_s14  ;;  %v12228_v32 = vpop.permute.xlu0 %5463  ;;  %v3601_v14 = vmul.f32 %v14109_v6, %v14108_v42  ;;  %v14115_v42 = vld [vmem:[#allocation63_spill] sm:$0xff] }
 0xa29   : > { %14102 = vst [vmem:[#allocation127_spill] sm:$0xff] %v12228_v32  ;;  %v4221_v6 = vmul.f32 %v14115_v42, %v12040_v9  ;;  %v14120_v9 = vld [vmem:[#allocation103_spill] sm:$0xff]  ;;  %v14124_v32 = vld [vmem:[#allocation158_spill] sm:$0xff] }
 0xa2a   : > { %5726 = vrot.lane.b32.xlu1 %v3595_v53, %s8044_s14  ;;  %v12233_v53 = vpop.permute.xlu1 %5468  ;;  %v4224_v42 = vmul.f32 %v14120_v9, %v12048_v59  ;;  %v14125_v59 = vld [vmem:[#allocation80_spill] sm:$0xff] }
 0xa2b   : > { %14105 = vst [vmem:[#allocation116_spill] sm:$0xff] %v12233_v53  ;;  %v14113_v53 = vld [vmem:[#allocation78_spill] sm:$0xff]  ;;  %v4227_v9 = vmul.f32 %v14125_v59, %v14124_v32  ;;  %v14131_v32 = vld [vmem:[#allocation52_spill] sm:$0xff] }
 0xa2c   : > { %5728 = vrot.lane.b32.xlu0 %v3596_v17, %s8044_s14  ;;  %v12238_v17 = vpop.permute.xlu0 %5473  ;;  %v4220_v54 = vmul.f32 %v14114_v45, %v14113_v53  ;;  %v14118_v53 = vld [vmem:[#allocation90_spill] sm:$0xff]  ;;  %v4230_v59 = vmul.f32 %v14131_v32, %v12072_v37  ;;  %v14138_v37 = vld [vmem:[#allocation76_spill] sm:$0xff] }
 0xa2d   : > { %14107 = vst [vmem:[#allocation150_spill] sm:$0xff] %v12238_v17  ;;  %v14119_v45 = vld [vmem:[#allocation186_spill] sm:$0xff]  ;;  %v14121_v17 = vld [vmem:[#allocation163_spill] sm:$0xff] }
 0xa2e   : > { %5730 = vrot.lane.b32.xlu1 %v3597_v4, %s8044_s14 }
 0xa30   : > { %5732 = vrot.lane.b32.xlu0 %v3598_v10, %s8044_s14 }
 0xa32   : > { %5734 = vrot.lane.b32.xlu1 %v3599_v18, %s8044_s14 }
 0xa34   : > { %5736 = vrot.lane.b32.xlu0 %v3600_v48, %s8044_s14 }
 0xa35   : > { %v12243_v4 = vpop.permute.xlu1 %5478 }
 0xa36   : > { %14110 = vst [vmem:[#allocation130_spill] sm:$0xff] %v12243_v4  ;;  %5738 = vrot.lane.b32.xlu1 %v3601_v14, %s8044_s14  ;;  %v4222_v14 = vmul.f32 %v14117_v21, %v14116_v16  ;;  %v14122_v16 = vld [vmem:[#allocation61_spill] sm:$0xff] }
 0xa37   : > { %v12248_v10 = vpop.permute.xlu0 %5483  ;;  %v4225_v21 = vmul.f32 %v14122_v16, %v14121_v17  ;;  %v14127_v17 = vld [vmem:[#allocation105_spill] sm:$0xff] }
 0xa38   : > { %14112 = vst [vmem:[#allocation117_spill] sm:$0xff] %v12248_v10  ;;  %5740 = vrot.lane.b32.xlu0 %v3602_v34, %s8044_s14  ;;  %v4223_v34 = vmul.f32 %v14119_v45, %v14118_v53  ;;  %v14123_v53 = vld [vmem:[#allocation93_spill] sm:$0xff]  ;;  %v4228_v16 = vmul.f32 %v14127_v17, %v12064_v56  ;;  %v14134_v56 = vld [vmem:[#allocation107_spill] sm:$0xff]  ;;  %s8048_s14 = smov [#allocation2]  }
 0xa39   : > { %v12253_v18 = vpop.permute.xlu1 %5518  ;;  %v4226_v45 = vmul.f32 %v14123_v53, %v12056_v7  ;;  %v14129_v7 = vld [vmem:[#allocation95_spill] sm:$0xff] }
 0xa3a   : > { %5774 = vrot.lane.b32.xlu1 %v4220_v54, %s8045_s15  ;;  %v4229_v53 = vmul.f32 %v14129_v7, %v14128_v40  ;;  %v14136_v40 = vld [vmem:[#allocation82_spill] sm:$0xff] }
 0xa3b   : > { %v12258_v48 = vpop.permute.xlu0 %5520  ;;  %v4232_v7 = vmul.f32 %v14136_v40, %v12080_v61  ;;  %v4853_v40 = vmul.f32 %v11817_v35, %v12098_v47  ;;  %v4856_v35 = vmul.f32 %v11830_v62, %v12108_v50  ;;  %v4859_v62 = vmul.f32 %v11843_v52, %v12123_v11 }
 0xa3c   : > { %5776 = vrot.lane.b32.xlu0 %v4221_v6, %s8045_s15  ;;  %v4862_v52 = vmul.f32 %v11856_v31, %v12138_v12  ;;  %v4865_v31 = vmul.f32 %v11869_v19, %v12153_v0  ;;  %v14144_v19 = vld [vmem:[#allocation72_spill] sm:$0xff] }
 0xa3d   : > { %v12263_v10 = vpop.permute.xlu1 %5522  ;;  %v1070_v0 = vmul.f32 %v14144_v19, %v11840_v49  ;;  %v14147_v49 = vld [vmem:[#allocation40_spill] sm:$0xff] }
 0xa3e   : > { %5778 = vrot.lane.b32.xlu1 %v4222_v14, %s8045_s15 }
 0xa3f   : > { %v12268_v4 = vpop.permute.xlu0 %5524 }
 0xa40   : > { %5780 = vrot.lane.b32.xlu0 %v4223_v34, %s8045_s15 }
 0xa41   : > { %v12273_v54 = vpop.permute.xlu1 %5526 }
 0xa42   : > { %5782 = vrot.lane.b32.xlu1 %v4224_v42, %s8045_s15 }
 0xa43   : > { %v12278_v6 = vpop.permute.xlu0 %5528 }
 0xa44   : > { %5784 = vrot.lane.b32.xlu0 %v4225_v21, %s8045_s15 }
 0xa45   : > { %v12283_v14 = vpop.permute.xlu1 %5530 }
 0xa46   : > { %5786 = vrot.lane.b32.xlu1 %v4226_v45, %s8045_s15 }
 0xa47   : > { %v12288_v34 = vpop.permute.xlu0 %5532 }
 0xa48   : > { %14126 = vst [vmem:[#allocation133_spill] sm:$0xff] %v12288_v34  ;;  %5788 = vrot.lane.b32.xlu0 %v4227_v9, %s8045_s15  ;;  %v14133_v34 = vld [vmem:[#allocation166_spill] sm:$0xff] }
 0xa49   : > { %v12293_v42 = vpop.permute.xlu1 %5534  ;;  %v4231_v17 = vmul.f32 %v14134_v56, %v14133_v34  ;;  %v14139_v34 = vld [vmem:[#allocation100_spill] sm:$0xff] }
 0xa4a   : > { %5790 = vrot.lane.b32.xlu1 %v4228_v16, %s8045_s15  ;;  %v4234_v56 = vmul.f32 %v14139_v34, %v12088_v41 }
 0xa4b   : > { %v12298_v21 = vpop.permute.xlu0 %5536 }
 0xa4c   : > { %14130 = vst [vmem:[#allocation120_spill] sm:$0xff] %v12298_v21  ;;  %5792 = vrot.lane.b32.xlu0 %v4229_v53, %s8045_s15  ;;  %v14137_v21 = vld [vmem:[#allocation201_spill] sm:$0xff] }
 0xa4d   : > { %v12303_v45 = vpop.permute.xlu1 %5538  ;;  %v4233_v32 = vmul.f32 %v14138_v37, %v14137_v21  ;;  %v14143_v37 = vld [vmem:[#allocation55_spill] sm:$0xff] }
 0xa4e   : > { %14132 = vst [vmem:[#allocation135_spill] sm:$0xff] %v12303_v45  ;;  %5794 = vrot.lane.b32.xlu1 %v4230_v59, %s8045_s15  ;;  %v14141_v45 = vld [vmem:[#allocation83_spill] sm:$0xff] }
 0xa4f   : > { %v12308_v9 = vpop.permute.xlu0 %5540 }
 0xa50   : > { %14135 = vst [vmem:[#allocation28_spill] sm:$0xff] %v12308_v9  ;;  %5796 = vrot.lane.b32.xlu0 %v4231_v17, %s8045_s15  ;;  %v14140_v9 = vld [vmem:[#allocation202_spill] sm:$0xff] }
 0xa51   : > { %v12313_v16 = vpop.permute.xlu1 %5542  ;;  %v4235_v61 = vmul.f32 %v14141_v45, %v14140_v9  ;;  %v4855_v45 = vmul.f32 %v11827_v22, %v12103_v55  ;;  %v4858_v22 = vmul.f32 %v11838_v36, %v12118_v38  ;;  %v4861_v36 = vmul.f32 %v11853_v58, %v12133_v8 }
 0xa52   : > { %5798 = vrot.lane.b32.xlu1 %v4232_v7, %s8045_s15  ;;  %v4854_v7 = vmul.f32 %v11822_v13, %v12093_v30  ;;  %v4857_v13 = vmul.f32 %v11835_v1, %v12113_v26  ;;  %v4860_v1 = vmul.f32 %v11848_v23, %v12128_v15  ;;  %v4863_v23 = vmul.f32 %v11861_v29, %v12143_v33  ;;  %v14142_v33 = vld [vmem:[#allocation164_spill] sm:$0xff] }
 0xa53   : > { %v12318_v53 = vpop.permute.xlu0 %5544  ;;  %v4864_v58 = vmul.f32 %v11864_v60, %v12148_v39  ;;  %v4866_v29 = vmul.f32 %v11874_v28, %v12158_v2  ;;  %v4867_v39 = vmul.f32 %v11879_v57, %v12163_v44  ;;  %v14145_v2 = vld [vmem:[#allocation136_spill] sm:$0xff] }
 0xa54   : > { %5800 = vrot.lane.b32.xlu0 %v4233_v32, %s8045_s15  ;;  %v1069_v32 = vmul.f32 %v14143_v37, %v14142_v33  ;;  %v14155_v33 = vld [vmem:[#allocation58_spill] sm:$0xff] }
 0xa55   : > { %v5547_v59 = vpop.permute.xlu1 %5546 }
 0xa56   : > { %5802 = vrot.lane.b32.xlu1 %v4234_v56, %s8045_s15  ;;  %v5965_v34 = vsel %vm5950_vm0, %v1069_v32, %v5547_v59  ;;  %v14146_v56 = vld [vmem:[#allocation59_spill] sm:$0xff]  ;;  %v1056_v59 = vmul.f32 %v14147_v49, %v11809_v3  ;;  %v5487_v3 = vmul.f32 %v11892_v20, %v12178_v43  ;;  %v14156_v32 = vld [vmem:[#allocation210_spill] sm:$0xff] }
 0xa57   : > { %v5549_v17 = vpop.permute.xlu0 %5548  ;;  %v14162_v49 = vld [vmem:[#allocation71_spill] sm:$0xff] }
 0xa58   : > { %5804 = vrot.lane.b32.xlu0 %v4235_v61, %s8045_s15  ;;  %v1055_v61 = vmul.f32 %v14146_v56, %v14145_v2  ;;  %v5966_v57 = vsel %vm5950_vm0, %v1070_v0, %v5549_v17  ;;  %v14148_v17 = vld [vmem:[#allocation142_spill] sm:$0xff]  ;;  %v14159_v56 = vld [vmem:[#allocation115_spill] sm:$0xff]  ;;  %s7958_s15 = sshll.u32 %s8048_s14, 4  ;;  %s7959_s15 = int_to_ptr.vmem [resolvable:$false] %s7958_s15 }
 0xa59   : > { %v5583_v21 = vpop.permute.xlu1 %5582  ;;  %p7961_p1 = scmp.lt.s32.totalorder %s12884_s10, %s7959_s15 }
 0xa5a   : > { %5838 = vrot.lane.b32.xlu1 %v4853_v40, %s8046_s16  ;;  %v4868_v40 = vmul.f32 %v11882_v63, %v12168_v24 }
 0xa5b   : > { %v12332_v41 = vpop.permute.xlu0 %5584 }
 0xa5c   : > { %5840 = vrot.lane.b32.xlu0 %v4854_v7, %s8046_s16 }
 0xa5d   : > { %v12337_v9 = vpop.permute.xlu1 %5586 }
 0xa5e   : > { %5842 = vrot.lane.b32.xlu1 %v4855_v45, %s8046_s16  ;;  %v5486_v45 = vmul.f32 %v11889_v5, %v12173_v46  ;;  %v5952_v5 = vsel %vm5950_vm0, %v1056_v59, %v12258_v48 }
 0xa5f   : > { %v12342_v47 = vpop.permute.xlu0 %5588 }
 0xa60   : > { %5844 = vrot.lane.b32.xlu0 %v4856_v35, %s8046_s16  ;;  %v5951_v35 = vsel %vm5950_vm0, %v1055_v61, %v12253_v18  ;;  %v5969_v18 = vsel %vm5967_vm1, %v5952_v5, %v12332_v41  ;;  %v14154_v41 = vld [vmem:[#allocation149_spill] sm:$0xff]  ;;  %v14160_v61 = vld [vmem:[#allocation207_spill] sm:$0xff] }
 0xa61   : > { %v12347_v30 = vpop.permute.xlu1 %5590  ;;  %v5968_v24 = vsel %vm5967_vm1, %v5951_v35, %v5583_v21  ;;  %v1059_v37 = vmul.f32 %v14155_v33, %v14154_v41  ;;  %v14167_v5 = vld [vmem:[#allocation123_spill] sm:$0xff]  ;;  %v14173_v41 = vld [vmem:[#allocation33_spill] sm:$0xff] }
 0xa62   : > { %5846 = vrot.lane.b32.xlu1 %v4857_v13, %s8046_s16 }
 0xa63   : > { %v12352_v55 = vpop.permute.xlu0 %5592 }
 0xa64   : > { %5848 = vrot.lane.b32.xlu0 %v4858_v22, %s8046_s16  ;;  %v14149_v22 = vld [vmem:[#allocation53_spill] sm:$0xff] }
 0xa65   : > { %v12357_v50 = vpop.permute.xlu1 %5594 }
 0xa66   : > { %5850 = vrot.lane.b32.xlu1 %v4859_v62, %s8046_s16  ;;  %v1057_v62 = vmul.f32 %v14149_v22, %v14148_v17  ;;  %v14165_v22 = vld [vmem:[#allocation60_spill] sm:$0xff] }
 0xa67   : > { %v12362_v26 = vpop.permute.xlu0 %5596 }
 0xa68   : > { %5852 = vrot.lane.b32.xlu0 %v4860_v1, %s8046_s16  ;;  %v14150_v1 = vld [vmem:[#allocation198_spill] sm:$0xff]  ;;  %v5953_v20 = vsel %vm5950_vm0, %v1057_v62, %v12263_v10 }
 0xa69   : > { %v12367_v38 = vpop.permute.xlu1 %5598  ;;  %v5970_v48 = vsel %vm5967_vm1, %v5953_v20, %v12337_v9  ;;  %v14157_v9 = vld [vmem:[#allocation199_spill] sm:$0xff] }
 0xa6a   : > { %5854 = vrot.lane.b32.xlu1 %v4861_v36, %s8046_s16  ;;  %v14151_v36 = vld [vmem:[#allocation70_spill] sm:$0xff] }
 0xa6b   : > { %v12372_v11 = vpop.permute.xlu0 %5600 }
 0xa6c   : > { %5856 = vrot.lane.b32.xlu0 %v4862_v52, %s8046_s16  ;;  %v1058_v52 = vmul.f32 %v14151_v36, %v14150_v1  ;;  %v14169_v36 = vld [vmem:[#allocation57_spill] sm:$0xff] }
 0xa6d   : > { %v12377_v15 = vpop.permute.xlu1 %5602 }
 0xa6e   : > { %5858 = vrot.lane.b32.xlu1 %v4863_v23, %s8046_s16  ;;  %v14152_v23 = vld [vmem:[#allocation125_spill] sm:$0xff]  ;;  %v5954_v19 = vsel %vm5950_vm0, %v1058_v52, %v12268_v4 }
 0xa6f   : > { %v12382_v8 = vpop.permute.xlu0 %5604  ;;  %v5971_v0 = vsel %vm5967_vm1, %v5954_v19, %v12342_v47  ;;  %v14161_v47 = vld [vmem:[#allocation152_spill] sm:$0xff] }
 0xa70   : > { %5860 = vrot.lane.b32.xlu0 %v4864_v58, %s8046_s16  ;;  %v14153_v58 = vld [vmem:[#allocation206_spill] sm:$0xff]  ;;  %v1061_v59 = vmul.f32 %v14162_v49, %v14161_v47  ;;  %v14181_v47 = vld [vmem:[#allocation205_spill] sm:$0xff] }
 0xa71   : > { %v12387_v12 = vpop.permute.xlu1 %5606 }
 0xa72   : > { %5862 = vrot.lane.b32.xlu1 %v4865_v31, %s8046_s16  ;;  %v5488_v31 = vmul.f32 %v14153_v58, %v14152_v23  ;;  %v14170_v23 = vld [vmem:[#allocation10_spill] sm:$0xff] }
 0xa73   : > { %v12394_v60 = vpop.permute.xlu0 %5608  ;;  %v5493_v58 = vmul.f32 %v14170_v23, %v12208_v27  ;;  %v14191_v23 = vld [vmem:[#allocation209_spill] sm:$0xff] }
 0xa74   : > { %5864 = vrot.lane.b32.xlu0 %v4866_v29, %s8046_s16 }
 0xa75   : > { %v5611_v28 = vpop.permute.xlu1 %5610 }
 0xa76   : > { %v12407_v7 = vsel %vm5967_vm1, %v5965_v34, %v5611_v28  ;;  %5866 = vrot.lane.b32.xlu1 %v4867_v39, %s8046_s16  ;;  %v5489_v39 = vmul.f32 %v14156_v32, %v12188_v25  ;;  %v14158_v28 = vld [vmem:[#allocation62_spill] sm:$0xff]  ;;  %v5955_v25 = vsel %vm5950_vm0, %v1059_v37, %v12273_v54  ;;  %v14174_v37 = vld [vmem:[#allocation23_spill] sm:$0xff] }
 0xa77   : > { %v5613_v44 = vpop.permute.xlu0 %5612  ;;  %v1060_v2 = vmul.f32 %v14158_v28, %v14157_v9  ;;  %v14175_v32 = vld [vmem:[#allocation11_spill] sm:$0xff]  ;;  %v14177_v9 = vld [vmem:[#allocation37_spill] sm:$0xff] }
 0xa78   : > { %v12418_v63 = vsel %vm5967_vm1, %v5966_v57, %v5613_v44  ;;  %5868 = vrot.lane.b32.xlu0 %v4868_v40, %s8046_s16  ;;  %v5490_v40 = vmul.f32 %v14160_v61, %v14159_v56  ;;  %v5972_v57 = vsel %vm5967_vm1, %v5955_v25, %v12347_v30  ;;  %v14164_v30 = vld [vmem:[#allocation200_spill] sm:$0xff]  ;;  %s7960_s16 = scalar_lea.vmem %s7959_s15, 4096 }
 0xa79   : > { %v5647_v13 = vpop.permute.xlu1 %5646  ;;  %v1062_v62 = vmul.f32 %v14165_v22, %v14164_v30  ;;  %v14179_v56 = vld [vmem:[#allocation112_spill] sm:$0xff]  ;;  %p7962_p2 = scmp.lt.s32.totalorder %s7960_s16, %s7954_s12 }
 0xa7a   : > { %v12429_v46 = vsel %vm5984_vm2, %v5968_v24, %v5647_v13  ;;  %5902 = vrot.lane.b32.xlu1 %v5486_v45, %s8047_s7  ;;  %v14163_v45 = vld [vmem:[#allocation111_spill] sm:$0xff]  ;;  %v5956_v24 = vsel %vm5950_vm0, %v1060_v2, %v12278_v6  ;;  %v14178_v2 = vld [vmem:[#allocation192_spill] sm:$0xff] }
 0xa7b   : > { %v5649_v21 = vpop.permute.xlu0 %5648  ;;  %v5491_v35 = vmul.f32 %v14163_v45, %v12198_v51  ;;  %v5973_v13 = vsel %vm5967_vm1, %v5956_v24, %v12352_v55  ;;  %v5957_v51 = vsel %vm5950_vm0, %v1061_v59, %v12283_v14  ;;  %v14168_v55 = vld [vmem:[#allocation156_spill] sm:$0xff]  ;;  %v5495_v61 = vmul.f32 %v14179_v56, %v14178_v2  ;;  %v14183_v59 = vld [vmem:[#allocation195_spill] sm:$0xff]  ;;  %v14184_v45 = vld [vmem:[#allocation113_spill] sm:$0xff]  ;;  %p7963_p3 = por %p7962_p2, %p7961_p1 }
 0xa7c   : > { %v12441_v43 = vsel %vm5984_vm2, %v5969_v18, %v5649_v21  ;;  %5904 = vrot.lane.b32.xlu0 %v5487_v3, %s8047_s7  ;;  %v14166_v3 = vld [vmem:[#allocation148_spill] sm:$0xff]  ;;  %v5974_v21 = vsel %vm5967_vm1, %v5957_v51, %v12357_v50  ;;  %v1063_v52 = vmul.f32 %v14169_v36, %v14168_v55  ;;  %v14185_v24 = vld [vmem:[#allocation135_spill] sm:$0xff]  ;;  %v14199_v2 = vld [vmem:[#allocation117_spill] sm:$0xff] }
 0xa7d   : > { %v5651_v29 = vpop.permute.xlu1 %5650  ;;  %v5492_v18 = vmul.f32 %v14167_v5, %v14166_v3  ;;  %v14172_v50 = vld [vmem:[#allocation208_spill] sm:$0xff]  ;;  %v14188_v5 = vld [vmem:[#allocation127_spill] sm:$0xff]  ;;  %p7964_p4 = pnand %p7963_p3, %p7957_p0 }
 0xa7e   : > { %v12453_v10 = vsel %vm5984_vm2, %v5970_v48, %v5651_v29  ;;  %5906 = vrot.lane.b32.xlu1 %v5488_v31, %s8047_s7  ;;  %v14171_v31 = vld [vmem:[#allocation133_spill] sm:$0xff]  ;;  %v1064_v33 = vmul.f32 %v14173_v41, %v14172_v50  ;;  %v5959_v27 = vsel %vm5950_vm0, %v1063_v52, %v12293_v42  ;;  %v14200_v56 = vld [vmem:[#allocation48_spill] sm:$0xff] }
 0xa7f   : > { %v5653_v34 = vpop.permute.xlu0 %5652  ;;  %v5958_v20 = vsel %vm5950_vm0, %v1062_v62, %v14171_v31  ;;  %v14186_v62 = vld [vmem:[#allocation161_spill] sm:$0xff]  ;;  %v14193_v31 = vld [vmem:[#allocation116_spill] sm:$0xff] }
 0xa80   : > { %v12465_v4 = vsel %vm5984_vm2, %v5971_v0, %v5653_v34  ;;  %5908 = vrot.lane.b32.xlu0 %v5489_v39, %s8047_s7  ;;  %v5975_v48 = vsel %vm5967_vm1, %v5958_v20, %v12362_v26  ;;  %v5494_v39 = vmul.f32 %v14175_v32, %v14174_v37  ;;  %v5976_v0 = vsel %vm5967_vm1, %v5959_v27, %v12367_v38  ;;  %v14176_v26 = vld [vmem:[#allocation159_spill] sm:$0xff]  ;;  %v14182_v38 = vld [vmem:[#allocation41_spill] sm:$0xff]  ;;  %v14195_v37 = vld [vmem:[#allocation150_spill] sm:$0xff] }
 0xa81   : > { %v5655_v44 = vpop.permute.xlu1 %5654  ;;  %v1065_v28 = vmul.f32 %v14177_v9, %v14176_v26  ;;  %v1066_v49 = vmul.f32 %v14182_v38, %v14181_v47  ;;  %v14194_v20 = vld [vmem:[#allocation145_spill] sm:$0xff]  ;;  %v14198_v26 = vld [vmem:[#allocation114_spill] sm:$0xff] }
 0xa82   : > { %v12477_v54 = vsel %vm5984_vm2, %v5972_v57, %v5655_v44  ;;  %5910 = vrot.lane.b32.xlu1 %v5490_v40, %s8047_s7  ;;  %v14180_v40 = vld [vmem:[#allocation120_spill] sm:$0xff] }
 0xa83   : > { %v5657_v17 = vpop.permute.xlu0 %5656  ;;  %v5960_v25 = vsel %vm5950_vm0, %v1064_v33, %v14180_v40 }
 0xa84   : > { %v12489_v6 = vsel %vm5984_vm2, %v5973_v13, %v5657_v17  ;;  %5912 = vrot.lane.b32.xlu0 %v5491_v35, %s8047_s7  ;;  %v5977_v57 = vsel %vm5967_vm1, %v5960_v25, %v12372_v11  ;;  %v5496_v35 = vmul.f32 %v14184_v45, %v14183_v59  ;;  %v5961_v13 = vsel %vm5950_vm0, %v1065_v28, %v14185_v24  ;;  %v14187_v11 = vld [vmem:[#allocation44_spill] sm:$0xff] }
 0xa85   : > { %v5659_v1 = vpop.permute.xlu1 %5658  ;;  %v5978_v30 = vsel %vm5967_vm1, %v5961_v13, %v12377_v15  ;;  %v1067_v3 = vmul.f32 %v14187_v11, %v14186_v62  ;;  %v14192_v15 = vld [vmem:[#allocation49_spill] sm:$0xff] }
 0xa86   : > { %v12501_v14 = vsel %vm5984_vm2, %v5974_v21, %v5659_v1  ;;  %5914 = vrot.lane.b32.xlu1 %v5492_v18, %s8047_s7  ;;  %v14189_v18 = vld [vmem:[#allocation153_spill] sm:$0xff]  ;;  %v14190_v21 = vld [vmem:[#allocation28_spill] sm:$0xff] }
 0xa87   : > { %v5661_v29 = vpop.permute.xlu0 %5660  ;;  %v5497_v51 = vmul.f32 %v14189_v18, %v14188_v5  ;;  %v5962_v1 = vsel %vm5950_vm0, %v1066_v49, %v14190_v21 }
 0xa88   : > { %v12513_v19 = vsel %vm5984_vm2, %v5975_v48, %v5661_v29  ;;  %5916 = vrot.lane.b32.xlu0 %v5493_v58, %s8047_s7  ;;  %v5979_v36 = vsel %vm5967_vm1, %v5962_v1, %v12382_v8  ;;  %v1068_v58 = vmul.f32 %v14192_v15, %v14191_v23  ;;  %v5498_v48 = vmul.f32 %v14194_v20, %v14193_v31  ;;  %v14196_v8 = vld [vmem:[#allocation25_spill] sm:$0xff] }
 0xa89   : > { %v5663_v34 = vpop.permute.xlu1 %5662  ;;  %v5963_v29 = vsel %vm5950_vm0, %v1067_v3, %v12313_v16  ;;  %v5499_v32 = vmul.f32 %v14196_v8, %v14195_v37 }
 0xa8a   : > { %v5993_v42 = vsel %vm5984_vm2, %v5976_v0, %v5663_v34  ;;  %5918 = vrot.lane.b32.xlu1 %v5494_v39, %s8047_s7  ;;  %v5980_v41 = vsel %vm5967_vm1, %v5963_v29, %v12387_v12  ;;  %v5964_v39 = vsel %vm5950_vm0, %v1068_v58, %v12318_v53  ;;  %v14197_v34 = vld [vmem:[#allocation130_spill] sm:$0xff] }
 0xa8b   : > { %v5665_v44 = vpop.permute.xlu0 %5664  ;;  %v5981_v16 = vsel %vm5967_vm1, %v5964_v39, %v12394_v60  ;;  %v5500_v9 = vmul.f32 %v14198_v26, %v14197_v34 }
 0xa8c   : > { %v5994_v17 = vsel %vm5984_vm2, %v5977_v57, %v5665_v44  ;;  %5920 = vrot.lane.b32.xlu0 %v5495_v61, %s8047_s7  ;;  %v5501_v61 = vmul.f32 %v14200_v56, %v14199_v2 }
 0xa8d   : > { %v5667_v22 = vpop.permute.xlu1 %5666 }
 0xa8e   : > { %v5995_v55 = vsel %vm5984_vm2, %v5978_v30, %v5667_v22  ;;  %5922 = vrot.lane.b32.xlu1 %v5496_v35, %s8047_s7 }
 0xa8f   : > { %v5669_v52 = vpop.permute.xlu0 %5668 }
 0xa90   : > { %v5996_v50 = vsel %vm5984_vm2, %v5979_v36, %v5669_v52  ;;  %5924 = vrot.lane.b32.xlu0 %v5497_v51, %s8047_s7 }
 0xa91   : > { %v5671_v33 = vpop.permute.xlu1 %5670 }
 0xa92   : > { %v5997_v27 = vsel %vm5984_vm2, %v5980_v41, %v5671_v33  ;;  %5926 = vrot.lane.b32.xlu1 %v5498_v48, %s8047_s7 }
 0xa93   : > { %v5673_v0 = vpop.permute.xlu0 %5672 }
 0xa94   : > { %v5998_v12 = vsel %vm5984_vm2, %v5981_v16, %v5673_v0  ;;  %5928 = vrot.lane.b32.xlu0 %v5499_v32, %s8047_s7 }
 0xa95   : > { %v5675_v28 = vpop.permute.xlu1 %5674 }
 0xa96   : > { %v5999_v53 = vsel %vm5984_vm2, %v12407_v7, %v5675_v28  ;;  %5930 = vrot.lane.b32.xlu1 %v5500_v9, %s8047_s7 }
 0xa97   : > { %v5677_v40 = vpop.permute.xlu0 %5676 }
 0xa98   : > { %v6000_v60 = vsel %vm5984_vm2, %v12418_v63, %v5677_v40  ;;  %5932 = vrot.lane.b32.xlu0 %v5501_v61, %s8047_s7 }
 0xa99   : > { %v5711_v25 = vpop.permute.xlu1 %5710 }
 0xa9a   : > { %v12580_v57 = vsel %vm6001_vm3, %v12429_v46, %v5711_v25 }
 0xa9b   : > { %v5713_v44 = vpop.permute.xlu0 %5712 }
 0xa9c   : > { %v12584_v47 = vsel %vm6001_vm3, %v12441_v43, %v5713_v44 }
 0xa9d   : > { %v5715_v7 = vpop.permute.xlu1 %5714 }
 0xa9e   : > { %v12588_v38 = vsel %vm6001_vm3, %v12453_v10, %v5715_v7 }
 0xa9f   : > { %v5717_v49 = vpop.permute.xlu0 %5716 }
 0xaa0   : > { %v12592_v63 = vsel %vm6001_vm3, %v12465_v4, %v5717_v49 }
 0xaa1   : > { %v5719_v59 = vpop.permute.xlu1 %5718 }
 0xaa2   : > { %v12596_v46 = vsel %vm6001_vm3, %v12477_v54, %v5719_v59 }
 0xaa3   : > { %v5721_v45 = vpop.permute.xlu0 %5720 }
 0xaa4   : > { %v12600_v43 = vsel %vm6001_vm3, %v12489_v6, %v5721_v45 }
 0xaa5   : > { %v5723_v35 = vpop.permute.xlu1 %5722 }
 0xaa6   : > { %v12604_v10 = vsel %vm6001_vm3, %v12501_v14, %v5723_v35  ;;  %v12666_v35 = vld [vmem:[%s12935_s3] ss:$0 sm:$0xff] }
 0xaa7   : > { %v5725_v24 = vpop.permute.xlu0 %5724 }
 0xaa8   : > { %v12608_v4 = vsel %vm6001_vm3, %v12513_v19, %v5725_v24 }
 0xaa9   : > { %v5727_v13 = vpop.permute.xlu1 %5726 }
 0xaaa   : > { %v12611_v30 = vsel %vm6001_vm3, %v5993_v42, %v5727_v13 }
 0xaab   : > { %v5729_v54 = vpop.permute.xlu0 %5728 }
 0xaac   : > { %v12614_v22 = vsel %vm6001_vm3, %v5994_v17, %v5729_v54 }
 0xaad   : > { %v5731_v6 = vpop.permute.xlu1 %5730 }
 0xaae   : > { %v12617_v62 = vsel %vm6001_vm3, %v5995_v55, %v5731_v6 }
 0xaaf   : > { %v5733_v11 = vpop.permute.xlu0 %5732 }
 0xab0   : > { %v6013_v14 = vsel %vm6001_vm3, %v5996_v50, %v5733_v11 }
 0xab1   : > { %v5735_v3 = vpop.permute.xlu1 %5734 }
 0xab2   : > { %v6014_v5 = vsel %vm6001_vm3, %v5997_v27, %v5735_v3 }
 0xab3   : > { %v5737_v19 = vpop.permute.xlu0 %5736 }
 0xab4   : > { %v6015_v18 = vsel %vm6001_vm3, %v5998_v12, %v5737_v19 }
 0xab5   : > { %v5739_v51 = vpop.permute.xlu1 %5738 }
 0xab6   : > { %v6016_v42 = vsel %vm6001_vm3, %v5999_v53, %v5739_v51 }
 0xab7   : > { %v5741_v21 = vpop.permute.xlu0 %5740 }
 0xab8   : > { %v6017_v17 = vsel %vm6001_vm3, %v6000_v60, %v5741_v21 }
 0xab9   : > { %v5775_v1 = vpop.permute.xlu1 %5774 }
 0xaba   : > { %v6019_v45 = vsel %vm6018_vm4, %v12580_v57, %v5775_v1 }
 0xabb   : > { %v5777_v36 = vpop.permute.xlu0 %5776 }
 0xabc   : > { %v6020_v54 = vsel %vm6018_vm4, %v12584_v47, %v5777_v36 }
 0xabd   : > { %v5779_v52 = vpop.permute.xlu1 %5778 }
 0xabe   : > { %v6021_v57 = vsel %vm6018_vm4, %v12588_v38, %v5779_v52 }
 0xabf   : > { %v5781_v55 = vpop.permute.xlu0 %5780 }
 0xac1   : > { %v5783_v23 = vpop.permute.xlu1 %5782 }
 0xac3   : > { %v5785_v15 = vpop.permute.xlu0 %5784 }
 0xac5   : > { %v5787_v58 = vpop.permute.xlu1 %5786 }
 0xac7   : > { %v12624_v31 = vpop.permute.xlu0 %5788 }
 0xac9   : > { %v12626_v20 = vpop.permute.xlu1 %5790 }
 0xacb   : > { %v12628_v48 = vpop.permute.xlu0 %5792 }
 0xacd   : > { %v12630_v29 = vpop.permute.xlu1 %5794 }
 0xacf   : > { %v5797_v50 = vpop.permute.xlu0 %5796 }
 0xad0   : > { %v12633_v41 = vsel %vm6018_vm4, %v6013_v14, %v5797_v50  ;;  %v6023_v50 = vsel %vm6018_vm4, %v12596_v46, %v5783_v23  ;;  %v6027_v46 = vsel %vm6018_vm4, %v12611_v30, %v12626_v20  ;;  %v6029_v30 = vsel %vm6018_vm4, %v12617_v62, %v12630_v29 }
 0xad1   : > { %v5799_v33 = vpop.permute.xlu1 %5798 }
 0xad2   : > { %v12636_v37 = vsel %vm6018_vm4, %v6014_v5, %v5799_v33  ;;  %v6024_v33 = vsel %vm6018_vm4, %v12600_v43, %v5785_v15 }
 0xad3   : > { %v5801_v8 = vpop.permute.xlu0 %5800 }
 0xad4   : > { %v12639_v32 = vsel %vm6018_vm4, %v6015_v18, %v5801_v8 }
 0xad5   : > { %v5803_v39 = vpop.permute.xlu1 %5802 }
 0xad6   : > { %v12642_v27 = vsel %vm6018_vm4, %v6016_v42, %v5803_v39  ;;  %v6022_v42 = vsel %vm6018_vm4, %v12592_v63, %v5781_v55  ;;  %v6025_v63 = vsel %vm6018_vm4, %v12604_v10, %v5787_v58 }
 0xad7   : > { %v5805_v16 = vpop.permute.xlu0 %5804 }
 0xad8   : > { %v12645_v0 = vsel %vm6018_vm4, %v6017_v17, %v5805_v16 }
 0xad9   : > { %v5839_v34 = vpop.permute.xlu1 %5838 }
 0xada   : > { %v6036_v24 = vsel %vm6035_vm5, %v6019_v45, %v5839_v34 }
 0xadb   : > { %v5841_v26 = vpop.permute.xlu0 %5840 }
 0xadc   : > { %v6037_v11 = vsel %vm6035_vm5, %v6020_v54, %v5841_v26  ;;  %v6026_v26 = vsel %vm6018_vm4, %v12608_v4, %v12624_v31  ;;  %v6028_v4 = vsel %vm6018_vm4, %v12614_v22, %v12628_v48 }
 0xadd   : > { %v5843_v9 = vpop.permute.xlu1 %5842 }
 0xade   : > { %v6038_v19 = vsel %vm6035_vm5, %v6021_v57, %v5843_v9 }
 0xadf   : > { %v5845_v12 = vpop.permute.xlu0 %5844 }
 0xae0   : > { %v6039_v17 = vsel %vm6035_vm5, %v6022_v42, %v5845_v12 }
 0xae1   : > { %v5847_v28 = vpop.permute.xlu1 %5846 }
 0xae2   : > { %v6040_v8 = vsel %vm6035_vm5, %v6023_v50, %v5847_v28 }
 0xae3   : > { %v5849_v2 = vpop.permute.xlu0 %5848 }
 0xae4   : > { %v6041_v23 = vsel %vm6035_vm5, %v6024_v33, %v5849_v2 }
 0xae5   : > { %v5851_v56 = vpop.permute.xlu1 %5850 }
 0xae6   : > { %v6042_v12 = vsel %vm6035_vm5, %v6025_v63, %v5851_v56 }
 0xae7   : > { %v5853_v61 = vpop.permute.xlu0 %5852 }
 0xae8   : > { %v6043_v22 = vsel %vm6035_vm5, %v6026_v26, %v5853_v61 }
 0xae9   : > { %v5855_v53 = vpop.permute.xlu1 %5854 }
 0xaea   : > { %v6044_v48 = vsel %vm6035_vm5, %v6027_v46, %v5855_v53 }
 0xaeb   : > { %v12647_v40 = vpop.permute.xlu0 %5856 }
 0xaec   : > { %v6045_v29 = vsel %vm6035_vm5, %v6028_v4, %v12647_v40 }
 0xaed   : > { %v12649_v60 = vpop.permute.xlu1 %5858 }
 0xaee   : > { %v6046_v61 = vsel %vm6035_vm5, %v6029_v30, %v12649_v60 }
 0xaef   : > { %v12651_v25 = vpop.permute.xlu0 %5860 }
 0xaf0   : > { %v6047_v53 = vsel %vm6035_vm5, %v12633_v41, %v12651_v25 }
 0xaf1   : > { %v12653_v44 = vpop.permute.xlu1 %5862 }
 0xaf2   : > { %v6048_v40 = vsel %vm6035_vm5, %v12636_v37, %v12653_v44 }
 0xaf3   : > { %v12655_v7 = vpop.permute.xlu0 %5864 }
 0xaf4   : > { %v12751_v60 = vsel %vm6035_vm5, %v12639_v32, %v12655_v7 }
 0xaf5   : > { %v12657_v49 = vpop.permute.xlu1 %5866 }
 0xaf6   : > { %v12756_v41 = vsel %vm6035_vm5, %v12642_v27, %v12657_v49 }
 0xaf7   : > { %v12659_v59 = vpop.permute.xlu0 %5868 }
 0xaf9   : > { %v5903_v13 = vpop.permute.xlu1 %5902 }
 0xafa   : > { %v6053_v6 = vsel %vm6052_vm6, %v6036_v24, %v5903_v13 }
 0xafb   : > { %v12674_v14 = vadd.f32 %v12666_v35, %v6053_v6  ;;  %v5905_v3 = vpop.permute.xlu0 %5904 }
 0xafc   : > { %v6054_v5 = vsel %vm6052_vm6, %v6037_v11, %v5905_v3 }
 0xafd   : > { %v6108_v18 = vmin.f32 %v12674_v14, 0.0  ;;  %v12682_v51 = vadd.f32 %v12666_v35, %v6054_v5  ;;  %v5907_v47 = vpop.permute.xlu1 %5906  ;;  %vm6092_vm8 = vcmp.gt.f32.partialorder %v12674_v14, 0.0 }
 0xafe   : > { %v6055_v21 = vsel %vm6052_vm6, %v6038_v19, %v5907_v47  ;;  %v12767_v19 = vsel %vm6035_vm5, %v12645_v0, %v12659_v59 }
 0xaff   : > { %v6124_v1 = vmul.f32 1.442695, %v6108_v18  ;;  %v6109_v38 = vmin.f32 %v12682_v51, 0.0  ;;  %v12690_v36 = vadd.f32 %v12666_v35, %v6055_v21  ;;  %v5909_v52 = vpop.permute.xlu0 %5908  ;;  %vm6093_vm9 = vcmp.gt.f32.partialorder %v12682_v51, 0.0 }
 0xb00   : > { %v6056_v55 = vsel %vm6052_vm6, %v6039_v17, %v5909_v52 }
 0xb01   : > { %7777 = vpow2.f32 %v6124_v1  ;;  %v6126_v39 = vmul.f32 1.442695, %v6109_v38  ;;  %v6110_v16 = vmin.f32 %v12690_v36, 0.0  ;;  %v5911_v34 = vpop.permute.xlu1 %5910  ;;  %v12708_v43 = vadd.f32 %v12666_v35, %v6056_v55 }
 0xb02   : > { %v6057_v10 = vsel %vm6052_vm6, %v6040_v8, %v5911_v34  ;;  %vm6094_vm10 = vcmp.gt.f32.partialorder %v12690_v36, 0.0 }
 0xb03   : > { %7779 = vpow2.f32 %v6126_v39  ;;  %v6128_v15 = vmul.f32 1.442695, %v6110_v16  ;;  %v12713_v58 = vadd.f32 %v12666_v35, %v6057_v10  ;;  %v5913_v9 = vpop.permute.xlu0 %5912  ;;  %v6111_v31 = vmin.f32 %v12708_v43, 0.0 }
 0xb04   : > { %v6058_v20 = vsel %vm6052_vm6, %v6041_v23, %v5913_v9  ;;  %vm6095_vm11 = vcmp.gt.f32.partialorder %v12708_v43, 0.0 }
 0xb05   : > { %7781 = vpow2.f32 %v6128_v15  ;;  %v6112_v28 = vmin.f32 %v12713_v58, 0.0  ;;  %v12726_v2 = vadd.f32 %v12666_v35, %v6058_v20  ;;  %v5915_v45 = vpop.permute.xlu1 %5914  ;;  %v6130_v24 = vmul.f32 1.442695, %v6111_v31 }
 0xb06   : > { %v6059_v62 = vsel %vm6052_vm6, %v6042_v12, %v5915_v45  ;;  %vm6096_vm12 = vcmp.gt.f32.partialorder %v12713_v58, 0.0 }
 0xb07   : > { %v6132_v56 = vmul.f32 1.442695, %v6112_v28  ;;  %v6113_v13 = vmin.f32 %v12726_v2, 0.0  ;;  %v12736_v54 = vadd.f32 %v12666_v35, %v6059_v62  ;;  %v5917_v6 = vpop.permute.xlu0 %5916  ;;  %7783 = vpow2.f32 %v6130_v24 }
 0xb08   : > { %v6060_v11 = vsel %vm6052_vm6, %v6043_v22, %v5917_v6  ;;  %vm6097_vm13 = vcmp.gt.f32.partialorder %v12726_v2, 0.0 }
 0xb09   : > { %7785 = vpow2.f32 %v6132_v56  ;;  %v6134_v3 = vmul.f32 1.442695, %v6113_v13  ;;  %v6114_v57 = vmin.f32 %v12736_v54, 0.0  ;;  %v5919_v5 = vpop.permute.xlu1 %5918  ;;  %v12761_v25 = vadd.f32 %v12666_v35, %v6060_v11 }
 0xb0a   : > { %v6061_v37 = vsel %vm6052_vm6, %v6044_v48, %v5919_v5  ;;  %vm6098_vm14 = vcmp.gt.f32.partialorder %v12736_v54, 0.0 }
 0xb0b   : > { %v7778_v44 = vpop.eup %7777  ;;  %7787 = vpow2.f32 %v6134_v3  ;;  %v6136_v32 = vmul.f32 1.442695, %v6114_v57  ;;  %v12770_v7 = vadd.f32 %v12666_v35, %v6061_v37  ;;  %v5921_v27 = vpop.permute.xlu0 %5920  ;;  %v6115_v18 = vmin.f32 %v12761_v25, 0.0 }
 0xb0c   : > { %v6336_v49 = vadd.f32 -1.0, %v7778_v44  ;;  %v6062_v47 = vsel %vm6052_vm6, %v6045_v29, %v5921_v27  ;;  %vm6099_vm15 = vcmp.gt.f32.partialorder %v12761_v25, 0.0 }
 0xb0d   : > { %v7780_v42 = vpop.eup %7779  ;;  %7789 = vpow2.f32 %v6136_v32  ;;  %v6116_v0 = vmin.f32 %v12770_v7, 0.0  ;;  %v12778_v59 = vadd.f32 %v12666_v35, %v6062_v47  ;;  %v5923_v21 = vpop.permute.xlu1 %5922  ;;  %v6138_v38 = vmul.f32 1.442695, %v6115_v18 }
 0xb0e   : > { %v6172_v17 = vsel %vm6092_vm8, %v12674_v14, %v6336_v49  ;;  %v6337_v1 = vadd.f32 -1.0, %v7780_v42  ;;  %v6063_v52 = vsel %vm6052_vm6, %v6046_v61, %v5923_v21  ;;  %vm6100_vm0 = vcmp.gt.f32.partialorder %v12770_v7, 0.0 }
 0xb0f   : > { %v7782_v50 = vpop.eup %7781  ;;  %v6189_v33 = vsel %vm6188_vm7, %v6172_v17, 0.0  ;;  %v6140_v63 = vmul.f32 1.442695, %v6116_v0  ;;  %v6117_v55 = vmin.f32 %v12778_v59, 0.0  ;;  %v5925_v8 = vpop.permute.xlu0 %5924  ;;  %7791 = vpow2.f32 %v6138_v38 }
 0xb10   : > { %6205 = vst [vmem:[%s12785_s23] sm:$0xff] %v6189_v33  ;;  %v6173_v14 = vsel %vm6093_vm9, %v12682_v51, %v6337_v1  ;;  %v6338_v39 = vadd.f32 -1.0, %v7782_v50  ;;  %v12792_v16 = vadd.f32 %v12666_v35, %v6063_v52  ;;  %v6064_v46 = vsel %vm6052_vm6, %v6047_v53, %v5925_v8 }
 0xb11   : > { %v6190_v34 = vsel %vm6188_vm7, %v6173_v14, 0.0  ;;  %7793 = vpow2.f32 %v6140_v63  ;;  %v6142_v26 = vmul.f32 1.442695, %v6117_v55  ;;  %v5927_v10 = vpop.permute.xlu1 %5926  ;;  %v7784_v23 = vpop.eup %7783  ;;  %v12803_v9 = vadd.f32 %v12666_v35, %v6064_v46 }
 0xb12   : > { %6206 = vst [vmem:[%s12785_s23 + $0x8] sm:$0xff] %v6190_v34  ;;  %v6174_v15 = vsel %vm6094_vm10, %v12690_v36, %v6338_v39  ;;  %v6118_v51 = vmin.f32 %v12792_v16, 0.0  ;;  %v6339_v31 = vadd.f32 -1.0, %v7784_v23  ;;  %v6065_v20 = vsel %vm6052_vm6, %v6048_v40, %v5927_v10 }
 0xb13   : > { %v7786_v4 = vpop.eup %7785  ;;  %v6191_v30 = vsel %vm6188_vm7, %v6174_v15, 0.0  ;;  %7795 = vpow2.f32 %v6142_v26  ;;  %v5929_v12 = vpop.permute.xlu0 %5928  ;;  %v6119_v45 = vmin.f32 %v12803_v9, 0.0  ;;  %v12813_v24 = vadd.f32 %v12666_v35, %v6065_v20 }
 0xb14   : > { %6207 = vst [vmem:[%s12785_s23 + $0x10] sm:$0xff] %v6191_v30  ;;  %v6340_v36 = vadd.f32 -1.0, %v7786_v4  ;;  %v6144_v28 = vmul.f32 1.442695, %v6118_v51  ;;  %v6175_v48 = vsel %vm6095_vm11, %v12708_v43, %v6339_v31  ;;  %v6066_v62 = vsel %vm6052_vm6, %v12751_v60, %v5929_v12 }
 0xb15   : > { %v7788_v22 = vpop.eup %7787  ;;  %v5931_v29 = vpop.permute.xlu1 %5930  ;;  %v6192_v56 = vsel %vm6188_vm7, %v6175_v48, 0.0  ;;  %v6146_v53 = vmul.f32 1.442695, %v6119_v45  ;;  %v6120_v11 = vmin.f32 %v12813_v24, 0.0  ;;  %vm6101_vm1 = vcmp.gt.f32.partialorder %v12778_v59, 0.0 }
 0xb16   : > { %v6176_v13 = vsel %vm6096_vm12, %v12713_v58, %v6340_v36  ;;  %v6341_v6 = vadd.f32 -1.0, %v7788_v22  ;;  %7797 = vpow2.f32 %v6144_v28  ;;  %6208 = vst [vmem:[%s12785_s23 + $0x18] sm:$0xff] %v6192_v56  ;;  %v12828_v58 = vadd.f32 %v12666_v35, %v6066_v62 }
 0xb17   : > { %v7790_v61 = vpop.eup %7789  ;;  %v6193_v43 = vsel %vm6188_vm7, %v6176_v13, 0.0  ;;  %v5933_v40 = vpop.permute.xlu0 %5932  ;;  %v6067_v5 = vsel %vm6052_vm6, %v12756_v41, %v5931_v29  ;;  %7799 = vpow2.f32 %v6146_v53  ;;  %v6148_v37 = vmul.f32 1.442695, %v6120_v11 }
 0xb18   : > { %6209 = vst [vmem:[%s12785_s23 + $0x20] sm:$0xff] %v6193_v43  ;;  %v6177_v3 = vsel %vm6097_vm13, %v12726_v2, %v6341_v6  ;;  %v6342_v57 = vadd.f32 -1.0, %v7790_v61  ;;  %v12834_v44 = vadd.f32 %v12666_v35, %v6067_v5  ;;  %v6121_v2 = vmin.f32 %v12828_v58, 0.0 }
 0xb19   : > { %v6194_v60 = vsel %vm6188_vm7, %v6177_v3, 0.0  ;;  %v7792_v32 = vpop.eup %7791  ;;  %v6068_v49 = vsel %vm6052_vm6, %v12767_v19, %v5933_v40  ;;  %7801 = vpow2.f32 %v6148_v37  ;;  %vm6102_vm2 = vcmp.gt.f32.partialorder %v12792_v16, 0.0 }
 0xb1a   : > { %6210 = vst [vmem:[%s12785_s23 + $0x28] sm:$0xff] %v6194_v60  ;;  %v6178_v27 = vsel %vm6098_vm14, %v12736_v54, %v6342_v57  ;;  %v6343_v41 = vadd.f32 -1.0, %v7792_v32  ;;  %v6150_v0 = vmul.f32 1.442695, %v6121_v2  ;;  %v6122_v21 = vmin.f32 %v12834_v44, 0.0 }
 0xb1b   : > { %v7794_v18 = vpop.eup %7793  ;;  %v6195_v47 = vsel %vm6188_vm7, %v6178_v27, 0.0  ;;  %v6091_v54 = vadd.f32 %v12666_v35, %v6068_v49  ;;  %vm6103_vm3 = vcmp.gt.f32.partialorder %v12803_v9, 0.0  ;;  %vm6104_vm4 = vcmp.gt.f32.partialorder %v12813_v24, 0.0 }
 0xb1c   : > { %6211 = vst [vmem:[%s12785_s23 + $0x30] sm:$0xff] %v6195_v47  ;;  %v6344_v42 = vadd.f32 -1.0, %v7794_v18  ;;  %v6179_v1 = vsel %vm6099_vm15, %v12761_v25, %v6343_v41  ;;  %7803 = vpow2.f32 %v6150_v0  ;;  %v6152_v33 = vmul.f32 1.442695, %v6122_v21 }
 0xb1d   : > { %v7796_v17 = vpop.eup %7795  ;;  %v6196_v19 = vsel %vm6188_vm7, %v6179_v1, 0.0  ;;  %v6123_v63 = vmin.f32 %v6091_v54, 0.0  ;;  %vm6105_vm5 = vcmp.gt.f32.partialorder %v12828_v58, 0.0  ;;  %vm6106_vm6 = vcmp.gt.f32.partialorder %v12834_v44, 0.0 }
 0xb1e   : > { %v6180_v38 = vsel %vm6100_vm0, %v12770_v7, %v6344_v42  ;;  %v6345_v52 = vadd.f32 -1.0, %v7796_v17  ;;  %6212 = vst [vmem:[%s12785_s23 + $0x38] sm:$0xff] %v6196_v19  ;;  %7805 = vpow2.f32 %v6152_v33  ;;  %vm6107_vm8 = vcmp.gt.f32.partialorder %v6091_v54, 0.0 }
 0xb1f   : > { %v6197_v50 = vsel %vm6188_vm7, %v6180_v38, 0.0  ;;  %v6154_v14 = vmul.f32 1.442695, %v6123_v63 }
 0xb20   : > { %v7798_v35 = vpop.eup %7797  ;;  %6213 = vst [vmem:[%s12785_s23 + $0x40] sm:$0xff] %v6197_v50  ;;  %v6181_v25 = vsel %vm6101_vm1, %v12778_v59, %v6345_v52 }
 0xb21   : > { %v6198_v55 = vsel %vm6188_vm7, %v6181_v25, 0.0  ;;  %v6346_v8 = vadd.f32 -1.0, %v7798_v35  ;;  %v7800_v7 = vpop.eup %7799  ;;  %7807 = vpow2.f32 %v6154_v14 }
 0xb22   : > { %6214 = vst [vmem:[%s12785_s23 + $0x48] sm:$0xff] %v6198_v55  ;;  %v6347_v26 = vadd.f32 -1.0, %v7800_v7 }
 0xb23   : > { %v6182_v39 = vsel %vm6102_vm2, %v12792_v16, %v6346_v8  ;;  %v7802_v46 = vpop.eup %7801 }
 0xb24   : > { %v6199_v34 = vsel %vm6188_vm7, %v6182_v39, 0.0  ;;  %v6183_v59 = vsel %vm6103_vm3, %v12803_v9, %v6347_v26  ;;  %v6348_v10 = vadd.f32 -1.0, %v7802_v46 }
 0xb25   : > { %6215 = vst [vmem:[%s12785_s23 + $0x50] sm:$0xff] %v6199_v34  ;;  %v6200_v23 = vsel %vm6188_vm7, %v6183_v59, 0.0 }
 0xb26   : > { %v7804_v16 = vpop.eup %7803  ;;  %6216 = vst [vmem:[%s12785_s23 + $0x58] sm:$0xff] %v6200_v23  ;;  %v6184_v15 = vsel %vm6104_vm4, %v12813_v24, %v6348_v10 }
 0xb27   : > { %v6201_v51 = vsel %vm6188_vm7, %v6184_v15, 0.0  ;;  %v6349_v4 = vadd.f32 -1.0, %v7804_v16 }
 0xb28   : > { %6217 = vst [vmem:[%s12785_s23 + $0x60] sm:$0xff] %v6201_v51  ;;  %v7806_v30 = vpop.eup %7805 }
 0xb29   : > { %v6185_v9 = vsel %vm6105_vm5, %v12828_v58, %v6349_v4  ;;  %v6350_v20 = vadd.f32 -1.0, %v7806_v30 }
 0xb2a   : > { %v6202_v31 = vsel %vm6188_vm7, %v6185_v9, 0.0 }
 0xb2b   : > { %v7808_v12 = vpop.eup %7807  ;;  %6218 = vst [vmem:[%s12785_s23 + $0x68] sm:$0xff] %v6202_v31  ;;  %v6186_v36 = vsel %vm6106_vm6, %v12834_v44, %v6350_v20 }
 0xb2c   : > { %v6351_v28 = vadd.f32 -1.0, %v7808_v12  ;;  %v6203_v45 = vsel %vm6188_vm7, %v6186_v36, 0.0 }
 0xb2d   : > { %6219 = vst [vmem:[%s12785_s23 + $0x70] sm:$0xff] %v6203_v45 }
 0xb2e   : > { %v6187_v22 = vsel %vm6107_vm8, %v6091_v54, %v6351_v28 }
 0xb2f   : > { %v6204_v48 = vsel %vm6188_vm7, %v6187_v22, 0.0 }
 0xb30   : > { %6220 = vst [vmem:[%s12785_s23 + $0x78] sm:$0xff] %v6204_v48 }
 0xb31   : > { %7967 = shalt.err (!%p7964_p4)
}
 0xb32   : > { %s7968_s7 = scalar_lea.hbm %s12881_s13, 2048  ;;  %s7972_s26 = scalar_lea.hbm %s12937_s5, 4096 }
 0xb33   : > { %p7969_p7 = scmp.ne.s32.totalorder %s12881_s13, %s7968_s7  ;;  %p7973_p10 = scmp.lt.u32.totalorder %s12881_s13, %s12937_s5 }
 0xb34   : > { %p7974_p11 = scmp.lt.u32.totalorder %s7972_s26, %s7968_s7  ;;  %p7976_p13 = scmp.lt.u32.totalorder %s7968_s7, %s12881_s13 }
 0xb35   : > { %p7970_p8 = pnand %p7969_p7, %p8118_p5 }
 0xb36   : > { %p7975_p12 = por %p7974_p11, %p7973_p10 }
 0xb37   : > { %p7971_p9 = pneg %p7970_p8 }
 0xb38   : > { %p7977_p0 = por %p7976_p13, %p7975_p12 }
 0xb3a   : > { %p7978_p1 = pnand %p7977_p0, %p7971_p9 }
 0xb3c   : > { %7981 = shalt.err (!%p7978_p1)
}
 0xb3d   : > { %s8049_s6 = smov 128  }
 0xb3e   : > { %6871 = dma.vmem_to_hbm [thread:$0]  (%p8118_p5), %s12884_s10, 2048, %s12881_s13, %s12890_s22, %s8049_s6, %s8049_s6, %s8041_s9  }
 0xb3f PF: > { %p6877_p2 = scmp.ge.s32.totalorder %s8016_s21, 2  ;;  %s6250_s11 = sand.u32 1, %s8004_s18  }
 0xb40   : > { %s6251_s8 = scalar_lea.sflag [#allocation3], %s6250_s11 }
 0xb41   : > { %p6874_p3 = pnand %p6877_p2, %p8122_p6 }
 0xb43   : > { %7999 = dma.done.wait (!%p6874_p3), %s6251_s8, 2048  }
 0xb44   : > { %8001 = vsyncadd (!%p6874_p3), %s6251_s8, 4294965248  ;;  %p15_p4 = scmp.ge.s32.totalorder %s8105_s24, 4   ;;  %s14201_s18 = smov %s8008_s19 }
 0xb45   : > { %s14202_s19 = smov %s8012_s20  ;;  %s14203_s20 = smov %s8116_s27 }
 0xb46   : > { %s14204_s21 = smov %s8105_s24  ;;  %17 = sbr.rel (!%p15_p4) target bundleno = 3 (0x3), region = 78 }
 0xb4d   :  { %6256 = vsyncpa [#allocation3], 1 }
 0xb4e   :  { %6258 = vsyncpa [#allocation3 + $0x1], 1 }

</bundles_post_ra>
